<compile_context>
chip_gen: v7x
topology: tpu7x:2x2x1
jax: 0.10.0
libtpu: 0.0.40
codegen_flags: <defaults>
</compile_context>

<pallas_src>
import jax
import jax.numpy as jnp
from jax.experimental import pallas as pl
from jax.experimental.pallas import tpu as pltpu

TILE_B = 128  # batch tile = one full lane dim; grid axis marked "parallel"


def _cnn_kernel(x_ref, w1_ref, b1_ref, w2_ref, b2_ref,
                wf1_ref, bf1_ref, wf2_ref, bf2_ref, wf3_ref, bf3_ref,
                o_ref, p1_ref, p2_ref):
    """Whole forward pass for one 128-image batch tile, fully VMEM resident."""
    f32, bf16 = jnp.float32, jnp.bfloat16
    TB = o_ref.shape[1]

    w1 = w1_ref[...]                      # (192, 160) bf16 banded conv1 weights
    b1 = b1_ref[...]                      # (8, 1)  f32 (oc padded 6->8)
    w2 = w2_ref[...]                      # (128, 480) bf16 banded conv2 weights
    b2 = b2_ref[...]                      # (16, 1) f32

    # ---- conv1 (1->6, k5, valid) + ReLU: one MXU dot per output row. -------
    # x_ref rows are h*32 + w (W padded to 32); slab = 5 input rows, K = 160.
    def conv1_row(oh):
        slab = x_ref[pl.ds(32 * oh, 160)]                        # (160, TB) bf16
        acc = jnp.dot(w1, slab, preferred_element_type=f32)      # (192, TB)
        return jnp.maximum(acc.reshape(24, 8, TB) + b1, 0.0)     # (ow, oc, b)

    # Fused 2x2 max-pool: two conv rows -> one pooled row, stored as bf16.
    for r in range(12):
        m = jnp.maximum(conv1_row(2 * r), conv1_row(2 * r + 1))  # pool over H
        m = m.reshape(12, 2, 8, TB)
        m = jnp.maximum(m[:, 0], m[:, 1])                        # pool W -> (12,8,TB)
        p1_ref[pl.ds(96 * r, 96)] = m.reshape(96, TB).astype(bf16)

    # ---- conv2 (6->16, k5, valid) + ReLU: one MXU dot per output row. ------
    # p1 rows are h*96 + w*8 + ic (ic padded 6->8); slab = 5 rows, K = 480.
    def conv2_row(oh):
        slab = p1_ref[pl.ds(96 * oh, 480)]                       # (480, TB) bf16
        acc = jnp.dot(w2, slab, preferred_element_type=f32)      # (128, TB)
        return jnp.maximum(acc.reshape(8, 16, TB) + b2, 0.0)     # (ow, oc, b)

    for r in range(4):
        m = jnp.maximum(conv2_row(2 * r), conv2_row(2 * r + 1))  # pool over H
        m = m.reshape(4, 2, 16, TB)
        m = jnp.maximum(m[:, 0], m[:, 1])                        # (4, 16, TB)
        p2_ref[pl.ds(64 * r, 64)] = m.reshape(64, TB).astype(bf16)

    # ---- fc1 -> fc2 -> fc3: single dots, batch stays on the lane axis. -----
    h = p2_ref[...]                                              # (256, TB) bf16
    z = jnp.maximum(jnp.dot(wf1_ref[...], h, preferred_element_type=f32)
                    + bf1_ref[...], 0.0)                         # (120, TB)
    z = jnp.maximum(jnp.dot(wf2_ref[...], z.astype(bf16),
                            preferred_element_type=f32) + bf2_ref[...], 0.0)
    z = (jnp.dot(wf3_ref[...], z.astype(bf16), preferred_element_type=f32)
         + bf3_ref[...])                                         # (10, TB)
    o_ref[...] = z.astype(o_ref.dtype)


# ---------------------------------------------------------------------------
# Parameter setup / one-time repacking (outside the hot path)
# ---------------------------------------------------------------------------
def init_params(key):
    """Deterministic init mimicking PyTorch's default U(-1/sqrt(fan_in), ...)."""
    def uniform(k, shape, fan_in):
        bound = 1.0 / float(fan_in) ** 0.5
        return jax.random.uniform(k, shape, jnp.float32, -bound, bound)

    keys = jax.random.split(key, 10)
    return {
        "conv1_w": uniform(keys[0], (6, 1, 5, 5), 25),
        "conv1_b": uniform(keys[1], (6,), 25),
        "conv2_w": uniform(keys[2], (16, 6, 5, 5), 150),
        "conv2_b": uniform(keys[3], (16,), 150),
        "fc1_w": uniform(keys[4], (120, 256), 256),
        "fc1_b": uniform(keys[5], (120,), 256),
        "fc2_w": uniform(keys[6], (64, 120), 120),
        "fc2_b": uniform(keys[7], (64,), 120),
        "fc3_w": uniform(keys[8], (10, 64), 64),
        "fc3_b": uniform(keys[9], (10,), 64),
    }


def prepare_params(params):
    """One-time repack of PyTorch-layout weights into kernel-ready operands."""
    f32, bf16 = jnp.float32, jnp.bfloat16

    # conv1 -> banded (192, 160): row m = ow*8 + oc, col k = dh*32 + w.
    w1 = params["conv1_w"].reshape(6, 5, 5)                  # (oc, dh, dw)
    ow = jnp.arange(24)
    wc = jnp.arange(32)
    dw = wc[None, :] - ow[:, None]                           # (24, 32)
    valid = (dw >= 0) & (dw < 5)
    big1 = w1[:, :, jnp.clip(dw, 0, 4)]                      # (oc, dh, ow, w)
    big1 = jnp.where(valid[None, None], big1, 0.0)
    big1 = big1.transpose(2, 0, 1, 3)                        # (ow, oc, dh, w)
    big1 = jnp.pad(big1, ((0, 0), (0, 2), (0, 0), (0, 0)))   # oc 6 -> 8
    bigw1 = big1.reshape(192, 160).astype(bf16)

    # conv2 -> banded (128, 480): row m = ow*16 + oc, col k = dh*96 + w*8 + ic.
    w2 = params["conv2_w"]                                   # (oc, ic, dh, dw)
    ow = jnp.arange(8)
    wc = jnp.arange(12)
    dw = wc[None, :] - ow[:, None]                           # (8, 12)
    valid = (dw >= 0) & (dw < 5)
    big2 = w2[:, :, :, jnp.clip(dw, 0, 4)]                   # (oc, ic, dh, ow, w)
    big2 = jnp.where(valid[None, None, None], big2, 0.0)
    big2 = big2.transpose(3, 0, 2, 4, 1)                     # (ow, oc, dh, w, ic)
    big2 = jnp.pad(big2, ((0, 0), (0, 0), (0, 0), (0, 0), (0, 2)))  # ic 6 -> 8
    bigw2 = big2.reshape(128, 480).astype(bf16)

    # fc1: fold the PyTorch (c, h, w) flatten order into (h, w, c) kernel order.
    wf1 = (params["fc1_w"].reshape(120, 16, 4, 4)            # (n, c, h, w)
           .transpose(0, 2, 3, 1)                            # (n, h, w, c)
           .reshape(120, 256).astype(bf16))

    return {
        "w1": bigw1,
        "b1": jnp.pad(params["conv1_b"], (0, 2)).reshape(8, 1).astype(f32),
        "w2": bigw2,
        "b2": params["conv2_b"].reshape(16, 1).astype(f32),
        "wf1": wf1,
        "bf1": params["fc1_b"].reshape(120, 1).astype(f32),
        "wf2": params["fc2_w"].astype(bf16),                 # (64, 120), no T needed
        "bf2": params["fc2_b"].reshape(64, 1).astype(f32),
        "wf3": params["fc3_w"].astype(bf16),                 # (10, 64)
        "bf3": params["fc3_b"].reshape(10, 1).astype(f32),
    }


_WEIGHT_ORDER = ("w1", "b1", "w2", "b2", "wf1", "bf1", "wf2", "bf2", "wf3", "bf3")


def _full_spec(a):
    nd = a.ndim
    return pl.BlockSpec(a.shape, lambda i, _nd=nd: (0,) * _nd)


@jax.jit
def cnn_forward(prep, x_nchw):
    """Matches PyTorch CNN.forward.  x_nchw: (B, 1, 28, 28) -> (B, 10)."""
    B = x_nchw.shape[0]
    assert x_nchw.shape[1:] == (1, 28, 28)
    b_pad = pl.cdiv(B, TILE_B) * TILE_B

    # (B,1,28,28) -> lane-dense (896, b_pad) bf16: rows = h*32 + w (W padded
    # 28->32 so in-kernel row slabs are aligned slices), batch on lanes.
    x = x_nchw[:, 0]
    x = jnp.pad(x, ((0, 0), (0, 0), (0, 4)))                 # (B, 28, 32)
    x = x.reshape(B, 896).T                                  # (896, B)
    x = jnp.pad(x, ((0, 0), (0, b_pad - B))).astype(jnp.bfloat16)

    weights = [prep[k] for k in _WEIGHT_ORDER]
    out = pl.pallas_call(
        _cnn_kernel,
        out_shape=jax.ShapeDtypeStruct((10, b_pad), jnp.float32),
        grid=(b_pad // TILE_B,),
        in_specs=[pl.BlockSpec((896, TILE_B), lambda i: (0, i))]
                 + [_full_spec(w) for w in weights],
        out_specs=pl.BlockSpec((10, TILE_B), lambda i: (0, i)),
        scratch_shapes=[
            pltpu.VMEM((1152, TILE_B), jnp.bfloat16),   # pooled conv1 (12,12,8,B)
            pltpu.VMEM((256, TILE_B), jnp.bfloat16),    # pooled conv2 (4,4,16,B)
        ],
        compiler_params=pltpu.CompilerParams(
            dimension_semantics=("parallel",)),
    )(x, *weights)
    return out[:, :B].T                                      # (B, 10) f32


# ---------------------------------------------------------------------------
# Pure-JAX reference (mirrors the PyTorch module) for a tolerance check
# ---------------------------------------------------------------------------
def cnn_reference(params, x_nchw):
    dn = ("NCHW", "OIHW", "NCHW")
    hp = jax.lax.Precision.HIGHEST
    B = x_nchw.shape[0]
    x = jax.lax.conv_general_dilated(x_nchw, params["conv1_w"], (1, 1), "VALID",
                                     dimension_numbers=dn, precision=hp)
    x = jax.nn.relu(x + params["conv1_b"][None, :, None, None])
    x = x.reshape(B, 6, 12, 2, 12, 2).max(axis=(3, 5))
    x = jax.lax.conv_general_dilated(x, params["conv2_w"], (1, 1), "VALID",
                                     dimension_numbers=dn, precision=hp)
    x = jax.nn.relu(x + params["conv2_b"][None, :, None, None])
    x = x.reshape(B, 16, 4, 2, 4, 2).max(axis=(3, 5))
    x = x.reshape(B, -1)
    x = jax.nn.relu(x @ params["fc1_w"].T + params["fc1_b"])
    x = jax.nn.relu(x @ params["fc2_w"].T + params["fc2_b"])
    return x @ params["fc3_w"].T + params["fc3_b"]


if __name__ == "__main__":
    key = jax.random.PRNGKey(0)
    k_x, k_p = jax.random.split(key)
    # Spatial must be 28x28 / 1 channel so the 16*4*4 flatten holds.
    x = jax.random.normal(k_x, (2, 1, 28, 28), dtype=jnp.float32)
    params = init_params(k_p)
    prep = prepare_params(params)

    out = jax.block_until_ready(cnn_forward(prep, x))
    assert out.shape == (2, 10) and out.dtype == jnp.float32

    ref = jax.block_until_ready(cnn_reference(params, x))
    err = float(jnp.max(jnp.abs(out - ref)))
    assert bool(jnp.allclose(out, ref, atol=5e-2, rtol=5e-2)), (
        "max abs err %f" % err)
    print("KERNEL_OK")
</pallas_src>

<mosaic_0001>
module attributes {stable_mosaic.version = 11 : i64} {
  func.func @_cnn_kernel(%arg0: i32, %arg1: memref<896x128xbf16, #tpu.memory_space<vmem>>, %arg2: memref<192x160xbf16, #tpu.memory_space<vmem>>, %arg3: memref<8x1xf32, #tpu.memory_space<vmem>>, %arg4: memref<128x480xbf16, #tpu.memory_space<vmem>>, %arg5: memref<16x1xf32, #tpu.memory_space<vmem>>, %arg6: memref<120x256xbf16, #tpu.memory_space<vmem>>, %arg7: memref<120x1xf32, #tpu.memory_space<vmem>>, %arg8: memref<64x120xbf16, #tpu.memory_space<vmem>>, %arg9: memref<64x1xf32, #tpu.memory_space<vmem>>, %arg10: memref<10x64xbf16, #tpu.memory_space<vmem>>, %arg11: memref<10x1xf32, #tpu.memory_space<vmem>>, %arg12: memref<10x128xf32, #tpu.memory_space<vmem>>, %arg13: memref<1152x128xbf16, #tpu.memory_space<vmem>>, %arg14: memref<256x128xbf16, #tpu.memory_space<vmem>>) attributes {dimension_semantics = [#tpu.dimension_semantics<parallel>], iteration_bounds = array<i64: 1>, scalar_prefetch = 0 : i64, scratch_operands = 2 : i64, tpu.core_type = #tpu.core_type<tc>, window_params = [{transform_indices = @transform_0, window_bounds = array<i64: 896, 128>}, {pipeline_mode = #tpu.pipeline_mode<synchronous>, transform_indices = @transform_1, window_bounds = array<i64: 192, 160>}, {pipeline_mode = #tpu.pipeline_mode<synchronous>, transform_indices = @transform_2, window_bounds = array<i64: 8, 1>}, {pipeline_mode = #tpu.pipeline_mode<synchronous>, transform_indices = @transform_3, window_bounds = array<i64: 128, 480>}, {pipeline_mode = #tpu.pipeline_mode<synchronous>, transform_indices = @transform_4, window_bounds = array<i64: 16, 1>}, {pipeline_mode = #tpu.pipeline_mode<synchronous>, transform_indices = @transform_5, window_bounds = array<i64: 120, 256>}, {pipeline_mode = #tpu.pipeline_mode<synchronous>, transform_indices = @transform_6, window_bounds = array<i64: 120, 1>}, {pipeline_mode = #tpu.pipeline_mode<synchronous>, transform_indices = @transform_7, window_bounds = array<i64: 64, 120>}, {pipeline_mode = #tpu.pipeline_mode<synchronous>, transform_indices = @transform_8, window_bounds = array<i64: 64, 1>}, {pipeline_mode = #tpu.pipeline_mode<synchronous>, transform_indices = @transform_9, window_bounds = array<i64: 10, 64>}, {pipeline_mode = #tpu.pipeline_mode<synchronous>, transform_indices = @transform_10, window_bounds = array<i64: 10, 1>}, {transform_indices = @transform_11, window_bounds = array<i64: 10, 128>}]} {
    %c0 = arith.constant 0 : index
    %c0_0 = arith.constant 0 : index
    %0 = vector.load %arg2[%c0, %c0_0] : memref<192x160xbf16, #tpu.memory_space<vmem>>, vector<192x160xbf16>
    %c0_1 = arith.constant 0 : index
    %c0_2 = arith.constant 0 : index
    %1 = vector.load %arg3[%c0_1, %c0_2] : memref<8x1xf32, #tpu.memory_space<vmem>>, vector<8x1xf32>
    %c0_3 = arith.constant 0 : index
    %c0_4 = arith.constant 0 : index
    %2 = vector.load %arg4[%c0_3, %c0_4] : memref<128x480xbf16, #tpu.memory_space<vmem>>, vector<128x480xbf16>
    %c0_5 = arith.constant 0 : index
    %c0_6 = arith.constant 0 : index
    %3 = vector.load %arg5[%c0_5, %c0_6] : memref<16x1xf32, #tpu.memory_space<vmem>>, vector<16x1xf32>
    %c0_7 = arith.constant 0 : index
    %c0_8 = arith.constant 0 : index
    %4 = vector.load %arg1[%c0_7, %c0_8] : memref<896x128xbf16, #tpu.memory_space<vmem>>, vector<160x128xbf16>
    %cst = arith.constant dense<0.000000e+00> : vector<192x128xf32>
    %5 = tpu.matmul %0, %4, %cst {dimension_numbers = #tpu.dot_dimension_numbers<[1], [0], [0], [1], [0, 0, 1, 1], [], []>} : vector<192x160xbf16>, vector<160x128xbf16>, vector<192x128xf32> -> vector<192x128xf32>
    %6 = vector.shape_cast %5 : vector<192x128xf32> to vector<24x8x128xf32>
    %7 = vector.shape_cast %1 : vector<8x1xf32> to vector<1x8x1xf32>
    %8 = vector.broadcast %7 : vector<1x8x1xf32> to vector<24x8x128xf32>
    %9 = arith.addf %6, %8 : vector<24x8x128xf32>
    %cst_9 = arith.constant 0.000000e+00 : f32
    %10 = vector.broadcast %cst_9 : f32 to vector<24x8x128xf32>
    %11 = arith.maximumf %9, %10 : vector<24x8x128xf32>
    %c32 = arith.constant 32 : index
    %c0_10 = arith.constant 0 : index
    %12 = vector.load %arg1[%c32, %c0_10] : memref<896x128xbf16, #tpu.memory_space<vmem>>, vector<160x128xbf16>
    %cst_11 = arith.constant dense<0.000000e+00> : vector<192x128xf32>
    %13 = tpu.matmul %0, %12, %cst_11 {dimension_numbers = #tpu.dot_dimension_numbers<[1], [0], [0], [1], [0, 0, 1, 1], [], []>} : vector<192x160xbf16>, vector<160x128xbf16>, vector<192x128xf32> -> vector<192x128xf32>
    %14 = vector.shape_cast %13 : vector<192x128xf32> to vector<24x8x128xf32>
    %15 = vector.shape_cast %1 : vector<8x1xf32> to vector<1x8x1xf32>
    %16 = vector.broadcast %15 : vector<1x8x1xf32> to vector<24x8x128xf32>
    %17 = arith.addf %14, %16 : vector<24x8x128xf32>
    %cst_12 = arith.constant 0.000000e+00 : f32
    %18 = vector.broadcast %cst_12 : f32 to vector<24x8x128xf32>
    %19 = arith.maximumf %17, %18 : vector<24x8x128xf32>
    %20 = arith.maximumf %11, %19 : vector<24x8x128xf32>
    %21 = vector.shape_cast %20 : vector<24x8x128xf32> to vector<12x2x8x128xf32>
    %22 = vector.extract_strided_slice %21 {offsets = [0, 0, 0, 0], sizes = [12, 1, 8, 128], strides = [1, 1, 1, 1]} : vector<12x2x8x128xf32> to vector<12x1x8x128xf32>
    %23 = vector.shape_cast %22 : vector<12x1x8x128xf32> to vector<12x8x128xf32>
    %24 = vector.extract_strided_slice %21 {offsets = [0, 1, 0, 0], sizes = [12, 1, 8, 128], strides = [1, 1, 1, 1]} : vector<12x2x8x128xf32> to vector<12x1x8x128xf32>
    %25 = vector.shape_cast %24 : vector<12x1x8x128xf32> to vector<12x8x128xf32>
    %26 = arith.maximumf %23, %25 : vector<12x8x128xf32>
    %27 = vector.shape_cast %26 : vector<12x8x128xf32> to vector<96x128xf32>
    %28 = arith.truncf %27 : vector<96x128xf32> to vector<96x128xbf16>
    %c0_13 = arith.constant 0 : index
    %c0_14 = arith.constant 0 : index
    %29 = vector.load %arg13[%c0_13, %c0_14] : memref<1152x128xbf16, #tpu.memory_space<vmem>>, vector<96x128xbf16>
    tpu.vector_store %arg13[%c0_13, %c0_14], %28 {strides = array<i32>} : memref<1152x128xbf16, #tpu.memory_space<vmem>>, vector<96x128xbf16>,
    %c64 = arith.constant 64 : index
    %c0_15 = arith.constant 0 : index
    %30 = vector.load %arg1[%c64, %c0_15] : memref<896x128xbf16, #tpu.memory_space<vmem>>, vector<160x128xbf16>
    %cst_16 = arith.constant dense<0.000000e+00> : vector<192x128xf32>
    %31 = tpu.matmul %0, %30, %cst_16 {dimension_numbers = #tpu.dot_dimension_numbers<[1], [0], [0], [1], [0, 0, 1, 1], [], []>} : vector<192x160xbf16>, vector<160x128xbf16>, vector<192x128xf32> -> vector<192x128xf32>
    %32 = vector.shape_cast %31 : vector<192x128xf32> to vector<24x8x128xf32>
    %33 = vector.shape_cast %1 : vector<8x1xf32> to vector<1x8x1xf32>
    %34 = vector.broadcast %33 : vector<1x8x1xf32> to vector<24x8x128xf32>
    %35 = arith.addf %32, %34 : vector<24x8x128xf32>
    %cst_17 = arith.constant 0.000000e+00 : f32
    %36 = vector.broadcast %cst_17 : f32 to vector<24x8x128xf32>
    %37 = arith.maximumf %35, %36 : vector<24x8x128xf32>
    %c96 = arith.constant 96 : index
    %c0_18 = arith.constant 0 : index
    %38 = vector.load %arg1[%c96, %c0_18] : memref<896x128xbf16, #tpu.memory_space<vmem>>, vector<160x128xbf16>
    %cst_19 = arith.constant dense<0.000000e+00> : vector<192x128xf32>
    %39 = tpu.matmul %0, %38, %cst_19 {dimension_numbers = #tpu.dot_dimension_numbers<[1], [0], [0], [1], [0, 0, 1, 1], [], []>} : vector<192x160xbf16>, vector<160x128xbf16>, vector<192x128xf32> -> vector<192x128xf32>
    %40 = vector.shape_cast %39 : vector<192x128xf32> to vector<24x8x128xf32>
    %41 = vector.shape_cast %1 : vector<8x1xf32> to vector<1x8x1xf32>
    %42 = vector.broadcast %41 : vector<1x8x1xf32> to vector<24x8x128xf32>
    %43 = arith.addf %40, %42 : vector<24x8x128xf32>
    %cst_20 = arith.constant 0.000000e+00 : f32
    %44 = vector.broadcast %cst_20 : f32 to vector<24x8x128xf32>
    %45 = arith.maximumf %43, %44 : vector<24x8x128xf32>
    %46 = arith.maximumf %37, %45 : vector<24x8x128xf32>
    %47 = vector.shape_cast %46 : vector<24x8x128xf32> to vector<12x2x8x128xf32>
    %48 = vector.extract_strided_slice %47 {offsets = [0, 0, 0, 0], sizes = [12, 1, 8, 128], strides = [1, 1, 1, 1]} : vector<12x2x8x128xf32> to vector<12x1x8x128xf32>
    %49 = vector.shape_cast %48 : vector<12x1x8x128xf32> to vector<12x8x128xf32>
    %50 = vector.extract_strided_slice %47 {offsets = [0, 1, 0, 0], sizes = [12, 1, 8, 128], strides = [1, 1, 1, 1]} : vector<12x2x8x128xf32> to vector<12x1x8x128xf32>
    %51 = vector.shape_cast %50 : vector<12x1x8x128xf32> to vector<12x8x128xf32>
    %52 = arith.maximumf %49, %51 : vector<12x8x128xf32>
    %53 = vector.shape_cast %52 : vector<12x8x128xf32> to vector<96x128xf32>
    %54 = arith.truncf %53 : vector<96x128xf32> to vector<96x128xbf16>
    %c96_21 = arith.constant 96 : index
    %c0_22 = arith.constant 0 : index
    %55 = vector.load %arg13[%c96_21, %c0_22] : memref<1152x128xbf16, #tpu.memory_space<vmem>>, vector<96x128xbf16>
    tpu.vector_store %arg13[%c96_21, %c0_22], %54 {strides = array<i32>} : memref<1152x128xbf16, #tpu.memory_space<vmem>>, vector<96x128xbf16>,
    %c128 = arith.constant 128 : index
    %c0_23 = arith.constant 0 : index
    %56 = vector.load %arg1[%c128, %c0_23] : memref<896x128xbf16, #tpu.memory_space<vmem>>, vector<160x128xbf16>
    %cst_24 = arith.constant dense<0.000000e+00> : vector<192x128xf32>
    %57 = tpu.matmul %0, %56, %cst_24 {dimension_numbers = #tpu.dot_dimension_numbers<[1], [0], [0], [1], [0, 0, 1, 1], [], []>} : vector<192x160xbf16>, vector<160x128xbf16>, vector<192x128xf32> -> vector<192x128xf32>
    %58 = vector.shape_cast %57 : vector<192x128xf32> to vector<24x8x128xf32>
    %59 = vector.shape_cast %1 : vector<8x1xf32> to vector<1x8x1xf32>
    %60 = vector.broadcast %59 : vector<1x8x1xf32> to vector<24x8x128xf32>
    %61 = arith.addf %58, %60 : vector<24x8x128xf32>
    %cst_25 = arith.constant 0.000000e+00 : f32
    %62 = vector.broadcast %cst_25 : f32 to vector<24x8x128xf32>
    %63 = arith.maximumf %61, %62 : vector<24x8x128xf32>
    %c160 = arith.constant 160 : index
    %c0_26 = arith.constant 0 : index
    %64 = vector.load %arg1[%c160, %c0_26] : memref<896x128xbf16, #tpu.memory_space<vmem>>, vector<160x128xbf16>
    %cst_27 = arith.constant dense<0.000000e+00> : vector<192x128xf32>
    %65 = tpu.matmul %0, %64, %cst_27 {dimension_numbers = #tpu.dot_dimension_numbers<[1], [0], [0], [1], [0, 0, 1, 1], [], []>} : vector<192x160xbf16>, vector<160x128xbf16>, vector<192x128xf32> -> vector<192x128xf32>
    %66 = vector.shape_cast %65 : vector<192x128xf32> to vector<24x8x128xf32>
    %67 = vector.shape_cast %1 : vector<8x1xf32> to vector<1x8x1xf32>
    %68 = vector.broadcast %67 : vector<1x8x1xf32> to vector<24x8x128xf32>
    %69 = arith.addf %66, %68 : vector<24x8x128xf32>
    %cst_28 = arith.constant 0.000000e+00 : f32
    %70 = vector.broadcast %cst_28 : f32 to vector<24x8x128xf32>
    %71 = arith.maximumf %69, %70 : vector<24x8x128xf32>
    %72 = arith.maximumf %63, %71 : vector<24x8x128xf32>
    %73 = vector.shape_cast %72 : vector<24x8x128xf32> to vector<12x2x8x128xf32>
    %74 = vector.extract_strided_slice %73 {offsets = [0, 0, 0, 0], sizes = [12, 1, 8, 128], strides = [1, 1, 1, 1]} : vector<12x2x8x128xf32> to vector<12x1x8x128xf32>
    %75 = vector.shape_cast %74 : vector<12x1x8x128xf32> to vector<12x8x128xf32>
    %76 = vector.extract_strided_slice %73 {offsets = [0, 1, 0, 0], sizes = [12, 1, 8, 128], strides = [1, 1, 1, 1]} : vector<12x2x8x128xf32> to vector<12x1x8x128xf32>
    %77 = vector.shape_cast %76 : vector<12x1x8x128xf32> to vector<12x8x128xf32>
    %78 = arith.maximumf %75, %77 : vector<12x8x128xf32>
    %79 = vector.shape_cast %78 : vector<12x8x128xf32> to vector<96x128xf32>
    %80 = arith.truncf %79 : vector<96x128xf32> to vector<96x128xbf16>
    %c192 = arith.constant 192 : index
    %c0_29 = arith.constant 0 : index
    %81 = vector.load %arg13[%c192, %c0_29] : memref<1152x128xbf16, #tpu.memory_space<vmem>>, vector<96x128xbf16>
    tpu.vector_store %arg13[%c192, %c0_29], %80 {strides = array<i32>} : memref<1152x128xbf16, #tpu.memory_space<vmem>>, vector<96x128xbf16>,
    %c192_30 = arith.constant 192 : index
    %c0_31 = arith.constant 0 : index
    %82 = vector.load %arg1[%c192_30, %c0_31] : memref<896x128xbf16, #tpu.memory_space<vmem>>, vector<160x128xbf16>
    %cst_32 = arith.constant dense<0.000000e+00> : vector<192x128xf32>
    %83 = tpu.matmul %0, %82, %cst_32 {dimension_numbers = #tpu.dot_dimension_numbers<[1], [0], [0], [1], [0, 0, 1, 1], [], []>} : vector<192x160xbf16>, vector<160x128xbf16>, vector<192x128xf32> -> vector<192x128xf32>
    %84 = vector.shape_cast %83 : vector<192x128xf32> to vector<24x8x128xf32>
    %85 = vector.shape_cast %1 : vector<8x1xf32> to vector<1x8x1xf32>
    %86 = vector.broadcast %85 : vector<1x8x1xf32> to vector<24x8x128xf32>
    %87 = arith.addf %84, %86 : vector<24x8x128xf32>
    %cst_33 = arith.constant 0.000000e+00 : f32
    %88 = vector.broadcast %cst_33 : f32 to vector<24x8x128xf32>
    %89 = arith.maximumf %87, %88 : vector<24x8x128xf32>
    %c224 = arith.constant 224 : index
    %c0_34 = arith.constant 0 : index
    %90 = vector.load %arg1[%c224, %c0_34] : memref<896x128xbf16, #tpu.memory_space<vmem>>, vector<160x128xbf16>
    %cst_35 = arith.constant dense<0.000000e+00> : vector<192x128xf32>
    %91 = tpu.matmul %0, %90, %cst_35 {dimension_numbers = #tpu.dot_dimension_numbers<[1], [0], [0], [1], [0, 0, 1, 1], [], []>} : vector<192x160xbf16>, vector<160x128xbf16>, vector<192x128xf32> -> vector<192x128xf32>
    %92 = vector.shape_cast %91 : vector<192x128xf32> to vector<24x8x128xf32>
    %93 = vector.shape_cast %1 : vector<8x1xf32> to vector<1x8x1xf32>
    %94 = vector.broadcast %93 : vector<1x8x1xf32> to vector<24x8x128xf32>
    %95 = arith.addf %92, %94 : vector<24x8x128xf32>
    %cst_36 = arith.constant 0.000000e+00 : f32
    %96 = vector.broadcast %cst_36 : f32 to vector<24x8x128xf32>
    %97 = arith.maximumf %95, %96 : vector<24x8x128xf32>
    %98 = arith.maximumf %89, %97 : vector<24x8x128xf32>
    %99 = vector.shape_cast %98 : vector<24x8x128xf32> to vector<12x2x8x128xf32>
    %100 = vector.extract_strided_slice %99 {offsets = [0, 0, 0, 0], sizes = [12, 1, 8, 128], strides = [1, 1, 1, 1]} : vector<12x2x8x128xf32> to vector<12x1x8x128xf32>
    %101 = vector.shape_cast %100 : vector<12x1x8x128xf32> to vector<12x8x128xf32>
    %102 = vector.extract_strided_slice %99 {offsets = [0, 1, 0, 0], sizes = [12, 1, 8, 128], strides = [1, 1, 1, 1]} : vector<12x2x8x128xf32> to vector<12x1x8x128xf32>
    %103 = vector.shape_cast %102 : vector<12x1x8x128xf32> to vector<12x8x128xf32>
    %104 = arith.maximumf %101, %103 : vector<12x8x128xf32>
    %105 = vector.shape_cast %104 : vector<12x8x128xf32> to vector<96x128xf32>
    %106 = arith.truncf %105 : vector<96x128xf32> to vector<96x128xbf16>
    %c288 = arith.constant 288 : index
    %c0_37 = arith.constant 0 : index
    %107 = vector.load %arg13[%c288, %c0_37] : memref<1152x128xbf16, #tpu.memory_space<vmem>>, vector<96x128xbf16>
    tpu.vector_store %arg13[%c288, %c0_37], %106 {strides = array<i32>} : memref<1152x128xbf16, #tpu.memory_space<vmem>>, vector<96x128xbf16>,
    %c256 = arith.constant 256 : index
    %c0_38 = arith.constant 0 : index
    %108 = vector.load %arg1[%c256, %c0_38] : memref<896x128xbf16, #tpu.memory_space<vmem>>, vector<160x128xbf16>
    %cst_39 = arith.constant dense<0.000000e+00> : vector<192x128xf32>
    %109 = tpu.matmul %0, %108, %cst_39 {dimension_numbers = #tpu.dot_dimension_numbers<[1], [0], [0], [1], [0, 0, 1, 1], [], []>} : vector<192x160xbf16>, vector<160x128xbf16>, vector<192x128xf32> -> vector<192x128xf32>
    %110 = vector.shape_cast %109 : vector<192x128xf32> to vector<24x8x128xf32>
    %111 = vector.shape_cast %1 : vector<8x1xf32> to vector<1x8x1xf32>
    %112 = vector.broadcast %111 : vector<1x8x1xf32> to vector<24x8x128xf32>
    %113 = arith.addf %110, %112 : vector<24x8x128xf32>
    %cst_40 = arith.constant 0.000000e+00 : f32
    %114 = vector.broadcast %cst_40 : f32 to vector<24x8x128xf32>
    %115 = arith.maximumf %113, %114 : vector<24x8x128xf32>
    %c288_41 = arith.constant 288 : index
    %c0_42 = arith.constant 0 : index
    %116 = vector.load %arg1[%c288_41, %c0_42] : memref<896x128xbf16, #tpu.memory_space<vmem>>, vector<160x128xbf16>
    %cst_43 = arith.constant dense<0.000000e+00> : vector<192x128xf32>
    %117 = tpu.matmul %0, %116, %cst_43 {dimension_numbers = #tpu.dot_dimension_numbers<[1], [0], [0], [1], [0, 0, 1, 1], [], []>} : vector<192x160xbf16>, vector<160x128xbf16>, vector<192x128xf32> -> vector<192x128xf32>
    %118 = vector.shape_cast %117 : vector<192x128xf32> to vector<24x8x128xf32>
    %119 = vector.shape_cast %1 : vector<8x1xf32> to vector<1x8x1xf32>
    %120 = vector.broadcast %119 : vector<1x8x1xf32> to vector<24x8x128xf32>
    %121 = arith.addf %118, %120 : vector<24x8x128xf32>
    %cst_44 = arith.constant 0.000000e+00 : f32
    %122 = vector.broadcast %cst_44 : f32 to vector<24x8x128xf32>
    %123 = arith.maximumf %121, %122 : vector<24x8x128xf32>
    %124 = arith.maximumf %115, %123 : vector<24x8x128xf32>
    %125 = vector.shape_cast %124 : vector<24x8x128xf32> to vector<12x2x8x128xf32>
    %126 = vector.extract_strided_slice %125 {offsets = [0, 0, 0, 0], sizes = [12, 1, 8, 128], strides = [1, 1, 1, 1]} : vector<12x2x8x128xf32> to vector<12x1x8x128xf32>
    %127 = vector.shape_cast %126 : vector<12x1x8x128xf32> to vector<12x8x128xf32>
    %128 = vector.extract_strided_slice %125 {offsets = [0, 1, 0, 0], sizes = [12, 1, 8, 128], strides = [1, 1, 1, 1]} : vector<12x2x8x128xf32> to vector<12x1x8x128xf32>
    %129 = vector.shape_cast %128 : vector<12x1x8x128xf32> to vector<12x8x128xf32>
    %130 = arith.maximumf %127, %129 : vector<12x8x128xf32>
    %131 = vector.shape_cast %130 : vector<12x8x128xf32> to vector<96x128xf32>
    %132 = arith.truncf %131 : vector<96x128xf32> to vector<96x128xbf16>
    %c384 = arith.constant 384 : index
    %c0_45 = arith.constant 0 : index
    %133 = vector.load %arg13[%c384, %c0_45] : memref<1152x128xbf16, #tpu.memory_space<vmem>>, vector<96x128xbf16>
    tpu.vector_store %arg13[%c384, %c0_45], %132 {strides = array<i32>} : memref<1152x128xbf16, #tpu.memory_space<vmem>>, vector<96x128xbf16>,
    %c320 = arith.constant 320 : index
    %c0_46 = arith.constant 0 : index
    %134 = vector.load %arg1[%c320, %c0_46] : memref<896x128xbf16, #tpu.memory_space<vmem>>, vector<160x128xbf16>
    %cst_47 = arith.constant dense<0.000000e+00> : vector<192x128xf32>
    %135 = tpu.matmul %0, %134, %cst_47 {dimension_numbers = #tpu.dot_dimension_numbers<[1], [0], [0], [1], [0, 0, 1, 1], [], []>} : vector<192x160xbf16>, vector<160x128xbf16>, vector<192x128xf32> -> vector<192x128xf32>
    %136 = vector.shape_cast %135 : vector<192x128xf32> to vector<24x8x128xf32>
    %137 = vector.shape_cast %1 : vector<8x1xf32> to vector<1x8x1xf32>
    %138 = vector.broadcast %137 : vector<1x8x1xf32> to vector<24x8x128xf32>
    %139 = arith.addf %136, %138 : vector<24x8x128xf32>
    %cst_48 = arith.constant 0.000000e+00 : f32
    %140 = vector.broadcast %cst_48 : f32 to vector<24x8x128xf32>
    %141 = arith.maximumf %139, %140 : vector<24x8x128xf32>
    %c352 = arith.constant 352 : index
    %c0_49 = arith.constant 0 : index
    %142 = vector.load %arg1[%c352, %c0_49] : memref<896x128xbf16, #tpu.memory_space<vmem>>, vector<160x128xbf16>
    %cst_50 = arith.constant dense<0.000000e+00> : vector<192x128xf32>
    %143 = tpu.matmul %0, %142, %cst_50 {dimension_numbers = #tpu.dot_dimension_numbers<[1], [0], [0], [1], [0, 0, 1, 1], [], []>} : vector<192x160xbf16>, vector<160x128xbf16>, vector<192x128xf32> -> vector<192x128xf32>
    %144 = vector.shape_cast %143 : vector<192x128xf32> to vector<24x8x128xf32>
    %145 = vector.shape_cast %1 : vector<8x1xf32> to vector<1x8x1xf32>
    %146 = vector.broadcast %145 : vector<1x8x1xf32> to vector<24x8x128xf32>
    %147 = arith.addf %144, %146 : vector<24x8x128xf32>
    %cst_51 = arith.constant 0.000000e+00 : f32
    %148 = vector.broadcast %cst_51 : f32 to vector<24x8x128xf32>
    %149 = arith.maximumf %147, %148 : vector<24x8x128xf32>
    %150 = arith.maximumf %141, %149 : vector<24x8x128xf32>
    %151 = vector.shape_cast %150 : vector<24x8x128xf32> to vector<12x2x8x128xf32>
    %152 = vector.extract_strided_slice %151 {offsets = [0, 0, 0, 0], sizes = [12, 1, 8, 128], strides = [1, 1, 1, 1]} : vector<12x2x8x128xf32> to vector<12x1x8x128xf32>
    %153 = vector.shape_cast %152 : vector<12x1x8x128xf32> to vector<12x8x128xf32>
    %154 = vector.extract_strided_slice %151 {offsets = [0, 1, 0, 0], sizes = [12, 1, 8, 128], strides = [1, 1, 1, 1]} : vector<12x2x8x128xf32> to vector<12x1x8x128xf32>
    %155 = vector.shape_cast %154 : vector<12x1x8x128xf32> to vector<12x8x128xf32>
    %156 = arith.maximumf %153, %155 : vector<12x8x128xf32>
    %157 = vector.shape_cast %156 : vector<12x8x128xf32> to vector<96x128xf32>
    %158 = arith.truncf %157 : vector<96x128xf32> to vector<96x128xbf16>
    %c480 = arith.constant 480 : index
    %c0_52 = arith.constant 0 : index
    %159 = vector.load %arg13[%c480, %c0_52] : memref<1152x128xbf16, #tpu.memory_space<vmem>>, vector<96x128xbf16>
    tpu.vector_store %arg13[%c480, %c0_52], %158 {strides = array<i32>} : memref<1152x128xbf16, #tpu.memory_space<vmem>>, vector<96x128xbf16>,
    %c384_53 = arith.constant 384 : index
    %c0_54 = arith.constant 0 : index
    %160 = vector.load %arg1[%c384_53, %c0_54] : memref<896x128xbf16, #tpu.memory_space<vmem>>, vector<160x128xbf16>
    %cst_55 = arith.constant dense<0.000000e+00> : vector<192x128xf32>
    %161 = tpu.matmul %0, %160, %cst_55 {dimension_numbers = #tpu.dot_dimension_numbers<[1], [0], [0], [1], [0, 0, 1, 1], [], []>} : vector<192x160xbf16>, vector<160x128xbf16>, vector<192x128xf32> -> vector<192x128xf32>
    %162 = vector.shape_cast %161 : vector<192x128xf32> to vector<24x8x128xf32>
    %163 = vector.shape_cast %1 : vector<8x1xf32> to vector<1x8x1xf32>
    %164 = vector.broadcast %163 : vector<1x8x1xf32> to vector<24x8x128xf32>
    %165 = arith.addf %162, %164 : vector<24x8x128xf32>
    %cst_56 = arith.constant 0.000000e+00 : f32
    %166 = vector.broadcast %cst_56 : f32 to vector<24x8x128xf32>
    %167 = arith.maximumf %165, %166 : vector<24x8x128xf32>
    %c416 = arith.constant 416 : index
    %c0_57 = arith.constant 0 : index
    %168 = vector.load %arg1[%c416, %c0_57] : memref<896x128xbf16, #tpu.memory_space<vmem>>, vector<160x128xbf16>
    %cst_58 = arith.constant dense<0.000000e+00> : vector<192x128xf32>
    %169 = tpu.matmul %0, %168, %cst_58 {dimension_numbers = #tpu.dot_dimension_numbers<[1], [0], [0], [1], [0, 0, 1, 1], [], []>} : vector<192x160xbf16>, vector<160x128xbf16>, vector<192x128xf32> -> vector<192x128xf32>
    %170 = vector.shape_cast %169 : vector<192x128xf32> to vector<24x8x128xf32>
    %171 = vector.shape_cast %1 : vector<8x1xf32> to vector<1x8x1xf32>
    %172 = vector.broadcast %171 : vector<1x8x1xf32> to vector<24x8x128xf32>
    %173 = arith.addf %170, %172 : vector<24x8x128xf32>
    %cst_59 = arith.constant 0.000000e+00 : f32
    %174 = vector.broadcast %cst_59 : f32 to vector<24x8x128xf32>
    %175 = arith.maximumf %173, %174 : vector<24x8x128xf32>
    %176 = arith.maximumf %167, %175 : vector<24x8x128xf32>
    %177 = vector.shape_cast %176 : vector<24x8x128xf32> to vector<12x2x8x128xf32>
    %178 = vector.extract_strided_slice %177 {offsets = [0, 0, 0, 0], sizes = [12, 1, 8, 128], strides = [1, 1, 1, 1]} : vector<12x2x8x128xf32> to vector<12x1x8x128xf32>
    %179 = vector.shape_cast %178 : vector<12x1x8x128xf32> to vector<12x8x128xf32>
    %180 = vector.extract_strided_slice %177 {offsets = [0, 1, 0, 0], sizes = [12, 1, 8, 128], strides = [1, 1, 1, 1]} : vector<12x2x8x128xf32> to vector<12x1x8x128xf32>
    %181 = vector.shape_cast %180 : vector<12x1x8x128xf32> to vector<12x8x128xf32>
    %182 = arith.maximumf %179, %181 : vector<12x8x128xf32>
    %183 = vector.shape_cast %182 : vector<12x8x128xf32> to vector<96x128xf32>
    %184 = arith.truncf %183 : vector<96x128xf32> to vector<96x128xbf16>
    %c576 = arith.constant 576 : index
    %c0_60 = arith.constant 0 : index
    %185 = vector.load %arg13[%c576, %c0_60] : memref<1152x128xbf16, #tpu.memory_space<vmem>>, vector<96x128xbf16>
    tpu.vector_store %arg13[%c576, %c0_60], %184 {strides = array<i32>} : memref<1152x128xbf16, #tpu.memory_space<vmem>>, vector<96x128xbf16>,
    %c448 = arith.constant 448 : index
    %c0_61 = arith.constant 0 : index
    %186 = vector.load %arg1[%c448, %c0_61] : memref<896x128xbf16, #tpu.memory_space<vmem>>, vector<160x128xbf16>
    %cst_62 = arith.constant dense<0.000000e+00> : vector<192x128xf32>
    %187 = tpu.matmul %0, %186, %cst_62 {dimension_numbers = #tpu.dot_dimension_numbers<[1], [0], [0], [1], [0, 0, 1, 1], [], []>} : vector<192x160xbf16>, vector<160x128xbf16>, vector<192x128xf32> -> vector<192x128xf32>
    %188 = vector.shape_cast %187 : vector<192x128xf32> to vector<24x8x128xf32>
    %189 = vector.shape_cast %1 : vector<8x1xf32> to vector<1x8x1xf32>
    %190 = vector.broadcast %189 : vector<1x8x1xf32> to vector<24x8x128xf32>
    %191 = arith.addf %188, %190 : vector<24x8x128xf32>
    %cst_63 = arith.constant 0.000000e+00 : f32
    %192 = vector.broadcast %cst_63 : f32 to vector<24x8x128xf32>
    %193 = arith.maximumf %191, %192 : vector<24x8x128xf32>
    %c480_64 = arith.constant 480 : index
    %c0_65 = arith.constant 0 : index
    %194 = vector.load %arg1[%c480_64, %c0_65] : memref<896x128xbf16, #tpu.memory_space<vmem>>, vector<160x128xbf16>
    %cst_66 = arith.constant dense<0.000000e+00> : vector<192x128xf32>
    %195 = tpu.matmul %0, %194, %cst_66 {dimension_numbers = #tpu.dot_dimension_numbers<[1], [0], [0], [1], [0, 0, 1, 1], [], []>} : vector<192x160xbf16>, vector<160x128xbf16>, vector<192x128xf32> -> vector<192x128xf32>
    %196 = vector.shape_cast %195 : vector<192x128xf32> to vector<24x8x128xf32>
    %197 = vector.shape_cast %1 : vector<8x1xf32> to vector<1x8x1xf32>
    %198 = vector.broadcast %197 : vector<1x8x1xf32> to vector<24x8x128xf32>
    %199 = arith.addf %196, %198 : vector<24x8x128xf32>
    %cst_67 = arith.constant 0.000000e+00 : f32
    %200 = vector.broadcast %cst_67 : f32 to vector<24x8x128xf32>
    %201 = arith.maximumf %199, %200 : vector<24x8x128xf32>
    %202 = arith.maximumf %193, %201 : vector<24x8x128xf32>
    %203 = vector.shape_cast %202 : vector<24x8x128xf32> to vector<12x2x8x128xf32>
    %204 = vector.extract_strided_slice %203 {offsets = [0, 0, 0, 0], sizes = [12, 1, 8, 128], strides = [1, 1, 1, 1]} : vector<12x2x8x128xf32> to vector<12x1x8x128xf32>
    %205 = vector.shape_cast %204 : vector<12x1x8x128xf32> to vector<12x8x128xf32>
    %206 = vector.extract_strided_slice %203 {offsets = [0, 1, 0, 0], sizes = [12, 1, 8, 128], strides = [1, 1, 1, 1]} : vector<12x2x8x128xf32> to vector<12x1x8x128xf32>
    %207 = vector.shape_cast %206 : vector<12x1x8x128xf32> to vector<12x8x128xf32>
    %208 = arith.maximumf %205, %207 : vector<12x8x128xf32>
    %209 = vector.shape_cast %208 : vector<12x8x128xf32> to vector<96x128xf32>
    %210 = arith.truncf %209 : vector<96x128xf32> to vector<96x128xbf16>
    %c672 = arith.constant 672 : index
    %c0_68 = arith.constant 0 : index
    %211 = vector.load %arg13[%c672, %c0_68] : memref<1152x128xbf16, #tpu.memory_space<vmem>>, vector<96x128xbf16>
    tpu.vector_store %arg13[%c672, %c0_68], %210 {strides = array<i32>} : memref<1152x128xbf16, #tpu.memory_space<vmem>>, vector<96x128xbf16>,
    %c512 = arith.constant 512 : index
    %c0_69 = arith.constant 0 : index
    %212 = vector.load %arg1[%c512, %c0_69] : memref<896x128xbf16, #tpu.memory_space<vmem>>, vector<160x128xbf16>
    %cst_70 = arith.constant dense<0.000000e+00> : vector<192x128xf32>
    %213 = tpu.matmul %0, %212, %cst_70 {dimension_numbers = #tpu.dot_dimension_numbers<[1], [0], [0], [1], [0, 0, 1, 1], [], []>} : vector<192x160xbf16>, vector<160x128xbf16>, vector<192x128xf32> -> vector<192x128xf32>
    %214 = vector.shape_cast %213 : vector<192x128xf32> to vector<24x8x128xf32>
    %215 = vector.shape_cast %1 : vector<8x1xf32> to vector<1x8x1xf32>
    %216 = vector.broadcast %215 : vector<1x8x1xf32> to vector<24x8x128xf32>
    %217 = arith.addf %214, %216 : vector<24x8x128xf32>
    %cst_71 = arith.constant 0.000000e+00 : f32
    %218 = vector.broadcast %cst_71 : f32 to vector<24x8x128xf32>
    %219 = arith.maximumf %217, %218 : vector<24x8x128xf32>
    %c544 = arith.constant 544 : index
    %c0_72 = arith.constant 0 : index
    %220 = vector.load %arg1[%c544, %c0_72] : memref<896x128xbf16, #tpu.memory_space<vmem>>, vector<160x128xbf16>
    %cst_73 = arith.constant dense<0.000000e+00> : vector<192x128xf32>
    %221 = tpu.matmul %0, %220, %cst_73 {dimension_numbers = #tpu.dot_dimension_numbers<[1], [0], [0], [1], [0, 0, 1, 1], [], []>} : vector<192x160xbf16>, vector<160x128xbf16>, vector<192x128xf32> -> vector<192x128xf32>
    %222 = vector.shape_cast %221 : vector<192x128xf32> to vector<24x8x128xf32>
    %223 = vector.shape_cast %1 : vector<8x1xf32> to vector<1x8x1xf32>
    %224 = vector.broadcast %223 : vector<1x8x1xf32> to vector<24x8x128xf32>
    %225 = arith.addf %222, %224 : vector<24x8x128xf32>
    %cst_74 = arith.constant 0.000000e+00 : f32
    %226 = vector.broadcast %cst_74 : f32 to vector<24x8x128xf32>
    %227 = arith.maximumf %225, %226 : vector<24x8x128xf32>
    %228 = arith.maximumf %219, %227 : vector<24x8x128xf32>
    %229 = vector.shape_cast %228 : vector<24x8x128xf32> to vector<12x2x8x128xf32>
    %230 = vector.extract_strided_slice %229 {offsets = [0, 0, 0, 0], sizes = [12, 1, 8, 128], strides = [1, 1, 1, 1]} : vector<12x2x8x128xf32> to vector<12x1x8x128xf32>
    %231 = vector.shape_cast %230 : vector<12x1x8x128xf32> to vector<12x8x128xf32>
    %232 = vector.extract_strided_slice %229 {offsets = [0, 1, 0, 0], sizes = [12, 1, 8, 128], strides = [1, 1, 1, 1]} : vector<12x2x8x128xf32> to vector<12x1x8x128xf32>
    %233 = vector.shape_cast %232 : vector<12x1x8x128xf32> to vector<12x8x128xf32>
    %234 = arith.maximumf %231, %233 : vector<12x8x128xf32>
    %235 = vector.shape_cast %234 : vector<12x8x128xf32> to vector<96x128xf32>
    %236 = arith.truncf %235 : vector<96x128xf32> to vector<96x128xbf16>
    %c768 = arith.constant 768 : index
    %c0_75 = arith.constant 0 : index
    %237 = vector.load %arg13[%c768, %c0_75] : memref<1152x128xbf16, #tpu.memory_space<vmem>>, vector<96x128xbf16>
    tpu.vector_store %arg13[%c768, %c0_75], %236 {strides = array<i32>} : memref<1152x128xbf16, #tpu.memory_space<vmem>>, vector<96x128xbf16>,
    %c576_76 = arith.constant 576 : index
    %c0_77 = arith.constant 0 : index
    %238 = vector.load %arg1[%c576_76, %c0_77] : memref<896x128xbf16, #tpu.memory_space<vmem>>, vector<160x128xbf16>
    %cst_78 = arith.constant dense<0.000000e+00> : vector<192x128xf32>
    %239 = tpu.matmul %0, %238, %cst_78 {dimension_numbers = #tpu.dot_dimension_numbers<[1], [0], [0], [1], [0, 0, 1, 1], [], []>} : vector<192x160xbf16>, vector<160x128xbf16>, vector<192x128xf32> -> vector<192x128xf32>
    %240 = vector.shape_cast %239 : vector<192x128xf32> to vector<24x8x128xf32>
    %241 = vector.shape_cast %1 : vector<8x1xf32> to vector<1x8x1xf32>
    %242 = vector.broadcast %241 : vector<1x8x1xf32> to vector<24x8x128xf32>
    %243 = arith.addf %240, %242 : vector<24x8x128xf32>
    %cst_79 = arith.constant 0.000000e+00 : f32
    %244 = vector.broadcast %cst_79 : f32 to vector<24x8x128xf32>
    %245 = arith.maximumf %243, %244 : vector<24x8x128xf32>
    %c608 = arith.constant 608 : index
    %c0_80 = arith.constant 0 : index
    %246 = vector.load %arg1[%c608, %c0_80] : memref<896x128xbf16, #tpu.memory_space<vmem>>, vector<160x128xbf16>
    %cst_81 = arith.constant dense<0.000000e+00> : vector<192x128xf32>
    %247 = tpu.matmul %0, %246, %cst_81 {dimension_numbers = #tpu.dot_dimension_numbers<[1], [0], [0], [1], [0, 0, 1, 1], [], []>} : vector<192x160xbf16>, vector<160x128xbf16>, vector<192x128xf32> -> vector<192x128xf32>
    %248 = vector.shape_cast %247 : vector<192x128xf32> to vector<24x8x128xf32>
    %249 = vector.shape_cast %1 : vector<8x1xf32> to vector<1x8x1xf32>
    %250 = vector.broadcast %249 : vector<1x8x1xf32> to vector<24x8x128xf32>
    %251 = arith.addf %248, %250 : vector<24x8x128xf32>
    %cst_82 = arith.constant 0.000000e+00 : f32
    %252 = vector.broadcast %cst_82 : f32 to vector<24x8x128xf32>
    %253 = arith.maximumf %251, %252 : vector<24x8x128xf32>
    %254 = arith.maximumf %245, %253 : vector<24x8x128xf32>
    %255 = vector.shape_cast %254 : vector<24x8x128xf32> to vector<12x2x8x128xf32>
    %256 = vector.extract_strided_slice %255 {offsets = [0, 0, 0, 0], sizes = [12, 1, 8, 128], strides = [1, 1, 1, 1]} : vector<12x2x8x128xf32> to vector<12x1x8x128xf32>
    %257 = vector.shape_cast %256 : vector<12x1x8x128xf32> to vector<12x8x128xf32>
    %258 = vector.extract_strided_slice %255 {offsets = [0, 1, 0, 0], sizes = [12, 1, 8, 128], strides = [1, 1, 1, 1]} : vector<12x2x8x128xf32> to vector<12x1x8x128xf32>
    %259 = vector.shape_cast %258 : vector<12x1x8x128xf32> to vector<12x8x128xf32>
    %260 = arith.maximumf %257, %259 : vector<12x8x128xf32>
    %261 = vector.shape_cast %260 : vector<12x8x128xf32> to vector<96x128xf32>
    %262 = arith.truncf %261 : vector<96x128xf32> to vector<96x128xbf16>
    %c864 = arith.constant 864 : index
    %c0_83 = arith.constant 0 : index
    %263 = vector.load %arg13[%c864, %c0_83] : memref<1152x128xbf16, #tpu.memory_space<vmem>>, vector<96x128xbf16>
    tpu.vector_store %arg13[%c864, %c0_83], %262 {strides = array<i32>} : memref<1152x128xbf16, #tpu.memory_space<vmem>>, vector<96x128xbf16>,
    %c640 = arith.constant 640 : index
    %c0_84 = arith.constant 0 : index
    %264 = vector.load %arg1[%c640, %c0_84] : memref<896x128xbf16, #tpu.memory_space<vmem>>, vector<160x128xbf16>
    %cst_85 = arith.constant dense<0.000000e+00> : vector<192x128xf32>
    %265 = tpu.matmul %0, %264, %cst_85 {dimension_numbers = #tpu.dot_dimension_numbers<[1], [0], [0], [1], [0, 0, 1, 1], [], []>} : vector<192x160xbf16>, vector<160x128xbf16>, vector<192x128xf32> -> vector<192x128xf32>
    %266 = vector.shape_cast %265 : vector<192x128xf32> to vector<24x8x128xf32>
    %267 = vector.shape_cast %1 : vector<8x1xf32> to vector<1x8x1xf32>
    %268 = vector.broadcast %267 : vector<1x8x1xf32> to vector<24x8x128xf32>
    %269 = arith.addf %266, %268 : vector<24x8x128xf32>
    %cst_86 = arith.constant 0.000000e+00 : f32
    %270 = vector.broadcast %cst_86 : f32 to vector<24x8x128xf32>
    %271 = arith.maximumf %269, %270 : vector<24x8x128xf32>
    %c672_87 = arith.constant 672 : index
    %c0_88 = arith.constant 0 : index
    %272 = vector.load %arg1[%c672_87, %c0_88] : memref<896x128xbf16, #tpu.memory_space<vmem>>, vector<160x128xbf16>
    %cst_89 = arith.constant dense<0.000000e+00> : vector<192x128xf32>
    %273 = tpu.matmul %0, %272, %cst_89 {dimension_numbers = #tpu.dot_dimension_numbers<[1], [0], [0], [1], [0, 0, 1, 1], [], []>} : vector<192x160xbf16>, vector<160x128xbf16>, vector<192x128xf32> -> vector<192x128xf32>
    %274 = vector.shape_cast %273 : vector<192x128xf32> to vector<24x8x128xf32>
    %275 = vector.shape_cast %1 : vector<8x1xf32> to vector<1x8x1xf32>
    %276 = vector.broadcast %275 : vector<1x8x1xf32> to vector<24x8x128xf32>
    %277 = arith.addf %274, %276 : vector<24x8x128xf32>
    %cst_90 = arith.constant 0.000000e+00 : f32
    %278 = vector.broadcast %cst_90 : f32 to vector<24x8x128xf32>
    %279 = arith.maximumf %277, %278 : vector<24x8x128xf32>
    %280 = arith.maximumf %271, %279 : vector<24x8x128xf32>
    %281 = vector.shape_cast %280 : vector<24x8x128xf32> to vector<12x2x8x128xf32>
    %282 = vector.extract_strided_slice %281 {offsets = [0, 0, 0, 0], sizes = [12, 1, 8, 128], strides = [1, 1, 1, 1]} : vector<12x2x8x128xf32> to vector<12x1x8x128xf32>
    %283 = vector.shape_cast %282 : vector<12x1x8x128xf32> to vector<12x8x128xf32>
    %284 = vector.extract_strided_slice %281 {offsets = [0, 1, 0, 0], sizes = [12, 1, 8, 128], strides = [1, 1, 1, 1]} : vector<12x2x8x128xf32> to vector<12x1x8x128xf32>
    %285 = vector.shape_cast %284 : vector<12x1x8x128xf32> to vector<12x8x128xf32>
    %286 = arith.maximumf %283, %285 : vector<12x8x128xf32>
    %287 = vector.shape_cast %286 : vector<12x8x128xf32> to vector<96x128xf32>
    %288 = arith.truncf %287 : vector<96x128xf32> to vector<96x128xbf16>
    %c960 = arith.constant 960 : index
    %c0_91 = arith.constant 0 : index
    %289 = vector.load %arg13[%c960, %c0_91] : memref<1152x128xbf16, #tpu.memory_space<vmem>>, vector<96x128xbf16>
    tpu.vector_store %arg13[%c960, %c0_91], %288 {strides = array<i32>} : memref<1152x128xbf16, #tpu.memory_space<vmem>>, vector<96x128xbf16>,
    %c704 = arith.constant 704 : index
    %c0_92 = arith.constant 0 : index
    %290 = vector.load %arg1[%c704, %c0_92] : memref<896x128xbf16, #tpu.memory_space<vmem>>, vector<160x128xbf16>
    %cst_93 = arith.constant dense<0.000000e+00> : vector<192x128xf32>
    %291 = tpu.matmul %0, %290, %cst_93 {dimension_numbers = #tpu.dot_dimension_numbers<[1], [0], [0], [1], [0, 0, 1, 1], [], []>} : vector<192x160xbf16>, vector<160x128xbf16>, vector<192x128xf32> -> vector<192x128xf32>
    %292 = vector.shape_cast %291 : vector<192x128xf32> to vector<24x8x128xf32>
    %293 = vector.shape_cast %1 : vector<8x1xf32> to vector<1x8x1xf32>
    %294 = vector.broadcast %293 : vector<1x8x1xf32> to vector<24x8x128xf32>
    %295 = arith.addf %292, %294 : vector<24x8x128xf32>
    %cst_94 = arith.constant 0.000000e+00 : f32
    %296 = vector.broadcast %cst_94 : f32 to vector<24x8x128xf32>
    %297 = arith.maximumf %295, %296 : vector<24x8x128xf32>
    %c736 = arith.constant 736 : index
    %c0_95 = arith.constant 0 : index
    %298 = vector.load %arg1[%c736, %c0_95] : memref<896x128xbf16, #tpu.memory_space<vmem>>, vector<160x128xbf16>
    %cst_96 = arith.constant dense<0.000000e+00> : vector<192x128xf32>
    %299 = tpu.matmul %0, %298, %cst_96 {dimension_numbers = #tpu.dot_dimension_numbers<[1], [0], [0], [1], [0, 0, 1, 1], [], []>} : vector<192x160xbf16>, vector<160x128xbf16>, vector<192x128xf32> -> vector<192x128xf32>
    %300 = vector.shape_cast %299 : vector<192x128xf32> to vector<24x8x128xf32>
    %301 = vector.shape_cast %1 : vector<8x1xf32> to vector<1x8x1xf32>
    %302 = vector.broadcast %301 : vector<1x8x1xf32> to vector<24x8x128xf32>
    %303 = arith.addf %300, %302 : vector<24x8x128xf32>
    %cst_97 = arith.constant 0.000000e+00 : f32
    %304 = vector.broadcast %cst_97 : f32 to vector<24x8x128xf32>
    %305 = arith.maximumf %303, %304 : vector<24x8x128xf32>
    %306 = arith.maximumf %297, %305 : vector<24x8x128xf32>
    %307 = vector.shape_cast %306 : vector<24x8x128xf32> to vector<12x2x8x128xf32>
    %308 = vector.extract_strided_slice %307 {offsets = [0, 0, 0, 0], sizes = [12, 1, 8, 128], strides = [1, 1, 1, 1]} : vector<12x2x8x128xf32> to vector<12x1x8x128xf32>
    %309 = vector.shape_cast %308 : vector<12x1x8x128xf32> to vector<12x8x128xf32>
    %310 = vector.extract_strided_slice %307 {offsets = [0, 1, 0, 0], sizes = [12, 1, 8, 128], strides = [1, 1, 1, 1]} : vector<12x2x8x128xf32> to vector<12x1x8x128xf32>
    %311 = vector.shape_cast %310 : vector<12x1x8x128xf32> to vector<12x8x128xf32>
    %312 = arith.maximumf %309, %311 : vector<12x8x128xf32>
    %313 = vector.shape_cast %312 : vector<12x8x128xf32> to vector<96x128xf32>
    %314 = arith.truncf %313 : vector<96x128xf32> to vector<96x128xbf16>
    %c1056 = arith.constant 1056 : index
    %c0_98 = arith.constant 0 : index
    %315 = vector.load %arg13[%c1056, %c0_98] : memref<1152x128xbf16, #tpu.memory_space<vmem>>, vector<96x128xbf16>
    tpu.vector_store %arg13[%c1056, %c0_98], %314 {strides = array<i32>} : memref<1152x128xbf16, #tpu.memory_space<vmem>>, vector<96x128xbf16>,
    %c0_99 = arith.constant 0 : index
    %c0_100 = arith.constant 0 : index
    %316 = vector.load %arg13[%c0_99, %c0_100] : memref<1152x128xbf16, #tpu.memory_space<vmem>>, vector<480x128xbf16>
    %cst_101 = arith.constant dense<0.000000e+00> : vector<128x128xf32>
    %317 = tpu.matmul %2, %316, %cst_101 {dimension_numbers = #tpu.dot_dimension_numbers<[1], [0], [0], [1], [0, 0, 1, 1], [], []>} : vector<128x480xbf16>, vector<480x128xbf16>, vector<128x128xf32> -> vector<128x128xf32>
    %318 = vector.shape_cast %317 : vector<128x128xf32> to vector<8x16x128xf32>
    %319 = vector.shape_cast %3 : vector<16x1xf32> to vector<1x16x1xf32>
    %320 = vector.broadcast %319 : vector<1x16x1xf32> to vector<8x16x128xf32>
    %321 = arith.addf %318, %320 : vector<8x16x128xf32>
    %cst_102 = arith.constant 0.000000e+00 : f32
    %322 = vector.broadcast %cst_102 : f32 to vector<8x16x128xf32>
    %323 = arith.maximumf %321, %322 : vector<8x16x128xf32>
    %c96_103 = arith.constant 96 : index
    %c0_104 = arith.constant 0 : index
    %324 = vector.load %arg13[%c96_103, %c0_104] : memref<1152x128xbf16, #tpu.memory_space<vmem>>, vector<480x128xbf16>
    %cst_105 = arith.constant dense<0.000000e+00> : vector<128x128xf32>
    %325 = tpu.matmul %2, %324, %cst_105 {dimension_numbers = #tpu.dot_dimension_numbers<[1], [0], [0], [1], [0, 0, 1, 1], [], []>} : vector<128x480xbf16>, vector<480x128xbf16>, vector<128x128xf32> -> vector<128x128xf32>
    %326 = vector.shape_cast %325 : vector<128x128xf32> to vector<8x16x128xf32>
    %327 = vector.shape_cast %3 : vector<16x1xf32> to vector<1x16x1xf32>
    %328 = vector.broadcast %327 : vector<1x16x1xf32> to vector<8x16x128xf32>
    %329 = arith.addf %326, %328 : vector<8x16x128xf32>
    %cst_106 = arith.constant 0.000000e+00 : f32
    %330 = vector.broadcast %cst_106 : f32 to vector<8x16x128xf32>
    %331 = arith.maximumf %329, %330 : vector<8x16x128xf32>
    %332 = arith.maximumf %323, %331 : vector<8x16x128xf32>
    %333 = vector.shape_cast %332 : vector<8x16x128xf32> to vector<4x2x16x128xf32>
    %334 = vector.extract_strided_slice %333 {offsets = [0, 0, 0, 0], sizes = [4, 1, 16, 128], strides = [1, 1, 1, 1]} : vector<4x2x16x128xf32> to vector<4x1x16x128xf32>
    %335 = vector.shape_cast %334 : vector<4x1x16x128xf32> to vector<4x16x128xf32>
    %336 = vector.extract_strided_slice %333 {offsets = [0, 1, 0, 0], sizes = [4, 1, 16, 128], strides = [1, 1, 1, 1]} : vector<4x2x16x128xf32> to vector<4x1x16x128xf32>
    %337 = vector.shape_cast %336 : vector<4x1x16x128xf32> to vector<4x16x128xf32>
    %338 = arith.maximumf %335, %337 : vector<4x16x128xf32>
    %339 = vector.shape_cast %338 : vector<4x16x128xf32> to vector<64x128xf32>
    %340 = arith.truncf %339 : vector<64x128xf32> to vector<64x128xbf16>
    %c0_107 = arith.constant 0 : index
    %c0_108 = arith.constant 0 : index
    %341 = vector.load %arg14[%c0_107, %c0_108] : memref<256x128xbf16, #tpu.memory_space<vmem>>, vector<64x128xbf16>
    tpu.vector_store %arg14[%c0_107, %c0_108], %340 {strides = array<i32>} : memref<256x128xbf16, #tpu.memory_space<vmem>>, vector<64x128xbf16>,
    %c192_109 = arith.constant 192 : index
    %c0_110 = arith.constant 0 : index
    %342 = vector.load %arg13[%c192_109, %c0_110] : memref<1152x128xbf16, #tpu.memory_space<vmem>>, vector<480x128xbf16>
    %cst_111 = arith.constant dense<0.000000e+00> : vector<128x128xf32>
    %343 = tpu.matmul %2, %342, %cst_111 {dimension_numbers = #tpu.dot_dimension_numbers<[1], [0], [0], [1], [0, 0, 1, 1], [], []>} : vector<128x480xbf16>, vector<480x128xbf16>, vector<128x128xf32> -> vector<128x128xf32>
    %344 = vector.shape_cast %343 : vector<128x128xf32> to vector<8x16x128xf32>
    %345 = vector.shape_cast %3 : vector<16x1xf32> to vector<1x16x1xf32>
    %346 = vector.broadcast %345 : vector<1x16x1xf32> to vector<8x16x128xf32>
    %347 = arith.addf %344, %346 : vector<8x16x128xf32>
    %cst_112 = arith.constant 0.000000e+00 : f32
    %348 = vector.broadcast %cst_112 : f32 to vector<8x16x128xf32>
    %349 = arith.maximumf %347, %348 : vector<8x16x128xf32>
    %c288_113 = arith.constant 288 : index
    %c0_114 = arith.constant 0 : index
    %350 = vector.load %arg13[%c288_113, %c0_114] : memref<1152x128xbf16, #tpu.memory_space<vmem>>, vector<480x128xbf16>
    %cst_115 = arith.constant dense<0.000000e+00> : vector<128x128xf32>
    %351 = tpu.matmul %2, %350, %cst_115 {dimension_numbers = #tpu.dot_dimension_numbers<[1], [0], [0], [1], [0, 0, 1, 1], [], []>} : vector<128x480xbf16>, vector<480x128xbf16>, vector<128x128xf32> -> vector<128x128xf32>
    %352 = vector.shape_cast %351 : vector<128x128xf32> to vector<8x16x128xf32>
    %353 = vector.shape_cast %3 : vector<16x1xf32> to vector<1x16x1xf32>
    %354 = vector.broadcast %353 : vector<1x16x1xf32> to vector<8x16x128xf32>
    %355 = arith.addf %352, %354 : vector<8x16x128xf32>
    %cst_116 = arith.constant 0.000000e+00 : f32
    %356 = vector.broadcast %cst_116 : f32 to vector<8x16x128xf32>
    %357 = arith.maximumf %355, %356 : vector<8x16x128xf32>
    %358 = arith.maximumf %349, %357 : vector<8x16x128xf32>
    %359 = vector.shape_cast %358 : vector<8x16x128xf32> to vector<4x2x16x128xf32>
    %360 = vector.extract_strided_slice %359 {offsets = [0, 0, 0, 0], sizes = [4, 1, 16, 128], strides = [1, 1, 1, 1]} : vector<4x2x16x128xf32> to vector<4x1x16x128xf32>
    %361 = vector.shape_cast %360 : vector<4x1x16x128xf32> to vector<4x16x128xf32>
    %362 = vector.extract_strided_slice %359 {offsets = [0, 1, 0, 0], sizes = [4, 1, 16, 128], strides = [1, 1, 1, 1]} : vector<4x2x16x128xf32> to vector<4x1x16x128xf32>
    %363 = vector.shape_cast %362 : vector<4x1x16x128xf32> to vector<4x16x128xf32>
    %364 = arith.maximumf %361, %363 : vector<4x16x128xf32>
    %365 = vector.shape_cast %364 : vector<4x16x128xf32> to vector<64x128xf32>
    %366 = arith.truncf %365 : vector<64x128xf32> to vector<64x128xbf16>
    %c64_117 = arith.constant 64 : index
    %c0_118 = arith.constant 0 : index
    %367 = vector.load %arg14[%c64_117, %c0_118] : memref<256x128xbf16, #tpu.memory_space<vmem>>, vector<64x128xbf16>
    tpu.vector_store %arg14[%c64_117, %c0_118], %366 {strides = array<i32>} : memref<256x128xbf16, #tpu.memory_space<vmem>>, vector<64x128xbf16>,
    %c384_119 = arith.constant 384 : index
    %c0_120 = arith.constant 0 : index
    %368 = vector.load %arg13[%c384_119, %c0_120] : memref<1152x128xbf16, #tpu.memory_space<vmem>>, vector<480x128xbf16>
    %cst_121 = arith.constant dense<0.000000e+00> : vector<128x128xf32>
    %369 = tpu.matmul %2, %368, %cst_121 {dimension_numbers = #tpu.dot_dimension_numbers<[1], [0], [0], [1], [0, 0, 1, 1], [], []>} : vector<128x480xbf16>, vector<480x128xbf16>, vector<128x128xf32> -> vector<128x128xf32>
    %370 = vector.shape_cast %369 : vector<128x128xf32> to vector<8x16x128xf32>
    %371 = vector.shape_cast %3 : vector<16x1xf32> to vector<1x16x1xf32>
    %372 = vector.broadcast %371 : vector<1x16x1xf32> to vector<8x16x128xf32>
    %373 = arith.addf %370, %372 : vector<8x16x128xf32>
    %cst_122 = arith.constant 0.000000e+00 : f32
    %374 = vector.broadcast %cst_122 : f32 to vector<8x16x128xf32>
    %375 = arith.maximumf %373, %374 : vector<8x16x128xf32>
    %c480_123 = arith.constant 480 : index
    %c0_124 = arith.constant 0 : index
    %376 = vector.load %arg13[%c480_123, %c0_124] : memref<1152x128xbf16, #tpu.memory_space<vmem>>, vector<480x128xbf16>
    %cst_125 = arith.constant dense<0.000000e+00> : vector<128x128xf32>
    %377 = tpu.matmul %2, %376, %cst_125 {dimension_numbers = #tpu.dot_dimension_numbers<[1], [0], [0], [1], [0, 0, 1, 1], [], []>} : vector<128x480xbf16>, vector<480x128xbf16>, vector<128x128xf32> -> vector<128x128xf32>
    %378 = vector.shape_cast %377 : vector<128x128xf32> to vector<8x16x128xf32>
    %379 = vector.shape_cast %3 : vector<16x1xf32> to vector<1x16x1xf32>
    %380 = vector.broadcast %379 : vector<1x16x1xf32> to vector<8x16x128xf32>
    %381 = arith.addf %378, %380 : vector<8x16x128xf32>
    %cst_126 = arith.constant 0.000000e+00 : f32
    %382 = vector.broadcast %cst_126 : f32 to vector<8x16x128xf32>
    %383 = arith.maximumf %381, %382 : vector<8x16x128xf32>
    %384 = arith.maximumf %375, %383 : vector<8x16x128xf32>
    %385 = vector.shape_cast %384 : vector<8x16x128xf32> to vector<4x2x16x128xf32>
    %386 = vector.extract_strided_slice %385 {offsets = [0, 0, 0, 0], sizes = [4, 1, 16, 128], strides = [1, 1, 1, 1]} : vector<4x2x16x128xf32> to vector<4x1x16x128xf32>
    %387 = vector.shape_cast %386 : vector<4x1x16x128xf32> to vector<4x16x128xf32>
    %388 = vector.extract_strided_slice %385 {offsets = [0, 1, 0, 0], sizes = [4, 1, 16, 128], strides = [1, 1, 1, 1]} : vector<4x2x16x128xf32> to vector<4x1x16x128xf32>
    %389 = vector.shape_cast %388 : vector<4x1x16x128xf32> to vector<4x16x128xf32>
    %390 = arith.maximumf %387, %389 : vector<4x16x128xf32>
    %391 = vector.shape_cast %390 : vector<4x16x128xf32> to vector<64x128xf32>
    %392 = arith.truncf %391 : vector<64x128xf32> to vector<64x128xbf16>
    %c128_127 = arith.constant 128 : index
    %c0_128 = arith.constant 0 : index
    %393 = vector.load %arg14[%c128_127, %c0_128] : memref<256x128xbf16, #tpu.memory_space<vmem>>, vector<64x128xbf16>
    tpu.vector_store %arg14[%c128_127, %c0_128], %392 {strides = array<i32>} : memref<256x128xbf16, #tpu.memory_space<vmem>>, vector<64x128xbf16>,
    %c576_129 = arith.constant 576 : index
    %c0_130 = arith.constant 0 : index
    %394 = vector.load %arg13[%c576_129, %c0_130] : memref<1152x128xbf16, #tpu.memory_space<vmem>>, vector<480x128xbf16>
    %cst_131 = arith.constant dense<0.000000e+00> : vector<128x128xf32>
    %395 = tpu.matmul %2, %394, %cst_131 {dimension_numbers = #tpu.dot_dimension_numbers<[1], [0], [0], [1], [0, 0, 1, 1], [], []>} : vector<128x480xbf16>, vector<480x128xbf16>, vector<128x128xf32> -> vector<128x128xf32>
    %396 = vector.shape_cast %395 : vector<128x128xf32> to vector<8x16x128xf32>
    %397 = vector.shape_cast %3 : vector<16x1xf32> to vector<1x16x1xf32>
    %398 = vector.broadcast %397 : vector<1x16x1xf32> to vector<8x16x128xf32>
    %399 = arith.addf %396, %398 : vector<8x16x128xf32>
    %cst_132 = arith.constant 0.000000e+00 : f32
    %400 = vector.broadcast %cst_132 : f32 to vector<8x16x128xf32>
    %401 = arith.maximumf %399, %400 : vector<8x16x128xf32>
    %c672_133 = arith.constant 672 : index
    %c0_134 = arith.constant 0 : index
    %402 = vector.load %arg13[%c672_133, %c0_134] : memref<1152x128xbf16, #tpu.memory_space<vmem>>, vector<480x128xbf16>
    %cst_135 = arith.constant dense<0.000000e+00> : vector<128x128xf32>
    %403 = tpu.matmul %2, %402, %cst_135 {dimension_numbers = #tpu.dot_dimension_numbers<[1], [0], [0], [1], [0, 0, 1, 1], [], []>} : vector<128x480xbf16>, vector<480x128xbf16>, vector<128x128xf32> -> vector<128x128xf32>
    %404 = vector.shape_cast %403 : vector<128x128xf32> to vector<8x16x128xf32>
    %405 = vector.shape_cast %3 : vector<16x1xf32> to vector<1x16x1xf32>
    %406 = vector.broadcast %405 : vector<1x16x1xf32> to vector<8x16x128xf32>
    %407 = arith.addf %404, %406 : vector<8x16x128xf32>
    %cst_136 = arith.constant 0.000000e+00 : f32
    %408 = vector.broadcast %cst_136 : f32 to vector<8x16x128xf32>
    %409 = arith.maximumf %407, %408 : vector<8x16x128xf32>
    %410 = arith.maximumf %401, %409 : vector<8x16x128xf32>
    %411 = vector.shape_cast %410 : vector<8x16x128xf32> to vector<4x2x16x128xf32>
    %412 = vector.extract_strided_slice %411 {offsets = [0, 0, 0, 0], sizes = [4, 1, 16, 128], strides = [1, 1, 1, 1]} : vector<4x2x16x128xf32> to vector<4x1x16x128xf32>
    %413 = vector.shape_cast %412 : vector<4x1x16x128xf32> to vector<4x16x128xf32>
    %414 = vector.extract_strided_slice %411 {offsets = [0, 1, 0, 0], sizes = [4, 1, 16, 128], strides = [1, 1, 1, 1]} : vector<4x2x16x128xf32> to vector<4x1x16x128xf32>
    %415 = vector.shape_cast %414 : vector<4x1x16x128xf32> to vector<4x16x128xf32>
    %416 = arith.maximumf %413, %415 : vector<4x16x128xf32>
    %417 = vector.shape_cast %416 : vector<4x16x128xf32> to vector<64x128xf32>
    %418 = arith.truncf %417 : vector<64x128xf32> to vector<64x128xbf16>
    %c192_137 = arith.constant 192 : index
    %c0_138 = arith.constant 0 : index
    %419 = vector.load %arg14[%c192_137, %c0_138] : memref<256x128xbf16, #tpu.memory_space<vmem>>, vector<64x128xbf16>
    tpu.vector_store %arg14[%c192_137, %c0_138], %418 {strides = array<i32>} : memref<256x128xbf16, #tpu.memory_space<vmem>>, vector<64x128xbf16>,
    %c0_139 = arith.constant 0 : index
    %c0_140 = arith.constant 0 : index
    %420 = vector.load %arg14[%c0_139, %c0_140] : memref<256x128xbf16, #tpu.memory_space<vmem>>, vector<256x128xbf16>
    %c0_141 = arith.constant 0 : index
    %c0_142 = arith.constant 0 : index
    %421 = vector.load %arg6[%c0_141, %c0_142] : memref<120x256xbf16, #tpu.memory_space<vmem>>, vector<120x256xbf16>
    %cst_143 = arith.constant dense<0.000000e+00> : vector<120x128xf32>
    %422 = tpu.matmul %421, %420, %cst_143 {dimension_numbers = #tpu.dot_dimension_numbers<[1], [0], [0], [1], [0, 0, 1, 1], [], []>} : vector<120x256xbf16>, vector<256x128xbf16>, vector<120x128xf32> -> vector<120x128xf32>
    %c0_144 = arith.constant 0 : index
    %c0_145 = arith.constant 0 : index
    %423 = vector.load %arg7[%c0_144, %c0_145] : memref<120x1xf32, #tpu.memory_space<vmem>>, vector<120x1xf32>
    %424 = vector.broadcast %423 : vector<120x1xf32> to vector<120x128xf32>
    %425 = arith.addf %422, %424 : vector<120x128xf32>
    %cst_146 = arith.constant 0.000000e+00 : f32
    %426 = vector.broadcast %cst_146 : f32 to vector<120x128xf32>
    %427 = arith.maximumf %425, %426 : vector<120x128xf32>
    %c0_147 = arith.constant 0 : index
    %c0_148 = arith.constant 0 : index
    %428 = vector.load %arg8[%c0_147, %c0_148] : memref<64x120xbf16, #tpu.memory_space<vmem>>, vector<64x120xbf16>
    %429 = arith.truncf %427 : vector<120x128xf32> to vector<120x128xbf16>
    %cst_149 = arith.constant dense<0.000000e+00> : vector<64x128xf32>
    %430 = tpu.matmul %428, %429, %cst_149 {dimension_numbers = #tpu.dot_dimension_numbers<[1], [0], [0], [1], [0, 0, 1, 1], [], []>} : vector<64x120xbf16>, vector<120x128xbf16>, vector<64x128xf32> -> vector<64x128xf32>
    %c0_150 = arith.constant 0 : index
    %c0_151 = arith.constant 0 : index
    %431 = vector.load %arg9[%c0_150, %c0_151] : memref<64x1xf32, #tpu.memory_space<vmem>>, vector<64x1xf32>
    %432 = vector.broadcast %431 : vector<64x1xf32> to vector<64x128xf32>
    %433 = arith.addf %430, %432 : vector<64x128xf32>
    %cst_152 = arith.constant 0.000000e+00 : f32
    %434 = vector.broadcast %cst_152 : f32 to vector<64x128xf32>
    %435 = arith.maximumf %433, %434 : vector<64x128xf32>
    %c0_153 = arith.constant 0 : index
    %c0_154 = arith.constant 0 : index
    %436 = vector.load %arg10[%c0_153, %c0_154] : memref<10x64xbf16, #tpu.memory_space<vmem>>, vector<10x64xbf16>
    %437 = arith.truncf %435 : vector<64x128xf32> to vector<64x128xbf16>
    %cst_155 = arith.constant dense<0.000000e+00> : vector<10x128xf32>
    %438 = tpu.matmul %436, %437, %cst_155 {dimension_numbers = #tpu.dot_dimension_numbers<[1], [0], [0], [1], [0, 0, 1, 1], [], []>} : vector<10x64xbf16>, vector<64x128xbf16>, vector<10x128xf32> -> vector<10x128xf32>
    %c0_156 = arith.constant 0 : index
    %c0_157 = arith.constant 0 : index
    %439 = vector.load %arg11[%c0_156, %c0_157] : memref<10x1xf32, #tpu.memory_space<vmem>>, vector<10x1xf32>
    %440 = vector.broadcast %439 : vector<10x1xf32> to vector<10x128xf32>
    %441 = arith.addf %438, %440 : vector<10x128xf32>
    %c0_158 = arith.constant 0 : index
    %c0_159 = arith.constant 0 : index
    %442 = vector.load %arg12[%c0_158, %c0_159] : memref<10x128xf32, #tpu.memory_space<vmem>>, vector<10x128xf32>
    tpu.vector_store %arg12[%c0_158, %c0_159], %441 {strides = array<i32>} : memref<10x128xf32, #tpu.memory_space<vmem>>, vector<10x128xf32>,
    return
  }
  func.func @transform_0(%arg0: i32) -> (i32, i32) {
    %c0_i32 = arith.constant 0 : i32
    %c0_i32_0 = arith.constant 0 : i32
    return %c0_i32, %arg0 : i32, i32
  }
  func.func @transform_1(%arg0: i32) -> (i32, i32) {
    %c0_i32 = arith.constant 0 : i32
    %c0_i32_0 = arith.constant 0 : i32
    %c0_i32_1 = arith.constant 0 : i32
    return %c0_i32, %c0_i32_0 : i32, i32
  }
  func.func @transform_2(%arg0: i32) -> (i32, i32) {
    %c0_i32 = arith.constant 0 : i32
    %c0_i32_0 = arith.constant 0 : i32
    %c0_i32_1 = arith.constant 0 : i32
    return %c0_i32, %c0_i32_0 : i32, i32
  }
  func.func @transform_3(%arg0: i32) -> (i32, i32) {
    %c0_i32 = arith.constant 0 : i32
    %c0_i32_0 = arith.constant 0 : i32
    %c0_i32_1 = arith.constant 0 : i32
    return %c0_i32, %c0_i32_0 : i32, i32
  }
  func.func @transform_4(%arg0: i32) -> (i32, i32) {
    %c0_i32 = arith.constant 0 : i32
    %c0_i32_0 = arith.constant 0 : i32
    %c0_i32_1 = arith.constant 0 : i32
    return %c0_i32, %c0_i32_0 : i32, i32
  }
  func.func @transform_5(%arg0: i32) -> (i32, i32) {
    %c0_i32 = arith.constant 0 : i32
    %c0_i32_0 = arith.constant 0 : i32
    %c0_i32_1 = arith.constant 0 : i32
    return %c0_i32, %c0_i32_0 : i32, i32
  }
  func.func @transform_6(%arg0: i32) -> (i32, i32) {
    %c0_i32 = arith.constant 0 : i32
    %c0_i32_0 = arith.constant 0 : i32
    %c0_i32_1 = arith.constant 0 : i32
    return %c0_i32, %c0_i32_0 : i32, i32
  }
  func.func @transform_7(%arg0: i32) -> (i32, i32) {
    %c0_i32 = arith.constant 0 : i32
    %c0_i32_0 = arith.constant 0 : i32
    %c0_i32_1 = arith.constant 0 : i32
    return %c0_i32, %c0_i32_0 : i32, i32
  }
  func.func @transform_8(%arg0: i32) -> (i32, i32) {
    %c0_i32 = arith.constant 0 : i32
    %c0_i32_0 = arith.constant 0 : i32
    %c0_i32_1 = arith.constant 0 : i32
    return %c0_i32, %c0_i32_0 : i32, i32
  }
  func.func @transform_9(%arg0: i32) -> (i32, i32) {
    %c0_i32 = arith.constant 0 : i32
    %c0_i32_0 = arith.constant 0 : i32
    %c0_i32_1 = arith.constant 0 : i32
    return %c0_i32, %c0_i32_0 : i32, i32
  }
  func.func @transform_10(%arg0: i32) -> (i32, i32) {
    %c0_i32 = arith.constant 0 : i32
    %c0_i32_0 = arith.constant 0 : i32
    %c0_i32_1 = arith.constant 0 : i32
    return %c0_i32, %c0_i32_0 : i32, i32
  }
  func.func @transform_11(%arg0: i32) -> (i32, i32) {
    %c0_i32 = arith.constant 0 : i32
    %c0_i32_0 = arith.constant 0 : i32
    return %c0_i32, %arg0 : i32, i32
  }
}

</mosaic_0001>

<bundles_post_ra>
// kernel: cnn_forward.1
= control target key start
LH: loop header
LB: loop body
LE: loop exit
PB: predicated region body
PF: predicated region fallthrough
CT: control target
= control target key end

     0   :  { %v16823_v0 = vmov 0   ;;  %vm286_vm0 = vcmask 261120   ;;  %vm7174_vm1 = vcmask 785408   ;;  %vm9748_vm2 = vcmask 982016   ;;  %s16811_s0 = inlined_call_operand.vmem [shape: bf16[896,128], index: 0, kind: input, shape index: {}]   ;;  %s16812_s1 = inlined_call_operand.vmem [shape: bf16[192,160], index: 1, kind: input, shape index: {}]   ;;  %s16813_s2 = inlined_call_operand.vmem [shape: f32[8,1], index: 2, kind: input, shape index: {}]   ;;  %s16814_s4 = inlined_call_operand.vmem [shape: f32[16,1], index: 4, kind: input, shape index: {}]   ;;  %s16815_s6 = inlined_call_operand.vmem [shape: f32[120,1], index: 6, kind: input, shape index: {}]   ;;  %s16816_s8 = inlined_call_operand.vmem [shape: f32[64,1], index: 8, kind: input, shape index: {}]   ;;  %s16817_s10 = inlined_call_operand.vmem [shape: f32[10,1], index: 10, kind: input, shape index: {}]   ;;  %s16818_s3 = inlined_call_operand.vmem [shape: bf16[128,480], index: 3, kind: input, shape index: {}]   ;;  %s16819_s5 = inlined_call_operand.vmem [shape: bf16[120,256], index: 5, kind: input, shape index: {}]   ;;  %s16820_s7 = inlined_call_operand.vmem [shape: bf16[64,120], index: 7, kind: input, shape index: {}]   ;;  %s16821_s9 = inlined_call_operand.vmem [shape: bf16[10,64], index: 9, kind: input, shape index: {}]   ;;  %s16822_s11 = inlined_call_operand.vmem [shape: f32[10,128], index: 11, kind: output, shape index: {}]  }
   0x1   :  { %323 = vmatprep.subr.bf16.mxu0 %v16823_v0  ;;  %585 = vmatprep.subr.bf16.mxu1 %v16823_v0  ;;  %v11221_v1 = vld [vmem:[%s16811_s0] sm:$0xff]   ;;  %v11222_v2 = vld [vmem:[%s16811_s0 + $0x10] sm:$0xff]   ;;  %v11223_v3 = vld [vmem:[%s16811_s0 + $0x8] sm:$0xff]   ;;  %vm9761_vm3 = vcmask 1043456   ;;  %vm11759_vm4 = vmmov 0   ;;  %vm9861_vm5 = vcmask 523264  }
   0x2   :  { %11219 = vset.pattern.permute.xlu0 %v16823_v0  ;;  %11220 = vset.pattern.permute.xlu1 %v16823_v0  ;;  %v11224_v4 = vld [vmem:[%s16811_s0 + $0x18] sm:$0xff]   ;;  %v11225_v5 = vld [vmem:[%s16811_s0 + $0x10] sm:$0xff]   ;;  %v11226_v6 = vld [vmem:[%s16811_s0 + $0x20] sm:$0xff]  }
   0x3   :  { %324 = vmatpush1.bf16.msra.mxu0 %v11221_v1  ;;  %586 = vmatpush1.bf16.msra.mxu1 %v11222_v2  ;;  %v11227_v7 = vld [vmem:[%s16811_s0 + $0x18] sm:$0xff]   ;;  %v11228_v8 = vld [vmem:[%s16811_s0 + $0x28] sm:$0xff]   ;;  %v11229_v9 = vld [vmem:[%s16811_s0 + $0x20] sm:$0xff]  }
   0x4   :  { %325 = vmatprep.subr.bf16.mxu0 %v16823_v0  ;;  %587 = vmatprep.subr.bf16.mxu1 %v16823_v0  ;;  %v11230_v10 = vld [vmem:[%s16811_s0 + $0x30] sm:$0xff]   ;;  %v11231_v11 = vld [vmem:[%s16811_s0 + $0x28] sm:$0xff]   ;;  %v11232_v12 = vld [vmem:[%s16811_s0 + $0x38] sm:$0xff]  }
   0x5   :  { %v11873_v13 = vld [vmem:[%s16812_s1 + $0x4] ss:$8 sps:$4 sm:$0xff]   ;;  %v11233_v14 = vld [vmem:[%s16811_s0 + $0x30] sm:$0xff]   ;;  %v11235_v16 = vld [vmem:[%s16811_s0 + $0x38] sm:$0xff]  }
   0x6   :  { %9946 = vmatprep.mubr.msk.bf16.mxu0 %vm286_vm0, %v11873_v13  ;;  %v11234_v15 = vld [vmem:[%s16811_s0 + $0x40] sm:$0xff]   ;;  %9968 = vmatprep.mubr.msk.bf16.mxu1 %vm286_vm0, %v11873_v13  ;;  %v11236_v17 = vld [vmem:[%s16811_s0 + $0x48] sm:$0xff]   ;;  %v11238_v19 = vld [vmem:[%s16811_s0 + $0x50] sm:$0xff]  }
   0x7   :  { %326 = vmatpush1.bf16.msra.mxu0 %v11223_v3  ;;  %588 = vmatpush1.bf16.msra.mxu1 %v11224_v4  ;;  %v11237_v18 = vld [vmem:[%s16811_s0 + $0x40] sm:$0xff]   ;;  %v11239_v20 = vld [vmem:[%s16811_s0 + $0x48] sm:$0xff]   ;;  %v11240_v21 = vld [vmem:[%s16811_s0 + $0x58] sm:$0xff]  }
   0x8   :  { %327 = vmatprep.subr.bf16.mxu0 %v16823_v0  ;;  %589 = vmatprep.subr.bf16.mxu1 %v16823_v0  ;;  %v11914_v22 = vld [vmem:[%s16812_s1] ss:$8 sps:$4 sm:$0xff]   ;;  %v11919_v23 = vld [vmem:[%s16812_s1 + $0x14] ss:$8 sps:$4 sm:$0xff]   ;;  %v11945_v28 = vld [vmem:[%s16812_s1 + $0x10] ss:$8 sps:$4 sm:$0xff]  }
   0x9   :  { %v11246_v24 = vld [vmem:[%s16811_s0 + $0x20] sm:$0xff]   ;;  %v11248_v25 = vld [vmem:[%s16811_s0 + $0x30] sm:$0xff]   ;;  %v11252_v26 = vld [vmem:[%s16811_s0 + $0x28] sm:$0xff]  }
   0xa   :  { %v11253_v27 = vld [vmem:[%s16811_s0 + $0x38] sm:$0xff]   ;;  %v11951_v29 = vld [vmem:[%s16812_s1 + $0x24] ss:$8 sps:$4 sm:$0xff]   ;;  %v11257_v30 = vld [vmem:[%s16811_s0 + $0x30] sm:$0xff]  }
   0xb   :  { %328 = vmatpush1.bf16.msra.mxu0 %v11225_v5  ;;  %590 = vmatpush1.bf16.msra.mxu1 %v11226_v6  ;;  %v11258_v31 = vld [vmem:[%s16811_s0 + $0x40] sm:$0xff]   ;;  %v11262_v33 = vld [vmem:[%s16811_s0 + $0x38] sm:$0xff]   ;;  %v11265_v34 = vld [vmem:[%s16811_s0 + $0x48] sm:$0xff]  }
   0xc   :  { %329 = vmatprep.subr.bf16.mxu0 %v16823_v0  ;;  %591 = vmatprep.subr.bf16.mxu1 %v16823_v0  ;;  %v63_v32 = vld [vmem:[%s16813_s2] sm:$0xff]  ;;  %v11986_v36 = vld [vmem:[%s16812_s1 + $0x34] ss:$8 sps:$4 sm:$0xff]   ;;  %v11274_v39 = vld [vmem:[%s16811_s0 + $0x48] sm:$0xff]  }
   0xd   :  { %v11980_v35 = vld [vmem:[%s16812_s1 + $0x20] ss:$8 sps:$4 sm:$0xff]   ;;  %454 = vperm.xlu0 %11219, %v63_v32   ;;  %v11271_v38 = vld [vmem:[%s16811_s0 + $0x50] sm:$0xff]   ;;  %v11276_v40 = vld [vmem:[%s16811_s0 + $0x58] sm:$0xff]  }
   0xe   :  { %v11267_v37 = vld [vmem:[%s16811_s0 + $0x40] sm:$0xff]   ;;  %v12012_v41 = vld [vmem:[%s16812_s1 + $0x30] ss:$8 sps:$4 sm:$0xff]   ;;  %v12045_v47 = vld [vmem:[%s16812_s1 + $0x54] ss:$8 sps:$4 sm:$0xff]  }
   0xf   :  { %330 = vmatpush1.bf16.msra.mxu0 %v11227_v7  ;;  %592 = vmatpush1.bf16.msra.mxu1 %v11228_v8  ;;  %v12018_v42 = vld [vmem:[%s16812_s1 + $0x44] ss:$8 sps:$4 sm:$0xff]   ;;  %v11280_v43 = vld [vmem:[%s16811_s0 + $0x50] sm:$0xff]   ;;  %v12037_v45 = vld [vmem:[%s16812_s1 + $0x40] ss:$8 sps:$4 sm:$0xff]  }
  0x10   :  { %331 = vmatprep.subr.bf16.mxu0 %v16823_v0  ;;  %593 = vmatprep.subr.bf16.mxu1 %v16823_v0  ;;  %v11281_v44 = vld [vmem:[%s16811_s0 + $0x60] sm:$0xff]   ;;  %v11285_v46 = vld [vmem:[%s16811_s0 + $0x58] sm:$0xff]   ;;  %v11286_v48 = vld [vmem:[%s16811_s0 + $0x68] sm:$0xff]  }
  0x11   :  { %v11290_v49 = vld [vmem:[%s16811_s0 + $0x60] sm:$0xff]   ;;  %v11293_v50 = vld [vmem:[%s16811_s0 + $0x70] sm:$0xff]   ;;  %v11295_v51 = vld [vmem:[%s16811_s0 + $0x68] sm:$0xff]  }
  0x12   :  { %v11296_v52 = vld [vmem:[%s16811_s0 + $0x78] sm:$0xff]   ;;  %v12080_v54 = vld [vmem:[%s16812_s1 + $0x64] ss:$8 sps:$4 sm:$0xff]   ;;  %v12095_v55 = vld [vmem:[%s16812_s1 + $0x60] ss:$8 sps:$4 sm:$0xff]  }
  0x13   :  { %332 = vmatpush1.bf16.msra.mxu0 %v11229_v9  ;;  %594 = vmatpush1.bf16.msra.mxu1 %v11230_v10  ;;  %v12075_v53 = vld [vmem:[%s16812_s1 + $0x50] ss:$8 sps:$4 sm:$0xff]   ;;  %v12100_v56 = vld [vmem:[%s16812_s1 + $0x74] ss:$8 sps:$4 sm:$0xff]   ;;  %v12116_v58 = vld [vmem:[%s16812_s1 + $0x84] ss:$8 sps:$4 sm:$0xff]  }
  0x14   :  { %333 = vmatprep.subr.bf16.mxu0 %v16823_v0  ;;  %595 = vmatprep.subr.bf16.mxu1 %v16823_v0  ;;  %v12111_v57 = vld [vmem:[%s16812_s1 + $0x70] ss:$8 sps:$4 sm:$0xff]   ;;  %v12127_v59 = vld [vmem:[%s16812_s1 + $0x80] ss:$8 sps:$4 sm:$0xff]   ;;  %v12132_v60 = vld [vmem:[%s16812_s1 + $0x94] ss:$8 sps:$4 sm:$0xff]  }
  0x15   :  { %v12143_v61 = vld [vmem:[%s16812_s1 + $0x90] ss:$8 sps:$4 sm:$0xff]   ;;  %v12148_v62 = vld [vmem:[%s16812_s1 + $0xa4] ss:$8 sps:$4 sm:$0xff]   ;;  %v12159_v63 = vld [vmem:[%s16812_s1 + $0xa0] ss:$8 sps:$4 sm:$0xff]  }
  0x16   :  { %v12164_v1 = vld [vmem:[%s16812_s1 + $0xb4] ss:$8 sps:$4 sm:$0xff]   ;;  %v12175_v2 = vld [vmem:[%s16812_s1 + $0xb0] ss:$8 sps:$4 sm:$0xff]   ;;  %v11297_v3 = vld [vmem:[%s16811_s0 + $0x40] sm:$0xff]  }
  0x17   :  { %334 = vmatpush1.bf16.msra.mxu0 %v11231_v11  ;;  %596 = vmatpush1.bf16.msra.mxu1 %v11232_v12  ;;  %v11298_v4 = vld [vmem:[%s16811_s0 + $0x50] sm:$0xff]   ;;  %v11299_v5 = vld [vmem:[%s16811_s0 + $0x48] sm:$0xff]   ;;  %v11300_v6 = vld [vmem:[%s16811_s0 + $0x58] sm:$0xff]  }
  0x18   :  { %335 = vmatprep.subr.bf16.mxu0 %v16823_v0  ;;  %597 = vmatprep.subr.bf16.mxu1 %v16823_v0  ;;  %v11301_v7 = vld [vmem:[%s16811_s0 + $0x50] sm:$0xff]   ;;  %v11302_v8 = vld [vmem:[%s16811_s0 + $0x60] sm:$0xff]   ;;  %v11303_v9 = vld [vmem:[%s16811_s0 + $0x58] sm:$0xff]  }
  0x19   :  { %v11304_v10 = vld [vmem:[%s16811_s0 + $0x68] sm:$0xff]   ;;  %v11305_v11 = vld [vmem:[%s16811_s0 + $0x60] sm:$0xff]   ;;  %v11306_v12 = vld [vmem:[%s16811_s0 + $0x70] sm:$0xff]  }
  0x1a   :  { %v12380_v32 = vld [vmem:[%s16812_s1 + $0x10] ss:$8 sps:$4 sm:$0xff]  }
  0x1b   :  { %336 = vmatpush1.bf16.msra.mxu0 %v11233_v14  ;;  %598 = vmatpush1.bf16.msra.mxu1 %v11234_v15  ;;  %v11308_v14 = vld [vmem:[%s16811_s0 + $0x78] sm:$0xff]   ;;  %v11309_v15 = vld [vmem:[%s16811_s0 + $0x70] sm:$0xff]  }
  0x1c   :  { %337 = vmatprep.subr.bf16.mxu0 %v16823_v0  ;;  %599 = vmatprep.subr.bf16.mxu1 %v16823_v0 }
  0x1f   :  { %338 = vmatpush1.bf16.msra.mxu0 %v11235_v16  ;;  %600 = vmatpush1.bf16.msra.mxu1 %v11236_v17  ;;  %v11310_v16 = vld [vmem:[%s16811_s0 + $0x80] sm:$0xff]   ;;  %v11311_v17 = vld [vmem:[%s16811_s0 + $0x78] sm:$0xff]  }
  0x20   :  { %339 = vmatprep.subr.bf16.mxu0 %v16823_v0  ;;  %601 = vmatprep.subr.bf16.mxu1 %v16823_v0 }
  0x23   :  { %340 = vmatpush1.bf16.msra.mxu0 %v11237_v18  ;;  %602 = vmatpush1.bf16.msra.mxu1 %v11238_v19  ;;  %v11312_v18 = vld [vmem:[%s16811_s0 + $0x88] sm:$0xff]   ;;  %v11313_v19 = vld [vmem:[%s16811_s0 + $0x80] sm:$0xff]  }
  0x24   :  { %341 = vmatprep.subr.bf16.mxu0 %v16823_v0  ;;  %603 = vmatprep.subr.bf16.mxu1 %v16823_v0 }
  0x27   :  { %342 = vmatpush1.bf16.msra.mxu0 %v11239_v20  ;;  %604 = vmatpush1.bf16.msra.mxu1 %v11240_v21  ;;  %v11314_v20 = vld [vmem:[%s16811_s0 + $0x90] sm:$0xff]   ;;  %v11315_v21 = vld [vmem:[%s16811_s0 + $0x88] sm:$0xff]  }
  0x28   :  { %890 = vmatprep.subr.bf16.mxu0 %v16823_v0  ;;  %1147 = vmatprep.subr.bf16.mxu1 %v16823_v0 }
  0x2a   :  { %356 = vmatmul.mubr.bf16.vlgmr.msra.gmra.mrb[0].mxu0 %v11914_v22  ;;  %618 = vmatmul.mubr.bf16.vlgmr.msra.gmra.mrb[0].mxu1 %v11914_v22 }
  0x2b   :  { %9947 = vmatprep.mubr.msk.bf16.mxu0 %vm286_vm0, %v11919_v23  ;;  %9969 = vmatprep.mubr.msk.bf16.mxu1 %vm286_vm0, %v11919_v23 }
  0x2c   :  { %891 = vmatpush1.bf16.msra.mxu0 %v11246_v24  ;;  %1148 = vmatpush1.bf16.msra.mxu1 %v11248_v25  ;;  %v11317_v24 = vld [vmem:[%s16811_s0 + $0x60] sm:$0xff]   ;;  %v11318_v25 = vld [vmem:[%s16811_s0 + $0x70] sm:$0xff]  }
  0x2d   :  { %892 = vmatprep.subr.bf16.mxu0 %v16823_v0  ;;  %1149 = vmatprep.subr.bf16.mxu1 %v16823_v0 }
  0x30   :  { %893 = vmatpush1.bf16.msra.mxu0 %v11252_v26  ;;  %1150 = vmatpush1.bf16.msra.mxu1 %v11253_v27  ;;  %v12349_v26 = vld [vmem:[%s16812_s1] ss:$8 sps:$4 sm:$0xff]   ;;  %v12356_v27 = vld [vmem:[%s16812_s1 + $0x14] ss:$8 sps:$4 sm:$0xff]  }
  0x31   :  { %894 = vmatprep.subr.bf16.mxu0 %v16823_v0  ;;  %1151 = vmatprep.subr.bf16.mxu1 %v16823_v0 }
  0x32   :  { %364 = vmatmul.mubr.bf16.gmra.mrb[4].mxu0 %v11945_v28  ;;  %626 = vmatmul.mubr.bf16.gmra.mrb[4].mxu1 %v11945_v28 }
  0x33   :  { %9948 = vmatprep.mubr.msk.bf16.mxu0 %vm286_vm0, %v11951_v29  ;;  %9970 = vmatprep.mubr.msk.bf16.mxu1 %vm286_vm0, %v11951_v29 }
  0x34   :  { %895 = vmatpush1.bf16.msra.mxu0 %v11257_v30  ;;  %1152 = vmatpush1.bf16.msra.mxu1 %v11258_v31  ;;  %v11321_v30 = vld [vmem:[%s16811_s0 + $0x70] sm:$0xff]   ;;  %v11322_v31 = vld [vmem:[%s16811_s0 + $0x80] sm:$0xff]  }
  0x35   :  { %896 = vmatprep.subr.bf16.mxu0 %v16823_v0  ;;  %1153 = vmatprep.subr.bf16.mxu1 %v16823_v0 }
  0x38   :  { %897 = vmatpush1.bf16.msra.mxu0 %v11262_v33  ;;  %1154 = vmatpush1.bf16.msra.mxu1 %v11265_v34  ;;  %v12388_v33 = vld [vmem:[%s16812_s1 + $0x24] ss:$8 sps:$4 sm:$0xff]   ;;  %v11323_v34 = vld [vmem:[%s16811_s0 + $0x78] sm:$0xff]  }
  0x39   :  { %898 = vmatprep.subr.bf16.mxu0 %v16823_v0  ;;  %1155 = vmatprep.subr.bf16.mxu1 %v16823_v0 }
  0x3a   :  { %372 = vmatmul.mubr.bf16.gmra.mrb[8].mxu0 %v11980_v35  ;;  %634 = vmatmul.mubr.bf16.gmra.mrb[8].mxu1 %v11980_v35 }
  0x3b   :  { %9949 = vmatprep.mubr.msk.bf16.mxu0 %vm286_vm0, %v11986_v36  ;;  %9971 = vmatprep.mubr.msk.bf16.mxu1 %vm286_vm0, %v11986_v36 }
  0x3c   :  { %899 = vmatpush1.bf16.msra.mxu0 %v11267_v37  ;;  %1156 = vmatpush1.bf16.msra.mxu1 %v11271_v38  ;;  %v11326_v37 = vld [vmem:[%s16811_s0 + $0x90] sm:$0xff]   ;;  %v12412_v38 = vld [vmem:[%s16812_s1 + $0x20] ss:$8 sps:$4 sm:$0xff]  }
  0x3d   :  { %900 = vmatprep.subr.bf16.mxu0 %v16823_v0  ;;  %1157 = vmatprep.subr.bf16.mxu1 %v16823_v0 }
  0x40   :  { %901 = vmatpush1.bf16.msra.mxu0 %v11274_v39  ;;  %1158 = vmatpush1.bf16.msra.mxu1 %v11276_v40  ;;  %v12422_v40 = vld [vmem:[%s16812_s1 + $0x34] ss:$8 sps:$4 sm:$0xff]  }
  0x41   :  { %902 = vmatprep.subr.bf16.mxu0 %v16823_v0  ;;  %1159 = vmatprep.subr.bf16.mxu1 %v16823_v0 }
  0x42   :  { %380 = vmatmul.mubr.bf16.gmra.mrb[12].mxu0 %v12012_v41  ;;  %642 = vmatmul.mubr.bf16.gmra.mrb[12].mxu1 %v12012_v41 }
  0x43   :  { %9950 = vmatprep.mubr.msk.bf16.mxu0 %vm286_vm0, %v12018_v42  ;;  %9972 = vmatprep.mubr.msk.bf16.mxu1 %vm286_vm0, %v12018_v42 }
  0x44   :  { %903 = vmatpush1.bf16.msra.mxu0 %v11280_v43  ;;  %1160 = vmatpush1.bf16.msra.mxu1 %v11281_v44  ;;  %v11328_v43 = vld [vmem:[%s16811_s0 + $0x98] sm:$0xff]  }
  0x45   :  { %904 = vmatprep.subr.bf16.mxu0 %v16823_v0  ;;  %1161 = vmatprep.subr.bf16.mxu1 %v16823_v0 }
  0x48   :  { %905 = vmatpush1.bf16.msra.mxu0 %v11285_v46  ;;  %1162 = vmatpush1.bf16.msra.mxu1 %v11286_v48 }
  0x49   :  { %906 = vmatprep.subr.bf16.mxu0 %v16823_v0  ;;  %1163 = vmatprep.subr.bf16.mxu1 %v16823_v0 }
  0x4a   :  { %388 = vmatmul.mubr.bf16.gmra.mrb[16].mxu0 %v12037_v45  ;;  %650 = vmatmul.mubr.bf16.gmra.mrb[16].mxu1 %v12037_v45 }
  0x4b   :  { %9951 = vmatprep.mubr.msk.bf16.mxu0 %vm286_vm0, %v12045_v47  ;;  %9973 = vmatprep.mubr.msk.bf16.mxu1 %vm286_vm0, %v12045_v47 }
  0x4c   :  { %907 = vmatpush1.bf16.msra.mxu0 %v11290_v49  ;;  %1164 = vmatpush1.bf16.msra.mxu1 %v11293_v50 }
  0x4d   :  { %908 = vmatprep.subr.bf16.mxu0 %v16823_v0  ;;  %1165 = vmatprep.subr.bf16.mxu1 %v16823_v0 }
  0x50   :  { %909 = vmatpush1.bf16.msra.mxu0 %v11295_v51  ;;  %1166 = vmatpush1.bf16.msra.mxu1 %v11296_v52 }
  0x51   :  { %1452 = vmatprep.subr.bf16.mxu0 %v16823_v0  ;;  %1709 = vmatprep.subr.bf16.mxu1 %v16823_v0 }
  0x52   :  { %396 = vmatmul.mubr.bf16.gmra.mrb[20].mxu0 %v12075_v53  ;;  %658 = vmatmul.mubr.bf16.gmra.mrb[20].mxu1 %v12075_v53 }
  0x53   :  { %9952 = vmatprep.mubr.msk.bf16.mxu0 %vm286_vm0, %v12080_v54  ;;  %9974 = vmatprep.mubr.msk.bf16.mxu1 %vm286_vm0, %v12080_v54 }
  0x5a   :  { %404 = vmatmul.mubr.bf16.gmra.mrb[24].mxu0 %v12095_v55  ;;  %666 = vmatmul.mubr.bf16.gmra.mrb[24].mxu1 %v12095_v55 }
  0x5b   :  { %9953 = vmatprep.mubr.msk.bf16.mxu0 %vm286_vm0, %v12100_v56  ;;  %9975 = vmatprep.mubr.msk.bf16.mxu1 %vm286_vm0, %v12100_v56 }
  0x62   :  { %412 = vmatmul.mubr.bf16.gmra.mrb[28].mxu0 %v12111_v57  ;;  %674 = vmatmul.mubr.bf16.gmra.mrb[28].mxu1 %v12111_v57 }
  0x63   :  { %9954 = vmatprep.mubr.msk.bf16.mxu0 %vm286_vm0, %v12116_v58  ;;  %9976 = vmatprep.mubr.msk.bf16.mxu1 %vm286_vm0, %v12116_v58 }
  0x6a   :  { %420 = vmatmul.mubr.bf16.gmra.mrb[32].mxu0 %v12127_v59  ;;  %682 = vmatmul.mubr.bf16.gmra.mrb[32].mxu1 %v12127_v59 }
  0x6b   :  { %9955 = vmatprep.mubr.msk.bf16.mxu0 %vm286_vm0, %v12132_v60  ;;  %9977 = vmatprep.mubr.msk.bf16.mxu1 %vm286_vm0, %v12132_v60 }
  0x72   :  { %428 = vmatmul.mubr.bf16.gmra.mrb[36].mxu0 %v12143_v61  ;;  %690 = vmatmul.mubr.bf16.gmra.mrb[36].mxu1 %v12143_v61 }
  0x73   :  { %9956 = vmatprep.mubr.msk.bf16.mxu0 %vm286_vm0, %v12148_v62  ;;  %9978 = vmatprep.mubr.msk.bf16.mxu1 %vm286_vm0, %v12148_v62 }
  0x7a   :  { %436 = vmatmul.mubr.bf16.gmra.mrb[40].mxu0 %v12159_v63  ;;  %698 = vmatmul.mubr.bf16.gmra.mrb[40].mxu1 %v12159_v63 }
  0x7b   :  { %9957 = vmatprep.mubr.msk.bf16.mxu0 %vm286_vm0, %v12164_v1  ;;  %9979 = vmatprep.mubr.msk.bf16.mxu1 %vm286_vm0, %v12164_v1 }
  0x82   :  { %444 = vmatmul.mubr.bf16.gmra.mrb[44].mxu0 %v12175_v2  ;;  %706 = vmatmul.mubr.bf16.gmra.mrb[44].mxu1 %v12175_v2 }
  0x83   :  { %9990 = vmatprep.mubr.msk.bf16.mxu0 %vm286_vm0, %v11873_v13  ;;  %10012 = vmatprep.mubr.msk.bf16.mxu1 %vm286_vm0, %v11873_v13  ;;  %v11307_v13 = vld [vmem:[%s16811_s0 + $0x68] sm:$0xff]  }
  0x8a   :  { %923 = vmatmul.mubr.bf16.vlgmr.msra.gmra.mrb[48].mxu0 %v11914_v22  ;;  %1180 = vmatmul.mubr.bf16.vlgmr.msra.gmra.mrb[48].mxu1 %v11914_v22  ;;  %v11316_v22 = vld [vmem:[%s16811_s0 + $0x98] sm:$0xff]  }
  0x8b   :  { %9991 = vmatprep.mubr.msk.bf16.mxu0 %vm286_vm0, %v11919_v23  ;;  %10013 = vmatprep.mubr.msk.bf16.mxu1 %vm286_vm0, %v11919_v23  ;;  %v12334_v23 = vld [vmem:[%s16812_s1 + $0x4] ss:$8 sps:$4 sm:$0xff]  }
  0x8c   :  { %1453 = vmatpush1.bf16.msra.mxu0 %v11297_v3  ;;  %1710 = vmatpush1.bf16.msra.mxu1 %v11298_v4  ;;  %v12417_v39 = vpop.permute.xlu0 %454  ;;  %v11332_v4 = vld [vmem:[%s16811_s0 + $0xa8] sm:$0xff]  }
  0x8d   :  { %1454 = vmatprep.subr.bf16.mxu0 %v16823_v0  ;;  %1711 = vmatprep.subr.bf16.mxu1 %v16823_v0 }
  0x90   :  { %1455 = vmatpush1.bf16.msra.mxu0 %v11299_v5  ;;  %1712 = vmatpush1.bf16.msra.mxu1 %v11300_v6 }
  0x91   :  { %1456 = vmatprep.subr.bf16.mxu0 %v16823_v0  ;;  %1713 = vmatprep.subr.bf16.mxu1 %v16823_v0 }
  0x92   :  { %931 = vmatmul.mubr.bf16.gmra.mrb[52].mxu0 %v11945_v28  ;;  %1188 = vmatmul.mubr.bf16.gmra.mrb[52].mxu1 %v11945_v28  ;;  %v11319_v28 = vld [vmem:[%s16811_s0 + $0x68] sm:$0xff]  }
  0x93   :  { %9992 = vmatprep.mubr.msk.bf16.mxu0 %vm286_vm0, %v11951_v29  ;;  %10014 = vmatprep.mubr.msk.bf16.mxu1 %vm286_vm0, %v11951_v29  ;;  %v11320_v29 = vld [vmem:[%s16811_s0 + $0x78] sm:$0xff]  }
  0x94   :  { %1457 = vmatpush1.bf16.msra.mxu0 %v11301_v7  ;;  %1714 = vmatpush1.bf16.msra.mxu1 %v11302_v8 }
  0x95   :  { %1458 = vmatprep.subr.bf16.mxu0 %v16823_v0  ;;  %1715 = vmatprep.subr.bf16.mxu1 %v16823_v0 }
  0x98   :  { %1459 = vmatpush1.bf16.msra.mxu0 %v11303_v9  ;;  %1716 = vmatpush1.bf16.msra.mxu1 %v11304_v10 }
  0x99   :  { %1460 = vmatprep.subr.bf16.mxu0 %v16823_v0  ;;  %1717 = vmatprep.subr.bf16.mxu1 %v16823_v0 }
  0x9a   :  { %939 = vmatmul.mubr.bf16.gmra.mrb[56].mxu0 %v11980_v35  ;;  %1196 = vmatmul.mubr.bf16.gmra.mrb[56].mxu1 %v11980_v35  ;;  %v11324_v35 = vld [vmem:[%s16811_s0 + $0x88] sm:$0xff]  }
  0x9b   :  { %9993 = vmatprep.mubr.msk.bf16.mxu0 %vm286_vm0, %v11986_v36  ;;  %10015 = vmatprep.mubr.msk.bf16.mxu1 %vm286_vm0, %v11986_v36  ;;  %v11325_v36 = vld [vmem:[%s16811_s0 + $0x80] sm:$0xff]  }
  0x9c   :  { %1461 = vmatpush1.bf16.msra.mxu0 %v11305_v11  ;;  %1718 = vmatpush1.bf16.msra.mxu1 %v11306_v12 }
  0x9d   :  { %1462 = vmatprep.subr.bf16.mxu0 %v16823_v0  ;;  %1719 = vmatprep.subr.bf16.mxu1 %v16823_v0 }
  0xa0   :  { %1463 = vmatpush1.bf16.msra.mxu0 %v11307_v13  ;;  %1720 = vmatpush1.bf16.msra.mxu1 %v11308_v14 }
  0xa1   :  { %1464 = vmatprep.subr.bf16.mxu0 %v16823_v0  ;;  %1721 = vmatprep.subr.bf16.mxu1 %v16823_v0 }
  0xa2   :  { %947 = vmatmul.mubr.bf16.gmra.mrb[60].mxu0 %v12012_v41  ;;  %1204 = vmatmul.mubr.bf16.gmra.mrb[60].mxu1 %v12012_v41  ;;  %v11327_v41 = vld [vmem:[%s16811_s0 + $0x88] sm:$0xff]  }
  0xa3   :  { %9994 = vmatprep.mubr.msk.bf16.mxu0 %vm286_vm0, %v12018_v42  ;;  %10016 = vmatprep.mubr.msk.bf16.mxu1 %vm286_vm0, %v12018_v42 }
  0xa4   :  { %1465 = vmatpush1.bf16.msra.mxu0 %v11309_v15  ;;  %1722 = vmatpush1.bf16.msra.mxu1 %v11310_v16  ;;  %v11333_v16 = vld [vmem:[%s16811_s0 + $0xa0] sm:$0xff]  }
  0xa5   :  { %1466 = vmatprep.subr.bf16.mxu0 %v16823_v0  ;;  %1723 = vmatprep.subr.bf16.mxu1 %v16823_v0 }
  0xa8   :  { %1467 = vmatpush1.bf16.msra.mxu0 %v11311_v17  ;;  %1724 = vmatpush1.bf16.msra.mxu1 %v11312_v18 }
  0xa9   :  { %1468 = vmatprep.subr.bf16.mxu0 %v16823_v0  ;;  %1725 = vmatprep.subr.bf16.mxu1 %v16823_v0 }
  0xaa   :  { %955 = vmatmul.mubr.bf16.gmra.mrb[64].mxu0 %v12037_v45  ;;  %1212 = vmatmul.mubr.bf16.gmra.mrb[64].mxu1 %v12037_v45 }
  0xab   :  { %9995 = vmatprep.mubr.msk.bf16.mxu0 %vm286_vm0, %v12045_v47  ;;  %10017 = vmatprep.mubr.msk.bf16.mxu1 %vm286_vm0, %v12045_v47 }
  0xac   :  { %1469 = vmatpush1.bf16.msra.mxu0 %v11313_v19  ;;  %1726 = vmatpush1.bf16.msra.mxu1 %v11314_v20  ;;  %v11334_v20 = vld [vmem:[%s16811_s0 + $0xb0] sm:$0xff]  }
  0xad   :  { %1470 = vmatprep.subr.bf16.mxu0 %v16823_v0  ;;  %1727 = vmatprep.subr.bf16.mxu1 %v16823_v0 }
  0xb0   :  { %1471 = vmatpush1.bf16.msra.mxu0 %v11315_v21  ;;  %1728 = vmatpush1.bf16.msra.mxu1 %v11316_v22  ;;  %v12489_v22 = vld [vmem:[%s16812_s1 + $0x40] ss:$8 sps:$4 sm:$0xff]  }
  0xb1   :  { %2014 = vmatprep.subr.bf16.mxu0 %v16823_v0  ;;  %2271 = vmatprep.subr.bf16.mxu1 %v16823_v0 }
  0xb2   :  { %963 = vmatmul.mubr.bf16.gmra.mrb[68].mxu0 %v12075_v53  ;;  %1220 = vmatmul.mubr.bf16.gmra.mrb[68].mxu1 %v12075_v53 }
  0xb3   :  { %9996 = vmatprep.mubr.msk.bf16.mxu0 %vm286_vm0, %v12080_v54  ;;  %10018 = vmatprep.mubr.msk.bf16.mxu1 %vm286_vm0, %v12080_v54  ;;  %v11329_v54 = vld [vmem:[%s16811_s0 + $0x90] sm:$0xff]  }
  0xba   :  { %971 = vmatmul.mubr.bf16.gmra.mrb[72].mxu0 %v12095_v55  ;;  %1228 = vmatmul.mubr.bf16.gmra.mrb[72].mxu1 %v12095_v55 }
  0xbb   :  { %9997 = vmatprep.mubr.msk.bf16.mxu0 %vm286_vm0, %v12100_v56  ;;  %10019 = vmatprep.mubr.msk.bf16.mxu1 %vm286_vm0, %v12100_v56 }
  0xc2   :  { %979 = vmatmul.mubr.bf16.gmra.mrb[76].mxu0 %v12111_v57  ;;  %1236 = vmatmul.mubr.bf16.gmra.mrb[76].mxu1 %v12111_v57 }
  0xc3   :  { %9998 = vmatprep.mubr.msk.bf16.mxu0 %vm286_vm0, %v12116_v58  ;;  %10020 = vmatprep.mubr.msk.bf16.mxu1 %vm286_vm0, %v12116_v58  ;;  %v11330_v58 = vld [vmem:[%s16811_s0 + $0xa0] sm:$0xff]  }
  0xca   :  { %987 = vmatmul.mubr.bf16.gmra.mrb[80].mxu0 %v12127_v59  ;;  %1244 = vmatmul.mubr.bf16.gmra.mrb[80].mxu1 %v12127_v59 }
  0xcb   :  { %9999 = vmatprep.mubr.msk.bf16.mxu0 %vm286_vm0, %v12132_v60  ;;  %10021 = vmatprep.mubr.msk.bf16.mxu1 %vm286_vm0, %v12132_v60  ;;  %v12450_v60 = vld [vmem:[%s16812_s1 + $0x30] ss:$8 sps:$4 sm:$0xff]  }
  0xd2   :  { %995 = vmatmul.mubr.bf16.gmra.mrb[84].mxu0 %v12143_v61  ;;  %1252 = vmatmul.mubr.bf16.gmra.mrb[84].mxu1 %v12143_v61 }
  0xd3   :  { %10000 = vmatprep.mubr.msk.bf16.mxu0 %vm286_vm0, %v12148_v62  ;;  %10022 = vmatprep.mubr.msk.bf16.mxu1 %vm286_vm0, %v12148_v62 }
  0xda   :  { %1003 = vmatmul.mubr.bf16.gmra.mrb[88].mxu0 %v12159_v63  ;;  %1260 = vmatmul.mubr.bf16.gmra.mrb[88].mxu1 %v12159_v63  ;;  %v12460_v63 = vld [vmem:[%s16812_s1 + $0x44] ss:$8 sps:$4 sm:$0xff]  }
  0xdb   :  { %10001 = vmatprep.mubr.msk.bf16.mxu0 %vm286_vm0, %v12164_v1  ;;  %10023 = vmatprep.mubr.msk.bf16.mxu1 %vm286_vm0, %v12164_v1  ;;  %v11331_v1 = vld [vmem:[%s16811_s0 + $0x98] sm:$0xff]  }
  0xe2   :  { %1011 = vmatmul.mubr.bf16.gmra.mrb[92].mxu0 %v12175_v2  ;;  %1268 = vmatmul.mubr.bf16.gmra.mrb[92].mxu1 %v12175_v2 }
  0xe3   :  { %10034 = vmatprep.mubr.msk.bf16.mxu0 %vm286_vm0, %v12334_v23  ;;  %10056 = vmatprep.mubr.msk.bf16.mxu1 %vm286_vm0, %v12334_v23 }
  0xea   :  { %1485 = vmatmul.mubr.bf16.vlgmr.msra.gmra.mrb[96].mxu0 %v12349_v26  ;;  %1742 = vmatmul.mubr.bf16.vlgmr.msra.gmra.mrb[96].mxu1 %v12349_v26 }
  0xeb   :  { %10035 = vmatprep.mubr.msk.bf16.mxu0 %vm286_vm0, %v12356_v27  ;;  %10057 = vmatprep.mubr.msk.bf16.mxu1 %vm286_vm0, %v12356_v27 }
  0xec   :  { %2015 = vmatpush1.bf16.msra.mxu0 %v11317_v24  ;;  %2272 = vmatpush1.bf16.msra.mxu1 %v11318_v25 }
  0xed   :  { %2016 = vmatprep.subr.bf16.mxu0 %v16823_v0  ;;  %2273 = vmatprep.subr.bf16.mxu1 %v16823_v0 }
  0xf0   :  { %2017 = vmatpush1.bf16.msra.mxu0 %v11319_v28  ;;  %2274 = vmatpush1.bf16.msra.mxu1 %v11320_v29  ;;  %v12497_v28 = vld [vmem:[%s16812_s1 + $0x54] ss:$8 sps:$4 sm:$0xff]   ;;  %v11335_v29 = vld [vmem:[%s16811_s0 + $0xa8] sm:$0xff]  }
  0xf1   :  { %2018 = vmatprep.subr.bf16.mxu0 %v16823_v0  ;;  %2275 = vmatprep.subr.bf16.mxu1 %v16823_v0 }
  0xf2   :  { %1493 = vmatmul.mubr.bf16.gmra.mrb[100].mxu0 %v12380_v32  ;;  %1750 = vmatmul.mubr.bf16.gmra.mrb[100].mxu1 %v12380_v32 }
  0xf3   :  { %10036 = vmatprep.mubr.msk.bf16.mxu0 %vm286_vm0, %v12388_v33  ;;  %10058 = vmatprep.mubr.msk.bf16.mxu1 %vm286_vm0, %v12388_v33 }
  0xf4   :  { %2019 = vmatpush1.bf16.msra.mxu0 %v11321_v30  ;;  %2276 = vmatpush1.bf16.msra.mxu1 %v11322_v31 }
  0xf5   :  { %2020 = vmatprep.subr.bf16.mxu0 %v16823_v0  ;;  %2277 = vmatprep.subr.bf16.mxu1 %v16823_v0 }
  0xf8   :  { %2021 = vmatpush1.bf16.msra.mxu0 %v11323_v34  ;;  %2278 = vmatpush1.bf16.msra.mxu1 %v11324_v35  ;;  %v11336_v34 = vld [vmem:[%s16811_s0 + $0xb8] sm:$0xff]  }
  0xf9   :  { %2022 = vmatprep.subr.bf16.mxu0 %v16823_v0  ;;  %2279 = vmatprep.subr.bf16.mxu1 %v16823_v0 }
  0xfa   :  { %1501 = vmatmul.mubr.bf16.gmra.mrb[104].mxu0 %v12412_v38  ;;  %1758 = vmatmul.mubr.bf16.gmra.mrb[104].mxu1 %v12412_v38 }
  0xfb   :  { %10037 = vmatprep.mubr.msk.bf16.mxu0 %vm286_vm0, %v12422_v40  ;;  %10059 = vmatprep.mubr.msk.bf16.mxu1 %vm286_vm0, %v12422_v40 }
  0xfc   :  { %2023 = vmatpush1.bf16.msra.mxu0 %v11325_v36  ;;  %2280 = vmatpush1.bf16.msra.mxu1 %v11326_v37 }
  0xfd   :  { %v357_v42 = vpop.f32.mrb[0].mxu0  ;;  %2024 = vmatprep.subr.bf16.mxu0 %v16823_v0  ;;  %v619_v45 = vpop.f32.mrb[0].mxu1  ;;  %2281 = vmatprep.subr.bf16.mxu1 %v16823_v0 }
  0xfe   :  { %v457_v44 = vadd.f32 %v12417_v39, %v357_v42  ;;  %v359_v46 = vpop.f32.mrb[1].mxu0  ;;  %v714_v47 = vadd.f32 %v619_v45, %v12417_v39  ;;  %v621_v48 = vpop.f32.mrb[1].mxu1 }
  0xff   :  { %v360_v49 = vpop.f32.mrb[2].mxu0  ;;  %v622_v52 = vpop.f32.mrb[2].mxu1 }
 0x100   :  { %v481_v50 = vmax.f32 %v457_v44, 0.0  ;;  %v458_v51 = vadd.f32 %v12417_v39, %v360_v49  ;;  %v362_v53 = vpop.f32.mrb[3].mxu0  ;;  %2025 = vmatpush1.bf16.msra.mxu0 %v11327_v41  ;;  %v738_v55 = vmax.f32 %v714_v47, 0.0  ;;  %v715_v56 = vadd.f32 %v622_v52, %v12417_v39  ;;  %v624_v57 = vpop.f32.mrb[3].mxu1  ;;  %2282 = vmatpush1.bf16.msra.mxu1 %v11328_v43 }
 0x101   :  { %2026 = vmatprep.subr.bf16.mxu0 %v16823_v0  ;;  %2283 = vmatprep.subr.bf16.mxu1 %v16823_v0  ;;  %v12529_v57 = vld [vmem:[%s16812_s1 + $0x64] ss:$8 sps:$4 sm:$0xff]  }
 0x102   :  { %v482_v59 = vmax.f32 %v458_v51, 0.0  ;;  %1509 = vmatmul.mubr.bf16.gmra.mrb[108].mxu0 %v12450_v60  ;;  %v12454_v61 = vmax.f32 %v481_v50, %v738_v55  ;;  %v739_v62 = vmax.f32 %v715_v56, 0.0  ;;  %1766 = vmatmul.mubr.bf16.gmra.mrb[108].mxu1 %v12450_v60 }
 0x103   :  { %10038 = vmatprep.mubr.msk.bf16.mxu0 %vm286_vm0, %v12460_v63  ;;  %10060 = vmatprep.mubr.msk.bf16.mxu1 %vm286_vm0, %v12460_v63 }
 0x104   :  { %2027 = vmatpush1.bf16.msra.mxu0 %v11329_v54  ;;  %v763_v2 = vmax.f32 %v482_v59, %v739_v62  ;;  %2284 = vmatpush1.bf16.msra.mxu1 %v11330_v58  ;;  %v12521_v54 = vld [vmem:[%s16812_s1 + $0x50] ss:$8 sps:$4 sm:$0xff]  }
 0x105   :  { %v365_v3 = vpop.f32.mrb[4].mxu0  ;;  %2028 = vmatprep.subr.bf16.mxu0 %v16823_v0  ;;  %v627_v6 = vpop.f32.mrb[4].mxu1  ;;  %2285 = vmatprep.subr.bf16.mxu1 %v16823_v0 }
 0x106   :  { %v459_v5 = vadd.f32 %v12417_v39, %v365_v3  ;;  %v367_v7 = vpop.f32.mrb[5].mxu0  ;;  %v786_v8 = vmax.f32 %v12454_v61, %v763_v2  ;;  %v716_v9 = vadd.f32 %v627_v6, %v12417_v39  ;;  %v629_v10 = vpop.f32.mrb[5].mxu1 }
 0x107   :  { %v368_v11 = vpop.f32.mrb[6].mxu0  ;;  %v630_v14 = vpop.f32.mrb[6].mxu1 }
 0x108   :  { %v483_v12 = vmax.f32 %v459_v5, 0.0  ;;  %v460_v13 = vadd.f32 %v12417_v39, %v368_v11  ;;  %v370_v15 = vpop.f32.mrb[7].mxu0  ;;  %2029 = vmatpush1.bf16.msra.mxu0 %v11331_v1  ;;  %v740_v17 = vmax.f32 %v716_v9, 0.0  ;;  %v717_v18 = vadd.f32 %v630_v14, %v12417_v39  ;;  %v632_v19 = vpop.f32.mrb[7].mxu1  ;;  %2286 = vmatpush1.bf16.msra.mxu1 %v11332_v4  ;;  %v12542_v14 = vld [vmem:[%s16812_s1 + $0x60] ss:$8 sps:$4 sm:$0xff]  }
 0x109   :  { %2030 = vmatprep.subr.bf16.mxu0 %v16823_v0  ;;  %2287 = vmatprep.subr.bf16.mxu1 %v16823_v0 }
 0x10a   :  { %v484_v21 = vmax.f32 %v460_v13, 0.0  ;;  %1517 = vmatmul.mubr.bf16.gmra.mrb[112].mxu0 %v12489_v22  ;;  %v764_v24 = vmax.f32 %v483_v12, %v740_v17  ;;  %v741_v25 = vmax.f32 %v717_v18, 0.0  ;;  %1774 = vmatmul.mubr.bf16.gmra.mrb[112].mxu1 %v12489_v22  ;;  %v12549_v17 = vld [vmem:[%s16812_s1 + $0x74] ss:$8 sps:$4 sm:$0xff]  }
 0x10b   :  { %10039 = vmatprep.mubr.msk.bf16.mxu0 %vm286_vm0, %v12497_v28  ;;  %10061 = vmatprep.mubr.msk.bf16.mxu1 %vm286_vm0, %v12497_v28 }
 0x10c   :  { %2031 = vmatpush1.bf16.msra.mxu0 %v11333_v16  ;;  %v765_v30 = vmax.f32 %v484_v21, %v741_v25  ;;  %2288 = vmatpush1.bf16.msra.mxu1 %v11334_v20 }
 0x10d   :  { %v373_v31 = vpop.f32.mrb[8].mxu0  ;;  %2032 = vmatprep.subr.bf16.mxu0 %v16823_v0  ;;  %v635_v36 = vpop.f32.mrb[8].mxu1  ;;  %2289 = vmatprep.subr.bf16.mxu1 %v16823_v0 }
 0x10e   :  { %v461_v35 = vadd.f32 %v12417_v39, %v373_v31  ;;  %v375_v37 = vpop.f32.mrb[9].mxu0  ;;  %v787_v41 = vmax.f32 %v764_v24, %v765_v30  ;;  %v718_v42 = vadd.f32 %v635_v36, %v12417_v39  ;;  %v637_v43 = vpop.f32.mrb[9].mxu1 }
 0x10f   :  { %v376_v44 = vpop.f32.mrb[10].mxu0  ;;  %v638_v47 = vpop.f32.mrb[10].mxu1 }
 0x110   :  { %v485_v45 = vmax.f32 %v461_v35, 0.0  ;;  %v462_v46 = vadd.f32 %v12417_v39, %v376_v44  ;;  %v378_v48 = vpop.f32.mrb[11].mxu0  ;;  %2033 = vmatpush1.bf16.msra.mxu0 %v11335_v29  ;;  %v742_v49 = vmax.f32 %v718_v42, 0.0  ;;  %v719_v50 = vadd.f32 %v638_v47, %v12417_v39  ;;  %v640_v51 = vpop.f32.mrb[11].mxu1  ;;  %2290 = vmatpush1.bf16.msra.mxu1 %v11336_v34 }
 0x111   :  { %2576 = vmatprep.subr.bf16.mxu0 %v16823_v0  ;;  %v12516_v52 = vpack.c.bf16 %v787_v41, %v786_v8  ;;  %2833 = vmatprep.subr.bf16.mxu1 %v16823_v0 }
 0x112   :  { %v486_v53 = vmax.f32 %v462_v46, 0.0  ;;  %1525 = vmatmul.mubr.bf16.gmra.mrb[116].mxu0 %v12521_v54  ;;  %v766_v55 = vmax.f32 %v485_v45, %v742_v49  ;;  %v743_v56 = vmax.f32 %v719_v50, 0.0  ;;  %1782 = vmatmul.mubr.bf16.gmra.mrb[116].mxu1 %v12521_v54  ;;  %v12564_v46 = vld [vmem:[%s16812_s1 + $0x70] ss:$8 sps:$4 sm:$0xff]   ;;  %v12571_v49 = vld [vmem:[%s16812_s1 + $0x84] ss:$8 sps:$4 sm:$0xff]  }
 0x113   :  { %10040 = vmatprep.mubr.msk.bf16.mxu0 %vm286_vm0, %v12529_v57  ;;  %10062 = vmatprep.mubr.msk.bf16.mxu1 %vm286_vm0, %v12529_v57 }
 0x114   :  { %v767_v58 = vmax.f32 %v486_v53, %v743_v56 }
 0x115   :  { %v381_v59 = vpop.f32.mrb[12].mxu0  ;;  %v643_v62 = vpop.f32.mrb[12].mxu1 }
 0x116   :  { %v463_v61 = vadd.f32 %v12417_v39, %v381_v59  ;;  %v383_v1 = vpop.f32.mrb[13].mxu0  ;;  %v788_v2 = vmax.f32 %v766_v55, %v767_v58  ;;  %v720_v3 = vadd.f32 %v643_v62, %v12417_v39  ;;  %v645_v4 = vpop.f32.mrb[13].mxu1 }
 0x117   :  { %v384_v5 = vpop.f32.mrb[14].mxu0  ;;  %v646_v8 = vpop.f32.mrb[14].mxu1 }
 0x118   :  { %v487_v6 = vmax.f32 %v463_v61, 0.0  ;;  %v464_v7 = vadd.f32 %v12417_v39, %v384_v5  ;;  %v386_v9 = vpop.f32.mrb[15].mxu0  ;;  %v744_v10 = vmax.f32 %v720_v3, 0.0  ;;  %v721_v11 = vadd.f32 %v646_v8, %v12417_v39  ;;  %v648_v12 = vpop.f32.mrb[15].mxu1 }
 0x119   :  { %v12584_v9 = vld [vmem:[%s16812_s1 + $0x80] ss:$8 sps:$4 sm:$0xff]   ;;  %v12591_v12 = vld [vmem:[%s16812_s1 + $0x94] ss:$8 sps:$4 sm:$0xff]  }
 0x11a   :  { %v488_v13 = vmax.f32 %v464_v7, 0.0  ;;  %1533 = vmatmul.mubr.bf16.gmra.mrb[120].mxu0 %v12542_v14  ;;  %v768_v15 = vmax.f32 %v487_v6, %v744_v10  ;;  %v745_v16 = vmax.f32 %v721_v11, 0.0  ;;  %1790 = vmatmul.mubr.bf16.gmra.mrb[120].mxu1 %v12542_v14 }
 0x11b   :  { %10041 = vmatprep.mubr.msk.bf16.mxu0 %vm286_vm0, %v12549_v17  ;;  %10063 = vmatprep.mubr.msk.bf16.mxu1 %vm286_vm0, %v12549_v17 }
 0x11c   :  { %v769_v18 = vmax.f32 %v488_v13, %v745_v16 }
 0x11d   :  { %v389_v19 = vpop.f32.mrb[16].mxu0  ;;  %v651_v21 = vpop.f32.mrb[16].mxu1 }
 0x11e   :  { %v465_v20 = vadd.f32 %v12417_v39, %v389_v19  ;;  %v391_v24 = vpop.f32.mrb[17].mxu0  ;;  %v789_v25 = vmax.f32 %v768_v15, %v769_v18  ;;  %v722_v29 = vadd.f32 %v651_v21, %v12417_v39  ;;  %v653_v30 = vpop.f32.mrb[17].mxu1 }
 0x11f   :  { %v392_v31 = vpop.f32.mrb[18].mxu0  ;;  %v654_v36 = vpop.f32.mrb[18].mxu1 }
 0x120   :  { %v489_v34 = vmax.f32 %v465_v20, 0.0  ;;  %v466_v35 = vadd.f32 %v12417_v39, %v392_v31  ;;  %v394_v37 = vpop.f32.mrb[19].mxu0  ;;  %v746_v41 = vmax.f32 %v722_v29, 0.0  ;;  %v723_v42 = vadd.f32 %v654_v36, %v12417_v39  ;;  %v656_v43 = vpop.f32.mrb[19].mxu1 }
 0x121   :  { %v12559_v44 = vpack.c.bf16 %v789_v25, %v788_v2  ;;  %v12606_v43 = vld [vmem:[%s16812_s1 + $0x90] ss:$8 sps:$4 sm:$0xff]  }
 0x122   :  { %v490_v45 = vmax.f32 %v466_v35, 0.0  ;;  %1541 = vmatmul.mubr.bf16.gmra.mrb[124].mxu0 %v12564_v46  ;;  %v770_v47 = vmax.f32 %v489_v34, %v746_v41  ;;  %v747_v48 = vmax.f32 %v723_v42, 0.0  ;;  %1798 = vmatmul.mubr.bf16.gmra.mrb[124].mxu1 %v12564_v46 }
 0x123   :  { %10042 = vmatprep.mubr.msk.bf16.mxu0 %vm286_vm0, %v12571_v49  ;;  %10064 = vmatprep.mubr.msk.bf16.mxu1 %vm286_vm0, %v12571_v49 }
 0x124   :  { %v771_v50 = vmax.f32 %v490_v45, %v747_v48  ;;  %v12613_v48 = vld [vmem:[%s16812_s1 + $0xa4] ss:$8 sps:$4 sm:$0xff]  }
 0x125   :  { %v397_v51 = vpop.f32.mrb[20].mxu0  ;;  %v659_v55 = vpop.f32.mrb[20].mxu1 }
 0x126   :  { %v467_v53 = vadd.f32 %v12417_v39, %v397_v51  ;;  %v399_v56 = vpop.f32.mrb[21].mxu0  ;;  %v790_v58 = vmax.f32 %v770_v47, %v771_v50  ;;  %v724_v59 = vadd.f32 %v659_v55, %v12417_v39  ;;  %v661_v61 = vpop.f32.mrb[21].mxu1 }
 0x127   :  { %v400_v62 = vpop.f32.mrb[22].mxu0  ;;  %v662_v3 = vpop.f32.mrb[22].mxu1 }
 0x128   :  { %v491_v1 = vmax.f32 %v467_v53, 0.0  ;;  %v468_v2 = vadd.f32 %v12417_v39, %v400_v62  ;;  %v402_v4 = vpop.f32.mrb[23].mxu0  ;;  %v748_v5 = vmax.f32 %v724_v59, 0.0  ;;  %v725_v6 = vadd.f32 %v662_v3, %v12417_v39  ;;  %v664_v7 = vpop.f32.mrb[23].mxu1 }
 0x12a   :  { %v492_v8 = vmax.f32 %v468_v2, 0.0  ;;  %1549 = vmatmul.mubr.bf16.gmra.mrb[128].mxu0 %v12584_v9  ;;  %v772_v10 = vmax.f32 %v491_v1, %v748_v5  ;;  %v749_v11 = vmax.f32 %v725_v6, 0.0  ;;  %1806 = vmatmul.mubr.bf16.gmra.mrb[128].mxu1 %v12584_v9 }
 0x12b   :  { %10043 = vmatprep.mubr.msk.bf16.mxu0 %vm286_vm0, %v12591_v12  ;;  %10065 = vmatprep.mubr.msk.bf16.mxu1 %vm286_vm0, %v12591_v12 }
 0x12c   :  { %v773_v13 = vmax.f32 %v492_v8, %v749_v11 }
 0x12d   :  { %v405_v15 = vpop.f32.mrb[24].mxu0  ;;  %v667_v18 = vpop.f32.mrb[24].mxu1 }
 0x12e   :  { %v469_v16 = vadd.f32 %v12417_v39, %v405_v15  ;;  %v407_v19 = vpop.f32.mrb[25].mxu0  ;;  %v791_v20 = vmax.f32 %v772_v10, %v773_v13  ;;  %v726_v21 = vadd.f32 %v667_v18, %v12417_v39  ;;  %v669_v24 = vpop.f32.mrb[25].mxu1  ;;  %v12626_v10 = vld [vmem:[%s16812_s1 + $0xa0] ss:$8 sps:$4 sm:$0xff]   ;;  %v12633_v15 = vld [vmem:[%s16812_s1 + $0xb4] ss:$8 sps:$4 sm:$0xff]  }
 0x12f   :  { %v408_v25 = vpop.f32.mrb[26].mxu0  ;;  %v670_v31 = vpop.f32.mrb[26].mxu1 }
 0x130   :  { %v493_v29 = vmax.f32 %v469_v16, 0.0  ;;  %v470_v30 = vadd.f32 %v12417_v39, %v408_v25  ;;  %v410_v34 = vpop.f32.mrb[27].mxu0  ;;  %v750_v35 = vmax.f32 %v726_v21, 0.0  ;;  %v727_v36 = vadd.f32 %v670_v31, %v12417_v39  ;;  %v672_v37 = vpop.f32.mrb[27].mxu1 }
 0x131   :  { %v12601_v41 = vpack.c.bf16 %v791_v20, %v790_v58 }
 0x132   :  { %v494_v42 = vmax.f32 %v470_v30, 0.0  ;;  %1557 = vmatmul.mubr.bf16.gmra.mrb[132].mxu0 %v12606_v43  ;;  %v774_v45 = vmax.f32 %v493_v29, %v750_v35  ;;  %v751_v47 = vmax.f32 %v727_v36, 0.0  ;;  %1814 = vmatmul.mubr.bf16.gmra.mrb[132].mxu1 %v12606_v43 }
 0x133   :  { %10044 = vmatprep.mubr.msk.bf16.mxu0 %vm286_vm0, %v12613_v48  ;;  %10066 = vmatprep.mubr.msk.bf16.mxu1 %vm286_vm0, %v12613_v48 }
 0x134   :  { %v775_v50 = vmax.f32 %v494_v42, %v751_v47 }
 0x135   :  { %v413_v51 = vpop.f32.mrb[28].mxu0  ;;  %v675_v55 = vpop.f32.mrb[28].mxu1 }
 0x136   :  { %v471_v53 = vadd.f32 %v12417_v39, %v413_v51  ;;  %v415_v56 = vpop.f32.mrb[29].mxu0  ;;  %v792_v58 = vmax.f32 %v774_v45, %v775_v50  ;;  %v728_v59 = vadd.f32 %v675_v55, %v12417_v39  ;;  %v677_v61 = vpop.f32.mrb[29].mxu1  ;;  %v12648_v51 = vld [vmem:[%s16812_s1 + $0xb0] ss:$8 sps:$4 sm:$0xff]  }
 0x137   :  { %v416_v62 = vpop.f32.mrb[30].mxu0  ;;  %v678_v3 = vpop.f32.mrb[30].mxu1 }
 0x138   :  { %v495_v1 = vmax.f32 %v471_v53, 0.0  ;;  %v472_v2 = vadd.f32 %v12417_v39, %v416_v62  ;;  %v418_v4 = vpop.f32.mrb[31].mxu0  ;;  %v752_v5 = vmax.f32 %v728_v59, 0.0  ;;  %v729_v6 = vadd.f32 %v678_v3, %v12417_v39  ;;  %v680_v7 = vpop.f32.mrb[31].mxu1 }
 0x13a   :  { %v496_v8 = vmax.f32 %v472_v2, 0.0  ;;  %1565 = vmatmul.mubr.bf16.gmra.mrb[136].mxu0 %v12626_v10  ;;  %v776_v11 = vmax.f32 %v495_v1, %v752_v5  ;;  %v753_v13 = vmax.f32 %v729_v6, 0.0  ;;  %1822 = vmatmul.mubr.bf16.gmra.mrb[136].mxu1 %v12626_v10 }
 0x13b   :  { %10045 = vmatprep.mubr.msk.bf16.mxu0 %vm286_vm0, %v12633_v15  ;;  %10067 = vmatprep.mubr.msk.bf16.mxu1 %vm286_vm0, %v12633_v15 }
 0x13c   :  { %v777_v16 = vmax.f32 %v496_v8, %v753_v13 }
 0x13d   :  { %v421_v18 = vpop.f32.mrb[32].mxu0  ;;  %v683_v20 = vpop.f32.mrb[32].mxu1 }
 0x13e   :  { %v473_v19 = vadd.f32 %v12417_v39, %v421_v18  ;;  %v423_v21 = vpop.f32.mrb[33].mxu0  ;;  %v793_v24 = vmax.f32 %v776_v11, %v777_v16  ;;  %v730_v25 = vadd.f32 %v683_v20, %v12417_v39  ;;  %v685_v29 = vpop.f32.mrb[33].mxu1  ;;  %v11338_v18 = vld [vmem:[%s16811_s0 + $0x90] sm:$0xff]  }
 0x13f   :  { %v424_v30 = vpop.f32.mrb[34].mxu0  ;;  %v686_v35 = vpop.f32.mrb[34].mxu1 }
 0x140   :  { %v497_v31 = vmax.f32 %v473_v19, 0.0  ;;  %v474_v34 = vadd.f32 %v12417_v39, %v424_v30  ;;  %v426_v36 = vpop.f32.mrb[35].mxu0  ;;  %v754_v37 = vmax.f32 %v730_v25, 0.0  ;;  %v731_v42 = vadd.f32 %v686_v35, %v12417_v39  ;;  %v688_v45 = vpop.f32.mrb[35].mxu1 }
 0x141   :  { %v12643_v47 = vpack.c.bf16 %v793_v24, %v792_v58  ;;  %v11339_v24 = vld [vmem:[%s16811_s0 + $0x88] sm:$0xff]  }
 0x142   :  { %v498_v50 = vmax.f32 %v474_v34, 0.0  ;;  %1573 = vmatmul.mubr.bf16.gmra.mrb[140].mxu0 %v12648_v51  ;;  %v778_v53 = vmax.f32 %v497_v31, %v754_v37  ;;  %v755_v55 = vmax.f32 %v731_v42, 0.0  ;;  %1830 = vmatmul.mubr.bf16.gmra.mrb[140].mxu1 %v12648_v51 }
 0x143   :  { %10078 = vmatprep.mubr.msk.bf16.mxu0 %vm286_vm0, %v12334_v23  ;;  %10100 = vmatprep.mubr.msk.bf16.mxu1 %vm286_vm0, %v12334_v23  ;;  %v11337_v23 = vld [vmem:[%s16811_s0 + $0x80] sm:$0xff]  }
 0x144   :  { %v779_v56 = vmax.f32 %v498_v50, %v755_v55  ;;  %v11341_v55 = vld [vmem:[%s16811_s0 + $0x90] sm:$0xff]  }
 0x145   :  { %v429_v58 = vpop.f32.mrb[36].mxu0  ;;  %v691_v61 = vpop.f32.mrb[36].mxu1 }
 0x146   :  { %v475_v59 = vadd.f32 %v12417_v39, %v429_v58  ;;  %v431_v62 = vpop.f32.mrb[37].mxu0  ;;  %v794_v1 = vmax.f32 %v778_v53, %v779_v56  ;;  %v732_v2 = vadd.f32 %v691_v61, %v12417_v39  ;;  %v693_v3 = vpop.f32.mrb[37].mxu1  ;;  %v11342_v61 = vld [vmem:[%s16811_s0 + $0xa0] sm:$0xff]  }
 0x147   :  { %v432_v4 = vpop.f32.mrb[38].mxu0  ;;  %v694_v7 = vpop.f32.mrb[38].mxu1 }
 0x148   :  { %v499_v5 = vmax.f32 %v475_v59, 0.0  ;;  %v476_v6 = vadd.f32 %v12417_v39, %v432_v4  ;;  %v434_v8 = vpop.f32.mrb[39].mxu0  ;;  %v756_v11 = vmax.f32 %v732_v2, 0.0  ;;  %v733_v13 = vadd.f32 %v694_v7, %v12417_v39  ;;  %v696_v16 = vpop.f32.mrb[39].mxu1 }
 0x14a   :  { %v500_v19 = vmax.f32 %v476_v6, 0.0  ;;  %2047 = vmatmul.mubr.bf16.vlgmr.msra.gmra.mrb[144].mxu0 %v12349_v26  ;;  %v780_v20 = vmax.f32 %v499_v5, %v756_v11  ;;  %v757_v21 = vmax.f32 %v733_v13, 0.0  ;;  %2304 = vmatmul.mubr.bf16.vlgmr.msra.gmra.mrb[144].mxu1 %v12349_v26  ;;  %v11340_v26 = vld [vmem:[%s16811_s0 + $0x98] sm:$0xff]  }
 0x14b   :  { %10079 = vmatprep.mubr.msk.bf16.mxu0 %vm286_vm0, %v12356_v27  ;;  %10101 = vmatprep.mubr.msk.bf16.mxu1 %vm286_vm0, %v12356_v27 }
 0x14c   :  { %2577 = vmatpush1.bf16.msra.mxu0 %v11337_v23  ;;  %v781_v25 = vmax.f32 %v500_v19, %v757_v21  ;;  %2834 = vmatpush1.bf16.msra.mxu1 %v11338_v18 }
 0x14d   :  { %v437_v29 = vpop.f32.mrb[40].mxu0  ;;  %2578 = vmatprep.subr.bf16.mxu0 %v16823_v0  ;;  %v699_v31 = vpop.f32.mrb[40].mxu1  ;;  %2835 = vmatprep.subr.bf16.mxu1 %v16823_v0 }
 0x14e   :  { %v477_v30 = vadd.f32 %v12417_v39, %v437_v29  ;;  %v439_v34 = vpop.f32.mrb[41].mxu0  ;;  %v795_v27 = vmax.f32 %v780_v20, %v781_v25  ;;  %v734_v35 = vadd.f32 %v699_v31, %v12417_v39  ;;  %v701_v36 = vpop.f32.mrb[41].mxu1 }
 0x14f   :  { %v440_v37 = vpop.f32.mrb[42].mxu0  ;;  %v702_v50 = vpop.f32.mrb[42].mxu1 }
 0x150   :  { %v501_v42 = vmax.f32 %v477_v30, 0.0  ;;  %v478_v45 = vadd.f32 %v12417_v39, %v440_v37  ;;  %v442_v53 = vpop.f32.mrb[43].mxu0  ;;  %2579 = vmatpush1.bf16.msra.mxu0 %v11339_v24  ;;  %v758_v56 = vmax.f32 %v734_v35, 0.0  ;;  %v735_v58 = vadd.f32 %v702_v50, %v12417_v39  ;;  %v704_v59 = vpop.f32.mrb[43].mxu1  ;;  %2836 = vmatpush1.bf16.msra.mxu1 %v11340_v26  ;;  %v11345_v24 = vld [vmem:[%s16811_s0 + $0xa0] sm:$0xff]   ;;  %v11346_v30 = vld [vmem:[%s16811_s0 + $0xb0] sm:$0xff]  }
 0x151   :  { %2580 = vmatprep.subr.bf16.mxu0 %v16823_v0  ;;  %v12691_v62 = vpack.c.bf16 %v795_v27, %v794_v1  ;;  %2837 = vmatprep.subr.bf16.mxu1 %v16823_v0  ;;  %v11343_v1 = vld [vmem:[%s16811_s0 + $0x98] sm:$0xff]   ;;  %v11347_v35 = vld [vmem:[%s16811_s0 + $0xa8] sm:$0xff]  }
 0x152   :  { %v502_v2 = vmax.f32 %v478_v45, 0.0  ;;  %2055 = vmatmul.mubr.bf16.gmra.mrb[148].mxu0 %v12380_v32  ;;  %v12695_v3 = vmax.f32 %v501_v42, %v758_v56  ;;  %v759_v4 = vmax.f32 %v735_v58, 0.0  ;;  %2312 = vmatmul.mubr.bf16.gmra.mrb[148].mxu1 %v12380_v32  ;;  %v11344_v32 = vld [vmem:[%s16811_s0 + $0xa8] sm:$0xff]  }
 0x153   :  { %10080 = vmatprep.mubr.msk.bf16.mxu0 %vm286_vm0, %v12388_v33  ;;  %10102 = vmatprep.mubr.msk.bf16.mxu1 %vm286_vm0, %v12388_v33 }
 0x154   :  { %2581 = vmatpush1.bf16.msra.mxu0 %v11341_v55  ;;  %v783_v5 = vmax.f32 %v502_v2, %v759_v4  ;;  %2838 = vmatpush1.bf16.msra.mxu1 %v11342_v61 }
 0x155   :  { %v445_v6 = vpop.f32.mrb[44].mxu0  ;;  %2582 = vmatprep.subr.bf16.mxu0 %v16823_v0  ;;  %v707_v8 = vpop.f32.mrb[44].mxu1  ;;  %2839 = vmatprep.subr.bf16.mxu1 %v16823_v0 }
 0x156   :  { %v479_v7 = vadd.f32 %v12417_v39, %v445_v6  ;;  %v447_v23 = vpop.f32.mrb[45].mxu0  ;;  %v796_v33 = vmax.f32 %v12695_v3, %v783_v5  ;;  %v736_v11 = vadd.f32 %v707_v8, %v12417_v39  ;;  %v709_v13 = vpop.f32.mrb[45].mxu1  ;;  %v11349_v3 = vld [vmem:[%s16811_s0 + $0xb0] sm:$0xff]   ;;  %v11350_v6 = vld [vmem:[%s16811_s0 + $0xc0] sm:$0xff]  }
 0x157   :  { %v448_v16 = vpop.f32.mrb[46].mxu0  ;;  %v710_v20 = vpop.f32.mrb[46].mxu1 }
 0x158   :  { %v503_v18 = vmax.f32 %v479_v7, 0.0  ;;  %v480_v19 = vadd.f32 %v12417_v39, %v448_v16  ;;  %v450_v21 = vpop.f32.mrb[47].mxu0  ;;  %2583 = vmatpush1.bf16.msra.mxu0 %v11343_v1  ;;  %v760_v25 = vmax.f32 %v736_v11, 0.0  ;;  %v737_v29 = vadd.f32 %v710_v20, %v12417_v39  ;;  %v712_v26 = vpop.f32.mrb[47].mxu1  ;;  %2840 = vmatpush1.bf16.msra.mxu1 %v11344_v32 }
 0x159   :  { %2584 = vmatprep.subr.bf16.mxu0 %v16823_v0  ;;  %2841 = vmatprep.subr.bf16.mxu1 %v16823_v0 }
 0x15a   :  { %v504_v31 = vmax.f32 %v480_v19, 0.0  ;;  %2063 = vmatmul.mubr.bf16.gmra.mrb[152].mxu0 %v12412_v38  ;;  %v784_v34 = vmax.f32 %v503_v18, %v760_v25  ;;  %v761_v27 = vmax.f32 %v737_v29, 0.0  ;;  %2320 = vmatmul.mubr.bf16.gmra.mrb[152].mxu1 %v12412_v38  ;;  %v11348_v38 = vld [vmem:[%s16811_s0 + $0xb8] sm:$0xff]  }
 0x15b   :  { %10081 = vmatprep.mubr.msk.bf16.mxu0 %vm286_vm0, %v12422_v40  ;;  %10103 = vmatprep.mubr.msk.bf16.mxu1 %vm286_vm0, %v12422_v40 }
 0x15c   :  { %2585 = vmatpush1.bf16.msra.mxu0 %v11345_v24  ;;  %v785_v36 = vmax.f32 %v504_v31, %v761_v27  ;;  %2842 = vmatpush1.bf16.msra.mxu1 %v11346_v30  ;;  %v11353_v31 = vld [vmem:[%s16811_s0 + $0xc0] sm:$0xff]  }
 0x15d   :  { %v924_v37 = vpop.f32.mrb[48].mxu0  ;;  %2586 = vmatprep.subr.bf16.mxu0 %v16823_v0  ;;  %v1181_v45 = vpop.f32.mrb[48].mxu1  ;;  %2843 = vmatprep.subr.bf16.mxu1 %v16823_v0 }
 0x15e   :  { %v1019_v42 = vadd.f32 %v924_v37, %v12417_v39  ;;  %v926_v50 = vpop.f32.mrb[49].mxu0  ;;  %v797_v40 = vmax.f32 %v784_v34, %v785_v36  ;;  %v1276_v53 = vadd.f32 %v1181_v45, %v12417_v39  ;;  %v1183_v55 = vpop.f32.mrb[49].mxu1  ;;  %v11354_v36 = vld [vmem:[%s16811_s0 + $0xd0] sm:$0xff]   ;;  %v11355_v45 = vld [vmem:[%s16811_s0 + $0xc8] sm:$0xff]  }
 0x15f   :  { %v927_v56 = vpop.f32.mrb[50].mxu0  ;;  %v1184_v61 = vpop.f32.mrb[50].mxu1 }
 0x160   :  { %v1043_v58 = vmax.f32 %v1019_v42, 0.0  ;;  %v1020_v59 = vadd.f32 %v927_v56, %v12417_v39  ;;  %v929_v2 = vpop.f32.mrb[51].mxu0  ;;  %2587 = vmatpush1.bf16.msra.mxu0 %v11347_v35  ;;  %v1300_v4 = vmax.f32 %v1276_v53, 0.0  ;;  %v1277_v1 = vadd.f32 %v1184_v61, %v12417_v39  ;;  %v1186_v5 = vpop.f32.mrb[51].mxu1  ;;  %2844 = vmatpush1.bf16.msra.mxu1 %v11348_v38 }
 0x161   :  { %2588 = vmatprep.subr.bf16.mxu0 %v16823_v0  ;;  %v12748_v32 = vpack.c.bf16 %v797_v40, %v796_v33  ;;  %2845 = vmatprep.subr.bf16.mxu1 %v16823_v0  ;;  %v11351_v33 = vld [vmem:[%s16811_s0 + $0xb8] sm:$0xff]  }
 0x162   :  { %v1044_v7 = vmax.f32 %v1020_v59, 0.0  ;;  %2071 = vmatmul.mubr.bf16.gmra.mrb[156].mxu0 %v12450_v60  ;;  %v12752_v8 = vmax.f32 %v1043_v58, %v1300_v4  ;;  %v1301_v23 = vmax.f32 %v1277_v1, 0.0  ;;  %2328 = vmatmul.mubr.bf16.gmra.mrb[156].mxu1 %v12450_v60  ;;  %v11352_v60 = vld [vmem:[%s16811_s0 + $0xc8] sm:$0xff]  }
 0x163   :  { %10082 = vmatprep.mubr.msk.bf16.mxu0 %vm286_vm0, %v12460_v63  ;;  %10104 = vmatprep.mubr.msk.bf16.mxu1 %vm286_vm0, %v12460_v63 }
 0x164   :  { %2589 = vmatpush1.bf16.msra.mxu0 %v11349_v3  ;;  %v1325_v11 = vmax.f32 %v1044_v7, %v1301_v23  ;;  %2846 = vmatpush1.bf16.msra.mxu1 %v11350_v6 }
 0x165   :  { %v932_v13 = vpop.f32.mrb[52].mxu0  ;;  %2590 = vmatprep.subr.bf16.mxu0 %v16823_v0  ;;  %v1189_v18 = vpop.f32.mrb[52].mxu1  ;;  %2847 = vmatprep.subr.bf16.mxu1 %v16823_v0 }
 0x166   :  { %v1021_v16 = vadd.f32 %v932_v13, %v12417_v39  ;;  %v934_v19 = vpop.f32.mrb[53].mxu0  ;;  %v1348_v63 = vmax.f32 %v12752_v8, %v1325_v11  ;;  %v1278_v20 = vadd.f32 %v1189_v18, %v12417_v39  ;;  %v1191_v21 = vpop.f32.mrb[53].mxu1 }
 0x167   :  { %v935_v24 = vpop.f32.mrb[54].mxu0  ;;  %v1192_v26 = vpop.f32.mrb[54].mxu1 }
 0x168   :  { %v1045_v25 = vmax.f32 %v1021_v16, 0.0  ;;  %v1022_v29 = vadd.f32 %v935_v24, %v12417_v39  ;;  %v937_v30 = vpop.f32.mrb[55].mxu0  ;;  %2591 = vmatpush1.bf16.msra.mxu0 %v11351_v33  ;;  %v1302_v34 = vmax.f32 %v1278_v20, 0.0  ;;  %v1279_v27 = vadd.f32 %v1192_v26, %v12417_v39  ;;  %v1194_v35 = vpop.f32.mrb[55].mxu1  ;;  %2848 = vmatpush1.bf16.msra.mxu1 %v11352_v60 }
 0x169   :  { %2592 = vmatprep.subr.bf16.mxu0 %v16823_v0  ;;  %2849 = vmatprep.subr.bf16.mxu1 %v16823_v0 }
 0x16a   :  { %v1046_v37 = vmax.f32 %v1022_v29, 0.0  ;;  %2079 = vmatmul.mubr.bf16.gmra.mrb[160].mxu0 %v12489_v22  ;;  %v1326_v38 = vmax.f32 %v1045_v25, %v1302_v34  ;;  %v1303_v42 = vmax.f32 %v1279_v27, 0.0  ;;  %2336 = vmatmul.mubr.bf16.gmra.mrb[160].mxu1 %v12489_v22  ;;  %v11356_v22 = vld [vmem:[%s16811_s0 + $0xd8] sm:$0xff]  }
 0x16b   :  { %10083 = vmatprep.mubr.msk.bf16.mxu0 %vm286_vm0, %v12497_v28  ;;  %10105 = vmatprep.mubr.msk.bf16.mxu1 %vm286_vm0, %v12497_v28 }
 0x16c   :  { %2593 = vmatpush1.bf16.msra.mxu0 %v11353_v31  ;;  %v1327_v50 = vmax.f32 %v1046_v37, %v1303_v42  ;;  %2850 = vmatpush1.bf16.msra.mxu1 %v11354_v36 }
 0x16d   :  { %v940_v40 = vpop.f32.mrb[56].mxu0  ;;  %2594 = vmatprep.subr.bf16.mxu0 %v16823_v0  ;;  %v1197_v55 = vpop.f32.mrb[56].mxu1  ;;  %2851 = vmatprep.subr.bf16.mxu1 %v16823_v0 }
 0x16e   :  { %v1023_v53 = vadd.f32 %v940_v40, %v12417_v39  ;;  %v942_v56 = vpop.f32.mrb[57].mxu0  ;;  %v1349_v28 = vmax.f32 %v1326_v38, %v1327_v50  ;;  %v1280_v58 = vadd.f32 %v1197_v55, %v12417_v39  ;;  %v1199_v59 = vpop.f32.mrb[57].mxu1 }
 0x16f   :  { %v943_v61 = vpop.f32.mrb[58].mxu0  ;;  %v1200_v4 = vpop.f32.mrb[58].mxu1 }
 0x170   :  { %v1047_v2 = vmax.f32 %v1023_v53, 0.0  ;;  %v1024_v3 = vadd.f32 %v943_v61, %v12417_v39  ;;  %v945_v1 = vpop.f32.mrb[59].mxu0  ;;  %2595 = vmatpush1.bf16.msra.mxu0 %v11355_v45  ;;  %v1304_v5 = vmax.f32 %v1280_v58, 0.0  ;;  %v1281_v6 = vadd.f32 %v1200_v4, %v12417_v39  ;;  %v1202_v7 = vpop.f32.mrb[59].mxu1  ;;  %2852 = vmatpush1.bf16.msra.mxu1 %v11356_v22 }
 0x171   :  { %3138 = vmatprep.subr.bf16.mxu0 %v16823_v0  ;;  %v12799_v8 = vpack.c.bf16 %v1349_v28, %v1348_v63  ;;  %3395 = vmatprep.subr.bf16.mxu1 %v16823_v0 }
 0x172   :  { %v1048_v23 = vmax.f32 %v1024_v3, 0.0  ;;  %2087 = vmatmul.mubr.bf16.gmra.mrb[164].mxu0 %v12521_v54  ;;  %v1328_v33 = vmax.f32 %v1047_v2, %v1304_v5  ;;  %v1305_v11 = vmax.f32 %v1281_v6, 0.0  ;;  %2344 = vmatmul.mubr.bf16.gmra.mrb[164].mxu1 %v12521_v54 }
 0x173   :  { %16931 = vst [vmem:[#allocation4_spill] sm:$0xff] %v12799_v8  ;;  %10084 = vmatprep.mubr.msk.bf16.mxu0 %vm286_vm0, %v12529_v57  ;;  %10106 = vmatprep.mubr.msk.bf16.mxu1 %vm286_vm0, %v12529_v57 }
 0x174   :  { %v1329_v13 = vmax.f32 %v1048_v23, %v1305_v11 }
 0x175   :  { %v948_v60 = vpop.f32.mrb[60].mxu0  ;;  %v1205_v18 = vpop.f32.mrb[60].mxu1 }
 0x176   :  { %v1025_v16 = vadd.f32 %v948_v60, %v12417_v39  ;;  %v950_v19 = vpop.f32.mrb[61].mxu0  ;;  %v1350_v63 = vmax.f32 %v1328_v33, %v1329_v13  ;;  %v1282_v20 = vadd.f32 %v1205_v18, %v12417_v39  ;;  %v1207_v21 = vpop.f32.mrb[61].mxu1 }
 0x177   :  { %v951_v24 = vpop.f32.mrb[62].mxu0  ;;  %v1208_v29 = vpop.f32.mrb[62].mxu1 }
 0x178   :  { %v1049_v25 = vmax.f32 %v1025_v16, 0.0  ;;  %v1026_v54 = vadd.f32 %v951_v24, %v12417_v39  ;;  %v953_v26 = vpop.f32.mrb[63].mxu0  ;;  %v1306_v30 = vmax.f32 %v1282_v20, 0.0  ;;  %v1283_v31 = vadd.f32 %v1208_v29, %v12417_v39  ;;  %v1210_v57 = vpop.f32.mrb[63].mxu1 }
 0x17a   :  { %v1050_v34 = vmax.f32 %v1026_v54, 0.0  ;;  %2095 = vmatmul.mubr.bf16.gmra.mrb[168].mxu0 %v12542_v14  ;;  %v1330_v27 = vmax.f32 %v1049_v25, %v1306_v30  ;;  %v1307_v35 = vmax.f32 %v1283_v31, 0.0  ;;  %2352 = vmatmul.mubr.bf16.gmra.mrb[168].mxu1 %v12542_v14 }
 0x17b   :  { %10085 = vmatprep.mubr.msk.bf16.mxu0 %vm286_vm0, %v12549_v17  ;;  %10107 = vmatprep.mubr.msk.bf16.mxu1 %vm286_vm0, %v12549_v17 }
 0x17c   :  { %v1331_v36 = vmax.f32 %v1050_v34, %v1307_v35 }
 0x17d   :  { %v956_v37 = vpop.f32.mrb[64].mxu0  ;;  %v1213_v42 = vpop.f32.mrb[64].mxu1 }
 0x17e   :  { %v1027_v38 = vadd.f32 %v956_v37, %v12417_v39  ;;  %v958_v45 = vpop.f32.mrb[65].mxu0  ;;  %v1351_v50 = vmax.f32 %v1330_v27, %v1331_v36  ;;  %v1284_v40 = vadd.f32 %v1213_v42, %v12417_v39  ;;  %v1215_v22 = vpop.f32.mrb[65].mxu1 }
 0x17f   :  { %v959_v53 = vpop.f32.mrb[66].mxu0  ;;  %v1216_v56 = vpop.f32.mrb[66].mxu1 }
 0x180   :  { %v1051_v55 = vmax.f32 %v1027_v38, 0.0  ;;  %v1028_v14 = vadd.f32 %v959_v53, %v12417_v39  ;;  %v961_v28 = vpop.f32.mrb[67].mxu0  ;;  %v1308_v58 = vmax.f32 %v1284_v40, 0.0  ;;  %v1285_v59 = vadd.f32 %v1216_v56, %v12417_v39  ;;  %v1218_v17 = vpop.f32.mrb[67].mxu1 }
 0x181   :  { %v12822_v61 = vpack.c.bf16 %v1351_v50, %v1350_v63 }
 0x182   :  { %v1052_v2 = vmax.f32 %v1028_v14, 0.0  ;;  %2103 = vmatmul.mubr.bf16.gmra.mrb[172].mxu0 %v12564_v46  ;;  %v1332_v3 = vmax.f32 %v1051_v55, %v1308_v58  ;;  %v1309_v4 = vmax.f32 %v1285_v59, 0.0  ;;  %2360 = vmatmul.mubr.bf16.gmra.mrb[172].mxu1 %v12564_v46 }
 0x183   :  { %16932 = vst [vmem:[#allocation5_spill] sm:$0xff] %v12822_v61  ;;  %10086 = vmatprep.mubr.msk.bf16.mxu0 %vm286_vm0, %v12571_v49  ;;  %10108 = vmatprep.mubr.msk.bf16.mxu1 %vm286_vm0, %v12571_v49 }
 0x184   :  { %v1333_v1 = vmax.f32 %v1052_v2, %v1309_v4 }
 0x185   :  { %v964_v5 = vpop.f32.mrb[68].mxu0  ;;  %v1221_v7 = vpop.f32.mrb[68].mxu1 }
 0x186   :  { %v1029_v6 = vadd.f32 %v964_v5, %v12417_v39  ;;  %v966_v23 = vpop.f32.mrb[69].mxu0  ;;  %v1286_v33 = vadd.f32 %v1221_v7, %v12417_v39  ;;  %v1223_v11 = vpop.f32.mrb[69].mxu1  ;;  %v1352_v60 = vmax.f32 %v1332_v3, %v1333_v1 }
 0x187   :  { %v967_v13 = vpop.f32.mrb[70].mxu0  ;;  %v1224_v18 = vpop.f32.mrb[70].mxu1 }
 0x188   :  { %v1053_v16 = vmax.f32 %v1029_v6, 0.0  ;;  %v1030_v46 = vadd.f32 %v967_v13, %v12417_v39  ;;  %v969_v19 = vpop.f32.mrb[71].mxu0  ;;  %v1310_v63 = vmax.f32 %v1286_v33, 0.0  ;;  %v1287_v20 = vadd.f32 %v1224_v18, %v12417_v39  ;;  %v1226_v49 = vpop.f32.mrb[71].mxu1 }
 0x18a   :  { %v1054_v21 = vmax.f32 %v1030_v46, 0.0  ;;  %2111 = vmatmul.mubr.bf16.gmra.mrb[176].mxu0 %v12584_v9  ;;  %v1334_v24 = vmax.f32 %v1053_v16, %v1310_v63  ;;  %v1311_v25 = vmax.f32 %v1287_v20, 0.0  ;;  %2368 = vmatmul.mubr.bf16.gmra.mrb[176].mxu1 %v12584_v9 }
 0x18b   :  { %10087 = vmatprep.mubr.msk.bf16.mxu0 %vm286_vm0, %v12591_v12  ;;  %10109 = vmatprep.mubr.msk.bf16.mxu1 %vm286_vm0, %v12591_v12 }
 0x18c   :  { %v1335_v54 = vmax.f32 %v1054_v21, %v1311_v25 }
 0x18d   :  { %v972_v29 = vpop.f32.mrb[72].mxu0  ;;  %v1229_v30 = vpop.f32.mrb[72].mxu1 }
 0x18e   :  { %v1031_v26 = vadd.f32 %v972_v29, %v12417_v39  ;;  %v974_v31 = vpop.f32.mrb[73].mxu0  ;;  %v1288_v57 = vadd.f32 %v1229_v30, %v12417_v39  ;;  %v1231_v34 = vpop.f32.mrb[73].mxu1  ;;  %v1353_v35 = vmax.f32 %v1334_v24, %v1335_v54 }
 0x18f   :  { %v975_v27 = vpop.f32.mrb[74].mxu0  ;;  %v1232_v37 = vpop.f32.mrb[74].mxu1  ;;  %v12873_v34 = vld [vmem:[%s16812_s1 + $0x4] ss:$8 sps:$4 sm:$0xff]  }
 0x190   :  { %v1055_v36 = vmax.f32 %v1031_v26, 0.0  ;;  %v1032_v9 = vadd.f32 %v975_v27, %v12417_v39  ;;  %v977_v38 = vpop.f32.mrb[75].mxu0  ;;  %v1312_v42 = vmax.f32 %v1288_v57, 0.0  ;;  %v1289_v45 = vadd.f32 %v1232_v37, %v12417_v39  ;;  %v1234_v12 = vpop.f32.mrb[75].mxu1 }
 0x191   :  { %v12844_v50 = vpack.c.bf16 %v1353_v35, %v1352_v60 }
 0x192   :  { %v1056_v40 = vmax.f32 %v1032_v9, 0.0  ;;  %2119 = vmatmul.mubr.bf16.gmra.mrb[180].mxu0 %v12606_v43  ;;  %v1336_v22 = vmax.f32 %v1055_v36, %v1312_v42  ;;  %v1313_v53 = vmax.f32 %v1289_v45, 0.0  ;;  %2376 = vmatmul.mubr.bf16.gmra.mrb[180].mxu1 %v12606_v43 }
 0x193   :  { %10088 = vmatprep.mubr.msk.bf16.mxu0 %vm286_vm0, %v12613_v48  ;;  %10110 = vmatprep.mubr.msk.bf16.mxu1 %vm286_vm0, %v12613_v48 }
 0x194   :  { %v1337_v55 = vmax.f32 %v1056_v40, %v1313_v53 }
 0x195   :  { %v980_v14 = vpop.f32.mrb[76].mxu0  ;;  %v1237_v28 = vpop.f32.mrb[76].mxu1 }
 0x196   :  { %v1033_v56 = vadd.f32 %v980_v14, %v12417_v39  ;;  %v982_v58 = vpop.f32.mrb[77].mxu0  ;;  %v1290_v59 = vadd.f32 %v1237_v28, %v12417_v39  ;;  %v1239_v17 = vpop.f32.mrb[77].mxu1  ;;  %v1354_v3 = vmax.f32 %v1336_v22, %v1337_v55  ;;  %v11357_v55 = vld [vmem:[%s16811_s0 + $0xa0] sm:$0xff]  }
 0x197   :  { %v983_v2 = vpop.f32.mrb[78].mxu0  ;;  %v1240_v1 = vpop.f32.mrb[78].mxu1  ;;  %v11358_v58 = vld [vmem:[%s16811_s0 + $0xb0] sm:$0xff]   ;;  %v12892_v17 = vld [vmem:[%s16812_s1] ss:$8 sps:$4 sm:$0xff]  }
 0x198   :  { %v1057_v4 = vmax.f32 %v1033_v56, 0.0  ;;  %v1034_v43 = vadd.f32 %v983_v2, %v12417_v39  ;;  %v985_v5 = vpop.f32.mrb[79].mxu0  ;;  %v1314_v6 = vmax.f32 %v1290_v59, 0.0  ;;  %v1291_v7 = vadd.f32 %v1240_v1, %v12417_v39  ;;  %v1242_v48 = vpop.f32.mrb[79].mxu1 }
 0x19a   :  { %v1058_v23 = vmax.f32 %v1034_v43, 0.0  ;;  %2127 = vmatmul.mubr.bf16.gmra.mrb[184].mxu0 %v12626_v10  ;;  %v1338_v33 = vmax.f32 %v1057_v4, %v1314_v6  ;;  %v1315_v11 = vmax.f32 %v1291_v7, 0.0  ;;  %2384 = vmatmul.mubr.bf16.gmra.mrb[184].mxu1 %v12626_v10  ;;  %v12899_v4 = vld [vmem:[%s16812_s1 + $0x14] ss:$8 sps:$4 sm:$0xff]   ;;  %v11359_v43 = vld [vmem:[%s16811_s0 + $0xa8] sm:$0xff]  }
 0x19b   :  { %10089 = vmatprep.mubr.msk.bf16.mxu0 %vm286_vm0, %v12633_v15  ;;  %10111 = vmatprep.mubr.msk.bf16.mxu1 %vm286_vm0, %v12633_v15  ;;  %v11360_v6 = vld [vmem:[%s16811_s0 + $0xb8] sm:$0xff]  }
 0x19c   :  { %v1339_v13 = vmax.f32 %v1058_v23, %v1315_v11 }
 0x19d   :  { %v988_v60 = vpop.f32.mrb[80].mxu0  ;;  %v1245_v46 = vpop.f32.mrb[80].mxu1 }
 0x19e   :  { %v1035_v16 = vadd.f32 %v988_v60, %v12417_v39  ;;  %v990_v18 = vpop.f32.mrb[81].mxu0  ;;  %v1292_v19 = vadd.f32 %v1245_v46, %v12417_v39  ;;  %v1247_v63 = vpop.f32.mrb[81].mxu1  ;;  %v1355_v49 = vmax.f32 %v1338_v33, %v1339_v13 }
 0x19f   :  { %v991_v20 = vpop.f32.mrb[82].mxu0  ;;  %v1248_v24 = vpop.f32.mrb[82].mxu1  ;;  %v11361_v63 = vld [vmem:[%s16811_s0 + $0xb0] sm:$0xff]  }
 0x1a0   :  { %v1059_v21 = vmax.f32 %v1035_v16, 0.0  ;;  %v1036_v10 = vadd.f32 %v991_v20, %v12417_v39  ;;  %v993_v25 = vpop.f32.mrb[83].mxu0  ;;  %v1316_v54 = vmax.f32 %v1292_v19, 0.0  ;;  %v1293_v29 = vadd.f32 %v1248_v24, %v12417_v39  ;;  %v1250_v15 = vpop.f32.mrb[83].mxu1 }
 0x1a1   :  { %v12866_v26 = vpack.c.bf16 %v1355_v49, %v1354_v3 }
 0x1a2   :  { %v1060_v30 = vmax.f32 %v1036_v10, 0.0  ;;  %2135 = vmatmul.mubr.bf16.gmra.mrb[188].mxu0 %v12648_v51  ;;  %v1340_v31 = vmax.f32 %v1059_v21, %v1316_v54  ;;  %v1317_v57 = vmax.f32 %v1293_v29, 0.0  ;;  %2392 = vmatmul.mubr.bf16.gmra.mrb[188].mxu1 %v12648_v51  ;;  %v11362_v10 = vld [vmem:[%s16811_s0 + $0xc0] sm:$0xff]   ;;  %v12929_v54 = vld [vmem:[%s16812_s1 + $0x10] ss:$8 sps:$4 sm:$0xff]  }
 0x1a3   :  { %10122 = vmatprep.mubr.msk.bf16.mxu0 %vm286_vm0, %v12873_v34  ;;  %10144 = vmatprep.mubr.msk.bf16.mxu1 %vm286_vm0, %v12873_v34 }
 0x1a4   :  { %v1341_v27 = vmax.f32 %v1060_v30, %v1317_v57  ;;  %v12939_v30 = vld [vmem:[%s16812_s1 + $0x24] ss:$8 sps:$4 sm:$0xff]  }
 0x1a5   :  { %v996_v35 = vpop.f32.mrb[84].mxu0  ;;  %v1253_v9 = vpop.f32.mrb[84].mxu1 }
 0x1a6   :  { %v1037_v36 = vadd.f32 %v996_v35, %v12417_v39  ;;  %v998_v37 = vpop.f32.mrb[85].mxu0  ;;  %v1294_v38 = vadd.f32 %v1253_v9, %v12417_v39  ;;  %v1255_v51 = vpop.f32.mrb[85].mxu1  ;;  %v1356_v45 = vmax.f32 %v1340_v31, %v1341_v27  ;;  %v11363_v31 = vld [vmem:[%s16811_s0 + $0xb8] sm:$0xff]   ;;  %v11364_v35 = vld [vmem:[%s16811_s0 + $0xc8] sm:$0xff]  }
 0x1a7   :  { %v999_v42 = vpop.f32.mrb[86].mxu0  ;;  %v1256_v22 = vpop.f32.mrb[86].mxu1 }
 0x1a8   :  { %v1061_v12 = vmax.f32 %v1037_v36, 0.0  ;;  %v1038_v40 = vadd.f32 %v999_v42, %v12417_v39  ;;  %v1001_v53 = vpop.f32.mrb[87].mxu0  ;;  %v1318_v14 = vmax.f32 %v1294_v38, 0.0  ;;  %v1295_v56 = vadd.f32 %v1256_v22, %v12417_v39  ;;  %v1258_v28 = vpop.f32.mrb[87].mxu1 }
 0x1aa   :  { %v1062_v59 = vmax.f32 %v1038_v40, 0.0  ;;  %2609 = vmatmul.mubr.bf16.vlgmr.msra.gmra.mrb[192].mxu0 %v12892_v17  ;;  %v1342_v2 = vmax.f32 %v1061_v12, %v1318_v14  ;;  %v1319_v3 = vmax.f32 %v1295_v56, 0.0  ;;  %2866 = vmatmul.mubr.bf16.vlgmr.msra.gmra.mrb[192].mxu1 %v12892_v17 }
 0x1ab   :  { %10123 = vmatprep.mubr.msk.bf16.mxu0 %vm286_vm0, %v12899_v4  ;;  %10145 = vmatprep.mubr.msk.bf16.mxu1 %vm286_vm0, %v12899_v4 }
 0x1ac   :  { %3139 = vmatpush1.bf16.msra.mxu0 %v11357_v55  ;;  %v1343_v1 = vmax.f32 %v1062_v59, %v1319_v3  ;;  %3396 = vmatpush1.bf16.msra.mxu1 %v11358_v58  ;;  %v11365_v55 = vld [vmem:[%s16811_s0 + $0xc0] sm:$0xff]   ;;  %v11366_v58 = vld [vmem:[%s16811_s0 + $0xd0] sm:$0xff]  }
 0x1ad   :  { %v1004_v5 = vpop.f32.mrb[88].mxu0  ;;  %3140 = vmatprep.subr.bf16.mxu0 %v16823_v0  ;;  %v1261_v48 = vpop.f32.mrb[88].mxu1  ;;  %3397 = vmatprep.subr.bf16.mxu1 %v16823_v0 }
 0x1ae   :  { %v1039_v7 = vadd.f32 %v1004_v5, %v12417_v39  ;;  %v1006_v23 = vpop.f32.mrb[89].mxu0  ;;  %v1296_v33 = vadd.f32 %v1261_v48, %v12417_v39  ;;  %v1263_v11 = vpop.f32.mrb[89].mxu1  ;;  %v1357_v60 = vmax.f32 %v1342_v2, %v1343_v1  ;;  %v12971_v2 = vld [vmem:[%s16812_s1 + $0x20] ss:$8 sps:$4 sm:$0xff]   ;;  %v12979_v1 = vld [vmem:[%s16812_s1 + $0x34] ss:$8 sps:$4 sm:$0xff]  }
 0x1af   :  { %v1007_v13 = vpop.f32.mrb[90].mxu0  ;;  %v1264_v18 = vpop.f32.mrb[90].mxu1  ;;  %v11367_v5 = vld [vmem:[%s16811_s0 + $0xc8] sm:$0xff]   ;;  %v11368_v48 = vld [vmem:[%s16811_s0 + $0xd8] sm:$0xff]  }
 0x1b0   :  { %v1063_v16 = vmax.f32 %v1039_v7, 0.0  ;;  %v1040_v46 = vadd.f32 %v1007_v13, %v12417_v39  ;;  %v1009_v19 = vpop.f32.mrb[91].mxu0  ;;  %3141 = vmatpush1.bf16.msra.mxu0 %v11359_v43  ;;  %v1320_v20 = vmax.f32 %v1296_v33, 0.0  ;;  %v1297_v49 = vadd.f32 %v1264_v18, %v12417_v39  ;;  %v1266_v21 = vpop.f32.mrb[91].mxu1  ;;  %3398 = vmatpush1.bf16.msra.mxu1 %v11360_v6 }
 0x1b1   :  { %3142 = vmatprep.subr.bf16.mxu0 %v16823_v0  ;;  %v12924_v24 = vpack.c.bf16 %v1357_v60, %v1356_v45  ;;  %3399 = vmatprep.subr.bf16.mxu1 %v16823_v0 }
 0x1b2   :  { %v1064_v25 = vmax.f32 %v1040_v46, 0.0  ;;  %2617 = vmatmul.mubr.bf16.gmra.mrb[196].mxu0 %v12929_v54  ;;  %v12933_v29 = vmax.f32 %v1063_v16, %v1320_v20  ;;  %v1321_v15 = vmax.f32 %v1297_v49, 0.0  ;;  %2874 = vmatmul.mubr.bf16.gmra.mrb[196].mxu1 %v12929_v54  ;;  %v11369_v49 = vld [vmem:[%s16811_s0 + $0xd0] sm:$0xff]  }
 0x1b3   :  { %10124 = vmatprep.mubr.msk.bf16.mxu0 %vm286_vm0, %v12939_v30  ;;  %10146 = vmatprep.mubr.msk.bf16.mxu1 %vm286_vm0, %v12939_v30 }
 0x1b4   :  { %3143 = vmatpush1.bf16.msra.mxu0 %v11361_v63  ;;  %v12948_v57 = vmax.f32 %v1064_v25, %v1321_v15  ;;  %3400 = vmatpush1.bf16.msra.mxu1 %v11362_v10 }
 0x1b5   :  { %v1012_v27 = vpop.f32.mrb[92].mxu0  ;;  %3144 = vmatprep.subr.bf16.mxu0 %v16823_v0  ;;  %v1269_v9 = vpop.f32.mrb[92].mxu1  ;;  %3401 = vmatprep.subr.bf16.mxu1 %v16823_v0 }
 0x1b6   :  { %v1041_v36 = vadd.f32 %v1012_v27, %v12417_v39  ;;  %v1014_v37 = vpop.f32.mrb[93].mxu0  ;;  %v1298_v38 = vadd.f32 %v1269_v9, %v12417_v39  ;;  %v1271_v51 = vpop.f32.mrb[93].mxu1  ;;  %v1358_v45 = vmax.f32 %v12933_v29, %v12948_v57  ;;  %v11370_v29 = vld [vmem:[%s16811_s0 + $0xe0] sm:$0xff]   ;;  %v13009_v57 = vld [vmem:[%s16812_s1 + $0x30] ss:$8 sps:$4 sm:$0xff]  }
 0x1b7   :  { %v1015_v42 = vpop.f32.mrb[94].mxu0  ;;  %v1272_v22 = vpop.f32.mrb[94].mxu1  ;;  %v11371_v9 = vld [vmem:[%s16811_s0 + $0xd8] sm:$0xff]   ;;  %v11372_v51 = vld [vmem:[%s16811_s0 + $0xe8] sm:$0xff]  }
 0x1b8   :  { %v1065_v12 = vmax.f32 %v1041_v36, 0.0  ;;  %v1042_v40 = vadd.f32 %v1015_v42, %v12417_v39  ;;  %v1017_v53 = vpop.f32.mrb[95].mxu0  ;;  %3145 = vmatpush1.bf16.msra.mxu0 %v11363_v31  ;;  %v1322_v14 = vmax.f32 %v1298_v38, 0.0  ;;  %v1299_v56 = vadd.f32 %v1272_v22, %v12417_v39  ;;  %v1274_v28 = vpop.f32.mrb[95].mxu1  ;;  %3402 = vmatpush1.bf16.msra.mxu1 %v11364_v35  ;;  %v13019_v36 = vld [vmem:[%s16812_s1 + $0x44] ss:$8 sps:$4 sm:$0xff]  }
 0x1b9   :  { %3146 = vmatprep.subr.bf16.mxu0 %v16823_v0  ;;  %3403 = vmatprep.subr.bf16.mxu1 %v16823_v0 }
 0x1ba   :  { %v1066_v59 = vmax.f32 %v1042_v40, 0.0  ;;  %2625 = vmatmul.mubr.bf16.gmra.mrb[200].mxu0 %v12971_v2  ;;  %v1346_v3 = vmax.f32 %v1065_v12, %v1322_v14  ;;  %v1323_v43 = vmax.f32 %v1299_v56, 0.0  ;;  %2882 = vmatmul.mubr.bf16.gmra.mrb[200].mxu1 %v12971_v2 }
 0x1bb   :  { %10125 = vmatprep.mubr.msk.bf16.mxu0 %vm286_vm0, %v12979_v1  ;;  %10147 = vmatprep.mubr.msk.bf16.mxu1 %vm286_vm0, %v12979_v1 }
 0x1bc   :  { %3147 = vmatpush1.bf16.msra.mxu0 %v11365_v55  ;;  %v1347_v6 = vmax.f32 %v1066_v59, %v1323_v43  ;;  %3404 = vmatpush1.bf16.msra.mxu1 %v11366_v58  ;;  %v11373_v59 = vld [vmem:[%s16811_s0 + $0xe0] sm:$0xff]  }
 0x1bd   :  { %v1486_v7 = vpop.f32.mrb[96].mxu0  ;;  %3148 = vmatprep.subr.bf16.mxu0 %v16823_v0  ;;  %v1743_v33 = vpop.f32.mrb[96].mxu1  ;;  %3405 = vmatprep.subr.bf16.mxu1 %v16823_v0 }
 0x1be   :  { %v1581_v23 = vadd.f32 %v1486_v7, %v12417_v39  ;;  %v1488_v11 = vpop.f32.mrb[97].mxu0  ;;  %v1838_v13 = vadd.f32 %v1743_v33, %v12417_v39  ;;  %v1745_v60 = vpop.f32.mrb[97].mxu1  ;;  %v1359_v46 = vmax.f32 %v1346_v3, %v1347_v6  ;;  %v11374_v6 = vld [vmem:[%s16811_s0 + $0xf0] sm:$0xff]  }
 0x1bf   :  { %v1489_v16 = vpop.f32.mrb[98].mxu0  ;;  %v1746_v63 = vpop.f32.mrb[98].mxu1  ;;  %v13056_v11 = vld [vmem:[%s16812_s1 + $0x54] ss:$8 sps:$4 sm:$0xff]  }
 0x1c0   :  { %v1605_v18 = vmax.f32 %v1581_v23, 0.0  ;;  %v1582_v19 = vadd.f32 %v1489_v16, %v12417_v39  ;;  %v1491_v20 = vpop.f32.mrb[99].mxu0  ;;  %3149 = vmatpush1.bf16.msra.mxu0 %v11367_v5  ;;  %v1862_v21 = vmax.f32 %v1838_v13, 0.0  ;;  %v1839_v10 = vadd.f32 %v1746_v63, %v12417_v39  ;;  %v1748_v25 = vpop.f32.mrb[99].mxu1  ;;  %3406 = vmatpush1.bf16.msra.mxu1 %v11368_v48  ;;  %v13048_v48 = vld [vmem:[%s16812_s1 + $0x40] ss:$8 sps:$4 sm:$0xff]  }
 0x1c1   :  { %3150 = vmatprep.subr.bf16.mxu0 %v16823_v0  ;;  %v13004_v15 = vpack.c.bf16 %v1359_v46, %v1358_v45  ;;  %3407 = vmatprep.subr.bf16.mxu1 %v16823_v0  ;;  %v11375_v13 = vld [vmem:[%s16811_s0 + $0xe8] sm:$0xff]   ;;  %v11376_v46 = vld [vmem:[%s16811_s0 + $0xf8] sm:$0xff]  }
 0x1c2   :  { %v1606_v31 = vmax.f32 %v1582_v19, 0.0  ;;  %2633 = vmatmul.mubr.bf16.gmra.mrb[204].mxu0 %v13009_v57  ;;  %v13013_v27 = vmax.f32 %v1605_v18, %v1862_v21  ;;  %v1863_v35 = vmax.f32 %v1839_v10, 0.0  ;;  %2890 = vmatmul.mubr.bf16.gmra.mrb[204].mxu1 %v13009_v57 }
 0x1c3   :  { %10126 = vmatprep.mubr.msk.bf16.mxu0 %vm286_vm0, %v13019_v36  ;;  %10148 = vmatprep.mubr.msk.bf16.mxu1 %vm286_vm0, %v13019_v36 }
 0x1c4   :  { %3151 = vmatpush1.bf16.msra.mxu0 %v11369_v49  ;;  %v1887_v37 = vmax.f32 %v1606_v31, %v1863_v35  ;;  %3408 = vmatpush1.bf16.msra.mxu1 %v11370_v29 }
 0x1c5   :  { %v1494_v38 = vpop.f32.mrb[100].mxu0  ;;  %3152 = vmatprep.subr.bf16.mxu0 %v16823_v0  ;;  %v1751_v45 = vpop.f32.mrb[100].mxu1  ;;  %3409 = vmatprep.subr.bf16.mxu1 %v16823_v0 }
 0x1c6   :  { %v1583_v42 = vadd.f32 %v1494_v38, %v12417_v39  ;;  %v1496_v12 = vpop.f32.mrb[101].mxu0  ;;  %v1840_v40 = vadd.f32 %v1751_v45, %v12417_v39  ;;  %v1753_v22 = vpop.f32.mrb[101].mxu1  ;;  %v1910_v55 = vmax.f32 %v13013_v27, %v1887_v37 }
 0x1c7   :  { %v1497_v53 = vpop.f32.mrb[102].mxu0  ;;  %v1754_v28 = vpop.f32.mrb[102].mxu1 }
 0x1c8   :  { %v1607_v14 = vmax.f32 %v1583_v42, 0.0  ;;  %v1584_v56 = vadd.f32 %v1497_v53, %v12417_v39  ;;  %v1499_v58 = vpop.f32.mrb[103].mxu0  ;;  %3153 = vmatpush1.bf16.msra.mxu0 %v11371_v9  ;;  %v1864_v3 = vmax.f32 %v1840_v40, 0.0  ;;  %v1841_v43 = vadd.f32 %v1754_v28, %v12417_v39  ;;  %v1756_v5 = vpop.f32.mrb[103].mxu1  ;;  %3410 = vmatpush1.bf16.msra.mxu1 %v11372_v51  ;;  %v13080_v42 = vld [vmem:[%s16812_s1 + $0x50] ss:$8 sps:$4 sm:$0xff]  }
 0x1c9   :  { %3154 = vmatprep.subr.bf16.mxu0 %v16823_v0  ;;  %3411 = vmatprep.subr.bf16.mxu1 %v16823_v0  ;;  %v13088_v40 = vld [vmem:[%s16812_s1 + $0x64] ss:$8 sps:$4 sm:$0xff]  }
 0x1ca   :  { %v1608_v7 = vmax.f32 %v1584_v56, 0.0  ;;  %2641 = vmatmul.mubr.bf16.gmra.mrb[208].mxu0 %v13048_v48  ;;  %v1888_v23 = vmax.f32 %v1607_v14, %v1864_v3  ;;  %v1865_v33 = vmax.f32 %v1841_v43, 0.0  ;;  %2898 = vmatmul.mubr.bf16.gmra.mrb[208].mxu1 %v13048_v48 }
 0x1cb   :  { %10127 = vmatprep.mubr.msk.bf16.mxu0 %vm286_vm0, %v13056_v11  ;;  %10149 = vmatprep.mubr.msk.bf16.mxu1 %vm286_vm0, %v13056_v11 }
 0x1cc   :  { %3155 = vmatpush1.bf16.msra.mxu0 %v11373_v59  ;;  %v1889_v60 = vmax.f32 %v1608_v7, %v1865_v33  ;;  %3412 = vmatpush1.bf16.msra.mxu1 %v11374_v6 }
 0x1cd   :  { %v1502_v16 = vpop.f32.mrb[104].mxu0  ;;  %3156 = vmatprep.subr.bf16.mxu0 %v16823_v0  ;;  %v1759_v19 = vpop.f32.mrb[104].mxu1  ;;  %3413 = vmatprep.subr.bf16.mxu1 %v16823_v0 }
 0x1ce   :  { %v1585_v18 = vadd.f32 %v1502_v16, %v12417_v39  ;;  %v1504_v63 = vpop.f32.mrb[105].mxu0  ;;  %v1842_v20 = vadd.f32 %v1759_v19, %v12417_v39  ;;  %v1761_v49 = vpop.f32.mrb[105].mxu1  ;;  %v1911_v10 = vmax.f32 %v1888_v23, %v1889_v60  ;;  %v13101_v16 = vld [vmem:[%s16812_s1 + $0x60] ss:$8 sps:$4 sm:$0xff]   ;;  %v13108_v19 = vld [vmem:[%s16812_s1 + $0x74] ss:$8 sps:$4 sm:$0xff]  }
 0x1cf   :  { %v1505_v21 = vpop.f32.mrb[106].mxu0  ;;  %v1762_v31 = vpop.f32.mrb[106].mxu1 }
 0x1d0   :  { %v1609_v25 = vmax.f32 %v1585_v18, 0.0  ;;  %v1586_v29 = vadd.f32 %v1505_v21, %v12417_v39  ;;  %v1507_v27 = vpop.f32.mrb[107].mxu0  ;;  %3157 = vmatpush1.bf16.msra.mxu0 %v11375_v13  ;;  %v1866_v35 = vmax.f32 %v1842_v20, 0.0  ;;  %v1843_v9 = vadd.f32 %v1762_v31, %v12417_v39  ;;  %v1764_v37 = vpop.f32.mrb[107].mxu1  ;;  %3414 = vmatpush1.bf16.msra.mxu1 %v11376_v46 }
 0x1d1   :  { %3700 = vmatprep.subr.bf16.mxu0 %v16823_v0  ;;  %v13075_v38 = vpack.c.bf16 %v1911_v10, %v1910_v55  ;;  %3957 = vmatprep.subr.bf16.mxu1 %v16823_v0 }
 0x1d2   :  { %v1610_v51 = vmax.f32 %v1586_v29, 0.0  ;;  %2649 = vmatmul.mubr.bf16.gmra.mrb[212].mxu0 %v13080_v42  ;;  %v1890_v45 = vmax.f32 %v1609_v25, %v1866_v35  ;;  %v1867_v12 = vmax.f32 %v1843_v9, 0.0  ;;  %2906 = vmatmul.mubr.bf16.gmra.mrb[212].mxu1 %v13080_v42 }
 0x1d3   :  { %10128 = vmatprep.mubr.msk.bf16.mxu0 %vm286_vm0, %v13088_v40  ;;  %10150 = vmatprep.mubr.msk.bf16.mxu1 %vm286_vm0, %v13088_v40 }
 0x1d4   :  { %v1891_v22 = vmax.f32 %v1610_v51, %v1867_v12 }
 0x1d5   :  { %v1510_v53 = vpop.f32.mrb[108].mxu0  ;;  %v1767_v14 = vpop.f32.mrb[108].mxu1 }
 0x1d6   :  { %v1587_v55 = vadd.f32 %v1510_v53, %v12417_v39  ;;  %v1512_v56 = vpop.f32.mrb[109].mxu0  ;;  %v1844_v28 = vadd.f32 %v1767_v14, %v12417_v39  ;;  %v1769_v58 = vpop.f32.mrb[109].mxu1  ;;  %v1912_v3 = vmax.f32 %v1890_v45, %v1891_v22  ;;  %v13123_v14 = vld [vmem:[%s16812_s1 + $0x70] ss:$8 sps:$4 sm:$0xff]  }
 0x1d7   :  { %v1513_v59 = vpop.f32.mrb[110].mxu0  ;;  %v1770_v6 = vpop.f32.mrb[110].mxu1  ;;  %v13130_v58 = vld [vmem:[%s16812_s1 + $0x84] ss:$8 sps:$4 sm:$0xff]  }
 0x1d8   :  { %v1611_v43 = vmax.f32 %v1587_v55, 0.0  ;;  %v1588_v5 = vadd.f32 %v1513_v59, %v12417_v39  ;;  %v1515_v7 = vpop.f32.mrb[111].mxu0  ;;  %v1868_v23 = vmax.f32 %v1844_v28, 0.0  ;;  %v1845_v33 = vadd.f32 %v1770_v6, %v12417_v39  ;;  %v1772_v13 = vpop.f32.mrb[111].mxu1 }
 0x1da   :  { %v1612_v60 = vmax.f32 %v1588_v5, 0.0  ;;  %2657 = vmatmul.mubr.bf16.gmra.mrb[216].mxu0 %v13101_v16  ;;  %v1892_v46 = vmax.f32 %v1611_v43, %v1868_v23  ;;  %v1869_v18 = vmax.f32 %v1845_v33, 0.0  ;;  %2914 = vmatmul.mubr.bf16.gmra.mrb[216].mxu1 %v13101_v16 }
 0x1db   :  { %10129 = vmatprep.mubr.msk.bf16.mxu0 %vm286_vm0, %v13108_v19  ;;  %10151 = vmatprep.mubr.msk.bf16.mxu1 %vm286_vm0, %v13108_v19 }
 0x1dc   :  { %v1893_v63 = vmax.f32 %v1612_v60, %v1869_v18 }
 0x1dd   :  { %v1518_v20 = vpop.f32.mrb[112].mxu0  ;;  %v1775_v21 = vpop.f32.mrb[112].mxu1 }
 0x1de   :  { %v1589_v49 = vadd.f32 %v1518_v20, %v12417_v39  ;;  %v1520_v10 = vpop.f32.mrb[113].mxu0  ;;  %v1846_v25 = vadd.f32 %v1775_v21, %v12417_v39  ;;  %v1777_v29 = vpop.f32.mrb[113].mxu1  ;;  %v1913_v27 = vmax.f32 %v1892_v46, %v1893_v63 }
 0x1df   :  { %v1521_v31 = vpop.f32.mrb[114].mxu0  ;;  %v1778_v37 = vpop.f32.mrb[114].mxu1 }
 0x1e0   :  { %v1613_v35 = vmax.f32 %v1589_v49, 0.0  ;;  %v1590_v9 = vadd.f32 %v1521_v31, %v12417_v39  ;;  %v1523_v51 = vpop.f32.mrb[115].mxu0  ;;  %v1870_v45 = vmax.f32 %v1846_v25, 0.0  ;;  %v1847_v12 = vadd.f32 %v1778_v37, %v12417_v39  ;;  %v1780_v22 = vpop.f32.mrb[115].mxu1  ;;  %v13143_v25 = vld [vmem:[%s16812_s1 + $0x80] ss:$8 sps:$4 sm:$0xff]  }
 0x1e1   :  { %v13118_v53 = vpack.c.bf16 %v1913_v27, %v1912_v3  ;;  %v13150_v27 = vld [vmem:[%s16812_s1 + $0x94] ss:$8 sps:$4 sm:$0xff]  }
 0x1e2   :  { %v1614_v55 = vmax.f32 %v1590_v9, 0.0  ;;  %2665 = vmatmul.mubr.bf16.gmra.mrb[220].mxu0 %v13123_v14  ;;  %v1894_v56 = vmax.f32 %v1613_v35, %v1870_v45  ;;  %v1871_v28 = vmax.f32 %v1847_v12, 0.0  ;;  %2922 = vmatmul.mubr.bf16.gmra.mrb[220].mxu1 %v13123_v14 }
 0x1e3   :  { %10130 = vmatprep.mubr.msk.bf16.mxu0 %vm286_vm0, %v13130_v58  ;;  %10152 = vmatprep.mubr.msk.bf16.mxu1 %vm286_vm0, %v13130_v58 }
 0x1e4   :  { %v1895_v59 = vmax.f32 %v1614_v55, %v1871_v28 }
 0x1e5   :  { %v1526_v3 = vpop.f32.mrb[116].mxu0  ;;  %v1783_v5 = vpop.f32.mrb[116].mxu1 }
 0x1e6   :  { %v1591_v43 = vadd.f32 %v1526_v3, %v12417_v39  ;;  %v1528_v6 = vpop.f32.mrb[117].mxu0  ;;  %v1848_v7 = vadd.f32 %v1783_v5, %v12417_v39  ;;  %v1785_v23 = vpop.f32.mrb[117].mxu1  ;;  %v1914_v13 = vmax.f32 %v1894_v56, %v1895_v59 }
 0x1e7   :  { %v1529_v33 = vpop.f32.mrb[118].mxu0  ;;  %v1786_v18 = vpop.f32.mrb[118].mxu1 }
 0x1e8   :  { %v1615_v60 = vmax.f32 %v1591_v43, 0.0  ;;  %v1592_v46 = vadd.f32 %v1529_v33, %v12417_v39  ;;  %v1531_v63 = vpop.f32.mrb[119].mxu0  ;;  %v1872_v20 = vmax.f32 %v1848_v7, 0.0  ;;  %v1849_v49 = vadd.f32 %v1786_v18, %v12417_v39  ;;  %v1788_v21 = vpop.f32.mrb[119].mxu1 }
 0x1e9   :  { %v13172_v63 = vld [vmem:[%s16812_s1 + $0xa4] ss:$8 sps:$4 sm:$0xff]  }
 0x1ea   :  { %v1616_v10 = vmax.f32 %v1592_v46, 0.0  ;;  %2673 = vmatmul.mubr.bf16.gmra.mrb[224].mxu0 %v13143_v25  ;;  %v1896_v29 = vmax.f32 %v1615_v60, %v1872_v20  ;;  %v1873_v31 = vmax.f32 %v1849_v49, 0.0  ;;  %2930 = vmatmul.mubr.bf16.gmra.mrb[224].mxu1 %v13143_v25  ;;  %v13165_v60 = vld [vmem:[%s16812_s1 + $0x90] ss:$8 sps:$4 sm:$0xff]  }
 0x1eb   :  { %10131 = vmatprep.mubr.msk.bf16.mxu0 %vm286_vm0, %v13150_v27  ;;  %10153 = vmatprep.mubr.msk.bf16.mxu1 %vm286_vm0, %v13150_v27 }
 0x1ec   :  { %v1897_v35 = vmax.f32 %v1616_v10, %v1873_v31 }
 0x1ed   :  { %v1534_v9 = vpop.f32.mrb[120].mxu0  ;;  %v1791_v51 = vpop.f32.mrb[120].mxu1 }
 0x1ee   :  { %v1593_v37 = vadd.f32 %v1534_v9, %v12417_v39  ;;  %v1536_v45 = vpop.f32.mrb[121].mxu0  ;;  %v1850_v12 = vadd.f32 %v1791_v51, %v12417_v39  ;;  %v1793_v22 = vpop.f32.mrb[121].mxu1  ;;  %v1915_v56 = vmax.f32 %v1896_v29, %v1897_v35 }
 0x1ef   :  { %v1537_v55 = vpop.f32.mrb[122].mxu0  ;;  %v1794_v3 = vpop.f32.mrb[122].mxu1 }
 0x1f0   :  { %v1617_v28 = vmax.f32 %v1593_v37, 0.0  ;;  %v1594_v59 = vadd.f32 %v1537_v55, %v12417_v39  ;;  %v1539_v43 = vpop.f32.mrb[123].mxu0  ;;  %v1874_v5 = vmax.f32 %v1850_v12, 0.0  ;;  %v1851_v6 = vadd.f32 %v1794_v3, %v12417_v39  ;;  %v1796_v7 = vpop.f32.mrb[123].mxu1 }
 0x1f1   :  { %v13160_v23 = vpack.c.bf16 %v1915_v56, %v1914_v13 }
 0x1f2   :  { %v1618_v33 = vmax.f32 %v1594_v59, 0.0  ;;  %2681 = vmatmul.mubr.bf16.gmra.mrb[228].mxu0 %v13165_v60  ;;  %v1898_v46 = vmax.f32 %v1617_v28, %v1874_v5  ;;  %v1875_v18 = vmax.f32 %v1851_v6, 0.0  ;;  %2938 = vmatmul.mubr.bf16.gmra.mrb[228].mxu1 %v13165_v60  ;;  %v13185_v59 = vld [vmem:[%s16812_s1 + $0xa0] ss:$8 sps:$4 sm:$0xff]   ;;  %v13192_v5 = vld [vmem:[%s16812_s1 + $0xb4] ss:$8 sps:$4 sm:$0xff]  }
 0x1f3   :  { %10132 = vmatprep.mubr.msk.bf16.mxu0 %vm286_vm0, %v13172_v63  ;;  %10154 = vmatprep.mubr.msk.bf16.mxu1 %vm286_vm0, %v13172_v63 }
 0x1f4   :  { %v1899_v13 = vmax.f32 %v1618_v33, %v1875_v18 }
 0x1f5   :  { %v1542_v20 = vpop.f32.mrb[124].mxu0  ;;  %v1799_v21 = vpop.f32.mrb[124].mxu1 }
 0x1f6   :  { %v1595_v49 = vadd.f32 %v1542_v20, %v12417_v39  ;;  %v1544_v10 = vpop.f32.mrb[125].mxu0  ;;  %v1852_v29 = vadd.f32 %v1799_v21, %v12417_v39  ;;  %v1801_v31 = vpop.f32.mrb[125].mxu1  ;;  %v1916_v9 = vmax.f32 %v1898_v46, %v1899_v13 }
 0x1f7   :  { %v1545_v35 = vpop.f32.mrb[126].mxu0  ;;  %v1802_v45 = vpop.f32.mrb[126].mxu1 }
 0x1f8   :  { %v1619_v37 = vmax.f32 %v1595_v49, 0.0  ;;  %v1596_v51 = vadd.f32 %v1545_v35, %v12417_v39  ;;  %v1547_v12 = vpop.f32.mrb[127].mxu0  ;;  %v1876_v22 = vmax.f32 %v1852_v29, 0.0  ;;  %v1853_v55 = vadd.f32 %v1802_v45, %v12417_v39  ;;  %v1804_v56 = vpop.f32.mrb[127].mxu1 }
 0x1fa   :  { %v1620_v28 = vmax.f32 %v1596_v51, 0.0  ;;  %2689 = vmatmul.mubr.bf16.gmra.mrb[232].mxu0 %v13185_v59  ;;  %v1900_v3 = vmax.f32 %v1619_v37, %v1876_v22  ;;  %v1877_v43 = vmax.f32 %v1853_v55, 0.0  ;;  %2946 = vmatmul.mubr.bf16.gmra.mrb[232].mxu1 %v13185_v59  ;;  %v13207_v55 = vld [vmem:[%s16812_s1 + $0xb0] ss:$8 sps:$4 sm:$0xff]  }
 0x1fb   :  { %10133 = vmatprep.mubr.msk.bf16.mxu0 %vm286_vm0, %v13192_v5  ;;  %10155 = vmatprep.mubr.msk.bf16.mxu1 %vm286_vm0, %v13192_v5 }
 0x1fc   :  { %v1901_v6 = vmax.f32 %v1620_v28, %v1877_v43 }
 0x1fd   :  { %v1550_v7 = vpop.f32.mrb[128].mxu0  ;;  %v1807_v46 = vpop.f32.mrb[128].mxu1 }
 0x1fe   :  { %v1597_v33 = vadd.f32 %v1550_v7, %v12417_v39  ;;  %v1552_v18 = vpop.f32.mrb[129].mxu0  ;;  %v1854_v13 = vadd.f32 %v1807_v46, %v12417_v39  ;;  %v1809_v20 = vpop.f32.mrb[129].mxu1  ;;  %v1917_v21 = vmax.f32 %v1900_v3, %v1901_v6 }
 0x1ff   :  { %v1553_v49 = vpop.f32.mrb[130].mxu0  ;;  %v1810_v31 = vpop.f32.mrb[130].mxu1 }
 0x200   :  { %v1621_v10 = vmax.f32 %v1597_v33, 0.0  ;;  %v1598_v29 = vadd.f32 %v1553_v49, %v12417_v39  ;;  %v1555_v35 = vpop.f32.mrb[131].mxu0  ;;  %v1878_v37 = vmax.f32 %v1854_v13, 0.0  ;;  %v1855_v51 = vadd.f32 %v1810_v31, %v12417_v39  ;;  %v1812_v45 = vpop.f32.mrb[131].mxu1 }
 0x201   :  { %v13202_v12 = vpack.c.bf16 %v1917_v21, %v1916_v9 }
 0x202   :  { %v1622_v22 = vmax.f32 %v1598_v29, 0.0  ;;  %2697 = vmatmul.mubr.bf16.gmra.mrb[236].mxu0 %v13207_v55  ;;  %v1902_v56 = vmax.f32 %v1621_v10, %v1878_v37  ;;  %v1879_v28 = vmax.f32 %v1855_v51, 0.0  ;;  %2954 = vmatmul.mubr.bf16.gmra.mrb[236].mxu1 %v13207_v55  ;;  %v11378_v37 = vld [vmem:[%s16811_s0 + $0xd0] sm:$0xff]  }
 0x203   :  { %16933 = vst [vmem:[#allocation6_spill] sm:$0xff] %v13202_v12  ;;  %10166 = vmatprep.mubr.msk.bf16.mxu0 %vm286_vm0, %v12873_v34  ;;  %10188 = vmatprep.mubr.msk.bf16.mxu1 %vm286_vm0, %v12873_v34  ;;  %v11377_v34 = vld [vmem:[%s16811_s0 + $0xc0] sm:$0xff]  }
 0x204   :  { %v1903_v9 = vmax.f32 %v1622_v22, %v1879_v28 }
 0x205   :  { %v1558_v3 = vpop.f32.mrb[132].mxu0  ;;  %v1815_v6 = vpop.f32.mrb[132].mxu1 }
 0x206   :  { %v1599_v43 = vadd.f32 %v1558_v3, %v12417_v39  ;;  %v1560_v7 = vpop.f32.mrb[133].mxu0  ;;  %v1918_v33 = vmax.f32 %v1902_v56, %v1903_v9  ;;  %v1856_v46 = vadd.f32 %v1815_v6, %v12417_v39  ;;  %v1817_v18 = vpop.f32.mrb[133].mxu1  ;;  %v11379_v56 = vld [vmem:[%s16811_s0 + $0xc8] sm:$0xff]  }
 0x207   :  { %v1561_v13 = vpop.f32.mrb[134].mxu0  ;;  %v1818_v21 = vpop.f32.mrb[134].mxu1 }
 0x208   :  { %v1623_v20 = vmax.f32 %v1599_v43, 0.0  ;;  %v1600_v49 = vadd.f32 %v1561_v13, %v12417_v39  ;;  %v1563_v10 = vpop.f32.mrb[135].mxu0  ;;  %v1880_v29 = vmax.f32 %v1856_v46, 0.0  ;;  %v1857_v31 = vadd.f32 %v1818_v21, %v12417_v39  ;;  %v1820_v35 = vpop.f32.mrb[135].mxu1 }
 0x209   :  { %v11381_v10 = vld [vmem:[%s16811_s0 + $0xd0] sm:$0xff]   ;;  %v11382_v35 = vld [vmem:[%s16811_s0 + $0xe0] sm:$0xff]  }
 0x20a   :  { %v1624_v51 = vmax.f32 %v1600_v49, 0.0  ;;  %3171 = vmatmul.mubr.bf16.vlgmr.msra.gmra.mrb[240].mxu0 %v12892_v17  ;;  %v1904_v45 = vmax.f32 %v1623_v20, %v1880_v29  ;;  %v1881_v22 = vmax.f32 %v1857_v31, 0.0  ;;  %3428 = vmatmul.mubr.bf16.vlgmr.msra.gmra.mrb[240].mxu1 %v12892_v17  ;;  %v11380_v17 = vld [vmem:[%s16811_s0 + $0xd8] sm:$0xff]  }
 0x20b   :  { %10167 = vmatprep.mubr.msk.bf16.mxu0 %vm286_vm0, %v12899_v4  ;;  %10189 = vmatprep.mubr.msk.bf16.mxu1 %vm286_vm0, %v12899_v4 }
 0x20c   :  { %3701 = vmatpush1.bf16.msra.mxu0 %v11377_v34  ;;  %v1905_v28 = vmax.f32 %v1624_v51, %v1881_v22  ;;  %3958 = vmatpush1.bf16.msra.mxu1 %v11378_v37 }
 0x20d   :  { %v1566_v9 = vpop.f32.mrb[136].mxu0  ;;  %3702 = vmatprep.subr.bf16.mxu0 %v16823_v0  ;;  %v1823_v43 = vpop.f32.mrb[136].mxu1  ;;  %3959 = vmatprep.subr.bf16.mxu1 %v16823_v0 }
 0x20e   :  { %v1601_v3 = vadd.f32 %v1566_v9, %v12417_v39  ;;  %v1568_v6 = vpop.f32.mrb[137].mxu0  ;;  %v1919_v4 = vmax.f32 %v1904_v45, %v1905_v28  ;;  %v1858_v7 = vadd.f32 %v1823_v43, %v12417_v39  ;;  %v1825_v46 = vpop.f32.mrb[137].mxu1 }
 0x20f   :  { %v1569_v18 = vpop.f32.mrb[138].mxu0  ;;  %v1826_v49 = vpop.f32.mrb[138].mxu1 }
 0x210   :  { %v1625_v13 = vmax.f32 %v1601_v3, 0.0  ;;  %v1602_v20 = vadd.f32 %v1569_v18, %v12417_v39  ;;  %v1571_v21 = vpop.f32.mrb[139].mxu0  ;;  %3703 = vmatpush1.bf16.msra.mxu0 %v11379_v56  ;;  %v1882_v34 = vmax.f32 %v1858_v7, 0.0  ;;  %v1859_v29 = vadd.f32 %v1826_v49, %v12417_v39  ;;  %v1828_v31 = vpop.f32.mrb[139].mxu1  ;;  %3960 = vmatpush1.bf16.msra.mxu1 %v11380_v17 }
 0x211   :  { %3704 = vmatprep.subr.bf16.mxu0 %v16823_v0  ;;  %v13250_v37 = vpack.c.bf16 %v1919_v4, %v1918_v33  ;;  %3961 = vmatprep.subr.bf16.mxu1 %v16823_v0  ;;  %v11383_v33 = vld [vmem:[%s16811_s0 + $0xd8] sm:$0xff]  }
 0x212   :  { %v1626_v51 = vmax.f32 %v1602_v20, 0.0  ;;  %3179 = vmatmul.mubr.bf16.gmra.mrb[244].mxu0 %v12929_v54  ;;  %v13254_v45 = vmax.f32 %v1625_v13, %v1882_v34  ;;  %v1883_v22 = vmax.f32 %v1859_v29, 0.0  ;;  %3436 = vmatmul.mubr.bf16.gmra.mrb[244].mxu1 %v12929_v54  ;;  %v11384_v54 = vld [vmem:[%s16811_s0 + $0xe8] sm:$0xff]   ;;  %v11385_v20 = vld [vmem:[%s16811_s0 + $0xe0] sm:$0xff]   ;;  %v11386_v34 = vld [vmem:[%s16811_s0 + $0xf0] sm:$0xff]  }
 0x213   :  { %10168 = vmatprep.mubr.msk.bf16.mxu0 %vm286_vm0, %v12939_v30  ;;  %10190 = vmatprep.mubr.msk.bf16.mxu1 %vm286_vm0, %v12939_v30 }
 0x214   :  { %3705 = vmatpush1.bf16.msra.mxu0 %v11381_v10  ;;  %v1907_v56 = vmax.f32 %v1626_v51, %v1883_v22  ;;  %3962 = vmatpush1.bf16.msra.mxu1 %v11382_v35  ;;  %v11387_v51 = vld [vmem:[%s16811_s0 + $0xe8] sm:$0xff]  }
 0x215   :  { %v1574_v28 = vpop.f32.mrb[140].mxu0  ;;  %3706 = vmatprep.subr.bf16.mxu0 %v16823_v0  ;;  %v1831_v17 = vpop.f32.mrb[140].mxu1  ;;  %3963 = vmatprep.subr.bf16.mxu1 %v16823_v0 }
 0x216   :  { %v1603_v9 = vadd.f32 %v1574_v28, %v12417_v39  ;;  %v1576_v3 = vpop.f32.mrb[141].mxu0  ;;  %v1920_v30 = vmax.f32 %v13254_v45, %v1907_v56  ;;  %v1860_v43 = vadd.f32 %v1831_v17, %v12417_v39  ;;  %v1833_v6 = vpop.f32.mrb[141].mxu1 }
 0x217   :  { %v1577_v4 = vpop.f32.mrb[142].mxu0  ;;  %v1834_v18 = vpop.f32.mrb[142].mxu1 }
 0x218   :  { %v1627_v7 = vmax.f32 %v1603_v9, 0.0  ;;  %v1604_v46 = vadd.f32 %v1577_v4, %v12417_v39  ;;  %v1579_v13 = vpop.f32.mrb[143].mxu0  ;;  %3707 = vmatpush1.bf16.msra.mxu0 %v11383_v33  ;;  %v1884_v49 = vmax.f32 %v1860_v43, 0.0  ;;  %v1861_v21 = vadd.f32 %v1834_v18, %v12417_v39  ;;  %v1836_v10 = vpop.f32.mrb[143].mxu1  ;;  %3964 = vmatpush1.bf16.msra.mxu1 %v11384_v54 }
 0x219   :  { %3708 = vmatprep.subr.bf16.mxu0 %v16823_v0  ;;  %3965 = vmatprep.subr.bf16.mxu1 %v16823_v0 }
 0x21a   :  { %v1628_v29 = vmax.f32 %v1604_v46, 0.0  ;;  %3187 = vmatmul.mubr.bf16.gmra.mrb[248].mxu0 %v12971_v2  ;;  %v1908_v31 = vmax.f32 %v1627_v7, %v1884_v49  ;;  %v1885_v35 = vmax.f32 %v1861_v21, 0.0  ;;  %3444 = vmatmul.mubr.bf16.gmra.mrb[248].mxu1 %v12971_v2  ;;  %v11388_v2 = vld [vmem:[%s16811_s0 + $0xf8] sm:$0xff]   ;;  %v11389_v7 = vld [vmem:[%s16811_s0 + $0xf0] sm:$0xff]  }
 0x21b   :  { %10169 = vmatprep.mubr.msk.bf16.mxu0 %vm286_vm0, %v12979_v1  ;;  %10191 = vmatprep.mubr.msk.bf16.mxu1 %vm286_vm0, %v12979_v1 }
 0x21c   :  { %3709 = vmatpush1.bf16.msra.mxu0 %v11385_v20  ;;  %v1909_v45 = vmax.f32 %v1628_v29, %v1885_v35  ;;  %3966 = vmatpush1.bf16.msra.mxu1 %v11386_v34  ;;  %v11390_v20 = vld [vmem:[%s16811_s0 + $0x100] sm:$0xff]  }
 0x21d   :  { %v2048_v22 = vpop.f32.mrb[144].mxu0  ;;  %3710 = vmatprep.subr.bf16.mxu0 %v16823_v0  ;;  %v2305_v56 = vpop.f32.mrb[144].mxu1  ;;  %3967 = vmatprep.subr.bf16.mxu1 %v16823_v0 }
 0x21e   :  { %v2143_v33 = vadd.f32 %v2048_v22, %v12417_v39  ;;  %v2050_v28 = vpop.f32.mrb[145].mxu0  ;;  %v1921_v1 = vmax.f32 %v1908_v31, %v1909_v45  ;;  %v2400_v54 = vadd.f32 %v2305_v56, %v12417_v39  ;;  %v2307_v9 = vpop.f32.mrb[145].mxu1 }
 0x21f   :  { %v2051_v17 = vpop.f32.mrb[146].mxu0  ;;  %v2308_v6 = vpop.f32.mrb[146].mxu1  ;;  %v11393_v9 = vld [vmem:[%s16811_s0 + $0x100] sm:$0xff]  }
 0x220   :  { %v2167_v3 = vmax.f32 %v2143_v33, 0.0  ;;  %v2144_v43 = vadd.f32 %v2051_v17, %v12417_v39  ;;  %v2053_v4 = vpop.f32.mrb[147].mxu0  ;;  %3711 = vmatpush1.bf16.msra.mxu0 %v11387_v51  ;;  %v2424_v46 = vmax.f32 %v2400_v54, 0.0  ;;  %v2401_v18 = vadd.f32 %v2308_v6, %v12417_v39  ;;  %v2310_v13 = vpop.f32.mrb[147].mxu1  ;;  %3968 = vmatpush1.bf16.msra.mxu1 %v11388_v2  ;;  %v11394_v6 = vld [vmem:[%s16811_s0 + $0x110] sm:$0xff]  }
 0x221   :  { %3712 = vmatprep.subr.bf16.mxu0 %v16823_v0  ;;  %v13307_v49 = vpack.c.bf16 %v1921_v1, %v1920_v30  ;;  %3969 = vmatprep.subr.bf16.mxu1 %v16823_v0  ;;  %v11391_v30 = vld [vmem:[%s16811_s0 + $0xf8] sm:$0xff]  }
 0x222   :  { %v2168_v21 = vmax.f32 %v2144_v43, 0.0  ;;  %3195 = vmatmul.mubr.bf16.gmra.mrb[252].mxu0 %v13009_v57  ;;  %v13311_v10 = vmax.f32 %v2167_v3, %v2424_v46  ;;  %v2425_v34 = vmax.f32 %v2401_v18, 0.0  ;;  %3452 = vmatmul.mubr.bf16.gmra.mrb[252].mxu1 %v13009_v57  ;;  %v11392_v57 = vld [vmem:[%s16811_s0 + $0x108] sm:$0xff]  }
 0x223   :  { %10170 = vmatprep.mubr.msk.bf16.mxu0 %vm286_vm0, %v13019_v36  ;;  %10192 = vmatprep.mubr.msk.bf16.mxu1 %vm286_vm0, %v13019_v36  ;;  %v11395_v18 = vld [vmem:[%s16811_s0 + $0x108] sm:$0xff]  }
 0x224   :  { %3713 = vmatpush1.bf16.msra.mxu0 %v11389_v7  ;;  %v2449_v29 = vmax.f32 %v2168_v21, %v2425_v34  ;;  %3970 = vmatpush1.bf16.msra.mxu1 %v11390_v20 }
 0x225   :  { %v2056_v31 = vpop.f32.mrb[148].mxu0  ;;  %3714 = vmatprep.subr.bf16.mxu0 %v16823_v0  ;;  %v2313_v51 = vpop.f32.mrb[148].mxu1  ;;  %3971 = vmatprep.subr.bf16.mxu1 %v16823_v0 }
 0x226   :  { %v2145_v35 = vadd.f32 %v2056_v31, %v12417_v39  ;;  %v2058_v45 = vpop.f32.mrb[149].mxu0  ;;  %v2472_v36 = vmax.f32 %v13311_v10, %v2449_v29  ;;  %v2402_v22 = vadd.f32 %v2313_v51, %v12417_v39  ;;  %v2315_v2 = vpop.f32.mrb[149].mxu1 }
 0x227   :  { %v2059_v33 = vpop.f32.mrb[150].mxu0  ;;  %v2316_v1 = vpop.f32.mrb[150].mxu1 }
 0x228   :  { %v2169_v56 = vmax.f32 %v2145_v35, 0.0  ;;  %v2146_v28 = vadd.f32 %v2059_v33, %v12417_v39  ;;  %v2061_v54 = vpop.f32.mrb[151].mxu0  ;;  %3715 = vmatpush1.bf16.msra.mxu0 %v11391_v30  ;;  %v2426_v17 = vmax.f32 %v2402_v22, 0.0  ;;  %v2403_v3 = vadd.f32 %v2316_v1, %v12417_v39  ;;  %v2318_v43 = vpop.f32.mrb[151].mxu1  ;;  %3972 = vmatpush1.bf16.msra.mxu1 %v11392_v57 }
 0x229   :  { %3716 = vmatprep.subr.bf16.mxu0 %v16823_v0  ;;  %3973 = vmatprep.subr.bf16.mxu1 %v16823_v0 }
 0x22a   :  { %v2170_v4 = vmax.f32 %v2146_v28, 0.0  ;;  %3203 = vmatmul.mubr.bf16.gmra.mrb[0].mxu0 %v13048_v48  ;;  %v2450_v7 = vmax.f32 %v2169_v56, %v2426_v17  ;;  %v2427_v46 = vmax.f32 %v2403_v3, 0.0  ;;  %3460 = vmatmul.mubr.bf16.gmra.mrb[0].mxu1 %v13048_v48  ;;  %v11396_v48 = vld [vmem:[%s16811_s0 + $0x118] sm:$0xff]  }
 0x22b   :  { %10171 = vmatprep.mubr.msk.bf16.mxu0 %vm286_vm0, %v13056_v11  ;;  %10193 = vmatprep.mubr.msk.bf16.mxu1 %vm286_vm0, %v13056_v11 }
 0x22c   :  { %3717 = vmatpush1.bf16.msra.mxu0 %v11393_v9  ;;  %v2451_v13 = vmax.f32 %v2170_v4, %v2427_v46  ;;  %3974 = vmatpush1.bf16.msra.mxu1 %v11394_v6 }
 0x22d   :  { %v2064_v20 = vpop.f32.mrb[152].mxu0  ;;  %3718 = vmatprep.subr.bf16.mxu0 %v16823_v0  ;;  %v2321_v10 = vpop.f32.mrb[152].mxu1  ;;  %3975 = vmatprep.subr.bf16.mxu1 %v16823_v0 }
 0x22e   :  { %v2147_v21 = vadd.f32 %v2064_v20, %v12417_v39  ;;  %v2066_v34 = vpop.f32.mrb[153].mxu0  ;;  %v2473_v11 = vmax.f32 %v2450_v7, %v2451_v13  ;;  %v2404_v30 = vadd.f32 %v2321_v10, %v12417_v39  ;;  %v2323_v29 = vpop.f32.mrb[153].mxu1 }
 0x22f   :  { %v2067_v31 = vpop.f32.mrb[154].mxu0  ;;  %v2324_v51 = vpop.f32.mrb[154].mxu1 }
 0x230   :  { %v2171_v57 = vmax.f32 %v2147_v21, 0.0  ;;  %v2148_v35 = vadd.f32 %v2067_v31, %v12417_v39  ;;  %v2069_v45 = vpop.f32.mrb[155].mxu0  ;;  %3719 = vmatpush1.bf16.msra.mxu0 %v11395_v18  ;;  %v2428_v22 = vmax.f32 %v2404_v30, 0.0  ;;  %v2405_v2 = vadd.f32 %v2324_v51, %v12417_v39  ;;  %v2326_v33 = vpop.f32.mrb[155].mxu1  ;;  %3976 = vmatpush1.bf16.msra.mxu1 %v11396_v48 }
 0x231   :  { %4262 = vmatprep.subr.bf16.mxu0 %v16823_v0  ;;  %v13358_v56 = vpack.c.bf16 %v2473_v11, %v2472_v36  ;;  %4519 = vmatprep.subr.bf16.mxu1 %v16823_v0 }
 0x232   :  { %v2172_v28 = vmax.f32 %v2148_v35, 0.0  ;;  %3211 = vmatmul.mubr.bf16.gmra.mrb[4].mxu0 %v13080_v42  ;;  %v2452_v1 = vmax.f32 %v2171_v57, %v2428_v22  ;;  %v2429_v54 = vmax.f32 %v2405_v2, 0.0  ;;  %3468 = vmatmul.mubr.bf16.gmra.mrb[4].mxu1 %v13080_v42 }
 0x233   :  { %10172 = vmatprep.mubr.msk.bf16.mxu0 %vm286_vm0, %v13088_v40  ;;  %10194 = vmatprep.mubr.msk.bf16.mxu1 %vm286_vm0, %v13088_v40 }
 0x234   :  { %v2453_v9 = vmax.f32 %v2172_v28, %v2429_v54 }
 0x235   :  { %v2072_v17 = vpop.f32.mrb[156].mxu0  ;;  %v2329_v3 = vpop.f32.mrb[156].mxu1 }
 0x236   :  { %v2149_v36 = vadd.f32 %v2072_v17, %v12417_v39  ;;  %v2074_v43 = vpop.f32.mrb[157].mxu0  ;;  %v2474_v6 = vmax.f32 %v2452_v1, %v2453_v9  ;;  %v2406_v4 = vadd.f32 %v2329_v3, %v12417_v39  ;;  %v2331_v7 = vpop.f32.mrb[157].mxu1 }
 0x237   :  { %v2075_v46 = vpop.f32.mrb[158].mxu0  ;;  %v2332_v13 = vpop.f32.mrb[158].mxu1 }
 0x238   :  { %v2173_v18 = vmax.f32 %v2149_v36, 0.0  ;;  %v2150_v42 = vadd.f32 %v2075_v46, %v12417_v39  ;;  %v2077_v20 = vpop.f32.mrb[159].mxu0  ;;  %v2430_v48 = vmax.f32 %v2406_v4, 0.0  ;;  %v2407_v21 = vadd.f32 %v2332_v13, %v12417_v39  ;;  %v2334_v40 = vpop.f32.mrb[159].mxu1 }
 0x23a   :  { %v2174_v10 = vmax.f32 %v2150_v42, 0.0  ;;  %3219 = vmatmul.mubr.bf16.gmra.mrb[8].mxu0 %v13101_v16  ;;  %v2454_v34 = vmax.f32 %v2173_v18, %v2430_v48  ;;  %v2431_v11 = vmax.f32 %v2407_v21, 0.0  ;;  %3476 = vmatmul.mubr.bf16.gmra.mrb[8].mxu1 %v13101_v16 }
 0x23b   :  { %10173 = vmatprep.mubr.msk.bf16.mxu0 %vm286_vm0, %v13108_v19  ;;  %10195 = vmatprep.mubr.msk.bf16.mxu1 %vm286_vm0, %v13108_v19 }
 0x23c   :  { %v2455_v30 = vmax.f32 %v2174_v10, %v2431_v11 }
 0x23d   :  { %v2080_v29 = vpop.f32.mrb[160].mxu0  ;;  %v2337_v57 = vpop.f32.mrb[160].mxu1 }
 0x23e   :  { %v2151_v31 = vadd.f32 %v2080_v29, %v12417_v39  ;;  %v2082_v35 = vpop.f32.mrb[161].mxu0  ;;  %v2475_v51 = vmax.f32 %v2454_v34, %v2455_v30  ;;  %v2408_v45 = vadd.f32 %v2337_v57, %v12417_v39  ;;  %v2339_v22 = vpop.f32.mrb[161].mxu1 }
 0x23f   :  { %v2083_v2 = vpop.f32.mrb[162].mxu0  ;;  %v2340_v28 = vpop.f32.mrb[162].mxu1 }
 0x240   :  { %v2175_v33 = vmax.f32 %v2151_v31, 0.0  ;;  %v2152_v16 = vadd.f32 %v2083_v2, %v12417_v39  ;;  %v2085_v1 = vpop.f32.mrb[163].mxu0  ;;  %v2432_v54 = vmax.f32 %v2408_v45, 0.0  ;;  %v2409_v9 = vadd.f32 %v2340_v28, %v12417_v39  ;;  %v2342_v19 = vpop.f32.mrb[163].mxu1 }
 0x241   :  { %v13381_v17 = vpack.c.bf16 %v2475_v51, %v2474_v6 }
 0x242   :  { %v2176_v36 = vmax.f32 %v2152_v16, 0.0  ;;  %3227 = vmatmul.mubr.bf16.gmra.mrb[12].mxu0 %v13123_v14  ;;  %v2456_v3 = vmax.f32 %v2175_v33, %v2432_v54  ;;  %v2433_v43 = vmax.f32 %v2409_v9, 0.0  ;;  %3484 = vmatmul.mubr.bf16.gmra.mrb[12].mxu1 %v13123_v14 }
 0x243   :  { %10174 = vmatprep.mubr.msk.bf16.mxu0 %vm286_vm0, %v13130_v58  ;;  %10196 = vmatprep.mubr.msk.bf16.mxu1 %vm286_vm0, %v13130_v58 }
 0x244   :  { %v2457_v4 = vmax.f32 %v2176_v36, %v2433_v43 }
 0x245   :  { %v2088_v7 = vpop.f32.mrb[164].mxu0  ;;  %v2345_v18 = vpop.f32.mrb[164].mxu1 }
 0x246   :  { %v2153_v46 = vadd.f32 %v2088_v7, %v12417_v39  ;;  %v2090_v6 = vpop.f32.mrb[165].mxu0  ;;  %v2476_v42 = vmax.f32 %v2456_v3, %v2457_v4  ;;  %v2410_v13 = vadd.f32 %v2345_v18, %v12417_v39  ;;  %v2347_v20 = vpop.f32.mrb[165].mxu1 }
 0x247   :  { %v2091_v48 = vpop.f32.mrb[166].mxu0  ;;  %v2348_v40 = vpop.f32.mrb[166].mxu1 }
 0x248   :  { %v2177_v21 = vmax.f32 %v2153_v46, 0.0  ;;  %v2154_v14 = vadd.f32 %v2091_v48, %v12417_v39  ;;  %v2093_v10 = vpop.f32.mrb[167].mxu0  ;;  %v2434_v34 = vmax.f32 %v2410_v13, 0.0  ;;  %v2411_v11 = vadd.f32 %v2348_v40, %v12417_v39  ;;  %v2350_v58 = vpop.f32.mrb[167].mxu1 }
 0x24a   :  { %v2178_v30 = vmax.f32 %v2154_v14, 0.0  ;;  %3235 = vmatmul.mubr.bf16.gmra.mrb[16].mxu0 %v13143_v25  ;;  %v2458_v29 = vmax.f32 %v2177_v21, %v2434_v34  ;;  %v2435_v31 = vmax.f32 %v2411_v11, 0.0  ;;  %3492 = vmatmul.mubr.bf16.gmra.mrb[16].mxu1 %v13143_v25 }
 0x24b   :  { %10175 = vmatprep.mubr.msk.bf16.mxu0 %vm286_vm0, %v13150_v27  ;;  %10197 = vmatprep.mubr.msk.bf16.mxu1 %vm286_vm0, %v13150_v27 }
 0x24c   :  { %v2459_v57 = vmax.f32 %v2178_v30, %v2435_v31 }
 0x24d   :  { %v2096_v35 = vpop.f32.mrb[168].mxu0  ;;  %v2353_v45 = vpop.f32.mrb[168].mxu1 }
 0x24e   :  { %v2155_v51 = vadd.f32 %v2096_v35, %v12417_v39  ;;  %v2098_v22 = vpop.f32.mrb[169].mxu0  ;;  %v2477_v2 = vmax.f32 %v2458_v29, %v2459_v57  ;;  %v2412_v33 = vadd.f32 %v2353_v45, %v12417_v39  ;;  %v2355_v16 = vpop.f32.mrb[169].mxu1 }
 0x24f   :  { %v2099_v28 = vpop.f32.mrb[170].mxu0  ;;  %v2356_v54 = vpop.f32.mrb[170].mxu1 }
 0x250   :  { %v2179_v1 = vmax.f32 %v2155_v51, 0.0  ;;  %v2156_v25 = vadd.f32 %v2099_v28, %v12417_v39  ;;  %v2101_v9 = vpop.f32.mrb[171].mxu0  ;;  %v2436_v19 = vmax.f32 %v2412_v33, 0.0  ;;  %v2413_v36 = vadd.f32 %v2356_v54, %v12417_v39  ;;  %v2358_v27 = vpop.f32.mrb[171].mxu1 }
 0x251   :  { %v13403_v3 = vpack.c.bf16 %v2477_v2, %v2476_v42 }
 0x252   :  { %v2180_v43 = vmax.f32 %v2156_v25, 0.0  ;;  %3243 = vmatmul.mubr.bf16.gmra.mrb[20].mxu0 %v13165_v60  ;;  %v2460_v4 = vmax.f32 %v2179_v1, %v2436_v19  ;;  %v2437_v7 = vmax.f32 %v2413_v36, 0.0  ;;  %3500 = vmatmul.mubr.bf16.gmra.mrb[20].mxu1 %v13165_v60 }
 0x253   :  { %16934 = vst [vmem:[#allocation7_spill] sm:$0xff] %v13403_v3  ;;  %10176 = vmatprep.mubr.msk.bf16.mxu0 %vm286_vm0, %v13172_v63  ;;  %10198 = vmatprep.mubr.msk.bf16.mxu1 %vm286_vm0, %v13172_v63 }
 0x254   :  { %v2461_v46 = vmax.f32 %v2180_v43, %v2437_v7  ;;  %v13432_v7 = vld [vmem:[%s16812_s1 + $0x4] ss:$8 sps:$4 sm:$0xff]  }
 0x255   :  { %v2104_v18 = vpop.f32.mrb[172].mxu0  ;;  %v2361_v13 = vpop.f32.mrb[172].mxu1 }
 0x256   :  { %v2157_v6 = vadd.f32 %v2104_v18, %v12417_v39  ;;  %v2106_v42 = vpop.f32.mrb[173].mxu0  ;;  %v2478_v20 = vmax.f32 %v2460_v4, %v2461_v46  ;;  %v2414_v48 = vadd.f32 %v2361_v13, %v12417_v39  ;;  %v2363_v21 = vpop.f32.mrb[173].mxu1 }
 0x257   :  { %v2107_v14 = vpop.f32.mrb[174].mxu0  ;;  %v2364_v10 = vpop.f32.mrb[174].mxu1 }
 0x258   :  { %v2181_v40 = vmax.f32 %v2157_v6, 0.0  ;;  %v2158_v60 = vadd.f32 %v2107_v14, %v12417_v39  ;;  %v2109_v34 = vpop.f32.mrb[175].mxu0  ;;  %v2438_v11 = vmax.f32 %v2414_v48, 0.0  ;;  %v2415_v58 = vadd.f32 %v2364_v10, %v12417_v39  ;;  %v2366_v63 = vpop.f32.mrb[175].mxu1 }
 0x259   :  { %v11397_v34 = vld [vmem:[%s16811_s0 + $0xe0] sm:$0xff]  }
 0x25a   :  { %v2182_v30 = vmax.f32 %v2158_v60, 0.0  ;;  %3251 = vmatmul.mubr.bf16.gmra.mrb[24].mxu0 %v13185_v59  ;;  %v2462_v29 = vmax.f32 %v2181_v40, %v2438_v11  ;;  %v2439_v31 = vmax.f32 %v2415_v58, 0.0  ;;  %3508 = vmatmul.mubr.bf16.gmra.mrb[24].mxu1 %v13185_v59 }
 0x25b   :  { %10177 = vmatprep.mubr.msk.bf16.mxu0 %vm286_vm0, %v13192_v5  ;;  %10199 = vmatprep.mubr.msk.bf16.mxu1 %vm286_vm0, %v13192_v5 }
 0x25c   :  { %v2463_v57 = vmax.f32 %v2182_v30, %v2439_v31  ;;  %v11398_v30 = vld [vmem:[%s16811_s0 + $0xf0] sm:$0xff]   ;;  %v13451_v31 = vld [vmem:[%s16812_s1] ss:$8 sps:$4 sm:$0xff]  }
 0x25d   :  { %v2112_v35 = vpop.f32.mrb[176].mxu0  ;;  %v2369_v45 = vpop.f32.mrb[176].mxu1 }
 0x25e   :  { %v2159_v51 = vadd.f32 %v2112_v35, %v12417_v39  ;;  %v2114_v22 = vpop.f32.mrb[177].mxu0  ;;  %v2479_v2 = vmax.f32 %v2462_v29, %v2463_v57  ;;  %v2416_v33 = vadd.f32 %v2369_v45, %v12417_v39  ;;  %v2371_v16 = vpop.f32.mrb[177].mxu1  ;;  %v11399_v45 = vld [vmem:[%s16811_s0 + $0xe8] sm:$0xff]  }
 0x25f   :  { %v2115_v28 = vpop.f32.mrb[178].mxu0  ;;  %v2372_v25 = vpop.f32.mrb[178].mxu1 }
 0x260   :  { %v2183_v1 = vmax.f32 %v2159_v51, 0.0  ;;  %v2160_v59 = vadd.f32 %v2115_v28, %v12417_v39  ;;  %v2117_v54 = vpop.f32.mrb[179].mxu0  ;;  %v2440_v9 = vmax.f32 %v2416_v33, 0.0  ;;  %v2417_v19 = vadd.f32 %v2372_v25, %v12417_v39  ;;  %v2374_v5 = vpop.f32.mrb[179].mxu1  ;;  %v13458_v51 = vld [vmem:[%s16812_s1 + $0x14] ss:$8 sps:$4 sm:$0xff]  }
 0x261   :  { %v13425_v36 = vpack.c.bf16 %v2479_v2, %v2478_v20  ;;  %v11400_v33 = vld [vmem:[%s16811_s0 + $0xf8] sm:$0xff]  }
 0x262   :  { %v2184_v27 = vmax.f32 %v2160_v59, 0.0  ;;  %3259 = vmatmul.mubr.bf16.gmra.mrb[28].mxu0 %v13207_v55  ;;  %v2464_v43 = vmax.f32 %v2183_v1, %v2440_v9  ;;  %v2441_v4 = vmax.f32 %v2417_v19, 0.0  ;;  %3516 = vmatmul.mubr.bf16.gmra.mrb[28].mxu1 %v13207_v55 }
 0x263   :  { %10210 = vmatprep.mubr.msk.bf16.mxu0 %vm286_vm0, %v13432_v7  ;;  %10232 = vmatprep.mubr.msk.bf16.mxu1 %vm286_vm0, %v13432_v7 }
 0x264   :  { %v2465_v46 = vmax.f32 %v2184_v27, %v2441_v4  ;;  %v11401_v4 = vld [vmem:[%s16811_s0 + $0xf0] sm:$0xff]  }
 0x265   :  { %v2120_v18 = vpop.f32.mrb[180].mxu0  ;;  %v2377_v13 = vpop.f32.mrb[180].mxu1 }
 0x266   :  { %v2161_v6 = vadd.f32 %v2120_v18, %v12417_v39  ;;  %v2122_v42 = vpop.f32.mrb[181].mxu0  ;;  %v2480_v20 = vmax.f32 %v2464_v43, %v2465_v46  ;;  %v2418_v55 = vadd.f32 %v2377_v13, %v12417_v39  ;;  %v2379_v48 = vpop.f32.mrb[181].mxu1  ;;  %v11402_v13 = vld [vmem:[%s16811_s0 + $0x100] sm:$0xff]  }
 0x267   :  { %v2123_v21 = vpop.f32.mrb[182].mxu0  ;;  %v2380_v60 = vpop.f32.mrb[182].mxu1  ;;  %v13488_v48 = vld [vmem:[%s16812_s1 + $0x10] ss:$8 sps:$4 sm:$0xff]  }
 0x268   :  { %v2185_v14 = vmax.f32 %v2161_v6, 0.0  ;;  %v2162_v40 = vadd.f32 %v2123_v21, %v12417_v39  ;;  %v2125_v10 = vpop.f32.mrb[183].mxu0  ;;  %v2442_v11 = vmax.f32 %v2418_v55, 0.0  ;;  %v2419_v58 = vadd.f32 %v2380_v60, %v12417_v39  ;;  %v2382_v63 = vpop.f32.mrb[183].mxu1 }
 0x26a   :  { %v2186_v29 = vmax.f32 %v2162_v40, 0.0  ;;  %3733 = vmatmul.mubr.bf16.vlgmr.msra.gmra.mrb[32].mxu0 %v13451_v31  ;;  %v2466_v57 = vmax.f32 %v2185_v14, %v2442_v11  ;;  %v2443_v35 = vmax.f32 %v2419_v58, 0.0  ;;  %3990 = vmatmul.mubr.bf16.vlgmr.msra.gmra.mrb[32].mxu1 %v13451_v31  ;;  %v11403_v40 = vld [vmem:[%s16811_s0 + $0xf8] sm:$0xff]  }
 0x26b   :  { %10211 = vmatprep.mubr.msk.bf16.mxu0 %vm286_vm0, %v13458_v51  ;;  %10233 = vmatprep.mubr.msk.bf16.mxu1 %vm286_vm0, %v13458_v51 }
 0x26c   :  { %4263 = vmatpush1.bf16.msra.mxu0 %v11397_v34  ;;  %v2467_v22 = vmax.f32 %v2186_v29, %v2443_v35  ;;  %4520 = vmatpush1.bf16.msra.mxu1 %v11398_v30  ;;  %v11404_v34 = vld [vmem:[%s16811_s0 + $0x108] sm:$0xff]  }
 0x26d   :  { %v2128_v2 = vpop.f32.mrb[184].mxu0  ;;  %4264 = vmatprep.subr.bf16.mxu0 %v16823_v0  ;;  %v2385_v28 = vpop.f32.mrb[184].mxu1  ;;  %4521 = vmatprep.subr.bf16.mxu1 %v16823_v0 }
 0x26e   :  { %v2163_v16 = vadd.f32 %v2128_v2, %v12417_v39  ;;  %v2130_v1 = vpop.f32.mrb[185].mxu0  ;;  %v2481_v59 = vmax.f32 %v2466_v57, %v2467_v22  ;;  %v2420_v25 = vadd.f32 %v2385_v28, %v12417_v39  ;;  %v2387_v54 = vpop.f32.mrb[185].mxu1 }
 0x26f   :  { %v2131_v9 = vpop.f32.mrb[186].mxu0  ;;  %v2388_v27 = vpop.f32.mrb[186].mxu1 }
 0x270   :  { %v2187_v19 = vmax.f32 %v2163_v16, 0.0  ;;  %v2164_v5 = vadd.f32 %v2131_v9, %v12417_v39  ;;  %v2133_v43 = vpop.f32.mrb[187].mxu0  ;;  %4265 = vmatpush1.bf16.msra.mxu0 %v11399_v45  ;;  %v2444_v46 = vmax.f32 %v2420_v25, 0.0  ;;  %v2421_v18 = vadd.f32 %v2388_v27, %v12417_v39  ;;  %v2390_v6 = vpop.f32.mrb[187].mxu1  ;;  %4522 = vmatpush1.bf16.msra.mxu1 %v11400_v33  ;;  %v11405_v16 = vld [vmem:[%s16811_s0 + $0x100] sm:$0xff]   ;;  %v11406_v25 = vld [vmem:[%s16811_s0 + $0x110] sm:$0xff]  }
 0x271   :  { %4266 = vmatprep.subr.bf16.mxu0 %v16823_v0  ;;  %v13483_v42 = vpack.c.bf16 %v2481_v59, %v2480_v20  ;;  %4523 = vmatprep.subr.bf16.mxu1 %v16823_v0  ;;  %v13498_v20 = vld [vmem:[%s16812_s1 + $0x24] ss:$8 sps:$4 sm:$0xff]   ;;  %v13530_v9 = vld [vmem:[%s16812_s1 + $0x20] ss:$8 sps:$4 sm:$0xff]   ;;  %v13538_v27 = vld [vmem:[%s16812_s1 + $0x34] ss:$8 sps:$4 sm:$0xff]  }
 0x272   :  { %v2188_v55 = vmax.f32 %v2164_v5, 0.0  ;;  %3741 = vmatmul.mubr.bf16.gmra.mrb[36].mxu0 %v13488_v48  ;;  %v13492_v21 = vmax.f32 %v2187_v19, %v2444_v46  ;;  %v2445_v14 = vmax.f32 %v2421_v18, 0.0  ;;  %3998 = vmatmul.mubr.bf16.gmra.mrb[36].mxu1 %v13488_v48  ;;  %v11407_v43 = vld [vmem:[%s16811_s0 + $0x108] sm:$0xff]   ;;  %v11408_v18 = vld [vmem:[%s16811_s0 + $0x118] sm:$0xff]  }
 0x273   :  { %16935 = vst [vmem:[#allocation8_spill] sm:$0xff] %v13483_v42  ;;  %10212 = vmatprep.mubr.msk.bf16.mxu0 %vm286_vm0, %v13498_v20  ;;  %10234 = vmatprep.mubr.msk.bf16.mxu1 %vm286_vm0, %v13498_v20 }
 0x274   :  { %4267 = vmatpush1.bf16.msra.mxu0 %v11401_v4  ;;  %v13507_v60 = vmax.f32 %v2188_v55, %v2445_v14  ;;  %4524 = vmatpush1.bf16.msra.mxu1 %v11402_v13 }
 0x275   :  { %v2136_v10 = vpop.f32.mrb[188].mxu0  ;;  %4268 = vmatprep.subr.bf16.mxu0 %v16823_v0  ;;  %v2393_v58 = vpop.f32.mrb[188].mxu1  ;;  %4525 = vmatprep.subr.bf16.mxu1 %v16823_v0 }
 0x276   :  { %v2165_v11 = vadd.f32 %v2136_v10, %v12417_v39  ;;  %v2138_v63 = vpop.f32.mrb[189].mxu0  ;;  %v2482_v30 = vmax.f32 %v13492_v21, %v13507_v60  ;;  %v2422_v29 = vadd.f32 %v2393_v58, %v12417_v39  ;;  %v2395_v57 = vpop.f32.mrb[189].mxu1 }
 0x277   :  { %v2139_v35 = vpop.f32.mrb[190].mxu0  ;;  %v2396_v2 = vpop.f32.mrb[190].mxu1  ;;  %v11409_v63 = vld [vmem:[%s16811_s0 + $0x110] sm:$0xff]  }
 0x278   :  { %v2189_v45 = vmax.f32 %v2165_v11, 0.0  ;;  %v2166_v22 = vadd.f32 %v2139_v35, %v12417_v39  ;;  %v2141_v33 = vpop.f32.mrb[191].mxu0  ;;  %4269 = vmatpush1.bf16.msra.mxu0 %v11403_v40  ;;  %v2446_v28 = vmax.f32 %v2422_v29, 0.0  ;;  %v2423_v1 = vadd.f32 %v2396_v2, %v12417_v39  ;;  %v2398_v59 = vpop.f32.mrb[191].mxu1  ;;  %4526 = vmatpush1.bf16.msra.mxu1 %v11404_v34 }
 0x279   :  { %4270 = vmatprep.subr.bf16.mxu0 %v16823_v0  ;;  %4527 = vmatprep.subr.bf16.mxu1 %v16823_v0  ;;  %v13568_v33 = vld [vmem:[%s16812_s1 + $0x30] ss:$8 sps:$4 sm:$0xff]  }
 0x27a   :  { %v2190_v54 = vmax.f32 %v2166_v22, 0.0  ;;  %3749 = vmatmul.mubr.bf16.gmra.mrb[40].mxu0 %v13530_v9  ;;  %v2470_v19 = vmax.f32 %v2189_v45, %v2446_v28  ;;  %v2447_v5 = vmax.f32 %v2423_v1, 0.0  ;;  %4006 = vmatmul.mubr.bf16.gmra.mrb[40].mxu1 %v13530_v9  ;;  %v11410_v45 = vld [vmem:[%s16811_s0 + $0x120] sm:$0xff]   ;;  %v11411_v1 = vld [vmem:[%s16811_s0 + $0x118] sm:$0xff]  }
 0x27b   :  { %10213 = vmatprep.mubr.msk.bf16.mxu0 %vm286_vm0, %v13538_v27  ;;  %10235 = vmatprep.mubr.msk.bf16.mxu1 %vm286_vm0, %v13538_v27 }
 0x27c   :  { %4271 = vmatpush1.bf16.msra.mxu0 %v11405_v16  ;;  %v2471_v4 = vmax.f32 %v2190_v54, %v2447_v5  ;;  %4528 = vmatpush1.bf16.msra.mxu1 %v11406_v25  ;;  %v11412_v54 = vld [vmem:[%s16811_s0 + $0x128] sm:$0xff]  }
 0x27d   :  { %v2610_v46 = vpop.f32.mrb[192].mxu0  ;;  %4272 = vmatprep.subr.bf16.mxu0 %v16823_v0  ;;  %v2867_v13 = vpop.f32.mrb[192].mxu1  ;;  %4529 = vmatprep.subr.bf16.mxu1 %v16823_v0 }
 0x27e   :  { %v2705_v6 = vadd.f32 %v2610_v46, %v12417_v39  ;;  %v2612_v55 = vpop.f32.mrb[193].mxu0  ;;  %v2483_v21 = vmax.f32 %v2470_v19, %v2471_v4  ;;  %v2962_v14 = vadd.f32 %v2867_v13, %v12417_v39  ;;  %v2869_v40 = vpop.f32.mrb[193].mxu1 }
 0x27f   :  { %v2613_v60 = vpop.f32.mrb[194].mxu0  ;;  %v2870_v11 = vpop.f32.mrb[194].mxu1  ;;  %v11413_v40 = vld [vmem:[%s16811_s0 + $0x120] sm:$0xff]  }
 0x280   :  { %v2729_v10 = vmax.f32 %v2705_v6, 0.0  ;;  %v2706_v34 = vadd.f32 %v2613_v60, %v12417_v39  ;;  %v2615_v58 = vpop.f32.mrb[195].mxu0  ;;  %4273 = vmatpush1.bf16.msra.mxu0 %v11407_v43  ;;  %v2986_v29 = vmax.f32 %v2962_v14, 0.0  ;;  %v2963_v57 = vadd.f32 %v2870_v11, %v12417_v39  ;;  %v2872_v35 = vpop.f32.mrb[195].mxu1  ;;  %4530 = vmatpush1.bf16.msra.mxu1 %v11408_v18  ;;  %v11414_v11 = vld [vmem:[%s16811_s0 + $0x130] sm:$0xff]  }
 0x281   :  { %4274 = vmatprep.subr.bf16.mxu0 %v16823_v0  ;;  %v13563_v22 = vpack.c.bf16 %v2483_v21, %v2482_v30  ;;  %4531 = vmatprep.subr.bf16.mxu1 %v16823_v0  ;;  %v13578_v30 = vld [vmem:[%s16812_s1 + $0x44] ss:$8 sps:$4 sm:$0xff]   ;;  %v13615_v35 = vld [vmem:[%s16812_s1 + $0x54] ss:$8 sps:$4 sm:$0xff]  }
 0x282   :  { %v2730_v2 = vmax.f32 %v2706_v34, 0.0  ;;  %3757 = vmatmul.mubr.bf16.gmra.mrb[44].mxu0 %v13568_v33  ;;  %v13572_v16 = vmax.f32 %v2729_v10, %v2986_v29  ;;  %v2987_v28 = vmax.f32 %v2963_v57, 0.0  ;;  %4014 = vmatmul.mubr.bf16.gmra.mrb[44].mxu1 %v13568_v33 }
 0x283   :  { %16936 = vst [vmem:[#allocation9_spill] sm:$0xff] %v13563_v22  ;;  %10214 = vmatprep.mubr.msk.bf16.mxu0 %vm286_vm0, %v13578_v30  ;;  %10236 = vmatprep.mubr.msk.bf16.mxu1 %vm286_vm0, %v13578_v30 }
 0x284   :  { %4275 = vmatpush1.bf16.msra.mxu0 %v11409_v63  ;;  %v3011_v59 = vmax.f32 %v2730_v2, %v2987_v28  ;;  %4532 = vmatpush1.bf16.msra.mxu1 %v11410_v45  ;;  %v13607_v63 = vld [vmem:[%s16812_s1 + $0x40] ss:$8 sps:$4 sm:$0xff]   ;;  %v11416_v28 = vld [vmem:[%s16811_s0 + $0x138] sm:$0xff]  }
 0x285   :  { %v2618_v25 = vpop.f32.mrb[196].mxu0  ;;  %4276 = vmatprep.subr.bf16.mxu0 %v16823_v0  ;;  %v2875_v5 = vpop.f32.mrb[196].mxu1  ;;  %4533 = vmatprep.subr.bf16.mxu1 %v16823_v0  ;;  %v11415_v45 = vld [vmem:[%s16811_s0 + $0x128] sm:$0xff]  }
 0x286   :  { %v2707_v19 = vadd.f32 %v2618_v25, %v12417_v39  ;;  %v2620_v43 = vpop.f32.mrb[197].mxu0  ;;  %v3034_v4 = vmax.f32 %v13572_v16, %v3011_v59  ;;  %v2964_v46 = vadd.f32 %v2875_v5, %v12417_v39  ;;  %v2877_v18 = vpop.f32.mrb[197].mxu1 }
 0x287   :  { %v2621_v6 = vpop.f32.mrb[198].mxu0  ;;  %v2878_v21 = vpop.f32.mrb[198].mxu1 }
 0x288   :  { %v2731_v13 = vmax.f32 %v2707_v19, 0.0  ;;  %v2708_v55 = vadd.f32 %v2621_v6, %v12417_v39  ;;  %v2623_v14 = vpop.f32.mrb[199].mxu0  ;;  %4277 = vmatpush1.bf16.msra.mxu0 %v11411_v1  ;;  %v2988_v60 = vmax.f32 %v2964_v46, 0.0  ;;  %v2965_v10 = vadd.f32 %v2878_v21, %v12417_v39  ;;  %v2880_v34 = vpop.f32.mrb[199].mxu1  ;;  %4534 = vmatpush1.bf16.msra.mxu1 %v11412_v54 }
 0x289   :  { %4278 = vmatprep.subr.bf16.mxu0 %v16823_v0  ;;  %4535 = vmatprep.subr.bf16.mxu1 %v16823_v0 }
 0x28a   :  { %v2732_v58 = vmax.f32 %v2708_v55, 0.0  ;;  %3765 = vmatmul.mubr.bf16.gmra.mrb[48].mxu0 %v13607_v63  ;;  %v3012_v29 = vmax.f32 %v2731_v13, %v2988_v60  ;;  %v2989_v57 = vmax.f32 %v2965_v10, 0.0  ;;  %4022 = vmatmul.mubr.bf16.gmra.mrb[48].mxu1 %v13607_v63  ;;  %v13639_v10 = vld [vmem:[%s16812_s1 + $0x50] ss:$8 sps:$4 sm:$0xff]  }
 0x28b   :  { %10215 = vmatprep.mubr.msk.bf16.mxu0 %vm286_vm0, %v13615_v35  ;;  %10237 = vmatprep.mubr.msk.bf16.mxu1 %vm286_vm0, %v13615_v35 }
 0x28c   :  { %4279 = vmatpush1.bf16.msra.mxu0 %v11413_v40  ;;  %v3013_v2 = vmax.f32 %v2732_v58, %v2989_v57  ;;  %4536 = vmatpush1.bf16.msra.mxu1 %v11414_v11  ;;  %v13647_v11 = vld [vmem:[%s16812_s1 + $0x64] ss:$8 sps:$4 sm:$0xff]  }
 0x28d   :  { %v2626_v16 = vpop.f32.mrb[200].mxu0  ;;  %4280 = vmatprep.subr.bf16.mxu0 %v16823_v0  ;;  %v2883_v59 = vpop.f32.mrb[200].mxu1  ;;  %4537 = vmatprep.subr.bf16.mxu1 %v16823_v0 }
 0x28e   :  { %v2709_v1 = vadd.f32 %v2626_v16, %v12417_v39  ;;  %v2628_v25 = vpop.f32.mrb[201].mxu0  ;;  %v3035_v54 = vmax.f32 %v3012_v29, %v3013_v2  ;;  %v2966_v19 = vadd.f32 %v2883_v59, %v12417_v39  ;;  %v2885_v5 = vpop.f32.mrb[201].mxu1 }
 0x28f   :  { %v2629_v43 = vpop.f32.mrb[202].mxu0  ;;  %v2886_v6 = vpop.f32.mrb[202].mxu1 }
 0x290   :  { %v2733_v46 = vmax.f32 %v2709_v1, 0.0  ;;  %v2710_v18 = vadd.f32 %v2629_v43, %v12417_v39  ;;  %v2631_v13 = vpop.f32.mrb[203].mxu0  ;;  %4281 = vmatpush1.bf16.msra.mxu0 %v11415_v45  ;;  %v13632_v55 = vpack.c.bf16 %v3035_v54, %v3034_v4  ;;  %v2990_v21 = vmax.f32 %v2966_v19, 0.0  ;;  %v2888_v40 = vpop.f32.mrb[203].mxu1  ;;  %4538 = vmatpush1.bf16.msra.mxu1 %v11416_v28 }
 0x291   :  { %v2967_v14 = vadd.f32 %v2886_v6, %v12417_v39  ;;  %4824 = vmatprep.subr.bf16.mxu0 %v16823_v0  ;;  %5081 = vmatprep.subr.bf16.mxu1 %v16823_v0  ;;  %v13660_v13 = vld [vmem:[%s16812_s1 + $0x60] ss:$8 sps:$4 sm:$0xff]   ;;  %v13667_v40 = vld [vmem:[%s16812_s1 + $0x74] ss:$8 sps:$4 sm:$0xff]  }
 0x292   :  { %16937 = vst [vmem:[#allocation10_spill] sm:$0xff] %v13632_v55  ;;  %v2734_v60 = vmax.f32 %v2710_v18, 0.0  ;;  %3773 = vmatmul.mubr.bf16.gmra.mrb[52].mxu0 %v13639_v10  ;;  %v3014_v34 = vmax.f32 %v2733_v46, %v2990_v21  ;;  %4030 = vmatmul.mubr.bf16.gmra.mrb[52].mxu1 %v13639_v10 }
 0x293   :  { %v2991_v4 = vmax.f32 %v2967_v14, 0.0  ;;  %10216 = vmatprep.mubr.msk.bf16.mxu0 %vm286_vm0, %v13647_v11  ;;  %10238 = vmatprep.mubr.msk.bf16.mxu1 %vm286_vm0, %v13647_v11 }
 0x295   :  { %v3015_v58 = vmax.f32 %v2734_v60, %v2991_v4  ;;  %v2634_v29 = vpop.f32.mrb[204].mxu0  ;;  %v2891_v45 = vpop.f32.mrb[204].mxu1 }
 0x296   :  { %v2711_v57 = vadd.f32 %v2634_v29, %v12417_v39  ;;  %v2636_v2 = vpop.f32.mrb[205].mxu0  ;;  %v2968_v28 = vadd.f32 %v2891_v45, %v12417_v39  ;;  %v2893_v1 = vpop.f32.mrb[205].mxu1 }
 0x297   :  { %v3036_v16 = vmax.f32 %v3014_v34, %v3015_v58  ;;  %v2637_v59 = vpop.f32.mrb[206].mxu0  ;;  %v2894_v19 = vpop.f32.mrb[206].mxu1 }
 0x298   :  { %v2735_v25 = vmax.f32 %v2711_v57, 0.0  ;;  %v2712_v54 = vadd.f32 %v2637_v59, %v12417_v39  ;;  %v2639_v5 = vpop.f32.mrb[207].mxu0  ;;  %v2992_v43 = vmax.f32 %v2968_v28, 0.0  ;;  %v2969_v46 = vadd.f32 %v2894_v19, %v12417_v39  ;;  %v2896_v18 = vpop.f32.mrb[207].mxu1 }
 0x29a   :  { %v2736_v6 = vmax.f32 %v2712_v54, 0.0  ;;  %3781 = vmatmul.mubr.bf16.gmra.mrb[56].mxu0 %v13660_v13  ;;  %v3016_v21 = vmax.f32 %v2735_v25, %v2992_v43  ;;  %v2993_v14 = vmax.f32 %v2969_v46, 0.0  ;;  %4038 = vmatmul.mubr.bf16.gmra.mrb[56].mxu1 %v13660_v13 }
 0x29b   :  { %10217 = vmatprep.mubr.msk.bf16.mxu0 %vm286_vm0, %v13667_v40  ;;  %10239 = vmatprep.mubr.msk.bf16.mxu1 %vm286_vm0, %v13667_v40 }
 0x29c   :  { %v3017_v60 = vmax.f32 %v2736_v6, %v2993_v14  ;;  %v13682_v6 = vld [vmem:[%s16812_s1 + $0x70] ss:$8 sps:$4 sm:$0xff]  }
 0x29d   :  { %v2642_v34 = vpop.f32.mrb[208].mxu0  ;;  %v2899_v58 = vpop.f32.mrb[208].mxu1 }
 0x29e   :  { %v2713_v4 = vadd.f32 %v2642_v34, %v12417_v39  ;;  %v2644_v29 = vpop.f32.mrb[209].mxu0  ;;  %v3037_v57 = vmax.f32 %v3016_v21, %v3017_v60  ;;  %v2970_v45 = vadd.f32 %v2899_v58, %v12417_v39  ;;  %v2901_v2 = vpop.f32.mrb[209].mxu1 }
 0x29f   :  { %v2645_v28 = vpop.f32.mrb[210].mxu0  ;;  %v2902_v25 = vpop.f32.mrb[210].mxu1 }
 0x2a0   :  { %v2737_v1 = vmax.f32 %v2713_v4, 0.0  ;;  %v2714_v59 = vadd.f32 %v2645_v28, %v12417_v39  ;;  %v2647_v54 = vpop.f32.mrb[211].mxu0  ;;  %v13676_v19 = vpack.c.bf16 %v3037_v57, %v3036_v16  ;;  %v2994_v5 = vmax.f32 %v2970_v45, 0.0  ;;  %v2904_v46 = vpop.f32.mrb[211].mxu1  ;;  %v13689_v16 = vld [vmem:[%s16812_s1 + $0x84] ss:$8 sps:$4 sm:$0xff]  }
 0x2a1   :  { %v2971_v43 = vadd.f32 %v2902_v25, %v12417_v39 }
 0x2a2   :  { %16938 = vst [vmem:[#allocation11_spill] sm:$0xff] %v13676_v19  ;;  %v2738_v18 = vmax.f32 %v2714_v59, 0.0  ;;  %3789 = vmatmul.mubr.bf16.gmra.mrb[60].mxu0 %v13682_v6  ;;  %v3018_v21 = vmax.f32 %v2737_v1, %v2994_v5  ;;  %4046 = vmatmul.mubr.bf16.gmra.mrb[60].mxu1 %v13682_v6 }
 0x2a3   :  { %v2995_v14 = vmax.f32 %v2971_v43, 0.0  ;;  %10218 = vmatprep.mubr.msk.bf16.mxu0 %vm286_vm0, %v13689_v16  ;;  %10240 = vmatprep.mubr.msk.bf16.mxu1 %vm286_vm0, %v13689_v16 }
 0x2a5   :  { %v3019_v60 = vmax.f32 %v2738_v18, %v2995_v14  ;;  %v2650_v34 = vpop.f32.mrb[212].mxu0  ;;  %v2907_v58 = vpop.f32.mrb[212].mxu1  ;;  %v13702_v14 = vld [vmem:[%s16812_s1 + $0x80] ss:$8 sps:$4 sm:$0xff]  }
 0x2a6   :  { %v2715_v4 = vadd.f32 %v2650_v34, %v12417_v39  ;;  %v2652_v29 = vpop.f32.mrb[213].mxu0  ;;  %v2972_v45 = vadd.f32 %v2907_v58, %v12417_v39  ;;  %v2909_v2 = vpop.f32.mrb[213].mxu1  ;;  %v13709_v34 = vld [vmem:[%s16812_s1 + $0x94] ss:$8 sps:$4 sm:$0xff]  }
 0x2a7   :  { %v3038_v57 = vmax.f32 %v3018_v21, %v3019_v60  ;;  %v2653_v28 = vpop.f32.mrb[214].mxu0  ;;  %v2910_v25 = vpop.f32.mrb[214].mxu1 }
 0x2a8   :  { %v2739_v1 = vmax.f32 %v2715_v4, 0.0  ;;  %v2716_v59 = vadd.f32 %v2653_v28, %v12417_v39  ;;  %v2655_v54 = vpop.f32.mrb[215].mxu0  ;;  %v2996_v5 = vmax.f32 %v2972_v45, 0.0  ;;  %v2973_v43 = vadd.f32 %v2910_v25, %v12417_v39  ;;  %v2912_v46 = vpop.f32.mrb[215].mxu1 }
 0x2aa   :  { %v2740_v18 = vmax.f32 %v2716_v59, 0.0  ;;  %3797 = vmatmul.mubr.bf16.gmra.mrb[64].mxu0 %v13702_v14  ;;  %v3020_v21 = vmax.f32 %v2739_v1, %v2996_v5  ;;  %v2997_v60 = vmax.f32 %v2973_v43, 0.0  ;;  %4054 = vmatmul.mubr.bf16.gmra.mrb[64].mxu1 %v13702_v14 }
 0x2ab   :  { %10219 = vmatprep.mubr.msk.bf16.mxu0 %vm286_vm0, %v13709_v34  ;;  %10241 = vmatprep.mubr.msk.bf16.mxu1 %vm286_vm0, %v13709_v34 }
 0x2ac   :  { %v3021_v4 = vmax.f32 %v2740_v18, %v2997_v60 }
 0x2ad   :  { %v2658_v58 = vpop.f32.mrb[216].mxu0  ;;  %v2915_v45 = vpop.f32.mrb[216].mxu1 }
 0x2ae   :  { %v2717_v29 = vadd.f32 %v2658_v58, %v12417_v39  ;;  %v2660_v2 = vpop.f32.mrb[217].mxu0  ;;  %v3039_v28 = vmax.f32 %v3020_v21, %v3021_v4  ;;  %v2974_v1 = vadd.f32 %v2915_v45, %v12417_v39  ;;  %v2917_v59 = vpop.f32.mrb[217].mxu1  ;;  %v13724_v21 = vld [vmem:[%s16812_s1 + $0x90] ss:$8 sps:$4 sm:$0xff]  }
 0x2af   :  { %v2661_v25 = vpop.f32.mrb[218].mxu0  ;;  %v2918_v43 = vpop.f32.mrb[218].mxu1 }
 0x2b0   :  { %v2741_v54 = vmax.f32 %v2717_v29, 0.0  ;;  %v2718_v5 = vadd.f32 %v2661_v25, %v12417_v39  ;;  %v2663_v46 = vpop.f32.mrb[219].mxu0  ;;  %v13718_v0 = vpack.c.bf16 %v3039_v28, %v3038_v57  ;;  %v2998_v19 = vmax.f32 %v2974_v1, 0.0  ;;  %v2920_v60 = vpop.f32.mrb[219].mxu1  ;;  %v13731_v57 = vld [vmem:[%s16812_s1 + $0xa4] ss:$8 sps:$4 sm:$0xff]  }
 0x2b1   :  { %v2975_v18 = vadd.f32 %v2918_v43, %v12417_v39 }
 0x2b2   :  { %16939 = vst [vmem:[#allocation12_spill] sm:$0xff] %v13718_v0  ;;  %v2742_v55 = vmax.f32 %v2718_v5, 0.0  ;;  %3805 = vmatmul.mubr.bf16.gmra.mrb[68].mxu0 %v13724_v21  ;;  %v3022_v4 = vmax.f32 %v2741_v54, %v2998_v19  ;;  %4062 = vmatmul.mubr.bf16.gmra.mrb[68].mxu1 %v13724_v21 }
 0x2b3   :  { %v2999_v58 = vmax.f32 %v2975_v18, 0.0  ;;  %10220 = vmatprep.mubr.msk.bf16.mxu0 %vm286_vm0, %v13731_v57  ;;  %10242 = vmatprep.mubr.msk.bf16.mxu1 %vm286_vm0, %v13731_v57 }
 0x2b5   :  { %v3023_v29 = vmax.f32 %v2742_v55, %v2999_v58  ;;  %v2666_v45 = vpop.f32.mrb[220].mxu0  ;;  %v2923_v28 = vpop.f32.mrb[220].mxu1  ;;  %v13744_v58 = vld [vmem:[%s16812_s1 + $0xa0] ss:$8 sps:$4 sm:$0xff]  }
 0x2b6   :  { %v2719_v2 = vadd.f32 %v2666_v45, %v12417_v39  ;;  %v2668_v19 = vpop.f32.mrb[221].mxu0  ;;  %v2976_v59 = vadd.f32 %v2923_v28, %v12417_v39  ;;  %v2925_v25 = vpop.f32.mrb[221].mxu1  ;;  %v13751_v45 = vld [vmem:[%s16812_s1 + $0xb4] ss:$8 sps:$4 sm:$0xff]  }
 0x2b7   :  { %v3040_v1 = vmax.f32 %v3022_v4, %v3023_v29  ;;  %v2669_v54 = vpop.f32.mrb[222].mxu0  ;;  %v2926_v46 = vpop.f32.mrb[222].mxu1 }
 0x2b8   :  { %v2743_v5 = vmax.f32 %v2719_v2, 0.0  ;;  %v2720_v43 = vadd.f32 %v2669_v54, %v12417_v39  ;;  %v2671_v18 = vpop.f32.mrb[223].mxu0  ;;  %v3000_v60 = vmax.f32 %v2976_v59, 0.0  ;;  %v2977_v0 = vadd.f32 %v2926_v46, %v12417_v39  ;;  %v2928_v22 = vpop.f32.mrb[223].mxu1 }
 0x2ba   :  { %v2744_v55 = vmax.f32 %v2720_v43, 0.0  ;;  %3813 = vmatmul.mubr.bf16.gmra.mrb[72].mxu0 %v13744_v58  ;;  %v3024_v4 = vmax.f32 %v2743_v5, %v3000_v60  ;;  %v3001_v29 = vmax.f32 %v2977_v0, 0.0  ;;  %4070 = vmatmul.mubr.bf16.gmra.mrb[72].mxu1 %v13744_v58 }
 0x2bb   :  { %10221 = vmatprep.mubr.msk.bf16.mxu0 %vm286_vm0, %v13751_v45  ;;  %10243 = vmatprep.mubr.msk.bf16.mxu1 %vm286_vm0, %v13751_v45 }
 0x2bc   :  { %v3025_v22 = vmax.f32 %v2744_v55, %v3001_v29 }
 0x2bd   :  { %v2674_v2 = vpop.f32.mrb[224].mxu0  ;;  %v2931_v19 = vpop.f32.mrb[224].mxu1 }
 0x2be   :  { %v2721_v28 = vadd.f32 %v2674_v2, %v12417_v39  ;;  %v2676_v59 = vpop.f32.mrb[225].mxu0  ;;  %v3041_v0 = vmax.f32 %v3024_v4, %v3025_v22  ;;  %v2978_v25 = vadd.f32 %v2931_v19, %v12417_v39  ;;  %v2933_v54 = vpop.f32.mrb[225].mxu1  ;;  %v13766_v4 = vld [vmem:[%s16812_s1 + $0xb0] ss:$8 sps:$4 sm:$0xff]  }
 0x2bf   :  { %v2677_v5 = vpop.f32.mrb[226].mxu0  ;;  %v2934_v18 = vpop.f32.mrb[226].mxu1 }
 0x2c0   :  { %v2745_v43 = vmax.f32 %v2721_v28, 0.0  ;;  %v2722_v46 = vadd.f32 %v2677_v5, %v12417_v39  ;;  %v2679_v60 = vpop.f32.mrb[227].mxu0  ;;  %v13760_v61 = vpack.c.bf16 %v3041_v0, %v3040_v1  ;;  %v3002_v12 = vmax.f32 %v2978_v25, 0.0  ;;  %v2936_v29 = vpop.f32.mrb[227].mxu1 }
 0x2c1   :  { %v2979_v55 = vadd.f32 %v2934_v18, %v12417_v39 }
 0x2c2   :  { %16940 = vst [vmem:[#allocation13_spill] sm:$0xff] %v13760_v61  ;;  %v2746_v42 = vmax.f32 %v2722_v46, 0.0  ;;  %3821 = vmatmul.mubr.bf16.gmra.mrb[76].mxu0 %v13766_v4  ;;  %v3026_v22 = vmax.f32 %v2745_v43, %v3002_v12  ;;  %4078 = vmatmul.mubr.bf16.gmra.mrb[76].mxu1 %v13766_v4 }
 0x2c3   :  { %v3003_v2 = vmax.f32 %v2979_v55, 0.0  ;;  %10254 = vmatprep.mubr.msk.bf16.mxu0 %vm286_vm0, %v13432_v7  ;;  %10276 = vmatprep.mubr.msk.bf16.mxu1 %vm286_vm0, %v13432_v7  ;;  %v11417_v7 = vld [vmem:[%s16811_s0 + $0x100] sm:$0xff]  }
 0x2c5   :  { %v3027_v1 = vmax.f32 %v2746_v42, %v3003_v2  ;;  %v2682_v28 = vpop.f32.mrb[228].mxu0  ;;  %v2939_v59 = vpop.f32.mrb[228].mxu1 }
 0x2c6   :  { %v2723_v19 = vadd.f32 %v2682_v28, %v12417_v39  ;;  %v2684_v0 = vpop.f32.mrb[229].mxu0  ;;  %v2980_v54 = vadd.f32 %v2939_v59, %v12417_v39  ;;  %v2941_v5 = vpop.f32.mrb[229].mxu1 }
 0x2c7   :  { %v3042_v25 = vmax.f32 %v3026_v22, %v3027_v1  ;;  %v2685_v12 = vpop.f32.mrb[230].mxu0  ;;  %v2942_v18 = vpop.f32.mrb[230].mxu1  ;;  %v11418_v22 = vld [vmem:[%s16811_s0 + $0x110] sm:$0xff]  }
 0x2c8   :  { %v2747_v43 = vmax.f32 %v2723_v19, 0.0  ;;  %v2724_v46 = vadd.f32 %v2685_v12, %v12417_v39  ;;  %v2687_v60 = vpop.f32.mrb[231].mxu0  ;;  %v3004_v42 = vmax.f32 %v2980_v54, 0.0  ;;  %v2981_v55 = vadd.f32 %v2942_v18, %v12417_v39  ;;  %v2944_v29 = vpop.f32.mrb[231].mxu1  ;;  %v11419_v19 = vld [vmem:[%s16811_s0 + $0x108] sm:$0xff]  }
 0x2c9   :  { %v16941_v54 = vmov 0  }
 0x2ca   :  { %v2748_v2 = vmax.f32 %v2724_v46, 0.0  ;;  %4295 = vmatmul.mubr.bf16.vlgmr.msra.gmra.mrb[80].mxu0 %v13451_v31  ;;  %v3028_v1 = vmax.f32 %v2747_v43, %v3004_v42  ;;  %v3005_v28 = vmax.f32 %v2981_v55, 0.0  ;;  %4552 = vmatmul.mubr.bf16.vlgmr.msra.gmra.mrb[80].mxu1 %v13451_v31  ;;  %v11420_v31 = vld [vmem:[%s16811_s0 + $0x118] sm:$0xff]  }
 0x2cb   :  { %10255 = vmatprep.mubr.msk.bf16.mxu0 %vm286_vm0, %v13458_v51  ;;  %10277 = vmatprep.mubr.msk.bf16.mxu1 %vm286_vm0, %v13458_v51 }
 0x2cc   :  { %4825 = vmatpush1.bf16.msra.mxu0 %v11417_v7  ;;  %v3029_v59 = vmax.f32 %v2748_v2, %v3005_v28  ;;  %5082 = vmatpush1.bf16.msra.mxu1 %v11418_v22  ;;  %v11421_v22 = vld [vmem:[%s16811_s0 + $0x110] sm:$0xff]  }
 0x2cd   :  { %v2690_v0 = vpop.f32.mrb[232].mxu0  ;;  %4826 = vmatprep.subr.bf16.mxu0 %v16941_v54  ;;  %v2947_v12 = vpop.f32.mrb[232].mxu1  ;;  %5083 = vmatprep.subr.bf16.mxu1 %v16941_v54 }
 0x2ce   :  { %v2725_v5 = vadd.f32 %v2690_v0, %v12417_v39  ;;  %v2692_v43 = vpop.f32.mrb[233].mxu0  ;;  %v3043_v51 = vmax.f32 %v3028_v1, %v3029_v59  ;;  %v2982_v46 = vadd.f32 %v2947_v12, %v12417_v39  ;;  %v2949_v18 = vpop.f32.mrb[233].mxu1  ;;  %v11422_v59 = vld [vmem:[%s16811_s0 + $0x120] sm:$0xff]  }
 0x2cf   :  { %v2693_v60 = vpop.f32.mrb[234].mxu0  ;;  %v2950_v55 = vpop.f32.mrb[234].mxu1 }
 0x2d0   :  { %v2749_v7 = vmax.f32 %v2725_v5, 0.0  ;;  %v2726_v42 = vadd.f32 %v2693_v60, %v12417_v39  ;;  %v2695_v29 = vpop.f32.mrb[235].mxu0  ;;  %4827 = vmatpush1.bf16.msra.mxu0 %v11419_v19  ;;  %v13804_v2 = vpack.c.bf16 %v3043_v51, %v3042_v25  ;;  %v3006_v28 = vmax.f32 %v2982_v46, 0.0  ;;  %v2952_v1 = vpop.f32.mrb[235].mxu1  ;;  %5084 = vmatpush1.bf16.msra.mxu1 %v11420_v31  ;;  %v11423_v25 = vld [vmem:[%s16811_s0 + $0x118] sm:$0xff]  }
 0x2d1   :  { %v2983_v0 = vadd.f32 %v2950_v55, %v12417_v39  ;;  %4828 = vmatprep.subr.bf16.mxu0 %v16941_v54  ;;  %5085 = vmatprep.subr.bf16.mxu1 %v16941_v54 }
 0x2d2   :  { %16942 = vst [vmem:[#allocation14_spill] sm:$0xff] %v13804_v2  ;;  %v2750_v5 = vmax.f32 %v2726_v42, 0.0  ;;  %4303 = vmatmul.mubr.bf16.gmra.mrb[84].mxu0 %v13488_v48  ;;  %v3030_v19 = vmax.f32 %v2749_v7, %v3006_v28  ;;  %4560 = vmatmul.mubr.bf16.gmra.mrb[84].mxu1 %v13488_v48  ;;  %v11424_v48 = vld [vmem:[%s16811_s0 + $0x128] sm:$0xff]  }
 0x2d3   :  { %v3007_v12 = vmax.f32 %v2983_v0, 0.0  ;;  %10256 = vmatprep.mubr.msk.bf16.mxu0 %vm286_vm0, %v13498_v20  ;;  %10278 = vmatprep.mubr.msk.bf16.mxu1 %vm286_vm0, %v13498_v20  ;;  %v11425_v0 = vld [vmem:[%s16811_s0 + $0x120] sm:$0xff]  }
 0x2d4   :  { %4829 = vmatpush1.bf16.msra.mxu0 %v11421_v22  ;;  %5086 = vmatpush1.bf16.msra.mxu1 %v11422_v59 }
 0x2d5   :  { %v3031_v31 = vmax.f32 %v2750_v5, %v3007_v12  ;;  %v2698_v43 = vpop.f32.mrb[236].mxu0  ;;  %4830 = vmatprep.subr.bf16.mxu0 %v16941_v54  ;;  %v2955_v46 = vpop.f32.mrb[236].mxu1  ;;  %5087 = vmatprep.subr.bf16.mxu1 %v16941_v54 }
 0x2d6   :  { %v2727_v51 = vadd.f32 %v2698_v43, %v12417_v39  ;;  %v2700_v18 = vpop.f32.mrb[237].mxu0  ;;  %v2984_v60 = vadd.f32 %v2955_v46, %v12417_v39  ;;  %v2957_v7 = vpop.f32.mrb[237].mxu1  ;;  %v11427_v43 = vld [vmem:[%s16811_s0 + $0x128] sm:$0xff]  }
 0x2d7   :  { %v3044_v20 = vmax.f32 %v3030_v19, %v3031_v31  ;;  %v2701_v42 = vpop.f32.mrb[238].mxu0  ;;  %v2958_v22 = vpop.f32.mrb[238].mxu1  ;;  %v11426_v19 = vld [vmem:[%s16811_s0 + $0x130] sm:$0xff]  }
 0x2d8   :  { %v2751_v55 = vmax.f32 %v2727_v51, 0.0  ;;  %v2728_v29 = vadd.f32 %v2701_v42, %v12417_v39  ;;  %v2703_v28 = vpop.f32.mrb[239].mxu0  ;;  %4831 = vmatpush1.bf16.msra.mxu0 %v11423_v25  ;;  %v3008_v1 = vmax.f32 %v2984_v60, 0.0  ;;  %v2985_v59 = vadd.f32 %v2958_v22, %v12417_v39  ;;  %v2960_v5 = vpop.f32.mrb[239].mxu1  ;;  %5088 = vmatpush1.bf16.msra.mxu1 %v11424_v48 }
 0x2d9   :  { %4832 = vmatprep.subr.bf16.mxu0 %v16941_v54  ;;  %5089 = vmatprep.subr.bf16.mxu1 %v16941_v54 }
 0x2da   :  { %v2752_v12 = vmax.f32 %v2728_v29, 0.0  ;;  %4311 = vmatmul.mubr.bf16.gmra.mrb[88].mxu0 %v13530_v9  ;;  %v3032_v25 = vmax.f32 %v2751_v55, %v3008_v1  ;;  %v3009_v31 = vmax.f32 %v2985_v59, 0.0  ;;  %4568 = vmatmul.mubr.bf16.gmra.mrb[88].mxu1 %v13530_v9  ;;  %v11428_v9 = vld [vmem:[%s16811_s0 + $0x138] sm:$0xff]   ;;  %v11429_v1 = vld [vmem:[%s16811_s0 + $0x130] sm:$0xff]  }
 0x2db   :  { %10257 = vmatprep.mubr.msk.bf16.mxu0 %vm286_vm0, %v13538_v27  ;;  %10279 = vmatprep.mubr.msk.bf16.mxu1 %vm286_vm0, %v13538_v27 }
 0x2dc   :  { %4833 = vmatpush1.bf16.msra.mxu0 %v11425_v0  ;;  %v3033_v48 = vmax.f32 %v2752_v12, %v3009_v31  ;;  %5090 = vmatpush1.bf16.msra.mxu1 %v11426_v19 }
 0x2dd   :  { %v3172_v51 = vpop.f32.mrb[240].mxu0  ;;  %4834 = vmatprep.subr.bf16.mxu0 %v16941_v54  ;;  %v3429_v18 = vpop.f32.mrb[240].mxu1  ;;  %5091 = vmatprep.subr.bf16.mxu1 %v16941_v54 }
 0x2de   :  { %v3267_v46 = vadd.f32 %v3172_v51, %v12417_v39  ;;  %v3174_v60 = vpop.f32.mrb[241].mxu0  ;;  %v3045_v27 = vmax.f32 %v3032_v25, %v3033_v48  ;;  %v3524_v7 = vadd.f32 %v3429_v18, %v12417_v39  ;;  %v3431_v42 = vpop.f32.mrb[241].mxu1  ;;  %v11430_v25 = vld [vmem:[%s16811_s0 + $0x140] sm:$0xff]  }
 0x2df   :  { %v3175_v55 = vpop.f32.mrb[242].mxu0  ;;  %v3432_v28 = vpop.f32.mrb[242].mxu1 }
 0x2e0   :  { %v3291_v29 = vmax.f32 %v3267_v46, 0.0  ;;  %v3268_v22 = vadd.f32 %v3175_v55, %v12417_v39  ;;  %v3177_v0 = vpop.f32.mrb[243].mxu0  ;;  %4835 = vmatpush1.bf16.msra.mxu0 %v11427_v43  ;;  %v13858_v59 = vpack.c.bf16 %v3045_v27, %v3044_v20  ;;  %v3548_v5 = vmax.f32 %v3524_v7, 0.0  ;;  %v3434_v12 = vpop.f32.mrb[243].mxu1  ;;  %5092 = vmatpush1.bf16.msra.mxu1 %v11428_v9  ;;  %v11431_v20 = vld [vmem:[%s16811_s0 + $0x138] sm:$0xff]  }
 0x2e1   :  { %v3525_v19 = vadd.f32 %v3432_v28, %v12417_v39  ;;  %4836 = vmatprep.subr.bf16.mxu0 %v16941_v54  ;;  %5093 = vmatprep.subr.bf16.mxu1 %v16941_v54  ;;  %v11433_v0 = vld [vmem:[%s16811_s0 + $0x140] sm:$0xff]   ;;  %v11434_v12 = vld [vmem:[%s16811_s0 + $0x150] sm:$0xff]  }
 0x2e2   :  { %16943 = vst [vmem:[#allocation15_spill] sm:$0xff] %v13858_v59  ;;  %v3292_v31 = vmax.f32 %v3268_v22, 0.0  ;;  %4319 = vmatmul.mubr.bf16.gmra.mrb[92].mxu0 %v13568_v33  ;;  %v3572_v43 = vmax.f32 %v3291_v29, %v3548_v5  ;;  %4576 = vmatmul.mubr.bf16.gmra.mrb[92].mxu1 %v13568_v33  ;;  %v11432_v33 = vld [vmem:[%s16811_s0 + $0x148] sm:$0xff]  }
 0x2e3   :  { %v3549_v48 = vmax.f32 %v3525_v19, 0.0  ;;  %10258 = vmatprep.mubr.msk.bf16.mxu0 %vm286_vm0, %v13578_v30  ;;  %10280 = vmatprep.mubr.msk.bf16.mxu1 %vm286_vm0, %v13578_v30 }
 0x2e4   :  { %4837 = vmatpush1.bf16.msra.mxu0 %v11429_v1  ;;  %5094 = vmatpush1.bf16.msra.mxu1 %v11430_v25 }
 0x2e5   :  { %v3573_v51 = vmax.f32 %v3292_v31, %v3549_v48  ;;  %v3180_v9 = vpop.f32.mrb[244].mxu0  ;;  %4838 = vmatprep.subr.bf16.mxu0 %v16941_v54  ;;  %v3437_v18 = vpop.f32.mrb[244].mxu1  ;;  %5095 = vmatprep.subr.bf16.mxu1 %v16941_v54  ;;  %v11435_v48 = vld [vmem:[%s16811_s0 + $0x148] sm:$0xff]  }
 0x2e6   :  { %v3269_v46 = vadd.f32 %v3180_v9, %v12417_v39  ;;  %v3182_v60 = vpop.f32.mrb[245].mxu0  ;;  %v3526_v27 = vadd.f32 %v3437_v18, %v12417_v39  ;;  %v3439_v7 = vpop.f32.mrb[245].mxu1 }
 0x2e7   :  { %v3596_v30 = vmax.f32 %v3572_v43, %v3573_v51  ;;  %v3183_v42 = vpop.f32.mrb[246].mxu0  ;;  %v3440_v22 = vpop.f32.mrb[246].mxu1 }
 0x2e8   :  { %v3293_v55 = vmax.f32 %v3269_v46, 0.0  ;;  %v3270_v29 = vadd.f32 %v3183_v42, %v12417_v39  ;;  %v3185_v28 = vpop.f32.mrb[247].mxu0  ;;  %4839 = vmatpush1.bf16.msra.mxu0 %v11431_v20  ;;  %v3550_v1 = vmax.f32 %v3526_v27, 0.0  ;;  %v3527_v5 = vadd.f32 %v3440_v22, %v12417_v39  ;;  %v3442_v19 = vpop.f32.mrb[247].mxu1  ;;  %5096 = vmatpush1.bf16.msra.mxu1 %v11432_v33 }
 0x2e9   :  { %4840 = vmatprep.subr.bf16.mxu0 %v16941_v54  ;;  %5097 = vmatprep.subr.bf16.mxu1 %v16941_v54 }
 0x2ea   :  { %v3294_v25 = vmax.f32 %v3270_v29, 0.0  ;;  %4327 = vmatmul.mubr.bf16.gmra.mrb[96].mxu0 %v13607_v63  ;;  %v3574_v31 = vmax.f32 %v3293_v55, %v3550_v1  ;;  %v3551_v43 = vmax.f32 %v3527_v5, 0.0  ;;  %4584 = vmatmul.mubr.bf16.gmra.mrb[96].mxu1 %v13607_v63  ;;  %v11436_v63 = vld [vmem:[%s16811_s0 + $0x158] sm:$0xff]  }
 0x2eb   :  { %10259 = vmatprep.mubr.msk.bf16.mxu0 %vm286_vm0, %v13615_v35  ;;  %10281 = vmatprep.mubr.msk.bf16.mxu1 %vm286_vm0, %v13615_v35 }
 0x2ec   :  { %4841 = vmatpush1.bf16.msra.mxu0 %v11433_v0  ;;  %v3575_v20 = vmax.f32 %v3294_v25, %v3551_v43  ;;  %5098 = vmatpush1.bf16.msra.mxu1 %v11434_v12 }
 0x2ed   :  { %v3188_v51 = vpop.f32.mrb[248].mxu0  ;;  %4842 = vmatprep.subr.bf16.mxu0 %v16941_v54  ;;  %v3445_v33 = vpop.f32.mrb[248].mxu1  ;;  %5099 = vmatprep.subr.bf16.mxu1 %v16941_v54 }
 0x2ee   :  { %v3271_v9 = vadd.f32 %v3188_v51, %v12417_v39  ;;  %v3190_v46 = vpop.f32.mrb[249].mxu0  ;;  %v3597_v35 = vmax.f32 %v3574_v31, %v3575_v20  ;;  %v3528_v18 = vadd.f32 %v3445_v33, %v12417_v39  ;;  %v3447_v60 = vpop.f32.mrb[249].mxu1 }
 0x2ef   :  { %v3191_v27 = vpop.f32.mrb[250].mxu0  ;;  %v3448_v55 = vpop.f32.mrb[250].mxu1 }
 0x2f0   :  { %v3295_v7 = vmax.f32 %v3271_v9, 0.0  ;;  %v3272_v42 = vadd.f32 %v3191_v27, %v12417_v39  ;;  %v3193_v29 = vpop.f32.mrb[251].mxu0  ;;  %4843 = vmatpush1.bf16.msra.mxu0 %v11435_v48  ;;  %v13909_v22 = vpack.c.bf16 %v3597_v35, %v3596_v30  ;;  %v3552_v28 = vmax.f32 %v3528_v18, 0.0  ;;  %v3450_v1 = vpop.f32.mrb[251].mxu1  ;;  %5100 = vmatpush1.bf16.msra.mxu1 %v11436_v63 }
 0x2f1   :  { %v3529_v0 = vadd.f32 %v3448_v55, %v12417_v39  ;;  %5386 = vmatprep.subr.bf16.mxu0 %v16941_v54  ;;  %5643 = vmatprep.subr.bf16.mxu1 %v16941_v54 }
 0x2f2   :  { %16944 = vst [vmem:[#allocation16_spill] sm:$0xff] %v13909_v22  ;;  %v3296_v5 = vmax.f32 %v3272_v42, 0.0  ;;  %4335 = vmatmul.mubr.bf16.gmra.mrb[100].mxu0 %v13639_v10  ;;  %v3576_v19 = vmax.f32 %v3295_v7, %v3552_v28  ;;  %4592 = vmatmul.mubr.bf16.gmra.mrb[100].mxu1 %v13639_v10 }
 0x2f3   :  { %v3553_v12 = vmax.f32 %v3529_v0, 0.0  ;;  %10260 = vmatprep.mubr.msk.bf16.mxu0 %vm286_vm0, %v13647_v11  ;;  %10282 = vmatprep.mubr.msk.bf16.mxu1 %vm286_vm0, %v13647_v11 }
 0x2f5   :  { %v3577_v30 = vmax.f32 %v3296_v5, %v3553_v12  ;;  %v3196_v25 = vpop.f32.mrb[252].mxu0  ;;  %v3453_v43 = vpop.f32.mrb[252].mxu1 }
 0x2f6   :  { %v3273_v31 = vadd.f32 %v3196_v25, %v12417_v39  ;;  %v3198_v48 = vpop.f32.mrb[253].mxu0  ;;  %v3530_v51 = vadd.f32 %v3453_v43, %v12417_v39  ;;  %v3455_v63 = vpop.f32.mrb[253].mxu1 }
 0x2f7   :  { %v3598_v20 = vmax.f32 %v3576_v19, %v3577_v30  ;;  %v3199_v9 = vpop.f32.mrb[254].mxu0  ;;  %v3456_v46 = vpop.f32.mrb[254].mxu1 }
 0x2f8   :  { %v3297_v33 = vmax.f32 %v3273_v31, 0.0  ;;  %v3274_v10 = vadd.f32 %v3199_v9, %v12417_v39  ;;  %v3201_v35 = vpop.f32.mrb[255].mxu0  ;;  %v3554_v18 = vmax.f32 %v3530_v51, 0.0  ;;  %v3531_v60 = vadd.f32 %v3456_v46, %v12417_v39  ;;  %v3458_v11 = vpop.f32.mrb[255].mxu1 }
 0x2fa   :  { %v3298_v27 = vmax.f32 %v3274_v10, 0.0  ;;  %4343 = vmatmul.mubr.bf16.gmra.mrb[104].mxu0 %v13660_v13  ;;  %v3578_v7 = vmax.f32 %v3297_v33, %v3554_v18  ;;  %v3555_v42 = vmax.f32 %v3531_v60, 0.0  ;;  %4600 = vmatmul.mubr.bf16.gmra.mrb[104].mxu1 %v13660_v13 }
 0x2fb   :  { %10261 = vmatprep.mubr.msk.bf16.mxu0 %vm286_vm0, %v13667_v40  ;;  %10283 = vmatprep.mubr.msk.bf16.mxu1 %vm286_vm0, %v13667_v40 }
 0x2fc   :  { %v3579_v55 = vmax.f32 %v3298_v27, %v3555_v42 }
 0x2fd   :  { %v3204_v29 = vpop.f32.mrb[0].mxu0  ;;  %v3461_v0 = vpop.f32.mrb[0].mxu1 }
 0x2fe   :  { %v3275_v28 = vadd.f32 %v3204_v29, %v12417_v39  ;;  %v3206_v1 = vpop.f32.mrb[1].mxu0  ;;  %v3599_v5 = vmax.f32 %v3578_v7, %v3579_v55  ;;  %v3532_v19 = vadd.f32 %v3461_v0, %v12417_v39  ;;  %v3463_v12 = vpop.f32.mrb[1].mxu1 }
 0x2ff   :  { %v3207_v30 = vpop.f32.mrb[2].mxu0  ;;  %v3464_v31 = vpop.f32.mrb[2].mxu1 }
 0x300   :  { %v3299_v25 = vmax.f32 %v3275_v28, 0.0  ;;  %v3276_v13 = vadd.f32 %v3207_v30, %v12417_v39  ;;  %v3209_v43 = vpop.f32.mrb[3].mxu0  ;;  %v13933_v48 = vpack.c.bf16 %v3599_v5, %v3598_v20  ;;  %v3556_v51 = vmax.f32 %v3532_v19, 0.0  ;;  %v3466_v63 = vpop.f32.mrb[3].mxu1 }
 0x301   :  { %v3533_v40 = vadd.f32 %v3464_v31, %v12417_v39 }
 0x302   :  { %16945 = vst [vmem:[#allocation17_spill] sm:$0xff] %v13933_v48  ;;  %v3300_v9 = vmax.f32 %v3276_v13, 0.0  ;;  %4351 = vmatmul.mubr.bf16.gmra.mrb[108].mxu0 %v13682_v6  ;;  %v3580_v33 = vmax.f32 %v3299_v25, %v3556_v51  ;;  %4608 = vmatmul.mubr.bf16.gmra.mrb[108].mxu1 %v13682_v6 }
 0x303   :  { %v3557_v10 = vmax.f32 %v3533_v40, 0.0  ;;  %10262 = vmatprep.mubr.msk.bf16.mxu0 %vm286_vm0, %v13689_v16  ;;  %10284 = vmatprep.mubr.msk.bf16.mxu1 %vm286_vm0, %v13689_v16 }
 0x305   :  { %v3581_v46 = vmax.f32 %v3300_v9, %v3557_v10  ;;  %v3212_v20 = vpop.f32.mrb[4].mxu0  ;;  %v3469_v18 = vpop.f32.mrb[4].mxu1 }
 0x306   :  { %v3277_v35 = vadd.f32 %v3212_v20, %v12417_v39  ;;  %v3214_v60 = vpop.f32.mrb[5].mxu0  ;;  %v3534_v27 = vadd.f32 %v3469_v18, %v12417_v39  ;;  %v3471_v7 = vpop.f32.mrb[5].mxu1 }
 0x307   :  { %v3600_v11 = vmax.f32 %v3580_v33, %v3581_v46  ;;  %v3215_v42 = vpop.f32.mrb[6].mxu0  ;;  %v3472_v29 = vpop.f32.mrb[6].mxu1 }
 0x308   :  { %v3301_v55 = vmax.f32 %v3277_v35, 0.0  ;;  %v3278_v6 = vadd.f32 %v3215_v42, %v12417_v39  ;;  %v3217_v28 = vpop.f32.mrb[7].mxu0  ;;  %v3558_v0 = vmax.f32 %v3534_v27, 0.0  ;;  %v3535_v1 = vadd.f32 %v3472_v29, %v12417_v39  ;;  %v3474_v16 = vpop.f32.mrb[7].mxu1 }
 0x30a   :  { %v3302_v5 = vmax.f32 %v3278_v6, 0.0  ;;  %4359 = vmatmul.mubr.bf16.gmra.mrb[112].mxu0 %v13702_v14  ;;  %v3582_v19 = vmax.f32 %v3301_v55, %v3558_v0  ;;  %v3559_v12 = vmax.f32 %v3535_v1, 0.0  ;;  %4616 = vmatmul.mubr.bf16.gmra.mrb[112].mxu1 %v13702_v14 }
 0x30b   :  { %10263 = vmatprep.mubr.msk.bf16.mxu0 %vm286_vm0, %v13709_v34  ;;  %10285 = vmatprep.mubr.msk.bf16.mxu1 %vm286_vm0, %v13709_v34 }
 0x30c   :  { %v3583_v30 = vmax.f32 %v3302_v5, %v3559_v12 }
 0x30d   :  { %v3220_v25 = vpop.f32.mrb[8].mxu0  ;;  %v3477_v31 = vpop.f32.mrb[8].mxu1 }
 0x30e   :  { %v3279_v13 = vadd.f32 %v3220_v25, %v12417_v39  ;;  %v3222_v43 = vpop.f32.mrb[9].mxu0  ;;  %v3601_v51 = vmax.f32 %v3582_v19, %v3583_v30  ;;  %v3536_v40 = vadd.f32 %v3477_v31, %v12417_v39  ;;  %v3479_v63 = vpop.f32.mrb[9].mxu1 }
 0x30f   :  { %v3223_v9 = vpop.f32.mrb[10].mxu0  ;;  %v3480_v10 = vpop.f32.mrb[10].mxu1 }
 0x310   :  { %v3303_v33 = vmax.f32 %v3279_v13, 0.0  ;;  %v3280_v14 = vadd.f32 %v3223_v9, %v12417_v39  ;;  %v3225_v46 = vpop.f32.mrb[11].mxu0  ;;  %v13955_v20 = vpack.c.bf16 %v3601_v51, %v3600_v11  ;;  %v3560_v35 = vmax.f32 %v3536_v40, 0.0  ;;  %v3482_v18 = vpop.f32.mrb[11].mxu1  ;;  %v96_v51 = vld [vmem:[%s16814_s4] sm:$0xff] }
 0x311   :  { %v3537_v34 = vadd.f32 %v3480_v10, %v12417_v39  ;;  %7395 = vperm.xlu0 %11219, %v96_v51  }
 0x312   :  { %16946 = vst [vmem:[#allocation18_spill] sm:$0xff] %v13955_v20  ;;  %v3304_v60 = vmax.f32 %v3280_v14, 0.0  ;;  %4367 = vmatmul.mubr.bf16.gmra.mrb[116].mxu0 %v13724_v21  ;;  %v3584_v27 = vmax.f32 %v3303_v33, %v3560_v35  ;;  %4624 = vmatmul.mubr.bf16.gmra.mrb[116].mxu1 %v13724_v21 }
 0x313   :  { %v3561_v7 = vmax.f32 %v3537_v34, 0.0  ;;  %10264 = vmatprep.mubr.msk.bf16.mxu0 %vm286_vm0, %v13731_v57  ;;  %10286 = vmatprep.mubr.msk.bf16.mxu1 %vm286_vm0, %v13731_v57 }
 0x315   :  { %v3585_v42 = vmax.f32 %v3304_v60, %v3561_v7  ;;  %v3228_v11 = vpop.f32.mrb[12].mxu0  ;;  %v3485_v6 = vpop.f32.mrb[12].mxu1 }
 0x316   :  { %v3281_v55 = vadd.f32 %v3228_v11, %v12417_v39  ;;  %v3230_v29 = vpop.f32.mrb[13].mxu0  ;;  %v3538_v0 = vadd.f32 %v3485_v6, %v12417_v39  ;;  %v3487_v1 = vpop.f32.mrb[13].mxu1  ;;  %v9387_v6 = vld [vmem:[%s16815_s6 + $0x8] sm:$0xff] }
 0x317   :  { %v3602_v28 = vmax.f32 %v3584_v27, %v3585_v42  ;;  %v3231_v16 = vpop.f32.mrb[14].mxu0  ;;  %v3488_v19 = vpop.f32.mrb[14].mxu1  ;;  %9408 = vperm.xlu0 %11219, %v9387_v6  }
 0x318   :  { %v3305_v5 = vmax.f32 %v3281_v55, 0.0  ;;  %v3282_v21 = vadd.f32 %v3231_v16, %v12417_v39  ;;  %v3233_v12 = vpop.f32.mrb[15].mxu0  ;;  %v3562_v30 = vmax.f32 %v3538_v0, 0.0  ;;  %v3539_v25 = vadd.f32 %v3488_v19, %v12417_v39  ;;  %v3490_v57 = vpop.f32.mrb[15].mxu1 }
 0x31a   :  { %v3306_v13 = vmax.f32 %v3282_v21, 0.0  ;;  %4375 = vmatmul.mubr.bf16.gmra.mrb[120].mxu0 %v13744_v58  ;;  %v3586_v31 = vmax.f32 %v3305_v5, %v3562_v30  ;;  %v3563_v43 = vmax.f32 %v3539_v25, 0.0  ;;  %4632 = vmatmul.mubr.bf16.gmra.mrb[120].mxu1 %v13744_v58  ;;  %v9389_v5 = vld [vmem:[%s16815_s6 + $0x18] sm:$0xff] }
 0x31b   :  { %10265 = vmatprep.mubr.msk.bf16.mxu0 %vm286_vm0, %v13751_v45  ;;  %10287 = vmatprep.mubr.msk.bf16.mxu1 %vm286_vm0, %v13751_v45 }
 0x31c   :  { %v3587_v40 = vmax.f32 %v3306_v13, %v3563_v43  ;;  %9418 = vperm.xlu0 %11219, %v9389_v5  }
 0x31d   :  { %v3236_v63 = vpop.f32.mrb[16].mxu0  ;;  %v3493_v33 = vpop.f32.mrb[16].mxu1 }
 0x31e   :  { %v3283_v9 = vadd.f32 %v3236_v63, %v12417_v39  ;;  %v3238_v14 = vpop.f32.mrb[17].mxu0  ;;  %v3603_v10 = vmax.f32 %v3586_v31, %v3587_v40  ;;  %v3540_v58 = vadd.f32 %v3493_v33, %v12417_v39  ;;  %v3495_v46 = vpop.f32.mrb[17].mxu1  ;;  %v11437_v40 = vld [vmem:[%s16811_s0 + $0x120] sm:$0xff]  }
 0x31f   :  { %v3239_v35 = vpop.f32.mrb[18].mxu0  ;;  %v3496_v45 = vpop.f32.mrb[18].mxu1  ;;  %v11438_v14 = vld [vmem:[%s16811_s0 + $0x130] sm:$0xff]  }
 0x320   :  { %v3307_v34 = vmax.f32 %v3283_v9, 0.0  ;;  %v3284_v18 = vadd.f32 %v3239_v35, %v12417_v39  ;;  %v3241_v60 = vpop.f32.mrb[19].mxu0  ;;  %v13980_v27 = vpack.c.bf16 %v3603_v10, %v3602_v28  ;;  %v3564_v7 = vmax.f32 %v3540_v58, 0.0  ;;  %v3498_v11 = vpop.f32.mrb[19].mxu1  ;;  %v13991_v28 = vld [vmem:[%s16812_s1 + $0x4] ss:$8 sps:$4 sm:$0xff]  }
 0x321   :  { %v3541_v42 = vadd.f32 %v3496_v45, %v12417_v39  ;;  %v14013_v58 = vld [vmem:[%s16812_s1] ss:$8 sps:$4 sm:$0xff]  }
 0x322   :  { %16947 = vst [vmem:[#allocation19_spill] sm:$0xff] %v13980_v27  ;;  %v3308_v55 = vmax.f32 %v3284_v18, 0.0  ;;  %4383 = vmatmul.mubr.bf16.gmra.mrb[124].mxu0 %v13766_v4  ;;  %v3588_v29 = vmax.f32 %v3307_v34, %v3564_v7  ;;  %4640 = vmatmul.mubr.bf16.gmra.mrb[124].mxu1 %v13766_v4  ;;  %v14020_v34 = vld [vmem:[%s16812_s1 + $0x14] ss:$8 sps:$4 sm:$0xff]   ;;  %v9391_v18 = vld [vmem:[%s16815_s6 + $0x28] sm:$0xff] }
 0x323   :  { %v3565_v0 = vmax.f32 %v3541_v42, 0.0  ;;  %10298 = vmatprep.mubr.msk.bf16.mxu0 %vm286_vm0, %v13991_v28  ;;  %10320 = vmatprep.mubr.msk.bf16.mxu1 %vm286_vm0, %v13991_v28  ;;  %v11439_v45 = vld [vmem:[%s16811_s0 + $0x128] sm:$0xff]   ;;  %v11440_v42 = vld [vmem:[%s16811_s0 + $0x138] sm:$0xff]  }
 0x324   :  { %9428 = vperm.xlu0 %11219, %v9391_v18  }
 0x325   :  { %v3589_v1 = vmax.f32 %v3308_v55, %v3565_v0  ;;  %v3244_v16 = vpop.f32.mrb[20].mxu0  ;;  %v3501_v21 = vpop.f32.mrb[20].mxu1 }
 0x326   :  { %v3285_v4 = vadd.f32 %v3244_v16, %v12417_v39  ;;  %v3246_v19 = vpop.f32.mrb[21].mxu0  ;;  %v3542_v30 = vadd.f32 %v3501_v21, %v12417_v39  ;;  %v3503_v25 = vpop.f32.mrb[21].mxu1 }
 0x327   :  { %v3604_v12 = vmax.f32 %v3588_v29, %v3589_v1  ;;  %v3247_v57 = vpop.f32.mrb[22].mxu0  ;;  %v3504_v43 = vpop.f32.mrb[22].mxu1 }
 0x328   :  { %v3309_v13 = vmax.f32 %v3285_v4, 0.0  ;;  %v3286_v31 = vadd.f32 %v3247_v57, %v12417_v39  ;;  %v3249_v51 = vpop.f32.mrb[23].mxu0  ;;  %v3566_v63 = vmax.f32 %v3542_v30, 0.0  ;;  %v3543_v9 = vadd.f32 %v3504_v43, %v12417_v39  ;;  %v3506_v33 = vpop.f32.mrb[23].mxu1  ;;  %v11441_v30 = vld [vmem:[%s16811_s0 + $0x130] sm:$0xff]   ;;  %v11442_v43 = vld [vmem:[%s16811_s0 + $0x140] sm:$0xff]  }
 0x329   :  { %v9393_v33 = vld [vmem:[%s16815_s6 + $0x38] sm:$0xff] }
 0x32a   :  { %v3310_v10 = vmax.f32 %v3286_v31, 0.0  ;;  %4857 = vmatmul.mubr.bf16.vlgmr.msra.gmra.mrb[128].mxu0 %v14013_v58  ;;  %v3590_v46 = vmax.f32 %v3309_v13, %v3566_v63  ;;  %v3567_v35 = vmax.f32 %v3543_v9, 0.0  ;;  %5114 = vmatmul.mubr.bf16.vlgmr.msra.gmra.mrb[128].mxu1 %v14013_v58  ;;  %v14063_v9 = vld [vmem:[%s16812_s1 + $0x24] ss:$8 sps:$4 sm:$0xff]  }
 0x32b   :  { %10299 = vmatprep.mubr.msk.bf16.mxu0 %vm286_vm0, %v14020_v34  ;;  %10321 = vmatprep.mubr.msk.bf16.mxu1 %vm286_vm0, %v14020_v34 }
 0x32c   :  { %5387 = vmatpush1.bf16.msra.mxu0 %v11437_v40  ;;  %v3591_v60 = vmax.f32 %v3310_v10, %v3567_v35  ;;  %5644 = vmatpush1.bf16.msra.mxu1 %v11438_v14  ;;  %v14053_v40 = vld [vmem:[%s16812_s1 + $0x10] ss:$8 sps:$4 sm:$0xff]   ;;  %v11444_v35 = vld [vmem:[%s16811_s0 + $0x148] sm:$0xff]  }
 0x32d   :  { %v3252_v7 = vpop.f32.mrb[24].mxu0  ;;  %5388 = vmatprep.subr.bf16.mxu0 %v16941_v54  ;;  %v3509_v55 = vpop.f32.mrb[24].mxu1  ;;  %5645 = vmatprep.subr.bf16.mxu1 %v16941_v54  ;;  %v11443_v14 = vld [vmem:[%s16811_s0 + $0x138] sm:$0xff]  }
 0x32e   :  { %v3287_v11 = vadd.f32 %v3252_v7, %v12417_v39  ;;  %v3254_v6 = vpop.f32.mrb[25].mxu0  ;;  %v3605_v29 = vmax.f32 %v3590_v46, %v3591_v60  ;;  %v3544_v0 = vadd.f32 %v3509_v55, %v12417_v39  ;;  %v3511_v1 = vpop.f32.mrb[25].mxu1  ;;  %9438 = vperm.xlu0 %11219, %v9393_v33  }
 0x32f   :  { %v3255_v16 = vpop.f32.mrb[26].mxu0  ;;  %v3512_v21 = vpop.f32.mrb[26].mxu1 }
 0x330   :  { %v3311_v5 = vmax.f32 %v3287_v11, 0.0  ;;  %v3288_v4 = vadd.f32 %v3255_v16, %v12417_v39  ;;  %v3257_v19 = vpop.f32.mrb[27].mxu0  ;;  %5389 = vmatpush1.bf16.msra.mxu0 %v11439_v45  ;;  %v14043_v25 = vpack.c.bf16 %v3605_v29, %v3604_v12  ;;  %v3568_v57 = vmax.f32 %v3544_v0, 0.0  ;;  %v3514_v31 = vpop.f32.mrb[27].mxu1  ;;  %5646 = vmatpush1.bf16.msra.mxu1 %v11440_v42  ;;  %v11445_v16 = vld [vmem:[%s16811_s0 + $0x140] sm:$0xff]  }
 0x331   :  { %v3545_v13 = vadd.f32 %v3512_v21, %v12417_v39  ;;  %5390 = vmatprep.subr.bf16.mxu0 %v16941_v54  ;;  %5647 = vmatprep.subr.bf16.mxu1 %v16941_v54  ;;  %v11446_v19 = vld [vmem:[%s16811_s0 + $0x150] sm:$0xff]  }
 0x332   :  { %16948 = vst [vmem:[#allocation20_spill] sm:$0xff] %v14043_v25  ;;  %v3312_v51 = vmax.f32 %v3288_v4, 0.0  ;;  %4865 = vmatmul.mubr.bf16.gmra.mrb[132].mxu0 %v14053_v40  ;;  %v14057_v12 = vmax.f32 %v3311_v5, %v3568_v57  ;;  %5122 = vmatmul.mubr.bf16.gmra.mrb[132].mxu1 %v14053_v40  ;;  %v14095_v57 = vld [vmem:[%s16812_s1 + $0x20] ss:$8 sps:$4 sm:$0xff]  }
 0x333   :  { %v3569_v63 = vmax.f32 %v3545_v13, 0.0  ;;  %10300 = vmatprep.mubr.msk.bf16.mxu0 %vm286_vm0, %v14063_v9  ;;  %10322 = vmatprep.mubr.msk.bf16.mxu1 %vm286_vm0, %v14063_v9 }
 0x334   :  { %5391 = vmatpush1.bf16.msra.mxu0 %v11441_v30  ;;  %5648 = vmatpush1.bf16.msra.mxu1 %v11442_v43  ;;  %v14103_v43 = vld [vmem:[%s16812_s1 + $0x34] ss:$8 sps:$4 sm:$0xff]  }
 0x335   :  { %v3593_v10 = vmax.f32 %v3312_v51, %v3569_v63  ;;  %v3260_v46 = vpop.f32.mrb[28].mxu0  ;;  %5392 = vmatprep.subr.bf16.mxu0 %v16941_v54  ;;  %v3517_v45 = vpop.f32.mrb[28].mxu1  ;;  %5649 = vmatprep.subr.bf16.mxu1 %v16941_v54  ;;  %v9395_v51 = vld [vmem:[%s16815_s6 + $0x48] sm:$0xff] }
 0x336   :  { %v3289_v18 = vadd.f32 %v3260_v46, %v12417_v39  ;;  %v3262_v60 = vpop.f32.mrb[29].mxu0  ;;  %v3546_v42 = vadd.f32 %v3517_v45, %v12417_v39  ;;  %v3519_v11 = vpop.f32.mrb[29].mxu1  ;;  %9448 = vperm.xlu0 %11219, %v9395_v51   ;;  %v9397_v51 = vld [vmem:[%s16815_s6 + $0x58] sm:$0xff] }
 0x337   :  { %v3606_v7 = vmax.f32 %v14057_v12, %v3593_v10  ;;  %v3263_v55 = vpop.f32.mrb[30].mxu0  ;;  %v3520_v0 = vpop.f32.mrb[30].mxu1  ;;  %v11447_v12 = vld [vmem:[%s16811_s0 + $0x148] sm:$0xff]  }
 0x338   :  { %v3313_v6 = vmax.f32 %v3289_v18, 0.0  ;;  %v3290_v29 = vadd.f32 %v3263_v55, %v12417_v39  ;;  %v3265_v1 = vpop.f32.mrb[31].mxu0  ;;  %5393 = vmatpush1.bf16.msra.mxu0 %v11443_v14  ;;  %v3570_v5 = vmax.f32 %v3546_v42, 0.0  ;;  %v3547_v4 = vadd.f32 %v3520_v0, %v12417_v39  ;;  %v3522_v21 = vpop.f32.mrb[31].mxu1  ;;  %5650 = vmatpush1.bf16.msra.mxu1 %v11444_v35  ;;  %v11448_v14 = vld [vmem:[%s16811_s0 + $0x158] sm:$0xff]   ;;  %v11449_v0 = vld [vmem:[%s16811_s0 + $0x150] sm:$0xff]  }
 0x339   :  { %5394 = vmatprep.subr.bf16.mxu0 %v16941_v54  ;;  %5651 = vmatprep.subr.bf16.mxu1 %v16941_v54  ;;  %v11450_v21 = vld [vmem:[%s16811_s0 + $0x160] sm:$0xff]  }
 0x33a   :  { %v3314_v30 = vmax.f32 %v3290_v29, 0.0  ;;  %4873 = vmatmul.mubr.bf16.gmra.mrb[136].mxu0 %v14095_v57  ;;  %v3594_v13 = vmax.f32 %v3313_v6, %v3570_v5  ;;  %v3571_v31 = vmax.f32 %v3547_v4, 0.0  ;;  %5130 = vmatmul.mubr.bf16.gmra.mrb[136].mxu1 %v14095_v57 }
 0x33b   :  { %10301 = vmatprep.mubr.msk.bf16.mxu0 %vm286_vm0, %v14103_v43  ;;  %10323 = vmatprep.mubr.msk.bf16.mxu1 %vm286_vm0, %v14103_v43 }
 0x33c   :  { %5395 = vmatpush1.bf16.msra.mxu0 %v11445_v16  ;;  %v3595_v63 = vmax.f32 %v3314_v30, %v3571_v31  ;;  %5652 = vmatpush1.bf16.msra.mxu1 %v11446_v19  ;;  %v14136_v30 = vld [vmem:[%s16812_s1 + $0x30] ss:$8 sps:$4 sm:$0xff]   ;;  %v14146_v31 = vld [vmem:[%s16812_s1 + $0x44] ss:$8 sps:$4 sm:$0xff]  }
 0x33d   :  { %v3734_v33 = vpop.f32.mrb[32].mxu0  ;;  %5396 = vmatprep.subr.bf16.mxu0 %v16941_v54  ;;  %v3991_v46 = vpop.f32.mrb[32].mxu1  ;;  %5653 = vmatprep.subr.bf16.mxu1 %v16941_v54 }
 0x33e   :  { %v3829_v10 = vadd.f32 %v3734_v33, %v12417_v39  ;;  %v3736_v35 = vpop.f32.mrb[33].mxu0  ;;  %v3607_v18 = vmax.f32 %v3594_v13, %v3595_v63  ;;  %v4086_v45 = vadd.f32 %v3991_v46, %v12417_v39  ;;  %v3993_v60 = vpop.f32.mrb[33].mxu1  ;;  %9458 = vperm.xlu0 %11219, %v9397_v51  }
 0x33f   :  { %v3737_v42 = vpop.f32.mrb[34].mxu0  ;;  %v3994_v6 = vpop.f32.mrb[34].mxu1 }
 0x340   :  { %v3853_v11 = vmax.f32 %v3829_v10, 0.0  ;;  %v3830_v55 = vadd.f32 %v3737_v42, %v12417_v39  ;;  %v3739_v29 = vpop.f32.mrb[35].mxu0  ;;  %5397 = vmatpush1.bf16.msra.mxu0 %v11447_v12  ;;  %v14126_v1 = vpack.c.bf16 %v3607_v18, %v3606_v7  ;;  %v4110_v16 = vmax.f32 %v4086_v45, 0.0  ;;  %v3996_v4 = vpop.f32.mrb[35].mxu1  ;;  %5654 = vmatpush1.bf16.msra.mxu1 %v11448_v14  ;;  %v11451_v12 = vld [vmem:[%s16811_s0 + $0x158] sm:$0xff]   ;;  %v11452_v14 = vld [vmem:[%s16811_s0 + $0x168] sm:$0xff]  }
 0x341   :  { %v4087_v5 = vadd.f32 %v3994_v6, %v12417_v39  ;;  %5398 = vmatprep.subr.bf16.mxu0 %v16941_v54  ;;  %5655 = vmatprep.subr.bf16.mxu1 %v16941_v54 }
 0x342   :  { %16949 = vst [vmem:[#allocation21_spill] sm:$0xff] %v14126_v1  ;;  %v3854_v19 = vmax.f32 %v3830_v55, 0.0  ;;  %4881 = vmatmul.mubr.bf16.gmra.mrb[140].mxu0 %v14136_v30  ;;  %v14140_v7 = vmax.f32 %v3853_v11, %v4110_v16  ;;  %5138 = vmatmul.mubr.bf16.gmra.mrb[140].mxu1 %v14136_v30 }
 0x343   :  { %v4111_v13 = vmax.f32 %v4087_v5, 0.0  ;;  %10302 = vmatprep.mubr.msk.bf16.mxu0 %vm286_vm0, %v14146_v31  ;;  %10324 = vmatprep.mubr.msk.bf16.mxu1 %vm286_vm0, %v14146_v31 }
 0x344   :  { %5399 = vmatpush1.bf16.msra.mxu0 %v11449_v0  ;;  %5656 = vmatpush1.bf16.msra.mxu1 %v11450_v21  ;;  %v11453_v0 = vld [vmem:[%s16811_s0 + $0x160] sm:$0xff]   ;;  %v11454_v21 = vld [vmem:[%s16811_s0 + $0x170] sm:$0xff]  }
 0x345   :  { %v4135_v63 = vmax.f32 %v3854_v19, %v4111_v13  ;;  %v3742_v33 = vpop.f32.mrb[36].mxu0  ;;  %5400 = vmatprep.subr.bf16.mxu0 %v16941_v54  ;;  %v3999_v46 = vpop.f32.mrb[36].mxu1  ;;  %5657 = vmatprep.subr.bf16.mxu1 %v16941_v54 }
 0x346   :  { %v3831_v10 = vadd.f32 %v3742_v33, %v12417_v39  ;;  %v3744_v35 = vpop.f32.mrb[37].mxu0  ;;  %v4088_v45 = vadd.f32 %v3999_v46, %v12417_v39  ;;  %v4001_v60 = vpop.f32.mrb[37].mxu1  ;;  %v11455_v33 = vld [vmem:[%s16811_s0 + $0x168] sm:$0xff]   ;;  %v11456_v46 = vld [vmem:[%s16811_s0 + $0x178] sm:$0xff]  }
 0x347   :  { %v4158_v18 = vmax.f32 %v14140_v7, %v4135_v63  ;;  %v3745_v42 = vpop.f32.mrb[38].mxu0  ;;  %v4002_v6 = vpop.f32.mrb[38].mxu1  ;;  %v14178_v7 = vld [vmem:[%s16812_s1 + $0x40] ss:$8 sps:$4 sm:$0xff]  }
 0x348   :  { %v3855_v11 = vmax.f32 %v3831_v10, 0.0  ;;  %v3832_v55 = vadd.f32 %v3745_v42, %v12417_v39  ;;  %v3747_v29 = vpop.f32.mrb[39].mxu0  ;;  %5401 = vmatpush1.bf16.msra.mxu0 %v11451_v12  ;;  %v4112_v16 = vmax.f32 %v4088_v45, 0.0  ;;  %v4089_v5 = vadd.f32 %v4002_v6, %v12417_v39  ;;  %v4004_v4 = vpop.f32.mrb[39].mxu1  ;;  %5658 = vmatpush1.bf16.msra.mxu1 %v11452_v14  ;;  %v14186_v12 = vld [vmem:[%s16812_s1 + $0x54] ss:$8 sps:$4 sm:$0xff]  }
 0x349   :  { %5402 = vmatprep.subr.bf16.mxu0 %v16941_v54  ;;  %5659 = vmatprep.subr.bf16.mxu1 %v16941_v54  ;;  %v9399_v63 = vld [vmem:[%s16815_s6 + $0x68] sm:$0xff] }
 0x34a   :  { %v3856_v19 = vmax.f32 %v3832_v55, 0.0  ;;  %4889 = vmatmul.mubr.bf16.gmra.mrb[144].mxu0 %v14178_v7  ;;  %v4136_v13 = vmax.f32 %v3855_v11, %v4112_v16  ;;  %v4113_v51 = vmax.f32 %v4089_v5, 0.0  ;;  %5146 = vmatmul.mubr.bf16.gmra.mrb[144].mxu1 %v14178_v7 }
 0x34b   :  { %10303 = vmatprep.mubr.msk.bf16.mxu0 %vm286_vm0, %v14186_v12  ;;  %10325 = vmatprep.mubr.msk.bf16.mxu1 %vm286_vm0, %v14186_v12 }
 0x34c   :  { %5403 = vmatpush1.bf16.msra.mxu0 %v11453_v0  ;;  %v4137_v14 = vmax.f32 %v3856_v19, %v4113_v51  ;;  %5660 = vmatpush1.bf16.msra.mxu1 %v11454_v21 }
 0x34d   :  { %v3750_v10 = vpop.f32.mrb[40].mxu0  ;;  %5404 = vmatprep.subr.bf16.mxu0 %v16941_v54  ;;  %v4007_v45 = vpop.f32.mrb[40].mxu1  ;;  %5661 = vmatprep.subr.bf16.mxu1 %v16941_v54 }
 0x34e   :  { %v3833_v35 = vadd.f32 %v3750_v10, %v12417_v39  ;;  %v3752_v60 = vpop.f32.mrb[41].mxu0  ;;  %9468 = vperm.xlu0 %11219, %v9399_v63   ;;  %v4159_v42 = vmax.f32 %v4136_v13, %v4137_v14  ;;  %v4090_v11 = vadd.f32 %v4007_v45, %v12417_v39  ;;  %v4009_v55 = vpop.f32.mrb[41].mxu1  ;;  %v9680_v13 = vld [vmem:[%s16816_s8] sm:$0xff]  ;;  %v14216_v14 = vld [vmem:[%s16812_s1 + $0x50] ss:$8 sps:$4 sm:$0xff]  }
 0x34f   :  { %v3753_v6 = vpop.f32.mrb[42].mxu0  ;;  %v4010_v16 = vpop.f32.mrb[42].mxu1  ;;  %v14224_v10 = vld [vmem:[%s16812_s1 + $0x64] ss:$8 sps:$4 sm:$0xff]   ;;  %v9682_v45 = vld [vmem:[%s16816_s8 + $0x10] sm:$0xff] }
 0x350   :  { %v3857_v29 = vmax.f32 %v3833_v35, 0.0  ;;  %v3834_v0 = vadd.f32 %v3753_v6, %v12417_v39  ;;  %v3755_v5 = vpop.f32.mrb[43].mxu0  ;;  %5405 = vmatpush1.bf16.msra.mxu0 %v11455_v33  ;;  %v14206_v4 = vpack.c.bf16 %v4159_v42, %v4158_v18  ;;  %v4114_v21 = vmax.f32 %v4090_v11, 0.0  ;;  %v4012_v51 = vpop.f32.mrb[43].mxu1  ;;  %5662 = vmatpush1.bf16.msra.mxu1 %v11456_v46 }
 0x351   :  { %v4091_v19 = vadd.f32 %v4010_v16, %v12417_v39  ;;  %5948 = vmatprep.subr.bf16.mxu0 %v16941_v54  ;;  %6205 = vmatprep.subr.bf16.mxu1 %v16941_v54 }
 0x352   :  { %16950 = vst [vmem:[#allocation22_spill] sm:$0xff] %v14206_v4  ;;  %v3858_v63 = vmax.f32 %v3834_v0, 0.0  ;;  %4897 = vmatmul.mubr.bf16.gmra.mrb[148].mxu0 %v14216_v14  ;;  %v4138_v18 = vmax.f32 %v3857_v29, %v4114_v21  ;;  %5154 = vmatmul.mubr.bf16.gmra.mrb[148].mxu1 %v14216_v14 }
 0x353   :  { %v4115_v33 = vmax.f32 %v4091_v19, 0.0  ;;  %10304 = vmatprep.mubr.msk.bf16.mxu0 %vm286_vm0, %v14224_v10  ;;  %10326 = vmatprep.mubr.msk.bf16.mxu1 %vm286_vm0, %v14224_v10 }
 0x354   :  { %9690 = vperm.xlu0 %11219, %v9680_v13  }
 0x355   :  { %v4139_v46 = vmax.f32 %v3858_v63, %v4115_v33  ;;  %v3758_v35 = vpop.f32.mrb[44].mxu0  ;;  %v4015_v42 = vpop.f32.mrb[44].mxu1  ;;  %v9684_v33 = vld [vmem:[%s16816_s8 + $0x20] sm:$0xff] }
 0x356   :  { %v3835_v60 = vadd.f32 %v3758_v35, %v12417_v39  ;;  %v3760_v11 = vpop.f32.mrb[45].mxu0  ;;  %v4092_v6 = vadd.f32 %v4015_v42, %v12417_v39  ;;  %v4017_v29 = vpop.f32.mrb[45].mxu1 }
 0x357   :  { %v4160_v55 = vmax.f32 %v4138_v18, %v4139_v46  ;;  %v3761_v0 = vpop.f32.mrb[46].mxu0  ;;  %v4018_v21 = vpop.f32.mrb[46].mxu1  ;;  %v14243_v18 = vld [vmem:[%s16812_s1 + $0x60] ss:$8 sps:$4 sm:$0xff]  }
 0x358   :  { %v3859_v16 = vmax.f32 %v3835_v60, 0.0  ;;  %v3836_v5 = vadd.f32 %v3761_v0, %v12417_v39  ;;  %v3763_v19 = vpop.f32.mrb[47].mxu0  ;;  %9700 = vperm.xlu0 %11219, %v9682_v45   ;;  %v4116_v51 = vmax.f32 %v4092_v6, 0.0  ;;  %v4093_v13 = vadd.f32 %v4018_v21, %v12417_v39  ;;  %v4020_v63 = vpop.f32.mrb[47].mxu1  ;;  %v14250_v45 = vld [vmem:[%s16812_s1 + $0x74] ss:$8 sps:$4 sm:$0xff]  }
 0x359   :  { %v9686_v6 = vld [vmem:[%s16816_s8 + $0x30] sm:$0xff] }
 0x35a   :  { %v3860_v35 = vmax.f32 %v3836_v5, 0.0  ;;  %4905 = vmatmul.mubr.bf16.gmra.mrb[152].mxu0 %v14243_v18  ;;  %v4140_v46 = vmax.f32 %v3859_v16, %v4116_v51  ;;  %v4117_v60 = vmax.f32 %v4093_v13, 0.0  ;;  %5162 = vmatmul.mubr.bf16.gmra.mrb[152].mxu1 %v14243_v18 }
 0x35b   :  { %10305 = vmatprep.mubr.msk.bf16.mxu0 %vm286_vm0, %v14250_v45  ;;  %10327 = vmatprep.mubr.msk.bf16.mxu1 %vm286_vm0, %v14250_v45 }
 0x35c   :  { %9710 = vperm.xlu0 %11219, %v9684_v33   ;;  %v4141_v42 = vmax.f32 %v3860_v35, %v4117_v60 }
 0x35d   :  { %v3766_v11 = vpop.f32.mrb[48].mxu0  ;;  %v4023_v0 = vpop.f32.mrb[48].mxu1 }
 0x35e   :  { %v3837_v29 = vadd.f32 %v3766_v11, %v12417_v39  ;;  %v3768_v16 = vpop.f32.mrb[49].mxu0  ;;  %v4161_v5 = vmax.f32 %v4140_v46, %v4141_v42  ;;  %v4094_v21 = vadd.f32 %v4023_v0, %v12417_v39  ;;  %v4025_v19 = vpop.f32.mrb[49].mxu1  ;;  %v9844_v46 = vld [vmem:[%s16817_s10] sm:$0xff]  ;;  %v14271_v11 = vld [vmem:[%s16812_s1 + $0x70] ss:$8 sps:$4 sm:$0xff]  }
 0x35f   :  { %v3769_v51 = vpop.f32.mrb[50].mxu0  ;;  %v4026_v4 = vpop.f32.mrb[50].mxu1 }
 0x360   :  { %v3861_v13 = vmax.f32 %v3837_v29, 0.0  ;;  %v3838_v63 = vadd.f32 %v3769_v51, %v12417_v39  ;;  %v3771_v33 = vpop.f32.mrb[51].mxu0  ;;  %9720 = vperm.xlu0 %11219, %v9686_v6   ;;  %v14262_v35 = vpack.c.bf16 %v4161_v5, %v4160_v55  ;;  %v4118_v60 = vmax.f32 %v4094_v21, 0.0  ;;  %v4028_v25 = vpop.f32.mrb[51].mxu1 }
 0x361   :  { %v4095_v1 = vadd.f32 %v4026_v4, %v12417_v39  ;;  %v14278_v25 = vld [vmem:[%s16812_s1 + $0x84] ss:$8 sps:$4 sm:$0xff]  }
 0x362   :  { %16951 = vst [vmem:[#allocation23_spill] sm:$0xff] %v14262_v35  ;;  %v3862_v42 = vmax.f32 %v3838_v63, 0.0  ;;  %4913 = vmatmul.mubr.bf16.gmra.mrb[156].mxu0 %v14271_v11  ;;  %v4142_v29 = vmax.f32 %v3861_v13, %v4118_v60  ;;  %5170 = vmatmul.mubr.bf16.gmra.mrb[156].mxu1 %v14271_v11 }
 0x363   :  { %v4119_v6 = vmax.f32 %v4095_v1, 0.0  ;;  %10306 = vmatprep.mubr.msk.bf16.mxu0 %vm286_vm0, %v14278_v25  ;;  %10328 = vmatprep.mubr.msk.bf16.mxu1 %vm286_vm0, %v14278_v25 }
 0x364   :  { %9848 = vperm.xlu0 %11219, %v9844_v46  }
 0x365   :  { %v4143_v4 = vmax.f32 %v3862_v42, %v4119_v6  ;;  %v3774_v55 = vpop.f32.mrb[52].mxu0  ;;  %v4031_v16 = vpop.f32.mrb[52].mxu1  ;;  %v14291_v6 = vld [vmem:[%s16812_s1 + $0x80] ss:$8 sps:$4 sm:$0xff]  }
 0x366   :  { %v3839_v0 = vadd.f32 %v3774_v55, %v12417_v39  ;;  %v3776_v1 = vpop.f32.mrb[53].mxu0  ;;  %v4096_v21 = vadd.f32 %v4031_v16, %v12417_v39  ;;  %v4033_v19 = vpop.f32.mrb[53].mxu1  ;;  %v14298_v55 = vld [vmem:[%s16812_s1 + $0x94] ss:$8 sps:$4 sm:$0xff]  }
 0x367   :  { %v4162_v5 = vmax.f32 %v4142_v29, %v4143_v4  ;;  %v3777_v51 = vpop.f32.mrb[54].mxu0  ;;  %v4034_v33 = vpop.f32.mrb[54].mxu1 }
 0x368   :  { %v3863_v13 = vmax.f32 %v3839_v0, 0.0  ;;  %v3840_v63 = vadd.f32 %v3777_v51, %v12417_v39  ;;  %v3779_v60 = vpop.f32.mrb[55].mxu0  ;;  %v4120_v35 = vmax.f32 %v4096_v21, 0.0  ;;  %v4097_v27 = vadd.f32 %v4034_v33, %v12417_v39  ;;  %v4036_v46 = vpop.f32.mrb[55].mxu1 }
 0x36a   :  { %v3864_v42 = vmax.f32 %v3840_v63, 0.0  ;;  %4921 = vmatmul.mubr.bf16.gmra.mrb[160].mxu0 %v14291_v6  ;;  %v4144_v29 = vmax.f32 %v3863_v13, %v4120_v35  ;;  %v4121_v4 = vmax.f32 %v4097_v27, 0.0  ;;  %5178 = vmatmul.mubr.bf16.gmra.mrb[160].mxu1 %v14291_v6 }
 0x36b   :  { %10307 = vmatprep.mubr.msk.bf16.mxu0 %vm286_vm0, %v14298_v55  ;;  %10329 = vmatprep.mubr.msk.bf16.mxu1 %vm286_vm0, %v14298_v55 }
 0x36c   :  { %v4145_v0 = vmax.f32 %v3864_v42, %v4121_v4 }
 0x36d   :  { %v3782_v16 = vpop.f32.mrb[56].mxu0  ;;  %v4039_v21 = vpop.f32.mrb[56].mxu1 }
 0x36e   :  { %v3841_v1 = vadd.f32 %v3782_v16, %v12417_v39  ;;  %v3784_v35 = vpop.f32.mrb[57].mxu0  ;;  %v4163_v27 = vmax.f32 %v4144_v29, %v4145_v0  ;;  %v4098_v19 = vadd.f32 %v4039_v21, %v12417_v39  ;;  %v4041_v51 = vpop.f32.mrb[57].mxu1  ;;  %v14313_v29 = vld [vmem:[%s16812_s1 + $0x90] ss:$8 sps:$4 sm:$0xff]  }
 0x36f   :  { %v3785_v13 = vpop.f32.mrb[58].mxu0  ;;  %v4042_v60 = vpop.f32.mrb[58].mxu1 }
 0x370   :  { %v3865_v63 = vmax.f32 %v3841_v1, 0.0  ;;  %v3842_v33 = vadd.f32 %v3785_v13, %v12417_v39  ;;  %v3787_v46 = vpop.f32.mrb[59].mxu0  ;;  %v14307_v20 = vpack.c.bf16 %v4163_v27, %v4162_v5  ;;  %v4122_v48 = vmax.f32 %v4098_v19, 0.0  ;;  %v4044_v4 = vpop.f32.mrb[59].mxu1  ;;  %v14320_v5 = vld [vmem:[%s16812_s1 + $0xa4] ss:$8 sps:$4 sm:$0xff]  }
 0x371   :  { %v4099_v42 = vadd.f32 %v4042_v60, %v12417_v39 }
 0x372   :  { %16952 = vst [vmem:[#allocation24_spill] sm:$0xff] %v14307_v20  ;;  %v3866_v22 = vmax.f32 %v3842_v33, 0.0  ;;  %4929 = vmatmul.mubr.bf16.gmra.mrb[164].mxu0 %v14313_v29  ;;  %v4146_v0 = vmax.f32 %v3865_v63, %v4122_v48  ;;  %5186 = vmatmul.mubr.bf16.gmra.mrb[164].mxu1 %v14313_v29 }
 0x373   :  { %v4123_v16 = vmax.f32 %v4099_v42, 0.0  ;;  %10308 = vmatprep.mubr.msk.bf16.mxu0 %vm286_vm0, %v14320_v5  ;;  %10330 = vmatprep.mubr.msk.bf16.mxu1 %vm286_vm0, %v14320_v5 }
 0x375   :  { %v4147_v1 = vmax.f32 %v3866_v22, %v4123_v16  ;;  %v3790_v21 = vpop.f32.mrb[60].mxu0  ;;  %v4047_v27 = vpop.f32.mrb[60].mxu1  ;;  %v14333_v16 = vld [vmem:[%s16812_s1 + $0xa0] ss:$8 sps:$4 sm:$0xff]  }
 0x376   :  { %v3843_v35 = vadd.f32 %v3790_v21, %v12417_v39  ;;  %v3792_v48 = vpop.f32.mrb[61].mxu0  ;;  %v4100_v51 = vadd.f32 %v4047_v27, %v12417_v39  ;;  %v4049_v13 = vpop.f32.mrb[61].mxu1  ;;  %v14340_v21 = vld [vmem:[%s16812_s1 + $0xb4] ss:$8 sps:$4 sm:$0xff]  }
 0x377   :  { %v4164_v19 = vmax.f32 %v4146_v0, %v4147_v1  ;;  %v3793_v63 = vpop.f32.mrb[62].mxu0  ;;  %v4050_v46 = vpop.f32.mrb[62].mxu1 }
 0x378   :  { %v3867_v33 = vmax.f32 %v3843_v35, 0.0  ;;  %v3844_v60 = vadd.f32 %v3793_v63, %v12417_v39  ;;  %v3795_v42 = vpop.f32.mrb[63].mxu0  ;;  %v4124_v4 = vmax.f32 %v4100_v51, 0.0  ;;  %v4101_v20 = vadd.f32 %v4050_v46, %v12417_v39  ;;  %v4052_v59 = vpop.f32.mrb[63].mxu1 }
 0x37a   :  { %v3868_v22 = vmax.f32 %v3844_v60, 0.0  ;;  %4937 = vmatmul.mubr.bf16.gmra.mrb[168].mxu0 %v14333_v16  ;;  %v4148_v0 = vmax.f32 %v3867_v33, %v4124_v4  ;;  %v4125_v1 = vmax.f32 %v4101_v20, 0.0  ;;  %5194 = vmatmul.mubr.bf16.gmra.mrb[168].mxu1 %v14333_v16 }
 0x37b   :  { %10309 = vmatprep.mubr.msk.bf16.mxu0 %vm286_vm0, %v14340_v21  ;;  %10331 = vmatprep.mubr.msk.bf16.mxu1 %vm286_vm0, %v14340_v21 }
 0x37c   :  { %v4149_v59 = vmax.f32 %v3868_v22, %v4125_v1 }
 0x37d   :  { %v3798_v35 = vpop.f32.mrb[64].mxu0  ;;  %v4055_v48 = vpop.f32.mrb[64].mxu1 }
 0x37e   :  { %v3845_v27 = vadd.f32 %v3798_v35, %v12417_v39  ;;  %v3800_v51 = vpop.f32.mrb[65].mxu0  ;;  %v4165_v20 = vmax.f32 %v4148_v0, %v4149_v59  ;;  %v4102_v13 = vadd.f32 %v4055_v48, %v12417_v39  ;;  %v4057_v63 = vpop.f32.mrb[65].mxu1  ;;  %v14355_v0 = vld [vmem:[%s16812_s1 + $0xb0] ss:$8 sps:$4 sm:$0xff]  }
 0x37f   :  { %v3801_v33 = vpop.f32.mrb[66].mxu0  ;;  %v4058_v42 = vpop.f32.mrb[66].mxu1 }
 0x380   :  { %v3869_v60 = vmax.f32 %v3845_v27, 0.0  ;;  %v3846_v46 = vadd.f32 %v3801_v33, %v12417_v39  ;;  %v3803_v4 = vpop.f32.mrb[67].mxu0  ;;  %v14349_v2 = vpack.c.bf16 %v4165_v20, %v4164_v19  ;;  %v4126_v61 = vmax.f32 %v4102_v13, 0.0  ;;  %v4060_v1 = vpop.f32.mrb[67].mxu1 }
 0x381   :  { %v4103_v22 = vadd.f32 %v4058_v42, %v12417_v39 }
 0x382   :  { %16953 = vst [vmem:[#allocation25_spill] sm:$0xff] %v14349_v2  ;;  %v3870_v8 = vmax.f32 %v3846_v46, 0.0  ;;  %4945 = vmatmul.mubr.bf16.gmra.mrb[172].mxu0 %v14355_v0  ;;  %v4150_v59 = vmax.f32 %v3869_v60, %v4126_v61  ;;  %5202 = vmatmul.mubr.bf16.gmra.mrb[172].mxu1 %v14355_v0 }
 0x383   :  { %v4127_v35 = vmax.f32 %v4103_v22, 0.0  ;;  %10342 = vmatprep.mubr.msk.bf16.mxu0 %vm286_vm0, %v13991_v28  ;;  %10364 = vmatprep.mubr.msk.bf16.mxu1 %vm286_vm0, %v13991_v28  ;;  %v11457_v28 = vld [vmem:[%s16811_s0 + $0x140] sm:$0xff]  }
 0x385   :  { %v4151_v19 = vmax.f32 %v3870_v8, %v4127_v35  ;;  %v3806_v27 = vpop.f32.mrb[68].mxu0  ;;  %v4063_v51 = vpop.f32.mrb[68].mxu1 }
 0x386   :  { %v3847_v48 = vadd.f32 %v3806_v27, %v12417_v39  ;;  %v3808_v20 = vpop.f32.mrb[69].mxu0  ;;  %v4104_v63 = vadd.f32 %v4063_v51, %v12417_v39  ;;  %v4065_v33 = vpop.f32.mrb[69].mxu1 }
 0x387   :  { %v4166_v13 = vmax.f32 %v4150_v59, %v4151_v19  ;;  %v3809_v61 = vpop.f32.mrb[70].mxu0  ;;  %v4066_v42 = vpop.f32.mrb[70].mxu1  ;;  %v11458_v59 = vld [vmem:[%s16811_s0 + $0x150] sm:$0xff]  }
 0x388   :  { %v3871_v60 = vmax.f32 %v3847_v48, 0.0  ;;  %v3848_v46 = vadd.f32 %v3809_v61, %v12417_v39  ;;  %v3811_v4 = vpop.f32.mrb[71].mxu0  ;;  %v4128_v8 = vmax.f32 %v4104_v63, 0.0  ;;  %v4105_v22 = vadd.f32 %v4066_v42, %v12417_v39  ;;  %v4068_v1 = vpop.f32.mrb[71].mxu1  ;;  %v11459_v48 = vld [vmem:[%s16811_s0 + $0x148] sm:$0xff]  }
 0x389   :  { %v11461_v1 = vld [vmem:[%s16811_s0 + $0x150] sm:$0xff]  }
 0x38a   :  { %v3872_v35 = vmax.f32 %v3848_v46, 0.0  ;;  %5419 = vmatmul.mubr.bf16.vlgmr.msra.gmra.mrb[176].mxu0 %v14013_v58  ;;  %v4152_v19 = vmax.f32 %v3871_v60, %v4128_v8  ;;  %v4129_v27 = vmax.f32 %v4105_v22, 0.0  ;;  %5676 = vmatmul.mubr.bf16.vlgmr.msra.gmra.mrb[176].mxu1 %v14013_v58  ;;  %v11460_v58 = vld [vmem:[%s16811_s0 + $0x158] sm:$0xff]  }
 0x38b   :  { %10343 = vmatprep.mubr.msk.bf16.mxu0 %vm286_vm0, %v14020_v34  ;;  %10365 = vmatprep.mubr.msk.bf16.mxu1 %vm286_vm0, %v14020_v34 }
 0x38c   :  { %5949 = vmatpush1.bf16.msra.mxu0 %v11457_v28  ;;  %v4153_v51 = vmax.f32 %v3872_v35, %v4129_v27  ;;  %6206 = vmatpush1.bf16.msra.mxu1 %v11458_v59 }
 0x38d   :  { %v3814_v20 = vpop.f32.mrb[72].mxu0  ;;  %5950 = vmatprep.subr.bf16.mxu0 %v16941_v54  ;;  %v4071_v33 = vpop.f32.mrb[72].mxu1  ;;  %6207 = vmatprep.subr.bf16.mxu1 %v16941_v54 }
 0x38e   :  { %v3849_v63 = vadd.f32 %v3814_v20, %v12417_v39  ;;  %v3816_v61 = vpop.f32.mrb[73].mxu0  ;;  %v4167_v34 = vmax.f32 %v4152_v19, %v4153_v51  ;;  %v4106_v60 = vadd.f32 %v4071_v33, %v12417_v39  ;;  %v4073_v46 = vpop.f32.mrb[73].mxu1  ;;  %v11462_v51 = vld [vmem:[%s16811_s0 + $0x160] sm:$0xff]  }
 0x38f   :  { %v3817_v42 = vpop.f32.mrb[74].mxu0  ;;  %v4074_v8 = vpop.f32.mrb[74].mxu1 }
 0x390   :  { %v3873_v4 = vmax.f32 %v3849_v63, 0.0  ;;  %v3850_v28 = vadd.f32 %v3817_v42, %v12417_v39  ;;  %v3819_v22 = vpop.f32.mrb[75].mxu0  ;;  %5951 = vmatpush1.bf16.msra.mxu0 %v11459_v48  ;;  %v14393_v59 = vpack.c.bf16 %v4167_v34, %v4166_v13  ;;  %v4130_v35 = vmax.f32 %v4106_v60, 0.0  ;;  %v4076_v19 = vpop.f32.mrb[75].mxu1  ;;  %6208 = vmatpush1.bf16.msra.mxu1 %v11460_v58  ;;  %v11463_v13 = vld [vmem:[%s16811_s0 + $0x158] sm:$0xff]  }
 0x391   :  { %v4107_v27 = vadd.f32 %v4074_v8, %v12417_v39  ;;  %5952 = vmatprep.subr.bf16.mxu0 %v16941_v54  ;;  %6209 = vmatprep.subr.bf16.mxu1 %v16941_v54 }
 0x392   :  { %16954 = vst [vmem:[#allocation26_spill] sm:$0xff] %v14393_v59  ;;  %v3874_v20 = vmax.f32 %v3850_v28, 0.0  ;;  %5427 = vmatmul.mubr.bf16.gmra.mrb[180].mxu0 %v14053_v40  ;;  %v4154_v48 = vmax.f32 %v3873_v4, %v4130_v35  ;;  %5684 = vmatmul.mubr.bf16.gmra.mrb[180].mxu1 %v14053_v40  ;;  %v11464_v40 = vld [vmem:[%s16811_s0 + $0x168] sm:$0xff]   ;;  %v11465_v35 = vld [vmem:[%s16811_s0 + $0x160] sm:$0xff]  }
 0x393   :  { %v4131_v63 = vmax.f32 %v4107_v27, 0.0  ;;  %10344 = vmatprep.mubr.msk.bf16.mxu0 %vm286_vm0, %v14063_v9  ;;  %10366 = vmatprep.mubr.msk.bf16.mxu1 %vm286_vm0, %v14063_v9 }
 0x394   :  { %5953 = vmatpush1.bf16.msra.mxu0 %v11461_v1  ;;  %6210 = vmatpush1.bf16.msra.mxu1 %v11462_v51 }
 0x395   :  { %v4155_v58 = vmax.f32 %v3874_v20, %v4131_v63  ;;  %v3822_v33 = vpop.f32.mrb[76].mxu0  ;;  %5954 = vmatprep.subr.bf16.mxu0 %v16941_v54  ;;  %v4079_v34 = vpop.f32.mrb[76].mxu1  ;;  %6211 = vmatprep.subr.bf16.mxu1 %v16941_v54  ;;  %v11466_v20 = vld [vmem:[%s16811_s0 + $0x170] sm:$0xff]  }
 0x396   :  { %v3851_v61 = vadd.f32 %v3822_v33, %v12417_v39  ;;  %v3824_v60 = vpop.f32.mrb[77].mxu0  ;;  %v4108_v46 = vadd.f32 %v4079_v34, %v12417_v39  ;;  %v4081_v42 = vpop.f32.mrb[77].mxu1 }
 0x397   :  { %v4168_v9 = vmax.f32 %v4154_v48, %v4155_v58  ;;  %v3825_v4 = vpop.f32.mrb[78].mxu0  ;;  %v4082_v22 = vpop.f32.mrb[78].mxu1  ;;  %v11467_v58 = vld [vmem:[%s16811_s0 + $0x168] sm:$0xff]  }
 0x398   :  { %v3875_v28 = vmax.f32 %v3851_v61, 0.0  ;;  %v3852_v8 = vadd.f32 %v3825_v4, %v12417_v39  ;;  %v3827_v1 = vpop.f32.mrb[79].mxu0  ;;  %5955 = vmatpush1.bf16.msra.mxu0 %v11463_v13  ;;  %v4132_v27 = vmax.f32 %v4108_v46, 0.0  ;;  %v4109_v19 = vadd.f32 %v4082_v22, %v12417_v39  ;;  %v4084_v51 = vpop.f32.mrb[79].mxu1  ;;  %6212 = vmatpush1.bf16.msra.mxu1 %v11464_v40 }
 0x399   :  { %5956 = vmatprep.subr.bf16.mxu0 %v16941_v54  ;;  %6213 = vmatprep.subr.bf16.mxu1 %v16941_v54 }
 0x39a   :  { %v3876_v48 = vmax.f32 %v3852_v8, 0.0  ;;  %5435 = vmatmul.mubr.bf16.gmra.mrb[184].mxu0 %v14095_v57  ;;  %v4156_v63 = vmax.f32 %v3875_v28, %v4132_v27  ;;  %v4133_v13 = vmax.f32 %v4109_v19, 0.0  ;;  %5692 = vmatmul.mubr.bf16.gmra.mrb[184].mxu1 %v14095_v57  ;;  %v11468_v57 = vld [vmem:[%s16811_s0 + $0x178] sm:$0xff]  }
 0x39b   :  { %10345 = vmatprep.mubr.msk.bf16.mxu0 %vm286_vm0, %v14103_v43  ;;  %10367 = vmatprep.mubr.msk.bf16.mxu1 %vm286_vm0, %v14103_v43 }
 0x39c   :  { %5957 = vmatpush1.bf16.msra.mxu0 %v11465_v35  ;;  %v4157_v33 = vmax.f32 %v3876_v48, %v4133_v13  ;;  %6214 = vmatpush1.bf16.msra.mxu1 %v11466_v20  ;;  %v11469_v35 = vld [vmem:[%s16811_s0 + $0x170] sm:$0xff]   ;;  %v11470_v48 = vld [vmem:[%s16811_s0 + $0x180] sm:$0xff]  }
 0x39d   :  { %v4296_v40 = vpop.f32.mrb[80].mxu0  ;;  %5958 = vmatprep.subr.bf16.mxu0 %v16941_v54  ;;  %v4553_v34 = vpop.f32.mrb[80].mxu1  ;;  %6215 = vmatprep.subr.bf16.mxu1 %v16941_v54 }
 0x39e   :  { %v4391_v61 = vadd.f32 %v4296_v40, %v12417_v39  ;;  %v4298_v60 = vpop.f32.mrb[81].mxu0  ;;  %v4169_v43 = vmax.f32 %v4156_v63, %v4157_v33  ;;  %v4648_v46 = vadd.f32 %v4553_v34, %v12417_v39  ;;  %v4555_v42 = vpop.f32.mrb[81].mxu1 }
 0x39f   :  { %v4299_v4 = vpop.f32.mrb[82].mxu0  ;;  %v4556_v22 = vpop.f32.mrb[82].mxu1 }
 0x3a0   :  { %v4415_v28 = vmax.f32 %v4391_v61, 0.0  ;;  %v4392_v8 = vadd.f32 %v4299_v4, %v12417_v39  ;;  %v4301_v1 = vpop.f32.mrb[83].mxu0  ;;  %5959 = vmatpush1.bf16.msra.mxu0 %v11467_v58  ;;  %v14447_v27 = vpack.c.bf16 %v4169_v43, %v4168_v9  ;;  %v4672_v19 = vmax.f32 %v4648_v46, 0.0  ;;  %v4558_v20 = vpop.f32.mrb[83].mxu1  ;;  %6216 = vmatpush1.bf16.msra.mxu1 %v11468_v57  ;;  %v11471_v9 = vld [vmem:[%s16811_s0 + $0x178] sm:$0xff]  }
 0x3a1   :  { %v4649_v51 = vadd.f32 %v4556_v22, %v12417_v39  ;;  %5960 = vmatprep.subr.bf16.mxu0 %v16941_v54  ;;  %6217 = vmatprep.subr.bf16.mxu1 %v16941_v54  ;;  %v11473_v22 = vld [vmem:[%s16811_s0 + $0x180] sm:$0xff]  }
 0x3a2   :  { %16955 = vst [vmem:[#allocation27_spill] sm:$0xff] %v14447_v27  ;;  %v4416_v63 = vmax.f32 %v4392_v8, 0.0  ;;  %5443 = vmatmul.mubr.bf16.gmra.mrb[188].mxu0 %v14136_v30  ;;  %v4696_v13 = vmax.f32 %v4415_v28, %v4672_v19  ;;  %5700 = vmatmul.mubr.bf16.gmra.mrb[188].mxu1 %v14136_v30  ;;  %v11472_v30 = vld [vmem:[%s16811_s0 + $0x188] sm:$0xff]  }
 0x3a3   :  { %v4673_v58 = vmax.f32 %v4649_v51, 0.0  ;;  %10346 = vmatprep.mubr.msk.bf16.mxu0 %vm286_vm0, %v14146_v31  ;;  %10368 = vmatprep.mubr.msk.bf16.mxu1 %vm286_vm0, %v14146_v31  ;;  %v11474_v51 = vld [vmem:[%s16811_s0 + $0x190] sm:$0xff]  }
 0x3a4   :  { %5961 = vmatpush1.bf16.msra.mxu0 %v11469_v35  ;;  %6218 = vmatpush1.bf16.msra.mxu1 %v11470_v48 }
 0x3a5   :  { %v4697_v33 = vmax.f32 %v4416_v63, %v4673_v58  ;;  %v4304_v40 = vpop.f32.mrb[84].mxu0  ;;  %5962 = vmatprep.subr.bf16.mxu0 %v16941_v54  ;;  %v4561_v61 = vpop.f32.mrb[84].mxu1  ;;  %6219 = vmatprep.subr.bf16.mxu1 %v16941_v54 }
 0x3a6   :  { %v4393_v57 = vadd.f32 %v4304_v40, %v12417_v39  ;;  %v4306_v34 = vpop.f32.mrb[85].mxu0  ;;  %v4650_v60 = vadd.f32 %v4561_v61, %v12417_v39  ;;  %v4563_v43 = vpop.f32.mrb[85].mxu1 }
 0x3a7   :  { %v4720_v31 = vmax.f32 %v4696_v13, %v4697_v33  ;;  %v4307_v46 = vpop.f32.mrb[86].mxu0  ;;  %v4564_v28 = vpop.f32.mrb[86].mxu1  ;;  %v11475_v13 = vld [vmem:[%s16811_s0 + $0x188] sm:$0xff]  }
 0x3a8   :  { %v4417_v42 = vmax.f32 %v4393_v57, 0.0  ;;  %v4394_v4 = vadd.f32 %v4307_v46, %v12417_v39  ;;  %v4309_v8 = vpop.f32.mrb[87].mxu0  ;;  %5963 = vmatpush1.bf16.msra.mxu0 %v11471_v9  ;;  %v4674_v1 = vmax.f32 %v4650_v60, 0.0  ;;  %v4651_v35 = vadd.f32 %v4564_v28, %v12417_v39  ;;  %v4566_v19 = vpop.f32.mrb[87].mxu1  ;;  %6220 = vmatpush1.bf16.msra.mxu1 %v11472_v30 }
 0x3a9   :  { %5964 = vmatprep.subr.bf16.mxu0 %v16941_v54  ;;  %6221 = vmatprep.subr.bf16.mxu1 %v16941_v54 }
 0x3aa   :  { %v4418_v20 = vmax.f32 %v4394_v4, 0.0  ;;  %5451 = vmatmul.mubr.bf16.gmra.mrb[192].mxu0 %v14178_v7  ;;  %v4698_v48 = vmax.f32 %v4417_v42, %v4674_v1  ;;  %v4675_v63 = vmax.f32 %v4651_v35, 0.0  ;;  %5708 = vmatmul.mubr.bf16.gmra.mrb[192].mxu1 %v14178_v7  ;;  %v11476_v7 = vld [vmem:[%s16811_s0 + $0x198] sm:$0xff]  }
 0x3ab   :  { %10347 = vmatprep.mubr.msk.bf16.mxu0 %vm286_vm0, %v14186_v12  ;;  %10369 = vmatprep.mubr.msk.bf16.mxu1 %vm286_vm0, %v14186_v12 }
 0x3ac   :  { %5965 = vmatpush1.bf16.msra.mxu0 %v11473_v22  ;;  %v4699_v58 = vmax.f32 %v4418_v20, %v4675_v63  ;;  %6222 = vmatpush1.bf16.msra.mxu1 %v11474_v51 }
 0x3ad   :  { %v4312_v9 = vpop.f32.mrb[88].mxu0  ;;  %5966 = vmatprep.subr.bf16.mxu0 %v16941_v54  ;;  %v4569_v40 = vpop.f32.mrb[88].mxu1  ;;  %6223 = vmatprep.subr.bf16.mxu1 %v16941_v54 }
 0x3ae   :  { %v4395_v33 = vadd.f32 %v4312_v9, %v12417_v39  ;;  %v4314_v30 = vpop.f32.mrb[89].mxu0  ;;  %v4721_v12 = vmax.f32 %v4698_v48, %v4699_v58  ;;  %v4652_v57 = vadd.f32 %v4569_v40, %v12417_v39  ;;  %v4571_v61 = vpop.f32.mrb[89].mxu1 }
 0x3af   :  { %v4315_v34 = vpop.f32.mrb[90].mxu0  ;;  %v4572_v46 = vpop.f32.mrb[90].mxu1 }
 0x3b0   :  { %v4419_v60 = vmax.f32 %v4395_v33, 0.0  ;;  %v4396_v43 = vadd.f32 %v4315_v34, %v12417_v39  ;;  %v4317_v42 = vpop.f32.mrb[91].mxu0  ;;  %5967 = vmatpush1.bf16.msra.mxu0 %v11475_v13  ;;  %v14498_v4 = vpack.c.bf16 %v4721_v12, %v4720_v31  ;;  %v4676_v28 = vmax.f32 %v4652_v57, 0.0  ;;  %v4574_v22 = vpop.f32.mrb[91].mxu1  ;;  %6224 = vmatpush1.bf16.msra.mxu1 %v11476_v7 }
 0x3b1   :  { %v4653_v8 = vadd.f32 %v4572_v46, %v12417_v39  ;;  %6510 = vmatprep.subr.bf16.mxu0 %v16941_v54  ;;  %6767 = vmatprep.subr.bf16.mxu1 %v16941_v54 }
 0x3b2   :  { %16956 = vst [vmem:[#allocation28_spill] sm:$0xff] %v14498_v4  ;;  %v4420_v1 = vmax.f32 %v4396_v43, 0.0  ;;  %5459 = vmatmul.mubr.bf16.gmra.mrb[196].mxu0 %v14216_v14  ;;  %v4700_v35 = vmax.f32 %v4419_v60, %v4676_v28  ;;  %5716 = vmatmul.mubr.bf16.gmra.mrb[196].mxu1 %v14216_v14 }
 0x3b3   :  { %v4677_v19 = vmax.f32 %v4653_v8, 0.0  ;;  %10348 = vmatprep.mubr.msk.bf16.mxu0 %vm286_vm0, %v14224_v10  ;;  %10370 = vmatprep.mubr.msk.bf16.mxu1 %vm286_vm0, %v14224_v10 }
 0x3b5   :  { %v4701_v31 = vmax.f32 %v4420_v1, %v4677_v19  ;;  %v4320_v51 = vpop.f32.mrb[92].mxu0  ;;  %v4577_v48 = vpop.f32.mrb[92].mxu1 }
 0x3b6   :  { %v4397_v20 = vadd.f32 %v4320_v51, %v12417_v39  ;;  %v4322_v63 = vpop.f32.mrb[93].mxu0  ;;  %v4654_v58 = vadd.f32 %v4577_v48, %v12417_v39  ;;  %v4579_v9 = vpop.f32.mrb[93].mxu1 }
 0x3b7   :  { %v4722_v13 = vmax.f32 %v4700_v35, %v4701_v31  ;;  %v4323_v7 = vpop.f32.mrb[94].mxu0  ;;  %v4580_v40 = vpop.f32.mrb[94].mxu1 }
 0x3b8   :  { %v4421_v33 = vmax.f32 %v4397_v20, 0.0  ;;  %v4398_v14 = vadd.f32 %v4323_v7, %v12417_v39  ;;  %v4325_v30 = vpop.f32.mrb[95].mxu0  ;;  %v4678_v12 = vmax.f32 %v4654_v58, 0.0  ;;  %v4655_v57 = vadd.f32 %v4580_v40, %v12417_v39  ;;  %v4582_v10 = vpop.f32.mrb[95].mxu1 }
 0x3ba   :  { %v4422_v61 = vmax.f32 %v4398_v14, 0.0  ;;  %5467 = vmatmul.mubr.bf16.gmra.mrb[200].mxu0 %v14243_v18  ;;  %v4702_v34 = vmax.f32 %v4421_v33, %v4678_v12  ;;  %v4679_v60 = vmax.f32 %v4655_v57, 0.0  ;;  %5724 = vmatmul.mubr.bf16.gmra.mrb[200].mxu1 %v14243_v18 }
 0x3bb   :  { %10349 = vmatprep.mubr.msk.bf16.mxu0 %vm286_vm0, %v14250_v45  ;;  %10371 = vmatprep.mubr.msk.bf16.mxu1 %vm286_vm0, %v14250_v45 }
 0x3bc   :  { %v4703_v43 = vmax.f32 %v4422_v61, %v4679_v60 }
 0x3bd   :  { %v4328_v46 = vpop.f32.mrb[96].mxu0  ;;  %v4585_v28 = vpop.f32.mrb[96].mxu1 }
 0x3be   :  { %v4399_v42 = vadd.f32 %v4328_v46, %v12417_v39  ;;  %v4330_v8 = vpop.f32.mrb[97].mxu0  ;;  %v4723_v22 = vmax.f32 %v4702_v34, %v4703_v43  ;;  %v4656_v1 = vadd.f32 %v4585_v28, %v12417_v39  ;;  %v4587_v35 = vpop.f32.mrb[97].mxu1 }
 0x3bf   :  { %v4331_v19 = vpop.f32.mrb[98].mxu0  ;;  %v4588_v51 = vpop.f32.mrb[98].mxu1 }
 0x3c0   :  { %v4423_v31 = vmax.f32 %v4399_v42, 0.0  ;;  %v4400_v18 = vadd.f32 %v4331_v19, %v12417_v39  ;;  %v4333_v20 = vpop.f32.mrb[99].mxu0  ;;  %v14522_v48 = vpack.c.bf16 %v4723_v22, %v4722_v13  ;;  %v4680_v63 = vmax.f32 %v4656_v1, 0.0  ;;  %v4590_v58 = vpop.f32.mrb[99].mxu1 }
 0x3c1   :  { %v4657_v45 = vadd.f32 %v4588_v51, %v12417_v39 }
 0x3c2   :  { %16957 = vst [vmem:[#allocation29_spill] sm:$0xff] %v14522_v48  ;;  %v4424_v9 = vmax.f32 %v4400_v18, 0.0  ;;  %5475 = vmatmul.mubr.bf16.gmra.mrb[204].mxu0 %v14271_v11  ;;  %v4704_v7 = vmax.f32 %v4423_v31, %v4680_v63  ;;  %5732 = vmatmul.mubr.bf16.gmra.mrb[204].mxu1 %v14271_v11 }
 0x3c3   :  { %v4681_v33 = vmax.f32 %v4657_v45, 0.0  ;;  %10350 = vmatprep.mubr.msk.bf16.mxu0 %vm286_vm0, %v14278_v25  ;;  %10372 = vmatprep.mubr.msk.bf16.mxu1 %vm286_vm0, %v14278_v25 }
 0x3c5   :  { %v4705_v14 = vmax.f32 %v4424_v9, %v4681_v33  ;;  %v4336_v13 = vpop.f32.mrb[100].mxu0  ;;  %v4593_v30 = vpop.f32.mrb[100].mxu1 }
 0x3c6   :  { %v4401_v40 = vadd.f32 %v4336_v13, %v12417_v39  ;;  %v4338_v12 = vpop.f32.mrb[101].mxu0  ;;  %v4658_v10 = vadd.f32 %v4593_v30, %v12417_v39  ;;  %v4595_v61 = vpop.f32.mrb[101].mxu1 }
 0x3c7   :  { %v4724_v57 = vmax.f32 %v4704_v7, %v4705_v14  ;;  %v4339_v34 = vpop.f32.mrb[102].mxu0  ;;  %v4596_v43 = vpop.f32.mrb[102].mxu1 }
 0x3c8   :  { %v4425_v60 = vmax.f32 %v4401_v40, 0.0  ;;  %v4402_v11 = vadd.f32 %v4339_v34, %v12417_v39  ;;  %v4341_v46 = vpop.f32.mrb[103].mxu0  ;;  %v4682_v42 = vmax.f32 %v4658_v10, 0.0  ;;  %v4659_v28 = vadd.f32 %v4596_v43, %v12417_v39  ;;  %v4598_v25 = vpop.f32.mrb[103].mxu1 }
 0x3ca   :  { %v4426_v8 = vmax.f32 %v4402_v11, 0.0  ;;  %5483 = vmatmul.mubr.bf16.gmra.mrb[208].mxu0 %v14291_v6  ;;  %v4706_v22 = vmax.f32 %v4425_v60, %v4682_v42  ;;  %v4683_v1 = vmax.f32 %v4659_v28, 0.0  ;;  %5740 = vmatmul.mubr.bf16.gmra.mrb[208].mxu1 %v14291_v6 }
 0x3cb   :  { %10351 = vmatprep.mubr.msk.bf16.mxu0 %vm286_vm0, %v14298_v55  ;;  %10373 = vmatprep.mubr.msk.bf16.mxu1 %vm286_vm0, %v14298_v55 }
 0x3cc   :  { %v4707_v35 = vmax.f32 %v4426_v8, %v4683_v1 }
 0x3cd   :  { %v4344_v19 = vpop.f32.mrb[104].mxu0  ;;  %v4601_v18 = vpop.f32.mrb[104].mxu1 }
 0x3ce   :  { %v4403_v31 = vadd.f32 %v4344_v19, %v12417_v39  ;;  %v4346_v51 = vpop.f32.mrb[105].mxu0  ;;  %v4725_v20 = vmax.f32 %v4706_v22, %v4707_v35  ;;  %v4660_v63 = vadd.f32 %v4601_v18, %v12417_v39  ;;  %v4603_v45 = vpop.f32.mrb[105].mxu1 }
 0x3cf   :  { %v4347_v58 = vpop.f32.mrb[106].mxu0  ;;  %v4604_v7 = vpop.f32.mrb[106].mxu1 }
 0x3d0   :  { %v4427_v9 = vmax.f32 %v4403_v31, 0.0  ;;  %v4404_v6 = vadd.f32 %v4347_v58, %v12417_v39  ;;  %v4349_v33 = vpop.f32.mrb[107].mxu0  ;;  %v14544_v14 = vpack.c.bf16 %v4725_v20, %v4724_v57  ;;  %v4684_v13 = vmax.f32 %v4660_v63, 0.0  ;;  %v4606_v40 = vpop.f32.mrb[107].mxu1 }
 0x3d1   :  { %v4661_v55 = vadd.f32 %v4604_v7, %v12417_v39 }
 0x3d2   :  { %16958 = vst [vmem:[#allocation30_spill] sm:$0xff] %v14544_v14  ;;  %v4428_v30 = vmax.f32 %v4404_v6, 0.0  ;;  %5491 = vmatmul.mubr.bf16.gmra.mrb[212].mxu0 %v14313_v29  ;;  %v4708_v12 = vmax.f32 %v4427_v9, %v4684_v13  ;;  %5748 = vmatmul.mubr.bf16.gmra.mrb[212].mxu1 %v14313_v29 }
 0x3d3   :  { %v4685_v10 = vmax.f32 %v4661_v55, 0.0  ;;  %10352 = vmatprep.mubr.msk.bf16.mxu0 %vm286_vm0, %v14320_v5  ;;  %10374 = vmatprep.mubr.msk.bf16.mxu1 %vm286_vm0, %v14320_v5 }
 0x3d5   :  { %v4709_v61 = vmax.f32 %v4428_v30, %v4685_v10  ;;  %v4352_v57 = vpop.f32.mrb[108].mxu0  ;;  %v4609_v60 = vpop.f32.mrb[108].mxu1 }
 0x3d6   :  { %v4405_v34 = vadd.f32 %v4352_v57, %v12417_v39  ;;  %v4354_v11 = vpop.f32.mrb[109].mxu0  ;;  %v4662_v46 = vadd.f32 %v4609_v60, %v12417_v39  ;;  %v4611_v42 = vpop.f32.mrb[109].mxu1  ;;  %v14574_v60 = vld [vmem:[%s16812_s1 + $0x4] ss:$8 sps:$4 sm:$0xff]  }
 0x3d7   :  { %v4726_v43 = vmax.f32 %v4708_v12, %v4709_v61  ;;  %v4355_v28 = vpop.f32.mrb[110].mxu0  ;;  %v4612_v8 = vpop.f32.mrb[110].mxu1 }
 0x3d8   :  { %v4429_v25 = vmax.f32 %v4405_v34, 0.0  ;;  %v4406_v29 = vadd.f32 %v4355_v28, %v12417_v39  ;;  %v4357_v22 = vpop.f32.mrb[111].mxu0  ;;  %v4686_v1 = vmax.f32 %v4662_v46, 0.0  ;;  %v4663_v35 = vadd.f32 %v4612_v8, %v12417_v39  ;;  %v4614_v5 = vpop.f32.mrb[111].mxu1 }
 0x3d9   :  { %v11477_v22 = vld [vmem:[%s16811_s0 + $0x160] sm:$0xff]  }
 0x3da   :  { %v4430_v19 = vmax.f32 %v4406_v29, 0.0  ;;  %5499 = vmatmul.mubr.bf16.gmra.mrb[216].mxu0 %v14333_v16  ;;  %v4710_v31 = vmax.f32 %v4429_v25, %v4686_v1  ;;  %v4687_v18 = vmax.f32 %v4663_v35, 0.0  ;;  %5756 = vmatmul.mubr.bf16.gmra.mrb[216].mxu1 %v14333_v16 }
 0x3db   :  { %10353 = vmatprep.mubr.msk.bf16.mxu0 %vm286_vm0, %v14340_v21  ;;  %10375 = vmatprep.mubr.msk.bf16.mxu1 %vm286_vm0, %v14340_v21 }
 0x3dc   :  { %v4711_v51 = vmax.f32 %v4430_v19, %v4687_v18 }
 0x3dd   :  { %v4360_v20 = vpop.f32.mrb[112].mxu0  ;;  %v4617_v45 = vpop.f32.mrb[112].mxu1 }
 0x3de   :  { %v4407_v63 = vadd.f32 %v4360_v20, %v12417_v39  ;;  %v4362_v58 = vpop.f32.mrb[113].mxu0  ;;  %v4727_v9 = vmax.f32 %v4710_v31, %v4711_v51  ;;  %v4664_v6 = vadd.f32 %v4617_v45, %v12417_v39  ;;  %v4619_v7 = vpop.f32.mrb[113].mxu1  ;;  %v11480_v20 = vld [vmem:[%s16811_s0 + $0x170] sm:$0xff]   ;;  %v14593_v45 = vld [vmem:[%s16812_s1] ss:$8 sps:$4 sm:$0xff]  }
 0x3df   :  { %v4363_v33 = vpop.f32.mrb[114].mxu0  ;;  %v4620_v55 = vpop.f32.mrb[114].mxu1  ;;  %v14604_v7 = vld [vmem:[%s16812_s1 + $0x14] ss:$8 sps:$4 sm:$0xff]  }
 0x3e0   :  { %v4431_v13 = vmax.f32 %v4407_v63, 0.0  ;;  %v4408_v16 = vadd.f32 %v4363_v33, %v12417_v39  ;;  %v4365_v40 = vpop.f32.mrb[115].mxu0  ;;  %v14566_v30 = vpack.c.bf16 %v4727_v9, %v4726_v43  ;;  %v4688_v12 = vmax.f32 %v4664_v6, 0.0  ;;  %v4622_v10 = vpop.f32.mrb[115].mxu1  ;;  %v11478_v6 = vld [vmem:[%s16811_s0 + $0x168] sm:$0xff]  }
 0x3e1   :  { %v4665_v21 = vadd.f32 %v4620_v55, %v12417_v39 }
 0x3e2   :  { %16959 = vst [vmem:[#allocation31_spill] sm:$0xff] %v14566_v30  ;;  %v4432_v61 = vmax.f32 %v4408_v16, 0.0  ;;  %5507 = vmatmul.mubr.bf16.gmra.mrb[220].mxu0 %v14355_v0  ;;  %v4712_v57 = vmax.f32 %v4431_v13, %v4688_v12  ;;  %5764 = vmatmul.mubr.bf16.gmra.mrb[220].mxu1 %v14355_v0  ;;  %v11484_v16 = vld [vmem:[%s16811_s0 + $0x178] sm:$0xff]  }
 0x3e3   :  { %v4689_v34 = vmax.f32 %v4665_v21, 0.0  ;;  %10386 = vmatprep.mubr.msk.bf16.mxu0 %vm286_vm0, %v14574_v60  ;;  %10408 = vmatprep.mubr.msk.bf16.mxu1 %vm286_vm0, %v14574_v60 }
 0x3e5   :  { %v4713_v11 = vmax.f32 %v4432_v61, %v4689_v34  ;;  %v4368_v43 = vpop.f32.mrb[116].mxu0  ;;  %v4625_v42 = vpop.f32.mrb[116].mxu1  ;;  %v11479_v34 = vld [vmem:[%s16811_s0 + $0x170] sm:$0xff]  }
 0x3e6   :  { %v4409_v46 = vadd.f32 %v4368_v43, %v12417_v39  ;;  %v4370_v28 = vpop.f32.mrb[117].mxu0  ;;  %v4666_v0 = vadd.f32 %v4625_v42, %v12417_v39  ;;  %v4627_v29 = vpop.f32.mrb[117].mxu1 }
 0x3e7   :  { %v4728_v25 = vmax.f32 %v4712_v57, %v4713_v11  ;;  %v4371_v8 = vpop.f32.mrb[118].mxu0  ;;  %v4628_v5 = vpop.f32.mrb[118].mxu1 }
 0x3e8   :  { %v4433_v1 = vmax.f32 %v4409_v46, 0.0  ;;  %v4410_v35 = vadd.f32 %v4371_v8, %v12417_v39  ;;  %v4373_v19 = vpop.f32.mrb[119].mxu0  ;;  %v4690_v31 = vmax.f32 %v4666_v0, 0.0  ;;  %v4667_v18 = vadd.f32 %v4628_v5, %v12417_v39  ;;  %v4630_v51 = vpop.f32.mrb[119].mxu1 }
 0x3e9   :  { %v11481_v19 = vld [vmem:[%s16811_s0 + $0x178] sm:$0xff]  }
 0x3ea   :  { %v4434_v63 = vmax.f32 %v4410_v35, 0.0  ;;  %5981 = vmatmul.mubr.bf16.vlgmr.msra.gmra.mrb[224].mxu0 %v14593_v45  ;;  %v4714_v58 = vmax.f32 %v4433_v1, %v4690_v31  ;;  %v4691_v9 = vmax.f32 %v4667_v18, 0.0  ;;  %6238 = vmatmul.mubr.bf16.vlgmr.msra.gmra.mrb[224].mxu1 %v14593_v45  ;;  %v14630_v35 = vld [vmem:[%s16812_s1 + $0x10] ss:$8 sps:$4 sm:$0xff]   ;;  %v14644_v31 = vld [vmem:[%s16812_s1 + $0x24] ss:$8 sps:$4 sm:$0xff]  }
 0x3eb   :  { %6511 = vmatpush1.bf16.msra.mxu0 %v11477_v22  ;;  %10387 = vmatprep.mubr.msk.bf16.mxu0 %vm286_vm0, %v14604_v7  ;;  %v11487_v22 = vld [vmem:[%s16811_s0 + $0x180] sm:$0xff]  }
 0x3ec   :  { %6512 = vmatprep.subr.bf16.mxu0 %v16941_v54  ;;  %v4715_v33 = vmax.f32 %v4434_v63, %v4691_v9  ;;  %10409 = vmatprep.mubr.msk.bf16.mxu1 %vm286_vm0, %v14604_v7 }
 0x3ed   :  { %v4376_v13 = vpop.f32.mrb[120].mxu0  ;;  %6768 = vmatpush1.bf16.msra.mxu1 %v11480_v20  ;;  %v4633_v40 = vpop.f32.mrb[120].mxu1  ;;  %v11490_v20 = vld [vmem:[%s16811_s0 + $0x188] sm:$0xff]  }
 0x3ee   :  { %v4411_v55 = vadd.f32 %v4376_v13, %v12417_v39  ;;  %v4378_v12 = vpop.f32.mrb[121].mxu0  ;;  %6769 = vmatprep.subr.bf16.mxu1 %v16941_v54  ;;  %v4729_v21 = vmax.f32 %v4714_v58, %v4715_v33  ;;  %v4668_v10 = vadd.f32 %v4633_v40, %v12417_v39  ;;  %v4635_v61 = vpop.f32.mrb[121].mxu1 }
 0x3ef   :  { %6513 = vmatpush1.bf16.msra.mxu0 %v11478_v6  ;;  %v4379_v57 = vpop.f32.mrb[122].mxu0  ;;  %v4636_v46 = vpop.f32.mrb[122].mxu1 }
 0x3f0   :  { %v4435_v11 = vmax.f32 %v4411_v55, 0.0  ;;  %v4412_v43 = vadd.f32 %v4379_v57, %v12417_v39  ;;  %v4381_v42 = vpop.f32.mrb[123].mxu0  ;;  %6514 = vmatprep.subr.bf16.mxu0 %v16941_v54  ;;  %v14621_v28 = vpack.c.bf16 %v4729_v21, %v4728_v25  ;;  %v4692_v0 = vmax.f32 %v4668_v10, 0.0  ;;  %v4638_v8 = vpop.f32.mrb[123].mxu1  ;;  %v11482_v55 = vld [vmem:[%s16811_s0 + $0x180] sm:$0xff]  }
 0x3f1   :  { %v4669_v29 = vadd.f32 %v4636_v46, %v12417_v39  ;;  %6770 = vmatpush1.bf16.msra.mxu1 %v11484_v16  ;;  %v14669_v46 = vld [vmem:[%s16812_s1 + $0x20] ss:$8 sps:$4 sm:$0xff]   ;;  %v14681_v8 = vld [vmem:[%s16812_s1 + $0x34] ss:$8 sps:$4 sm:$0xff]  }
 0x3f2   :  { %16960 = vst [vmem:[#allocation32_spill] sm:$0xff] %v14621_v28  ;;  %v4436_v1 = vmax.f32 %v4412_v43, 0.0  ;;  %5989 = vmatmul.mubr.bf16.gmra.mrb[228].mxu0 %v14630_v35  ;;  %6771 = vmatprep.subr.bf16.mxu1 %v16941_v54  ;;  %v14634_v25 = vmax.f32 %v4435_v11, %v4692_v0  ;;  %v11491_v11 = vld [vmem:[%s16811_s0 + $0x190] sm:$0xff]  }
 0x3f3   :  { %v4693_v5 = vmax.f32 %v4669_v29, 0.0  ;;  %6246 = vmatmul.mubr.bf16.gmra.mrb[228].mxu1 %v14630_v35  ;;  %6515 = vmatpush1.bf16.msra.mxu0 %v11479_v34  ;;  %v11483_v29 = vld [vmem:[%s16811_s0 + $0x188] sm:$0xff]  }
 0x3f4   :  { %6516 = vmatprep.subr.bf16.mxu0 %v16941_v54  ;;  %10388 = vmatprep.mubr.msk.bf16.mxu0 %vm286_vm0, %v14644_v31 }
 0x3f5   :  { %v4717_v18 = vmax.f32 %v4436_v1, %v4693_v5  ;;  %v4384_v51 = vpop.f32.mrb[124].mxu0  ;;  %10410 = vmatprep.mubr.msk.bf16.mxu1 %vm286_vm0, %v14644_v31  ;;  %6772 = vmatpush1.bf16.msra.mxu1 %v11487_v22  ;;  %v4641_v58 = vpop.f32.mrb[124].mxu1 }
 0x3f6   :  { %v4413_v63 = vadd.f32 %v4384_v51, %v12417_v39  ;;  %v4386_v9 = vpop.f32.mrb[125].mxu0  ;;  %6773 = vmatprep.subr.bf16.mxu1 %v16941_v54  ;;  %v4670_v33 = vadd.f32 %v4641_v58, %v12417_v39  ;;  %v4643_v13 = vpop.f32.mrb[125].mxu1 }
 0x3f7   :  { %v4730_v6 = vmax.f32 %v14634_v25, %v4717_v18  ;;  %6517 = vmatpush1.bf16.msra.mxu0 %v11481_v19  ;;  %v4387_v16 = vpop.f32.mrb[126].mxu0  ;;  %v4644_v21 = vpop.f32.mrb[126].mxu1  ;;  %v11492_v25 = vld [vmem:[%s16811_s0 + $0x198] sm:$0xff]   ;;  %v11485_v9 = vld [vmem:[%s16811_s0 + $0x190] sm:$0xff]  }
 0x3f8   :  { %v4437_v40 = vmax.f32 %v4413_v63, 0.0  ;;  %v4414_v12 = vadd.f32 %v4387_v16, %v12417_v39  ;;  %v4389_v10 = vpop.f32.mrb[127].mxu0  ;;  %6518 = vmatprep.subr.bf16.mxu0 %v16941_v54  ;;  %v4694_v61 = vmax.f32 %v4670_v33, 0.0  ;;  %v4671_v57 = vadd.f32 %v4644_v21, %v12417_v39  ;;  %v4646_v34 = vpop.f32.mrb[127].mxu1 }
 0x3f9   :  { %6774 = vmatpush1.bf16.msra.mxu1 %v11490_v20  ;;  %v14707_v34 = vld [vmem:[%s16812_s1 + $0x30] ss:$8 sps:$4 sm:$0xff]  }
 0x3fa   :  { %v4438_v43 = vmax.f32 %v4414_v12, 0.0  ;;  %5997 = vmatmul.mubr.bf16.gmra.mrb[232].mxu0 %v14669_v46  ;;  %6775 = vmatprep.subr.bf16.mxu1 %v16941_v54  ;;  %v4718_v42 = vmax.f32 %v4437_v40, %v4694_v61  ;;  %v4695_v0 = vmax.f32 %v4671_v57, 0.0  ;;  %v11493_v61 = vld [vmem:[%s16811_s0 + $0x1a0] sm:$0xff]  }
 0x3fb   :  { %6254 = vmatmul.mubr.bf16.gmra.mrb[232].mxu1 %v14669_v46  ;;  %6519 = vmatpush1.bf16.msra.mxu0 %v11482_v55 }
 0x3fc   :  { %6520 = vmatprep.subr.bf16.mxu0 %v16941_v54  ;;  %10389 = vmatprep.mubr.msk.bf16.mxu0 %vm286_vm0, %v14681_v8  ;;  %v4719_v22 = vmax.f32 %v4438_v43, %v4695_v0  ;;  %v11486_v43 = vld [vmem:[%s16811_s0 + $0x198] sm:$0xff]  }
 0x3fd   :  { %v4858_v1 = vpop.f32.mrb[128].mxu0  ;;  %10411 = vmatprep.mubr.msk.bf16.mxu1 %vm286_vm0, %v14681_v8  ;;  %6776 = vmatpush1.bf16.msra.mxu1 %v11491_v11  ;;  %v5115_v19 = vpop.f32.mrb[128].mxu1 }
 0x3fe   :  { %v4953_v5 = vadd.f32 %v4858_v1, %v12417_v39  ;;  %v4860_v18 = vpop.f32.mrb[129].mxu0  ;;  %6777 = vmatprep.subr.bf16.mxu1 %v16941_v54  ;;  %v4731_v51 = vmax.f32 %v4718_v42, %v4719_v22  ;;  %v5210_v20 = vadd.f32 %v5115_v19, %v12417_v39  ;;  %v5117_v63 = vpop.f32.mrb[129].mxu1  ;;  %v14721_v42 = vld [vmem:[%s16812_s1 + $0x44] ss:$8 sps:$4 sm:$0xff]  }
 0x3ff   :  { %6521 = vmatpush1.bf16.msra.mxu0 %v11483_v29  ;;  %v4861_v58 = vpop.f32.mrb[130].mxu0  ;;  %v5118_v16 = vpop.f32.mrb[130].mxu1  ;;  %v11494_v22 = vld [vmem:[%s16811_s0 + $0x1a8] sm:$0xff]   ;;  %v11488_v63 = vld [vmem:[%s16811_s0 + $0x1a0] sm:$0xff]  }
 0x400   :  { %v4977_v33 = vmax.f32 %v4953_v5, 0.0  ;;  %v4954_v13 = vadd.f32 %v4861_v58, %v12417_v39  ;;  %v4863_v55 = vpop.f32.mrb[131].mxu0  ;;  %6522 = vmatprep.subr.bf16.mxu0 %v16941_v54  ;;  %v14698_v40 = vpack.c.bf16 %v4731_v51, %v4730_v6  ;;  %v5234_v12 = vmax.f32 %v5210_v20, 0.0  ;;  %v5120_v10 = vpop.f32.mrb[131].mxu1 }
 0x401   :  { %v5211_v21 = vadd.f32 %v5118_v16, %v12417_v39  ;;  %6778 = vmatpush1.bf16.msra.mxu1 %v11492_v25 }
 0x402   :  { %16961 = vst [vmem:[#allocation33_spill] sm:$0xff] %v14698_v40  ;;  %v4978_v57 = vmax.f32 %v4954_v13, 0.0  ;;  %6005 = vmatmul.mubr.bf16.gmra.mrb[236].mxu0 %v14707_v34  ;;  %6779 = vmatprep.subr.bf16.mxu1 %v16941_v54  ;;  %v14711_v6 = vmax.f32 %v4977_v33, %v5234_v12 }
 0x403   :  { %v5235_v11 = vmax.f32 %v5211_v21, 0.0  ;;  %6262 = vmatmul.mubr.bf16.gmra.mrb[236].mxu1 %v14707_v34  ;;  %6523 = vmatpush1.bf16.msra.mxu0 %v11485_v9  ;;  %v11495_v21 = vld [vmem:[%s16811_s0 + $0x1b0] sm:$0xff]  }
 0x404   :  { %6524 = vmatprep.subr.bf16.mxu0 %v16941_v54  ;;  %10390 = vmatprep.mubr.msk.bf16.mxu0 %vm286_vm0, %v14721_v42 }
 0x405   :  { %v5259_v0 = vmax.f32 %v4978_v57, %v5235_v11  ;;  %v4866_v29 = vpop.f32.mrb[132].mxu0  ;;  %10412 = vmatprep.mubr.msk.bf16.mxu1 %vm286_vm0, %v14721_v42  ;;  %6780 = vmatpush1.bf16.msra.mxu1 %v11493_v61  ;;  %v5123_v25 = vpop.f32.mrb[132].mxu1  ;;  %v14746_v61 = vld [vmem:[%s16812_s1 + $0x40] ss:$8 sps:$4 sm:$0xff]  }
 0x406   :  { %v4955_v1 = vadd.f32 %v4866_v29, %v12417_v39  ;;  %v4868_v5 = vpop.f32.mrb[133].mxu0  ;;  %6781 = vmatprep.subr.bf16.mxu1 %v16941_v54  ;;  %v5212_v18 = vadd.f32 %v5123_v25, %v12417_v39  ;;  %v5125_v51 = vpop.f32.mrb[133].mxu1  ;;  %v11489_v11 = vld [vmem:[%s16811_s0 + $0x1a8] sm:$0xff]  }
 0x407   :  { %v5282_v19 = vmax.f32 %v14711_v6, %v5259_v0  ;;  %6525 = vmatpush1.bf16.msra.mxu0 %v11486_v43  ;;  %v4869_v20 = vpop.f32.mrb[134].mxu0  ;;  %v5126_v33 = vpop.f32.mrb[134].mxu1  ;;  %v14758_v43 = vld [vmem:[%s16812_s1 + $0x54] ss:$8 sps:$4 sm:$0xff]  }
 0x408   :  { %v4979_v58 = vmax.f32 %v4955_v1, 0.0  ;;  %v4956_v9 = vadd.f32 %v4869_v20, %v12417_v39  ;;  %v4871_v13 = vpop.f32.mrb[135].mxu0  ;;  %6526 = vmatprep.subr.bf16.mxu0 %v16941_v54  ;;  %v5236_v16 = vmax.f32 %v5212_v18, 0.0  ;;  %v5213_v55 = vadd.f32 %v5126_v33, %v12417_v39  ;;  %v5128_v12 = vpop.f32.mrb[135].mxu1 }
 0x409   :  { %6782 = vmatpush1.bf16.msra.mxu1 %v11494_v22  ;;  %v11496_v22 = vld [vmem:[%s16811_s0 + $0x1b8] sm:$0xff]  }
 0x40a   :  { %v4980_v10 = vmax.f32 %v4956_v9, 0.0  ;;  %6013 = vmatmul.mubr.bf16.gmra.mrb[240].mxu0 %v14746_v61  ;;  %6783 = vmatprep.subr.bf16.mxu1 %v16941_v54  ;;  %v5260_v57 = vmax.f32 %v4979_v58, %v5236_v16  ;;  %v5237_v6 = vmax.f32 %v5213_v55, 0.0 }
 0x40b   :  { %6270 = vmatmul.mubr.bf16.gmra.mrb[240].mxu1 %v14746_v61  ;;  %6527 = vmatpush1.bf16.msra.mxu0 %v11488_v63 }
 0x40c   :  { %6528 = vmatprep.subr.bf16.mxu0 %v16941_v54  ;;  %10391 = vmatprep.mubr.msk.bf16.mxu0 %vm286_vm0, %v14758_v43  ;;  %v5261_v0 = vmax.f32 %v4980_v10, %v5237_v6 }
 0x40d   :  { %v4874_v29 = vpop.f32.mrb[136].mxu0  ;;  %10413 = vmatprep.mubr.msk.bf16.mxu1 %vm286_vm0, %v14758_v43  ;;  %6784 = vmatpush1.bf16.msra.mxu1 %v11495_v21  ;;  %v5131_v25 = vpop.f32.mrb[136].mxu1 }
 0x40e   :  { %v4957_v1 = vadd.f32 %v4874_v29, %v12417_v39  ;;  %v4876_v5 = vpop.f32.mrb[137].mxu0  ;;  %6785 = vmatprep.subr.bf16.mxu1 %v16941_v54  ;;  %v5283_v18 = vmax.f32 %v5260_v57, %v5261_v0  ;;  %v5214_v51 = vadd.f32 %v5131_v25, %v12417_v39  ;;  %v5133_v20 = vpop.f32.mrb[137].mxu1  ;;  %v14778_v57 = vld [vmem:[%s16812_s1 + $0x50] ss:$8 sps:$4 sm:$0xff]   ;;  %v14786_v0 = vld [vmem:[%s16812_s1 + $0x64] ss:$8 sps:$4 sm:$0xff]  }
 0x40f   :  { %6529 = vmatpush1.bf16.msra.mxu0 %v11489_v11  ;;  %v4877_v63 = vpop.f32.mrb[138].mxu0  ;;  %v5134_v33 = vpop.f32.mrb[138].mxu1 }
 0x410   :  { %v4981_v58 = vmax.f32 %v4957_v1, 0.0  ;;  %v4958_v9 = vadd.f32 %v4877_v63, %v12417_v39  ;;  %10586 = vmatprep.subr.bf16.mxu0 %v12844_v50  ;;  %v4879_v13 = vpop.f32.mrb[139].mxu0  ;;  %v5238_v16 = vmax.f32 %v5214_v51, 0.0  ;;  %v5215_v55 = vadd.f32 %v5134_v33, %v12417_v39  ;;  %v5136_v12 = vpop.f32.mrb[139].mxu1 }
 0x411   :  { %6786 = vmatpush1.bf16.msra.mxu1 %v11496_v22  ;;  %v14773_v21 = vpack.c.bf16 %v5283_v18, %v5282_v19 }
 0x412   :  { %v4982_v10 = vmax.f32 %v4958_v9, 0.0  ;;  %6021 = vmatmul.mubr.bf16.gmra.mrb[244].mxu0 %v14778_v57  ;;  %7296 = vmatprep.subr.bf16.mxu1 %v16941_v54  ;;  %v5262_v6 = vmax.f32 %v4981_v58, %v5238_v16  ;;  %v5239_v11 = vmax.f32 %v5215_v55, 0.0 }
 0x413   :  { %16962 = vst [vmem:[#allocation34_spill] sm:$0xff] %v14773_v21  ;;  %6278 = vmatmul.mubr.bf16.gmra.mrb[244].mxu1 %v14778_v57  ;;  %10392 = vmatprep.mubr.msk.bf16.mxu0 %vm286_vm0, %v14786_v0 }
 0x414   :  { %10414 = vmatprep.mubr.msk.bf16.mxu1 %vm286_vm0, %v14786_v0  ;;  %v5263_v19 = vmax.f32 %v4982_v10, %v5239_v11  ;;  %v14799_v10 = vld [vmem:[%s16812_s1 + $0x60] ss:$8 sps:$4 sm:$0xff]  }
 0x415   :  { %v4882_v29 = vpop.f32.mrb[140].mxu0  ;;  %v5139_v1 = vpop.f32.mrb[140].mxu1 }
 0x416   :  { %v4959_v22 = vadd.f32 %v4882_v29, %v12417_v39  ;;  %v4884_v25 = vpop.f32.mrb[141].mxu0  ;;  %v5284_v5 = vmax.f32 %v5262_v6, %v5263_v19  ;;  %v5216_v18 = vadd.f32 %v5139_v1, %v12417_v39  ;;  %v5141_v51 = vpop.f32.mrb[141].mxu1  ;;  %v14806_v19 = vld [vmem:[%s16812_s1 + $0x74] ss:$8 sps:$4 sm:$0xff]  }
 0x417   :  { %v4885_v20 = vpop.f32.mrb[142].mxu0  ;;  %v5142_v9 = vpop.f32.mrb[142].mxu1 }
 0x418   :  { %v4983_v63 = vmax.f32 %v4959_v22, 0.0  ;;  %v4960_v58 = vadd.f32 %v4885_v20, %v12417_v39  ;;  %v4887_v33 = vpop.f32.mrb[143].mxu0  ;;  %v5240_v13 = vmax.f32 %v5216_v18, 0.0  ;;  %v5217_v16 = vadd.f32 %v5142_v9, %v12417_v39  ;;  %v5144_v55 = vpop.f32.mrb[143].mxu1 }
 0x41a   :  { %v4984_v12 = vmax.f32 %v4960_v58, 0.0  ;;  %6029 = vmatmul.mubr.bf16.gmra.mrb[248].mxu0 %v14799_v10  ;;  %v5264_v6 = vmax.f32 %v4983_v63, %v5240_v13  ;;  %v5241_v11 = vmax.f32 %v5217_v16, 0.0 }
 0x41b   :  { %6286 = vmatmul.mubr.bf16.gmra.mrb[248].mxu1 %v14799_v10  ;;  %10393 = vmatprep.mubr.msk.bf16.mxu0 %vm286_vm0, %v14806_v19 }
 0x41c   :  { %10415 = vmatprep.mubr.msk.bf16.mxu1 %vm286_vm0, %v14806_v19  ;;  %v5265_v29 = vmax.f32 %v4984_v12, %v5241_v11 }
 0x41d   :  { %v4890_v22 = vpop.f32.mrb[144].mxu0  ;;  %v5147_v25 = vpop.f32.mrb[144].mxu1 }
 0x41e   :  { %v4961_v1 = vadd.f32 %v4890_v22, %v12417_v39  ;;  %v4892_v18 = vpop.f32.mrb[145].mxu0  ;;  %v5285_v51 = vmax.f32 %v5264_v6, %v5265_v29  ;;  %v5218_v20 = vadd.f32 %v5147_v25, %v12417_v39  ;;  %v5149_v63 = vpop.f32.mrb[145].mxu1  ;;  %v14821_v6 = vld [vmem:[%s16812_s1 + $0x70] ss:$8 sps:$4 sm:$0xff]  }
 0x41f   :  { %v4893_v58 = vpop.f32.mrb[146].mxu0  ;;  %v5150_v13 = vpop.f32.mrb[146].mxu1 }
 0x420   :  { %v4985_v9 = vmax.f32 %v4961_v1, 0.0  ;;  %v4962_v33 = vadd.f32 %v4893_v58, %v12417_v39  ;;  %v4895_v16 = vpop.f32.mrb[147].mxu0  ;;  %v5242_v55 = vmax.f32 %v5218_v20, 0.0  ;;  %v5219_v21 = vadd.f32 %v5150_v13, %v12417_v39  ;;  %v5152_v40 = vpop.f32.mrb[147].mxu1  ;;  %v14828_v1 = vld [vmem:[%s16812_s1 + $0x84] ss:$8 sps:$4 sm:$0xff]  }
 0x421   :  { %v14816_v12 = vpack.c.bf16 %v5285_v51, %v5284_v5 }
 0x422   :  { %v4986_v11 = vmax.f32 %v4962_v33, 0.0  ;;  %6037 = vmatmul.mubr.bf16.gmra.mrb[252].mxu0 %v14821_v6  ;;  %v5266_v29 = vmax.f32 %v4985_v9, %v5242_v55  ;;  %v5243_v22 = vmax.f32 %v5219_v21, 0.0 }
 0x423   :  { %16963 = vst [vmem:[#allocation35_spill] sm:$0xff] %v14816_v12  ;;  %6294 = vmatmul.mubr.bf16.gmra.mrb[252].mxu1 %v14821_v6  ;;  %10394 = vmatprep.mubr.msk.bf16.mxu0 %vm286_vm0, %v14828_v1 }
 0x424   :  { %10416 = vmatprep.mubr.msk.bf16.mxu1 %vm286_vm0, %v14828_v1  ;;  %v5267_v40 = vmax.f32 %v4986_v11, %v5243_v22  ;;  %v14841_v22 = vld [vmem:[%s16812_s1 + $0x80] ss:$8 sps:$4 sm:$0xff]  }
 0x425   :  { %v4898_v5 = vpop.f32.mrb[148].mxu0  ;;  %v5155_v18 = vpop.f32.mrb[148].mxu1 }
 0x426   :  { %v4963_v25 = vadd.f32 %v4898_v5, %v12417_v39  ;;  %v4900_v51 = vpop.f32.mrb[149].mxu0  ;;  %v5286_v21 = vmax.f32 %v5266_v29, %v5267_v40  ;;  %v5220_v20 = vadd.f32 %v5155_v18, %v12417_v39  ;;  %v5157_v63 = vpop.f32.mrb[149].mxu1  ;;  %v14848_v5 = vld [vmem:[%s16812_s1 + $0x94] ss:$8 sps:$4 sm:$0xff]  }
 0x427   :  { %v4901_v58 = vpop.f32.mrb[150].mxu0  ;;  %v5158_v13 = vpop.f32.mrb[150].mxu1 }
 0x428   :  { %v4987_v9 = vmax.f32 %v4963_v25, 0.0  ;;  %v4964_v33 = vadd.f32 %v4901_v58, %v12417_v39  ;;  %v4903_v16 = vpop.f32.mrb[151].mxu0  ;;  %v5244_v55 = vmax.f32 %v5220_v20, 0.0  ;;  %v5221_v12 = vadd.f32 %v5158_v13, %v12417_v39  ;;  %v5160_v28 = vpop.f32.mrb[151].mxu1 }
 0x42a   :  { %v4988_v11 = vmax.f32 %v4964_v33, 0.0  ;;  %6045 = vmatmul.mubr.bf16.gmra.mrb[0].mxu0 %v14841_v22  ;;  %v5268_v29 = vmax.f32 %v4987_v9, %v5244_v55  ;;  %v5245_v40 = vmax.f32 %v5221_v12, 0.0 }
 0x42b   :  { %6302 = vmatmul.mubr.bf16.gmra.mrb[0].mxu1 %v14841_v22  ;;  %10395 = vmatprep.mubr.msk.bf16.mxu0 %vm286_vm0, %v14848_v5 }
 0x42c   :  { %10417 = vmatprep.mubr.msk.bf16.mxu1 %vm286_vm0, %v14848_v5  ;;  %v5269_v28 = vmax.f32 %v4988_v11, %v5245_v40 }
 0x42d   :  { %v4906_v25 = vpop.f32.mrb[152].mxu0  ;;  %v5163_v51 = vpop.f32.mrb[152].mxu1 }
 0x42e   :  { %v4965_v18 = vadd.f32 %v4906_v25, %v12417_v39  ;;  %v4908_v20 = vpop.f32.mrb[153].mxu0  ;;  %v5287_v12 = vmax.f32 %v5268_v29, %v5269_v28  ;;  %v5222_v63 = vadd.f32 %v5163_v51, %v12417_v39  ;;  %v5165_v58 = vpop.f32.mrb[153].mxu1  ;;  %v14863_v29 = vld [vmem:[%s16812_s1 + $0x90] ss:$8 sps:$4 sm:$0xff]  }
 0x42f   :  { %v4909_v9 = vpop.f32.mrb[154].mxu0  ;;  %v5166_v16 = vpop.f32.mrb[154].mxu1 }
 0x430   :  { %v4989_v33 = vmax.f32 %v4965_v18, 0.0  ;;  %v4966_v13 = vadd.f32 %v4909_v9, %v12417_v39  ;;  %v4911_v55 = vpop.f32.mrb[155].mxu0  ;;  %v5246_v30 = vmax.f32 %v5222_v63, 0.0  ;;  %v5223_v14 = vadd.f32 %v5166_v16, %v12417_v39  ;;  %v5168_v48 = vpop.f32.mrb[155].mxu1  ;;  %v14870_v18 = vld [vmem:[%s16812_s1 + $0xa4] ss:$8 sps:$4 sm:$0xff]  }
 0x431   :  { %v14858_v11 = vpack.c.bf16 %v5287_v12, %v5286_v21 }
 0x432   :  { %v4990_v40 = vmax.f32 %v4966_v13, 0.0  ;;  %6053 = vmatmul.mubr.bf16.gmra.mrb[4].mxu0 %v14863_v29  ;;  %v5270_v28 = vmax.f32 %v4989_v33, %v5246_v30  ;;  %v5247_v25 = vmax.f32 %v5223_v14, 0.0 }
 0x433   :  { %16964 = vst [vmem:[#allocation36_spill] sm:$0xff] %v14858_v11  ;;  %6310 = vmatmul.mubr.bf16.gmra.mrb[4].mxu1 %v14863_v29  ;;  %10396 = vmatprep.mubr.msk.bf16.mxu0 %vm286_vm0, %v14870_v18 }
 0x434   :  { %10418 = vmatprep.mubr.msk.bf16.mxu1 %vm286_vm0, %v14870_v18  ;;  %v5271_v48 = vmax.f32 %v4990_v40, %v5247_v25  ;;  %v14883_v25 = vld [vmem:[%s16812_s1 + $0xa0] ss:$8 sps:$4 sm:$0xff]  }
 0x435   :  { %v4914_v21 = vpop.f32.mrb[156].mxu0  ;;  %v5171_v20 = vpop.f32.mrb[156].mxu1 }
 0x436   :  { %v4967_v51 = vadd.f32 %v4914_v21, %v12417_v39  ;;  %v4916_v30 = vpop.f32.mrb[157].mxu0  ;;  %v5288_v14 = vmax.f32 %v5270_v28, %v5271_v48  ;;  %v5224_v12 = vadd.f32 %v5171_v20, %v12417_v39  ;;  %v5173_v63 = vpop.f32.mrb[157].mxu1  ;;  %v14890_v21 = vld [vmem:[%s16812_s1 + $0xb4] ss:$8 sps:$4 sm:$0xff]  }
 0x437   :  { %v4917_v58 = vpop.f32.mrb[158].mxu0  ;;  %v5174_v13 = vpop.f32.mrb[158].mxu1 }
 0x438   :  { %v4991_v9 = vmax.f32 %v4967_v51, 0.0  ;;  %v4968_v33 = vadd.f32 %v4917_v58, %v12417_v39  ;;  %v4919_v16 = vpop.f32.mrb[159].mxu0  ;;  %v5248_v55 = vmax.f32 %v5224_v12, 0.0  ;;  %v5225_v11 = vadd.f32 %v5174_v13, %v12417_v39  ;;  %v5176_v4 = vpop.f32.mrb[159].mxu1 }
 0x43a   :  { %v4992_v40 = vmax.f32 %v4968_v33, 0.0  ;;  %6061 = vmatmul.mubr.bf16.gmra.mrb[8].mxu0 %v14883_v25  ;;  %v5272_v28 = vmax.f32 %v4991_v9, %v5248_v55  ;;  %v5249_v48 = vmax.f32 %v5225_v11, 0.0 }
 0x43b   :  { %6318 = vmatmul.mubr.bf16.gmra.mrb[8].mxu1 %v14883_v25  ;;  %10397 = vmatprep.mubr.msk.bf16.mxu0 %vm286_vm0, %v14890_v21 }
 0x43c   :  { %10419 = vmatprep.mubr.msk.bf16.mxu1 %vm286_vm0, %v14890_v21  ;;  %v5273_v4 = vmax.f32 %v4992_v40, %v5249_v48 }
 0x43d   :  { %v4922_v51 = vpop.f32.mrb[160].mxu0  ;;  %v5179_v30 = vpop.f32.mrb[160].mxu1 }
 0x43e   :  { %v4969_v20 = vadd.f32 %v4922_v51, %v12417_v39  ;;  %v4924_v12 = vpop.f32.mrb[161].mxu0  ;;  %v5289_v11 = vmax.f32 %v5272_v28, %v5273_v4  ;;  %v5226_v63 = vadd.f32 %v5179_v30, %v12417_v39  ;;  %v5181_v58 = vpop.f32.mrb[161].mxu1  ;;  %v14905_v28 = vld [vmem:[%s16812_s1 + $0xb0] ss:$8 sps:$4 sm:$0xff]  }
 0x43f   :  { %v4925_v9 = vpop.f32.mrb[162].mxu0  ;;  %v5182_v16 = vpop.f32.mrb[162].mxu1 }
 0x440   :  { %v4993_v33 = vmax.f32 %v4969_v20, 0.0  ;;  %v4970_v13 = vadd.f32 %v4925_v9, %v12417_v39  ;;  %v4927_v55 = vpop.f32.mrb[163].mxu0  ;;  %v5250_v27 = vmax.f32 %v5226_v63, 0.0  ;;  %v5227_v59 = vadd.f32 %v5182_v16, %v12417_v39  ;;  %v5184_v2 = vpop.f32.mrb[163].mxu1 }
 0x441   :  { %v14900_v40 = vpack.c.bf16 %v5289_v11, %v5288_v14 }
 0x442   :  { %v4994_v48 = vmax.f32 %v4970_v13, 0.0  ;;  %6069 = vmatmul.mubr.bf16.gmra.mrb[12].mxu0 %v14905_v28  ;;  %v5274_v4 = vmax.f32 %v4993_v33, %v5250_v27  ;;  %v5251_v51 = vmax.f32 %v5227_v59, 0.0 }
 0x443   :  { %16965 = vst [vmem:[#allocation37_spill] sm:$0xff] %v14900_v40  ;;  %6326 = vmatmul.mubr.bf16.gmra.mrb[12].mxu1 %v14905_v28  ;;  %10430 = vmatprep.mubr.msk.bf16.mxu0 %vm286_vm0, %v14574_v60 }
 0x444   :  { %10452 = vmatprep.mubr.msk.bf16.mxu1 %vm286_vm0, %v14574_v60  ;;  %v5275_v2 = vmax.f32 %v4994_v48, %v5251_v51 }
 0x445   :  { %v4930_v14 = vpop.f32.mrb[164].mxu0  ;;  %v5187_v30 = vpop.f32.mrb[164].mxu1 }
 0x446   :  { %v4971_v20 = vadd.f32 %v4930_v14, %v12417_v39  ;;  %v4932_v12 = vpop.f32.mrb[165].mxu0  ;;  %v5290_v11 = vmax.f32 %v5274_v4, %v5275_v2  ;;  %v5228_v63 = vadd.f32 %v5187_v30, %v12417_v39  ;;  %v5189_v58 = vpop.f32.mrb[165].mxu1 }
 0x447   :  { %v4933_v27 = vpop.f32.mrb[166].mxu0  ;;  %v5190_v33 = vpop.f32.mrb[166].mxu1 }
 0x448   :  { %v4995_v59 = vmax.f32 %v4971_v20, 0.0  ;;  %v4972_v9 = vadd.f32 %v4933_v27, %v12417_v39  ;;  %v4935_v13 = vpop.f32.mrb[167].mxu0  ;;  %v5252_v16 = vmax.f32 %v5228_v63, 0.0  ;;  %v5229_v55 = vadd.f32 %v5190_v33, %v12417_v39  ;;  %v5192_v60 = vpop.f32.mrb[167].mxu1 }
 0x44a   :  { %v4996_v48 = vmax.f32 %v4972_v9, 0.0  ;;  %6543 = vmatmul.mubr.bf16.vlgmr.msra.gmra.mrb[16].mxu0 %v14593_v45  ;;  %v5276_v51 = vmax.f32 %v4995_v59, %v5252_v16  ;;  %v5253_v14 = vmax.f32 %v5229_v55, 0.0 }
 0x44b   :  { %6800 = vmatmul.mubr.bf16.vlgmr.msra.gmra.mrb[16].mxu1 %v14593_v45  ;;  %10587 = vmatpush3.bf16.msra.mxu0 %v12516_v52 }
 0x44c   :  { %7297 = vmatpush1.bf16.msra.mxu1 %v13250_v37  ;;  %10588 = vmatprep.subr.bf16.mxu0 %v12866_v26  ;;  %v5277_v4 = vmax.f32 %v4996_v48, %v5253_v14 }
 0x44d   :  { %v4938_v2 = vpop.f32.mrb[168].mxu0  ;;  %7298 = vmatprep.subr.bf16.mxu1 %v16941_v54  ;;  %10431 = vmatprep.mubr.msk.bf16.mxu0 %vm286_vm0, %v14604_v7  ;;  %v5195_v30 = vpop.f32.mrb[168].mxu1 }
 0x44e   :  { %v4973_v20 = vadd.f32 %v4938_v2, %v12417_v39  ;;  %v4940_v12 = vpop.f32.mrb[169].mxu0  ;;  %10453 = vmatprep.mubr.msk.bf16.mxu1 %vm286_vm0, %v14604_v7  ;;  %v5291_v45 = vmax.f32 %v5276_v51, %v5277_v4  ;;  %v5230_v52 = vadd.f32 %v5195_v30, %v12417_v39  ;;  %v5197_v63 = vpop.f32.mrb[169].mxu1 }
 0x44f   :  { %10589 = vmatpush3.bf16.msra.mxu0 %v12559_v44  ;;  %v4941_v58 = vpop.f32.mrb[170].mxu0  ;;  %v5198_v9 = vpop.f32.mrb[170].mxu1 }
 0x450   :  { %v4997_v27 = vmax.f32 %v4973_v20, 0.0  ;;  %7299 = vmatpush1.bf16.msra.mxu1 %v13307_v49  ;;  %v4974_v59 = vadd.f32 %v4941_v58, %v12417_v39  ;;  %10590 = vmatprep.subr.bf16.mxu0 %v12924_v24  ;;  %v4943_v33 = vpop.f32.mrb[171].mxu0  ;;  %v5254_v13 = vmax.f32 %v5230_v52, 0.0  ;;  %v5231_v16 = vadd.f32 %v5198_v9, %v12417_v39  ;;  %v5200_v7 = vpop.f32.mrb[171].mxu1 }
 0x451   :  { %7300 = vmatprep.subr.bf16.mxu1 %v16941_v54  ;;  %v14935_v55 = vpack.c.bf16 %v5291_v45, %v5290_v11 }
 0x452   :  { %v4998_v60 = vmax.f32 %v4974_v59, 0.0  ;;  %6551 = vmatmul.mubr.bf16.gmra.mrb[20].mxu0 %v14630_v35  ;;  %v5278_v44 = vmax.f32 %v4997_v27, %v5254_v13  ;;  %v5255_v48 = vmax.f32 %v5231_v16, 0.0 }
 0x453   :  { %16966 = vst [vmem:[#allocation38_spill] sm:$0xff] %v14935_v55  ;;  %6808 = vmatmul.mubr.bf16.gmra.mrb[20].mxu1 %v14630_v35  ;;  %10591 = vmatpush3.bf16.msra.mxu0 %v12601_v41 }
 0x454   :  { %7301 = vmatpush1.bf16.msra.mxu1 %v13358_v56  ;;  %10592 = vmatprep.subr.bf16.mxu0 %v13004_v15  ;;  %v5279_v51 = vmax.f32 %v4998_v60, %v5255_v48 }
 0x455   :  { %v4946_v14 = vpop.f32.mrb[172].mxu0  ;;  %7302 = vmatprep.subr.bf16.mxu1 %v16941_v54  ;;  %10432 = vmatprep.mubr.msk.bf16.mxu0 %vm286_vm0, %v14644_v31  ;;  %v5203_v4 = vpop.f32.mrb[172].mxu1 }
 0x456   :  { %v4975_v11 = vadd.f32 %v4946_v14, %v12417_v39  ;;  %v4948_v2 = vpop.f32.mrb[173].mxu0  ;;  %10454 = vmatprep.mubr.msk.bf16.mxu1 %vm286_vm0, %v14644_v31  ;;  %v5292_v35 = vmax.f32 %v5278_v44, %v5279_v51  ;;  %v5232_v41 = vadd.f32 %v5203_v4, %v12417_v39  ;;  %v5205_v20 = vpop.f32.mrb[173].mxu1 }
 0x457   :  { %10593 = vmatpush3.bf16.msra.mxu0 %v12643_v47  ;;  %v4949_v30 = vpop.f32.mrb[174].mxu0  ;;  %v5206_v52 = vpop.f32.mrb[174].mxu1 }
 0x458   :  { %v4999_v12 = vmax.f32 %v4975_v11, 0.0  ;;  %7303 = vmatpush1.bf16.msra.mxu1 %v13381_v17  ;;  %v4976_v45 = vadd.f32 %v4949_v30, %v12417_v39  ;;  %10594 = vmatprep.subr.bf16.mxu0 %v13075_v38  ;;  %v4951_v63 = vpop.f32.mrb[175].mxu0  ;;  %v5256_v58 = vmax.f32 %v5232_v41, 0.0  ;;  %v5233_v27 = vadd.f32 %v5206_v52, %v12417_v39  ;;  %v5208_v31 = vpop.f32.mrb[175].mxu1  ;;  %v16969_v52 = vld [vmem:[#allocation8_spill] sm:$0xff] }
 0x459   :  { %7304 = vmatprep.subr.bf16.mxu1 %v16941_v54  ;;  %v16970_v63 = vld [vmem:[#allocation6_spill] sm:$0xff] }
 0x45a   :  { %v5000_v59 = vmax.f32 %v4976_v45, 0.0  ;;  %6559 = vmatmul.mubr.bf16.gmra.mrb[24].mxu0 %v14669_v46  ;;  %v5280_v47 = vmax.f32 %v4999_v12, %v5256_v58  ;;  %v5257_v9 = vmax.f32 %v5233_v27, 0.0  ;;  %v16968_v45 = vld [vmem:[#allocation4_spill] sm:$0xff] }
 0x45b   :  { %6816 = vmatmul.mubr.bf16.gmra.mrb[24].mxu1 %v14669_v46  ;;  %10595 = vmatpush3.bf16.msra.mxu0 %v12691_v62 }
 0x45c   :  { %7305 = vmatpush1.bf16.msra.mxu1 %v13403_v3  ;;  %10596 = vmatprep.subr.bf16.mxu0 %v13118_v53  ;;  %v5281_v33 = vmax.f32 %v5000_v59, %v5257_v9 }
 0x45d   :  { %v5420_v13 = vpop.f32.mrb[176].mxu0  ;;  %7306 = vmatprep.subr.bf16.mxu1 %v16941_v54  ;;  %10433 = vmatprep.mubr.msk.bf16.mxu0 %vm286_vm0, %v14681_v8  ;;  %v5677_v7 = vpop.f32.mrb[176].mxu1 }
 0x45e   :  { %v5515_v16 = vadd.f32 %v5420_v13, %v12417_v39  ;;  %v5422_v60 = vpop.f32.mrb[177].mxu0  ;;  %10455 = vmatprep.mubr.msk.bf16.mxu1 %vm286_vm0, %v14681_v8  ;;  %v5293_v46 = vmax.f32 %v5280_v47, %v5281_v33  ;;  %v5772_v62 = vadd.f32 %v5677_v7, %v12417_v39  ;;  %v5679_v44 = vpop.f32.mrb[177].mxu1  ;;  %v16971_v33 = vld [vmem:[#allocation5_spill] sm:$0xff] }
 0x45f   :  { %10597 = vmatpush3.bf16.msra.mxu0 %v12748_v32  ;;  %v5423_v48 = vpop.f32.mrb[178].mxu0  ;;  %v5680_v11 = vpop.f32.mrb[178].mxu1  ;;  %v16972_v7 = vld [vmem:[#allocation9_spill] sm:$0xff] }
 0x460   :  { %v5539_v51 = vmax.f32 %v5515_v16, 0.0  ;;  %7307 = vmatpush1.bf16.msra.mxu1 %v13425_v36  ;;  %v5516_v14 = vadd.f32 %v5423_v48, %v12417_v39  ;;  %10598 = vmatprep.subr.bf16.mxu0 %v13160_v23  ;;  %v5425_v4 = vpop.f32.mrb[179].mxu0  ;;  %v5796_v2 = vmax.f32 %v5772_v62, 0.0  ;;  %v5773_v41 = vadd.f32 %v5680_v11, %v12417_v39  ;;  %v5682_v8 = vpop.f32.mrb[179].mxu1 }
 0x461   :  { %7308 = vmatprep.subr.bf16.mxu1 %v16941_v54  ;;  %v14973_v20 = vpack.c.bf16 %v5293_v46, %v5292_v35  ;;  %v16973_v4 = vld [vmem:[#allocation10_spill] sm:$0xff] }
 0x462   :  { %v5540_v30 = vmax.f32 %v5516_v14, 0.0  ;;  %6567 = vmatmul.mubr.bf16.gmra.mrb[28].mxu0 %v14707_v34  ;;  %v5820_v32 = vmax.f32 %v5539_v51, %v5796_v2  ;;  %v5797_v12 = vmax.f32 %v5773_v41, 0.0 }
 0x463   :  { %16967 = vst [vmem:[#allocation39_spill] sm:$0xff] %v14973_v20  ;;  %6824 = vmatmul.mubr.bf16.gmra.mrb[28].mxu1 %v14707_v34  ;;  %10599 = vmatpush3.bf16.msra.mxu0 %v16968_v45 }
 0x464   :  { %7309 = vmatpush1.bf16.msra.mxu1 %v16969_v52  ;;  %10600 = vmatprep.subr.bf16.mxu0 %v16970_v63  ;;  %v5821_v58 = vmax.f32 %v5540_v30, %v5797_v12 }
 0x465   :  { %v5428_v27 = vpop.f32.mrb[180].mxu0  ;;  %7310 = vmatprep.subr.bf16.mxu1 %v16941_v54  ;;  %10434 = vmatprep.mubr.msk.bf16.mxu0 %vm286_vm0, %v14721_v42  ;;  %v5685_v31 = vpop.f32.mrb[180].mxu1 }
 0x466   :  { %v5517_v35 = vadd.f32 %v5428_v27, %v12417_v39  ;;  %v5430_v59 = vpop.f32.mrb[181].mxu0  ;;  %10456 = vmatprep.mubr.msk.bf16.mxu1 %vm286_vm0, %v14721_v42  ;;  %v5844_v34 = vmax.f32 %v5820_v32, %v5821_v58  ;;  %v5774_v47 = vadd.f32 %v5685_v31, %v12417_v39  ;;  %v5687_v9 = vpop.f32.mrb[181].mxu1  ;;  %v16974_v31 = vld [vmem:[#allocation11_spill] sm:$0xff] }
 0x467   :  { %10601 = vmatpush3.bf16.msra.mxu0 %v16971_v33  ;;  %v5431_v13 = vpop.f32.mrb[182].mxu0  ;;  %v5688_v46 = vpop.f32.mrb[182].mxu1 }
 0x468   :  { %v5541_v16 = vmax.f32 %v5517_v35, 0.0  ;;  %7311 = vmatpush1.bf16.msra.mxu1 %v16972_v7  ;;  %v5518_v60 = vadd.f32 %v5431_v13, %v12417_v39  ;;  %10650 = vmatprep.subr.bf16.mxu0 %v13160_v23  ;;  %v5433_v62 = vpop.f32.mrb[183].mxu0  ;;  %v5798_v44 = vmax.f32 %v5774_v47, 0.0  ;;  %v5775_v48 = vadd.f32 %v5688_v46, %v12417_v39  ;;  %v5690_v42 = vpop.f32.mrb[183].mxu1 }
 0x469   :  { %7312 = vmatprep.subr.bf16.mxu1 %v16941_v54 }
 0x46a   :  { %v5542_v51 = vmax.f32 %v5518_v60, 0.0  ;;  %6575 = vmatmul.mubr.bf16.gmra.mrb[32].mxu0 %v14746_v61  ;;  %v5822_v14 = vmax.f32 %v5541_v16, %v5798_v44  ;;  %v5799_v11 = vmax.f32 %v5775_v48, 0.0  ;;  %v16976_v48 = vld [vmem:[#allocation12_spill] sm:$0xff] }
 0x46b   :  { %6832 = vmatmul.mubr.bf16.gmra.mrb[32].mxu1 %v14746_v61  ;;  %10435 = vmatprep.mubr.msk.bf16.mxu0 %vm286_vm0, %v14758_v43 }
 0x46c   :  { %7313 = vmatpush1.bf16.msra.mxu1 %v16973_v4  ;;  %10457 = vmatprep.mubr.msk.bf16.mxu1 %vm286_vm0, %v14758_v43  ;;  %v5823_v2 = vmax.f32 %v5542_v51, %v5799_v11 }
 0x46d   :  { %v5436_v41 = vpop.f32.mrb[184].mxu0  ;;  %7314 = vmatprep.subr.bf16.mxu1 %v16941_v54  ;;  %v5693_v30 = vpop.f32.mrb[184].mxu1 }
 0x46e   :  { %v5519_v8 = vadd.f32 %v5436_v41, %v12417_v39  ;;  %v5438_v32 = vpop.f32.mrb[185].mxu0  ;;  %v5845_v12 = vmax.f32 %v5822_v14, %v5823_v2  ;;  %v5776_v58 = vadd.f32 %v5693_v30, %v12417_v39  ;;  %v5695_v61 = vpop.f32.mrb[185].mxu1 }
 0x46f   :  { %v5439_v27 = vpop.f32.mrb[186].mxu0  ;;  %v5696_v47 = vpop.f32.mrb[186].mxu1  ;;  %v16977_v32 = vld [vmem:[#allocation13_spill] sm:$0xff] }
 0x470   :  { %v5543_v35 = vmax.f32 %v5519_v8, 0.0  ;;  %7315 = vmatpush1.bf16.msra.mxu1 %v16974_v31  ;;  %v5520_v59 = vadd.f32 %v5439_v27, %v12417_v39  ;;  %v5441_v43 = vpop.f32.mrb[187].mxu0  ;;  %v5800_v9 = vmax.f32 %v5776_v58, 0.0  ;;  %v5777_v13 = vadd.f32 %v5696_v47, %v12417_v39  ;;  %v5698_v16 = vpop.f32.mrb[187].mxu1 }
 0x471   :  { %7316 = vmatprep.subr.bf16.mxu1 %v16941_v54  ;;  %v15007_v60 = vpack.c.bf16 %v5845_v12, %v5844_v34 }
 0x472   :  { %v5544_v46 = vmax.f32 %v5520_v59, 0.0  ;;  %6583 = vmatmul.mubr.bf16.gmra.mrb[36].mxu0 %v14778_v57  ;;  %v5824_v62 = vmax.f32 %v5543_v35, %v5800_v9  ;;  %v5801_v44 = vmax.f32 %v5777_v13, 0.0  ;;  %v16978_v9 = vld [vmem:[#allocation14_spill] sm:$0xff] }
 0x473   :  { %16975 = vst [vmem:[#allocation4_spill] sm:$0xff] %v15007_v60  ;;  %6840 = vmatmul.mubr.bf16.gmra.mrb[36].mxu1 %v14778_v57  ;;  %10436 = vmatprep.mubr.msk.bf16.mxu0 %vm286_vm0, %v14786_v0 }
 0x474   :  { %7317 = vmatpush1.bf16.msra.mxu1 %v16976_v48  ;;  %10458 = vmatprep.mubr.msk.bf16.mxu1 %vm286_vm0, %v14786_v0  ;;  %v5825_v42 = vmax.f32 %v5544_v46, %v5801_v44 }
 0x475   :  { %v5444_v51 = vpop.f32.mrb[188].mxu0  ;;  %7318 = vmatprep.subr.bf16.mxu1 %v16941_v54  ;;  %v5701_v14 = vpop.f32.mrb[188].mxu1 }
 0x476   :  { %v5521_v34 = vadd.f32 %v5444_v51, %v12417_v39  ;;  %v5446_v11 = vpop.f32.mrb[189].mxu0  ;;  %v5846_v2 = vmax.f32 %v5824_v62, %v5825_v42  ;;  %v5778_v41 = vadd.f32 %v5701_v14, %v12417_v39  ;;  %v5703_v57 = vpop.f32.mrb[189].mxu1 }
 0x477   :  { %v5447_v8 = vpop.f32.mrb[190].mxu0  ;;  %v5704_v58 = vpop.f32.mrb[190].mxu1  ;;  %v16979_v11 = vld [vmem:[#allocation15_spill] sm:$0xff] }
 0x478   :  { %v5545_v30 = vmax.f32 %v5521_v34, 0.0  ;;  %7319 = vmatpush1.bf16.msra.mxu1 %v16977_v32  ;;  %v5522_v12 = vadd.f32 %v5447_v8, %v12417_v39  ;;  %v5449_v0 = vpop.f32.mrb[191].mxu0  ;;  %v5802_v61 = vmax.f32 %v5778_v41, 0.0  ;;  %v5779_v27 = vadd.f32 %v5704_v58, %v12417_v39  ;;  %v5706_v35 = vpop.f32.mrb[191].mxu1 }
 0x479   :  { %7320 = vmatprep.subr.bf16.mxu1 %v16941_v54 }
 0x47a   :  { %v5546_v59 = vmax.f32 %v5522_v12, 0.0  ;;  %6591 = vmatmul.mubr.bf16.gmra.mrb[40].mxu0 %v14799_v10  ;;  %v5826_v47 = vmax.f32 %v5545_v30, %v5802_v61  ;;  %v5803_v43 = vmax.f32 %v5779_v27, 0.0 }
 0x47b   :  { %6848 = vmatmul.mubr.bf16.gmra.mrb[40].mxu1 %v14799_v10  ;;  %10437 = vmatprep.mubr.msk.bf16.mxu0 %vm286_vm0, %v14806_v19 }
 0x47c   :  { %7321 = vmatpush1.bf16.msra.mxu1 %v16978_v9  ;;  %10459 = vmatprep.mubr.msk.bf16.mxu1 %vm286_vm0, %v14806_v19  ;;  %v5827_v13 = vmax.f32 %v5546_v59, %v5803_v43 }
 0x47d   :  { %v5452_v16 = vpop.f32.mrb[192].mxu0  ;;  %7322 = vmatprep.subr.bf16.mxu1 %v16941_v54  ;;  %v5709_v62 = vpop.f32.mrb[192].mxu1 }
 0x47e   :  { %v5523_v46 = vadd.f32 %v5452_v16, %v12417_v39  ;;  %v5454_v44 = vpop.f32.mrb[193].mxu0  ;;  %v5847_v42 = vmax.f32 %v5826_v47, %v5827_v13  ;;  %v5780_v51 = vadd.f32 %v5709_v62, %v12417_v39  ;;  %v5711_v10 = vpop.f32.mrb[193].mxu1  ;;  %v97_v13 = vld [vmem:[%s16814_s4 + $0x8] sm:$0xff] }
 0x47f   :  { %v5455_v34 = vpop.f32.mrb[194].mxu0  ;;  %v5712_v57 = vpop.f32.mrb[194].mxu1  ;;  %7400 = vperm.xlu1 %11220, %v97_v13  }
 0x480   :  { %v5547_v14 = vmax.f32 %v5523_v46, 0.0  ;;  %7323 = vmatpush1.bf16.msra.mxu1 %v16979_v11  ;;  %v5524_v41 = vadd.f32 %v5455_v34, %v12417_v39  ;;  %v5457_v19 = vpop.f32.mrb[195].mxu0  ;;  %v5804_v8 = vmax.f32 %v5780_v51, 0.0  ;;  %v5781_v30 = vadd.f32 %v5712_v57, %v12417_v39  ;;  %v5714_v12 = vpop.f32.mrb[195].mxu1 }
 0x481   :  { %7562 = vmatprep.subr.bf16.mxu1 %v16941_v54  ;;  %v15037_v58 = vpack.c.bf16 %v5847_v42, %v5846_v2 }
 0x482   :  { %v5548_v0 = vmax.f32 %v5524_v41, 0.0  ;;  %6599 = vmatmul.mubr.bf16.gmra.mrb[44].mxu0 %v14821_v6  ;;  %v5828_v61 = vmax.f32 %v5547_v14, %v5804_v8  ;;  %v5805_v27 = vmax.f32 %v5781_v30, 0.0 }
 0x483   :  { %16980 = vst [vmem:[#allocation8_spill] sm:$0xff] %v15037_v58  ;;  %6856 = vmatmul.mubr.bf16.gmra.mrb[44].mxu1 %v14821_v6  ;;  %10438 = vmatprep.mubr.msk.bf16.mxu0 %vm286_vm0, %v14828_v1 }
 0x484   :  { %10460 = vmatprep.mubr.msk.bf16.mxu1 %vm286_vm0, %v14828_v1  ;;  %v5829_v35 = vmax.f32 %v5548_v0, %v5805_v27 }
 0x485   :  { %v5460_v59 = vpop.f32.mrb[196].mxu0  ;;  %v5717_v43 = vpop.f32.mrb[196].mxu1 }
 0x486   :  { %v5525_v47 = vadd.f32 %v5460_v59, %v12417_v39  ;;  %v5462_v2 = vpop.f32.mrb[197].mxu0  ;;  %v5848_v16 = vmax.f32 %v5828_v61, %v5829_v35  ;;  %v5782_v46 = vadd.f32 %v5717_v43, %v12417_v39  ;;  %v5719_v6 = vpop.f32.mrb[197].mxu1 }
 0x487   :  { %v5463_v62 = vpop.f32.mrb[198].mxu0  ;;  %v5720_v1 = vpop.f32.mrb[198].mxu1 }
 0x488   :  { %v5549_v44 = vmax.f32 %v5525_v47, 0.0  ;;  %v5526_v42 = vadd.f32 %v5463_v62, %v12417_v39  ;;  %v5465_v51 = vpop.f32.mrb[199].mxu0  ;;  %v5806_v10 = vmax.f32 %v5782_v46, 0.0  ;;  %v5783_v34 = vadd.f32 %v5720_v1, %v12417_v39  ;;  %v5722_v14 = vpop.f32.mrb[199].mxu1 }
 0x48a   :  { %v5550_v41 = vmax.f32 %v5526_v42, 0.0  ;;  %6607 = vmatmul.mubr.bf16.gmra.mrb[48].mxu0 %v14841_v22  ;;  %v5830_v57 = vmax.f32 %v5549_v44, %v5806_v10  ;;  %v5807_v19 = vmax.f32 %v5783_v34, 0.0 }
 0x48b   :  { %6864 = vmatmul.mubr.bf16.gmra.mrb[48].mxu1 %v14841_v22  ;;  %10439 = vmatprep.mubr.msk.bf16.mxu0 %vm286_vm0, %v14848_v5 }
 0x48c   :  { %10461 = vmatprep.mubr.msk.bf16.mxu1 %vm286_vm0, %v14848_v5  ;;  %v5831_v8 = vmax.f32 %v5550_v41, %v5807_v19 }
 0x48d   :  { %v5468_v30 = vpop.f32.mrb[200].mxu0  ;;  %v5725_v0 = vpop.f32.mrb[200].mxu1 }
 0x48e   :  { %v5527_v12 = vadd.f32 %v5468_v30, %v12417_v39  ;;  %v5470_v61 = vpop.f32.mrb[201].mxu0  ;;  %v5849_v27 = vmax.f32 %v5830_v57, %v5831_v8  ;;  %v5784_v35 = vadd.f32 %v5725_v0, %v12417_v39  ;;  %v5727_v59 = vpop.f32.mrb[201].mxu1 }
 0x48f   :  { %v5471_v47 = vpop.f32.mrb[202].mxu0  ;;  %v5728_v2 = vpop.f32.mrb[202].mxu1 }
 0x490   :  { %v5551_v43 = vmax.f32 %v5527_v12, 0.0  ;;  %v5528_v22 = vadd.f32 %v5471_v47, %v12417_v39  ;;  %v5473_v13 = vpop.f32.mrb[203].mxu0  ;;  %v5808_v46 = vmax.f32 %v5784_v35, 0.0  ;;  %v5785_v6 = vadd.f32 %v5728_v2, %v12417_v39  ;;  %v5730_v5 = vpop.f32.mrb[203].mxu1 }
 0x491   :  { %v15062_v62 = vpack.c.bf16 %v5849_v27, %v5848_v16 }
 0x492   :  { %v5552_v44 = vmax.f32 %v5528_v22, 0.0  ;;  %6615 = vmatmul.mubr.bf16.gmra.mrb[52].mxu0 %v14863_v29  ;;  %v5832_v42 = vmax.f32 %v5551_v43, %v5808_v46  ;;  %v5809_v1 = vmax.f32 %v5785_v6, 0.0 }
 0x493   :  { %16981 = vst [vmem:[#allocation6_spill] sm:$0xff] %v15062_v62  ;;  %6872 = vmatmul.mubr.bf16.gmra.mrb[52].mxu1 %v14863_v29  ;;  %10440 = vmatprep.mubr.msk.bf16.mxu0 %vm286_vm0, %v14870_v18 }
 0x494   :  { %10462 = vmatprep.mubr.msk.bf16.mxu1 %vm286_vm0, %v14870_v18  ;;  %v5833_v51 = vmax.f32 %v5552_v44, %v5809_v1 }
 0x495   :  { %v5476_v10 = vpop.f32.mrb[204].mxu0  ;;  %v5733_v14 = vpop.f32.mrb[204].mxu1 }
 0x496   :  { %v5529_v34 = vadd.f32 %v5476_v10, %v12417_v39  ;;  %v5478_v16 = vpop.f32.mrb[205].mxu0  ;;  %v5850_v41 = vmax.f32 %v5832_v42, %v5833_v51  ;;  %v5786_v57 = vadd.f32 %v5733_v14, %v12417_v39  ;;  %v5735_v19 = vpop.f32.mrb[205].mxu1 }
 0x497   :  { %v5479_v8 = vpop.f32.mrb[206].mxu0  ;;  %v5736_v12 = vpop.f32.mrb[206].mxu1 }
 0x498   :  { %v5553_v30 = vmax.f32 %v5529_v34, 0.0  ;;  %v5530_v29 = vadd.f32 %v5479_v8, %v12417_v39  ;;  %v5481_v0 = vpop.f32.mrb[207].mxu0  ;;  %v5810_v61 = vmax.f32 %v5786_v57, 0.0  ;;  %v5787_v27 = vadd.f32 %v5736_v12, %v12417_v39  ;;  %v5738_v18 = vpop.f32.mrb[207].mxu1  ;;  %v15091_v34 = vld [vmem:[%s16818_s3 + $0xc] ss:$16 sps:$4 sm:$0xff]  }
 0x499   :  { %16983 = vst [vmem:[#allocation9_spill] sm:$0xff] %v15091_v34 }
 0x49a   :  { %v5554_v35 = vmax.f32 %v5530_v29, 0.0  ;;  %6623 = vmatmul.mubr.bf16.gmra.mrb[56].mxu0 %v14883_v25  ;;  %v5834_v59 = vmax.f32 %v5553_v30, %v5810_v61  ;;  %v5811_v47 = vmax.f32 %v5787_v27, 0.0 }
 0x49b   :  { %6880 = vmatmul.mubr.bf16.gmra.mrb[56].mxu1 %v14883_v25  ;;  %10441 = vmatprep.mubr.msk.bf16.mxu0 %vm286_vm0, %v14890_v21  ;;  %v15085_v25 = vld [vmem:[%s16818_s3 + $0x4] ss:$16 sps:$4 sm:$0xff]  }
 0x49c   :  { %10463 = vmatprep.mubr.msk.bf16.mxu1 %vm286_vm0, %v14890_v21  ;;  %v5835_v43 = vmax.f32 %v5554_v35, %v5811_v47  ;;  %16982 = vst [vmem:[#allocation5_spill] sm:$0xff] %v15085_v25 }
 0x49d   :  { %v5484_v22 = vpop.f32.mrb[208].mxu0  ;;  %v5741_v13 = vpop.f32.mrb[208].mxu1 }
 0x49e   :  { %v5531_v2 = vadd.f32 %v5484_v22, %v12417_v39  ;;  %v5486_v46 = vpop.f32.mrb[209].mxu0  ;;  %v5851_v6 = vmax.f32 %v5834_v59, %v5835_v43  ;;  %v5788_v5 = vadd.f32 %v5741_v13, %v12417_v39  ;;  %v5743_v44 = vpop.f32.mrb[209].mxu1  ;;  %v15111_v43 = vld [vmem:[%s16818_s3 + $0x8] ss:$16 sps:$4 sm:$0xff]  }
 0x49f   :  { %v5487_v42 = vpop.f32.mrb[210].mxu0  ;;  %v5744_v21 = vpop.f32.mrb[210].mxu1 }
 0x4a0   :  { %v5555_v1 = vmax.f32 %v5531_v2, 0.0  ;;  %v5532_v51 = vadd.f32 %v5487_v42, %v12417_v39  ;;  %v5489_v10 = vpop.f32.mrb[211].mxu0  ;;  %v5812_v14 = vmax.f32 %v5788_v5, 0.0  ;;  %v5789_v16 = vadd.f32 %v5744_v21, %v12417_v39  ;;  %v5746_v57 = vpop.f32.mrb[211].mxu1  ;;  %v15118_v42 = vld [vmem:[%s16818_s3 + $0x24] ss:$16 sps:$4 sm:$0xff]  }
 0x4a1   :  { %v15094_v19 = vpack.c.bf16 %v5851_v6, %v5850_v41  ;;  %v15105_v41 = vld [vmem:[%s16818_s3] ss:$16 sps:$4 sm:$0xff]  }
 0x4a2   :  { %v5556_v8 = vmax.f32 %v5532_v51, 0.0  ;;  %6631 = vmatmul.mubr.bf16.gmra.mrb[60].mxu0 %v14905_v28  ;;  %v5836_v30 = vmax.f32 %v5555_v1, %v5812_v14  ;;  %v5813_v29 = vmax.f32 %v5789_v16, 0.0  ;;  %v15124_v51 = vld [vmem:[%s16818_s3 + $0x2c] ss:$16 sps:$4 sm:$0xff]  }
 0x4a3   :  { %16984 = vst [vmem:[#allocation10_spill] sm:$0xff] %v15094_v19  ;;  %6888 = vmatmul.mubr.bf16.gmra.mrb[60].mxu1 %v14905_v28  ;;  %7231 = vmatprep.mubr.bf16.mxu0 %v15085_v25 }
 0x4a4   :  { %10496 = vmatprep.mubr.msk.bf16.mxu1 %vm7174_vm1, %v15091_v34  ;;  %v5837_v12 = vmax.f32 %v5556_v8, %v5813_v29 }
 0x4a5   :  { %v5492_v0 = vpop.f32.mrb[212].mxu0  ;;  %v5749_v27 = vpop.f32.mrb[212].mxu1 }
 0x4a6   :  { %v5533_v61 = vadd.f32 %v5492_v0, %v12417_v39  ;;  %v5494_v18 = vpop.f32.mrb[213].mxu0  ;;  %v5852_v35 = vmax.f32 %v5836_v30, %v5837_v12  ;;  %v5790_v59 = vadd.f32 %v5749_v27, %v12417_v39  ;;  %v5751_v28 = vpop.f32.mrb[213].mxu1  ;;  %v15145_v27 = vld [vmem:[%s16818_s3 + $0x28] ss:$16 sps:$4 sm:$0xff]  }
 0x4a7   :  { %v5495_v47 = vpop.f32.mrb[214].mxu0  ;;  %v5752_v13 = vpop.f32.mrb[214].mxu1 }
 0x4a8   :  { %v5557_v22 = vmax.f32 %v5533_v61, 0.0  ;;  %v5534_v2 = vadd.f32 %v5495_v47, %v12417_v39  ;;  %v5497_v46 = vpop.f32.mrb[215].mxu0  ;;  %v5814_v6 = vmax.f32 %v5790_v59, 0.0  ;;  %v5791_v5 = vadd.f32 %v5752_v13, %v12417_v39  ;;  %v5754_v44 = vpop.f32.mrb[215].mxu1 }
 0x4aa   :  { %v5558_v1 = vmax.f32 %v5534_v2, 0.0  ;;  %7232 = vmatmul.mubr.bf16.vlgmr.msra.gmra.mrb[64].mxu0 %v15105_v41  ;;  %v5838_v21 = vmax.f32 %v5557_v22, %v5814_v6  ;;  %v5815_v10 = vmax.f32 %v5791_v5, 0.0  ;;  %v15163_v5 = vld [vmem:[%s16818_s3 + $0x4c] ss:$16 sps:$4 sm:$0xff]  }
 0x4ab   :  { %7329 = vmatmul.mubr.bf16.vlgmr.msra.gmra.mrb[64].mxu1 %v15111_v43  ;;  %10651 = vmatpush3.bf16.msra.mxu0 %v16968_v45  ;;  %v15138_v45 = vld [vmem:[%s16818_s3 + $0x20] ss:$16 sps:$4 sm:$0xff]  }
 0x4ac   :  { %7563 = vmatpush1.bf16.msra.mxu1 %v16969_v52  ;;  %10652 = vmatprep.subr.bf16.mxu0 %v16970_v63  ;;  %v5839_v14 = vmax.f32 %v5558_v1, %v5815_v10 }
 0x4ad   :  { %v5500_v16 = vpop.f32.mrb[216].mxu0  ;;  %7564 = vmatprep.subr.bf16.mxu1 %v16941_v54  ;;  %7239 = vmatprep.mubr.bf16.mxu0 %v15118_v42  ;;  %v5757_v8 = vpop.f32.mrb[216].mxu1 }
 0x4ae   :  { %v5535_v57 = vadd.f32 %v5500_v16, %v12417_v39  ;;  %v5502_v30 = vpop.f32.mrb[217].mxu0  ;;  %10497 = vmatprep.mubr.msk.bf16.mxu1 %vm7174_vm1, %v15124_v51  ;;  %v5853_v29 = vmax.f32 %v5838_v21, %v5839_v14  ;;  %v5792_v12 = vadd.f32 %v5757_v8, %v12417_v39  ;;  %v5759_v0 = vpop.f32.mrb[217].mxu1 }
 0x4af   :  { %10653 = vmatpush3.bf16.msra.mxu0 %v16971_v33  ;;  %v5503_v61 = vpop.f32.mrb[218].mxu0  ;;  %v5760_v28 = vpop.f32.mrb[218].mxu1  ;;  %v15155_v33 = vld [vmem:[%s16818_s3 + $0x44] ss:$16 sps:$4 sm:$0xff]  }
 0x4b0   :  { %v5559_v18 = vmax.f32 %v5535_v57, 0.0  ;;  %7565 = vmatpush1.bf16.msra.mxu1 %v16972_v7  ;;  %v5536_v59 = vadd.f32 %v5503_v61, %v12417_v39  ;;  %10654 = vmatprep.subr.bf16.mxu0 %v13250_v37  ;;  %v5505_v47 = vpop.f32.mrb[219].mxu0  ;;  %v5816_v22 = vmax.f32 %v5792_v12, 0.0  ;;  %v5793_v2 = vadd.f32 %v5760_v28, %v12417_v39  ;;  %v5762_v13 = vpop.f32.mrb[219].mxu1  ;;  %v15187_v12 = vld [vmem:[%s16818_s3 + $0x48] ss:$16 sps:$4 sm:$0xff]  }
 0x4b1   :  { %7566 = vmatprep.subr.bf16.mxu1 %v16941_v54  ;;  %v15157_v46 = vpack.c.bf16 %v5853_v29, %v5852_v35  ;;  %v15203_v13 = vld [vmem:[%s16818_s3 + $0x6c] ss:$16 sps:$4 sm:$0xff]  }
 0x4b2   :  { %v5560_v6 = vmax.f32 %v5536_v59, 0.0  ;;  %7240 = vmatmul.mubr.bf16.gmra.mrb[68].mxu0 %v15138_v45  ;;  %v15165_v44 = vmax.f32 %v5559_v18, %v5816_v22  ;;  %v5817_v1 = vmax.f32 %v5793_v2, 0.0 }
 0x4b3   :  { %16985 = vst [vmem:[#allocation11_spill] sm:$0xff] %v15157_v46  ;;  %7337 = vmatmul.mubr.bf16.gmra.mrb[68].mxu1 %v15145_v27  ;;  %10655 = vmatpush3.bf16.msra.mxu0 %v12844_v50  ;;  %v15179_v50 = vld [vmem:[%s16818_s3 + $0x40] ss:$16 sps:$4 sm:$0xff]  }
 0x4b4   :  { %7567 = vmatpush1.bf16.msra.mxu1 %v16973_v4  ;;  %10656 = vmatprep.subr.bf16.mxu0 %v13307_v49  ;;  %v5841_v35 = vmax.f32 %v5560_v6, %v5817_v1 }
 0x4b5   :  { %v5508_v21 = vpop.f32.mrb[220].mxu0  ;;  %7568 = vmatprep.subr.bf16.mxu1 %v16941_v54  ;;  %7247 = vmatprep.mubr.bf16.mxu0 %v15155_v33  ;;  %v5765_v14 = vpop.f32.mrb[220].mxu1 }
 0x4b6   :  { %v5537_v10 = vadd.f32 %v5508_v21, %v12417_v39  ;;  %v5510_v16 = vpop.f32.mrb[221].mxu0  ;;  %10498 = vmatprep.mubr.msk.bf16.mxu1 %vm7174_vm1, %v15163_v5  ;;  %v5854_v57 = vmax.f32 %v15165_v44, %v5841_v35  ;;  %v5794_v8 = vadd.f32 %v5765_v14, %v12417_v39  ;;  %v5767_v30 = vpop.f32.mrb[221].mxu1 }
 0x4b7   :  { %10657 = vmatpush3.bf16.msra.mxu0 %v12866_v26  ;;  %v5511_v29 = vpop.f32.mrb[222].mxu0  ;;  %v5768_v18 = vpop.f32.mrb[222].mxu1  ;;  %v15197_v26 = vld [vmem:[%s16818_s3 + $0x64] ss:$16 sps:$4 sm:$0xff]  }
 0x4b8   :  { %v5561_v0 = vmax.f32 %v5537_v10, 0.0  ;;  %7569 = vmatpush1.bf16.msra.mxu1 %v16974_v31  ;;  %v5538_v61 = vadd.f32 %v5511_v29, %v12417_v39  ;;  %10658 = vmatprep.subr.bf16.mxu0 %v13358_v56  ;;  %v5513_v59 = vpop.f32.mrb[223].mxu0  ;;  %v5818_v28 = vmax.f32 %v5794_v8, 0.0  ;;  %v5795_v47 = vadd.f32 %v5768_v18, %v12417_v39  ;;  %v5770_v22 = vpop.f32.mrb[223].mxu1 }
 0x4b9   :  { %7570 = vmatprep.subr.bf16.mxu1 %v16941_v54 }
 0x4ba   :  { %v5562_v2 = vmax.f32 %v5538_v61, 0.0  ;;  %7248 = vmatmul.mubr.bf16.gmra.mrb[72].mxu0 %v15179_v50  ;;  %v5842_v6 = vmax.f32 %v5561_v0, %v5818_v28  ;;  %v5819_v44 = vmax.f32 %v5795_v47, 0.0  ;;  %v15224_v0 = vld [vmem:[%s16818_s3 + $0x68] ss:$16 sps:$4 sm:$0xff]  }
 0x4bb   :  { %7345 = vmatmul.mubr.bf16.gmra.mrb[72].mxu1 %v15187_v12  ;;  %10659 = vmatpush3.bf16.msra.mxu0 %v12924_v24  ;;  %v15217_v24 = vld [vmem:[%s16818_s3 + $0x60] ss:$16 sps:$4 sm:$0xff]  }
 0x4bc   :  { %7571 = vmatpush1.bf16.msra.mxu1 %v16976_v48  ;;  %10660 = vmatprep.subr.bf16.mxu0 %v13381_v17  ;;  %v5843_v1 = vmax.f32 %v5562_v2, %v5819_v44 }
 0x4bd   :  { %v5982_v35 = vpop.f32.mrb[224].mxu0  ;;  %7572 = vmatprep.subr.bf16.mxu1 %v16941_v54  ;;  %7255 = vmatprep.mubr.bf16.mxu0 %v15197_v26  ;;  %v6239_v10 = vpop.f32.mrb[224].mxu1 }
 0x4be   :  { %v6077_v21 = vadd.f32 %v5982_v35, %v12417_v39  ;;  %v5984_v14 = vpop.f32.mrb[225].mxu0  ;;  %10499 = vmatprep.mubr.msk.bf16.mxu1 %vm7174_vm1, %v15203_v13  ;;  %v5855_v16 = vmax.f32 %v5842_v6, %v5843_v1  ;;  %v6334_v8 = vadd.f32 %v6239_v10, %v12417_v39  ;;  %v6241_v30 = vpop.f32.mrb[225].mxu1  ;;  %v15242_v1 = vld [vmem:[%s16818_s3 + $0x8c] ss:$16 sps:$4 sm:$0xff]  }
 0x4bf   :  { %10661 = vmatpush3.bf16.msra.mxu0 %v13004_v15  ;;  %v5985_v29 = vpop.f32.mrb[226].mxu0  ;;  %v6242_v59 = vpop.f32.mrb[226].mxu1  ;;  %v15234_v15 = vld [vmem:[%s16818_s3 + $0x84] ss:$16 sps:$4 sm:$0xff]   ;;  %v15258_v30 = vld [vmem:[%s16818_s3 + $0x80] ss:$16 sps:$4 sm:$0xff]  }
 0x4c0   :  { %v6101_v61 = vmax.f32 %v6077_v21, 0.0  ;;  %7573 = vmatpush1.bf16.msra.mxu1 %v16977_v32  ;;  %v6078_v18 = vadd.f32 %v5985_v29, %v12417_v39  ;;  %10662 = vmatprep.subr.bf16.mxu0 %v13403_v3  ;;  %v5987_v28 = vpop.f32.mrb[227].mxu0  ;;  %v6358_v47 = vmax.f32 %v6334_v8, 0.0  ;;  %v6335_v22 = vadd.f32 %v6242_v59, %v12417_v39  ;;  %v6244_v2 = vpop.f32.mrb[227].mxu1 }
 0x4c1   :  { %7574 = vmatprep.subr.bf16.mxu1 %v16941_v54  ;;  %v15236_v6 = vpack.c.bf16 %v5855_v16, %v5854_v57  ;;  %v15266_v28 = vld [vmem:[%s16818_s3 + $0x88] ss:$16 sps:$4 sm:$0xff]  }
 0x4c2   :  { %v6102_v44 = vmax.f32 %v6078_v18, 0.0  ;;  %7256 = vmatmul.mubr.bf16.gmra.mrb[76].mxu0 %v15217_v24  ;;  %v15244_v35 = vmax.f32 %v6101_v61, %v6358_v47  ;;  %v6359_v21 = vmax.f32 %v6335_v22, 0.0  ;;  %v15271_v47 = vld [vmem:[%s16818_s3 + $0xa4] ss:$16 sps:$4 sm:$0xff]  }
 0x4c3   :  { %16986 = vst [vmem:[#allocation13_spill] sm:$0xff] %v15236_v6  ;;  %7353 = vmatmul.mubr.bf16.gmra.mrb[76].mxu1 %v15224_v0  ;;  %10663 = vmatpush3.bf16.msra.mxu0 %v13075_v38 }
 0x4c4   :  { %7575 = vmatpush1.bf16.msra.mxu1 %v16978_v9  ;;  %10664 = vmatprep.subr.bf16.mxu0 %v13425_v36  ;;  %v6383_v57 = vmax.f32 %v6102_v44, %v6359_v21  ;;  %v15279_v21 = vld [vmem:[%s16818_s3 + $0xac] ss:$16 sps:$4 sm:$0xff]  }
 0x4c5   :  { %v5990_v10 = vpop.f32.mrb[228].mxu0  ;;  %7576 = vmatprep.subr.bf16.mxu1 %v16941_v54  ;;  %7263 = vmatprep.mubr.bf16.mxu0 %v15234_v15  ;;  %16987 = vst [vmem:[#allocation14_spill] sm:$0xff] %v15279_v21 }
 0x4c6   :  { %v6079_v14 = vadd.f32 %v5990_v10, %v12417_v39  ;;  %v6247_v16 = vpop.f32.mrb[228].mxu1  ;;  %v5992_v8 = vpop.f32.mrb[229].mxu0  ;;  %10500 = vmatprep.mubr.msk.bf16.mxu1 %vm7174_vm1, %v15242_v1  ;;  %v6406_v29 = vmax.f32 %v15244_v35, %v6383_v57 }
 0x4c7   :  { %v6336_v61 = vadd.f32 %v6247_v16, %v12417_v39  ;;  %v6249_v18 = vpop.f32.mrb[229].mxu1  ;;  %10665 = vmatpush3.bf16.msra.mxu0 %v13118_v53  ;;  %v5993_v59 = vpop.f32.mrb[230].mxu0 }
 0x4c8   :  { %v6103_v22 = vmax.f32 %v6079_v14, 0.0  ;;  %7577 = vmatpush1.bf16.msra.mxu1 %v16979_v11  ;;  %v6080_v2 = vadd.f32 %v5993_v59, %v12417_v39  ;;  %v6250_v44 = vpop.f32.mrb[230].mxu1  ;;  %10714 = vmatprep.subr.bf16.mxu0 %v13403_v3  ;;  %v5995_v35 = vpop.f32.mrb[231].mxu0  ;;  %v16988_v59 = vld [vmem:[#allocation16_spill] sm:$0xff] }
 0x4c9   :  { %v6360_v57 = vmax.f32 %v6336_v61, 0.0  ;;  %v6337_v10 = vadd.f32 %v6250_v44, %v12417_v39  ;;  %v6252_v16 = vpop.f32.mrb[231].mxu1  ;;  %7578 = vmatprep.subr.bf16.mxu1 %v16941_v54 }
 0x4ca   :  { %v6104_v14 = vmax.f32 %v6080_v2, 0.0  ;;  %7264 = vmatmul.mubr.bf16.gmra.mrb[80].mxu0 %v15258_v30 }
 0x4cb   :  { %v6384_v8 = vmax.f32 %v6103_v22, %v6360_v57  ;;  %v6361_v18 = vmax.f32 %v6337_v10, 0.0  ;;  %7361 = vmatmul.mubr.bf16.gmra.mrb[80].mxu1 %v15266_v28  ;;  %7271 = vmatprep.mubr.bf16.mxu0 %v15271_v47  ;;  %v15294_v22 = vld [vmem:[%s16818_s3 + $0xa0] ss:$16 sps:$4 sm:$0xff]  }
 0x4cc   :  { %7579 = vmatpush1.bf16.msra.mxu1 %v16988_v59  ;;  %10501 = vmatprep.mubr.msk.bf16.mxu1 %vm7174_vm1, %v15279_v21  ;;  %16989 = vst [vmem:[#allocation15_spill] sm:$0xff] %v15294_v22 }
 0x4cd   :  { %v6385_v61 = vmax.f32 %v6104_v14, %v6361_v18  ;;  %v5998_v35 = vpop.f32.mrb[232].mxu0  ;;  %7580 = vmatprep.subr.bf16.mxu1 %v16941_v54  ;;  %v15300_v14 = vld [vmem:[%s16818_s3 + $0xa8] ss:$16 sps:$4 sm:$0xff]   ;;  %v15305_v18 = vld [vmem:[%s16818_s3 + $0xc4] ss:$16 sps:$4 sm:$0xff]  }
 0x4ce   :  { %v6081_v44 = vadd.f32 %v5998_v35, %v12417_v39  ;;  %v6255_v2 = vpop.f32.mrb[232].mxu1  ;;  %v6000_v16 = vpop.f32.mrb[233].mxu0  ;;  %16990 = vst [vmem:[#allocation16_spill] sm:$0xff] %v15300_v14  ;;  %16991 = vst [vmem:[#allocation40_spill] sm:$0xff] %v15305_v18 }
 0x4cf   :  { %v6407_v57 = vmax.f32 %v6384_v8, %v6385_v61  ;;  %v6338_v10 = vadd.f32 %v6255_v2, %v12417_v39  ;;  %v6257_v6 = vpop.f32.mrb[233].mxu1  ;;  %v6001_v46 = vpop.f32.mrb[234].mxu0  ;;  %v16992_v16 = vld [vmem:[#allocation17_spill] sm:$0xff] }
 0x4d0   :  { %v6105_v35 = vmax.f32 %v6081_v44, 0.0  ;;  %7581 = vmatpush1.bf16.msra.mxu1 %v16992_v16  ;;  %v6082_v19 = vadd.f32 %v6001_v46, %v12417_v39  ;;  %v6258_v8 = vpop.f32.mrb[234].mxu1  ;;  %v6003_v61 = vpop.f32.mrb[235].mxu0  ;;  %v15312_v6 = vld [vmem:[%s16818_s3 + $0xcc] ss:$16 sps:$4 sm:$0xff]  }
 0x4d1   :  { %16993 = vst [vmem:[#allocation17_spill] sm:$0xff] %v15312_v6  ;;  %v6362_v2 = vmax.f32 %v6338_v10, 0.0  ;;  %v6339_v62 = vadd.f32 %v6258_v8, %v12417_v39  ;;  %v6260_v58 = vpop.f32.mrb[235].mxu1  ;;  %7582 = vmatprep.subr.bf16.mxu1 %v16941_v54  ;;  %v15316_v60 = vpack.c.bf16 %v6407_v57, %v6406_v29  ;;  %v16995_v61 = vld [vmem:[#allocation18_spill] sm:$0xff] }
 0x4d2   :  { %v6106_v44 = vmax.f32 %v6082_v19, 0.0  ;;  %7272 = vmatmul.mubr.bf16.gmra.mrb[84].mxu0 %v15294_v22 }
 0x4d3   :  { %16994 = vst [vmem:[#allocation41_spill] sm:$0xff] %v15316_v60  ;;  %v6386_v20 = vmax.f32 %v6105_v35, %v6362_v2  ;;  %v6363_v46 = vmax.f32 %v6339_v62, 0.0  ;;  %7369 = vmatmul.mubr.bf16.gmra.mrb[84].mxu1 %v15300_v14  ;;  %7279 = vmatprep.mubr.bf16.mxu0 %v15305_v18  ;;  %v15329_v62 = vld [vmem:[%s16818_s3 + $0xc0] ss:$16 sps:$4 sm:$0xff]  }
 0x4d4   :  { %7583 = vmatpush1.bf16.msra.mxu1 %v16995_v61  ;;  %10502 = vmatprep.mubr.msk.bf16.mxu1 %vm7174_vm1, %v15312_v6  ;;  %16996 = vst [vmem:[#allocation18_spill] sm:$0xff] %v15329_v62 }
 0x4d5   :  { %v6387_v10 = vmax.f32 %v6106_v44, %v6363_v46  ;;  %v6006_v58 = vpop.f32.mrb[236].mxu0  ;;  %7584 = vmatprep.subr.bf16.mxu1 %v16941_v54  ;;  %v15335_v44 = vld [vmem:[%s16818_s3 + $0xc8] ss:$16 sps:$4 sm:$0xff]   ;;  %v15340_v46 = vld [vmem:[%s16818_s3 + $0xe4] ss:$16 sps:$4 sm:$0xff]  }
 0x4d6   :  { %v6083_v29 = vadd.f32 %v6006_v58, %v12417_v39  ;;  %v6263_v19 = vpop.f32.mrb[236].mxu1  ;;  %v6008_v57 = vpop.f32.mrb[237].mxu0  ;;  %16997 = vst [vmem:[#allocation42_spill] sm:$0xff] %v15335_v44  ;;  %16998 = vst [vmem:[#allocation43_spill] sm:$0xff] %v15340_v46 }
 0x4d7   :  { %v6408_v35 = vmax.f32 %v6386_v20, %v6387_v10  ;;  %v6340_v8 = vadd.f32 %v6263_v19, %v12417_v39  ;;  %v6265_v2 = vpop.f32.mrb[237].mxu1  ;;  %v6009_v60 = vpop.f32.mrb[238].mxu0  ;;  %v16999_v57 = vld [vmem:[#allocation19_spill] sm:$0xff] }
 0x4d8   :  { %v6107_v58 = vmax.f32 %v6083_v29, 0.0  ;;  %7585 = vmatpush1.bf16.msra.mxu1 %v16999_v57  ;;  %v6084_v55 = vadd.f32 %v6009_v60, %v12417_v39  ;;  %v6266_v20 = vpop.f32.mrb[238].mxu1  ;;  %v6011_v10 = vpop.f32.mrb[239].mxu0  ;;  %v15347_v19 = vld [vmem:[%s16818_s3 + $0xec] ss:$16 sps:$4 sm:$0xff]   ;;  %v17001_v60 = vld [vmem:[#allocation20_spill] sm:$0xff] }
 0x4d9   :  { %17000 = vst [vmem:[#allocation19_spill] sm:$0xff] %v15347_v19  ;;  %v6364_v2 = vmax.f32 %v6340_v8, 0.0  ;;  %v6341_v40 = vadd.f32 %v6266_v20, %v12417_v39  ;;  %v6268_v3 = vpop.f32.mrb[239].mxu1  ;;  %7586 = vmatprep.subr.bf16.mxu1 %v16941_v54 }
 0x4da   :  { %v6108_v6 = vmax.f32 %v6084_v55, 0.0  ;;  %7280 = vmatmul.mubr.bf16.gmra.mrb[88].mxu0 %v15329_v62 }
 0x4db   :  { %v6388_v29 = vmax.f32 %v6107_v58, %v6364_v2  ;;  %v6365_v18 = vmax.f32 %v6341_v40, 0.0  ;;  %7377 = vmatmul.mubr.bf16.gmra.mrb[88].mxu1 %v15335_v44  ;;  %7287 = vmatprep.mubr.bf16.mxu0 %v15340_v46  ;;  %v15362_v40 = vld [vmem:[%s16818_s3 + $0xe0] ss:$16 sps:$4 sm:$0xff]  }
 0x4dc   :  { %7587 = vmatpush1.bf16.msra.mxu1 %v17001_v60  ;;  %10503 = vmatprep.mubr.msk.bf16.mxu1 %vm7174_vm1, %v15347_v19  ;;  %17002 = vst [vmem:[#allocation20_spill] sm:$0xff] %v15362_v40  ;;  %v17004_v19 = vld [vmem:[#allocation21_spill] sm:$0xff] }
 0x4dd   :  { %v6389_v8 = vmax.f32 %v6108_v6, %v6365_v18  ;;  %v6014_v10 = vpop.f32.mrb[240].mxu0  ;;  %7588 = vmatprep.subr.bf16.mxu1 %v16941_v54  ;;  %v15368_v18 = vld [vmem:[%s16818_s3 + $0xe8] ss:$16 sps:$4 sm:$0xff]  }
 0x4de   :  { %v6085_v3 = vadd.f32 %v6014_v10, %v12417_v39  ;;  %v6271_v55 = vpop.f32.mrb[240].mxu1  ;;  %v6016_v20 = vpop.f32.mrb[241].mxu0  ;;  %17003 = vst [vmem:[#allocation44_spill] sm:$0xff] %v15368_v18 }
 0x4df   :  { %v6409_v58 = vmax.f32 %v6388_v29, %v6389_v8  ;;  %v6342_v2 = vadd.f32 %v6271_v55, %v12417_v39  ;;  %v6273_v46 = vpop.f32.mrb[241].mxu1  ;;  %v6017_v44 = vpop.f32.mrb[242].mxu0 }
 0x4e0   :  { %v6109_v6 = vmax.f32 %v6085_v3, 0.0  ;;  %7589 = vmatpush1.bf16.msra.mxu1 %v17004_v19  ;;  %v6086_v10 = vadd.f32 %v6017_v44, %v12417_v39  ;;  %v6274_v20 = vpop.f32.mrb[242].mxu1  ;;  %v6019_v62 = vpop.f32.mrb[243].mxu0 }
 0x4e1   :  { %v6366_v14 = vmax.f32 %v6342_v2, 0.0  ;;  %v6343_v22 = vadd.f32 %v6274_v20, %v12417_v39  ;;  %v6276_v29 = vpop.f32.mrb[243].mxu1  ;;  %7850 = vmatprep.subr.bf16.mxu1 %v16941_v54  ;;  %v15374_v46 = vpack.c.bf16 %v6409_v58, %v6408_v35 }
 0x4e2   :  { %v6110_v8 = vmax.f32 %v6086_v10, 0.0  ;;  %7288 = vmatmul.mubr.bf16.gmra.mrb[92].mxu0 %v15362_v40 }
 0x4e3   :  { %17005 = vst [vmem:[#allocation21_spill] sm:$0xff] %v15374_v46  ;;  %v6390_v55 = vmax.f32 %v6109_v6, %v6366_v14  ;;  %v6367_v21 = vmax.f32 %v6343_v22, 0.0  ;;  %7385 = vmatmul.mubr.bf16.gmra.mrb[92].mxu1 %v15368_v18  ;;  %7497 = vmatprep.mubr.bf16.mxu0 %v15085_v25 }
 0x4e4   :  { %10504 = vmatprep.mubr.msk.bf16.mxu1 %vm7174_vm1, %v15091_v34 }
 0x4e5   :  { %v6391_v62 = vmax.f32 %v6110_v8, %v6367_v21  ;;  %v6022_v44 = vpop.f32.mrb[244].mxu0 }
 0x4e6   :  { %v6087_v3 = vadd.f32 %v6022_v44, %v12417_v39  ;;  %v6279_v2 = vpop.f32.mrb[244].mxu1  ;;  %v6024_v20 = vpop.f32.mrb[245].mxu0 }
 0x4e7   :  { %v6410_v35 = vmax.f32 %v6390_v55, %v6391_v62  ;;  %v6344_v58 = vadd.f32 %v6279_v2, %v12417_v39  ;;  %v6281_v10 = vpop.f32.mrb[245].mxu1  ;;  %v6025_v29 = vpop.f32.mrb[246].mxu0 }
 0x4e8   :  { %v6111_v14 = vmax.f32 %v6087_v3, 0.0  ;;  %v6088_v22 = vadd.f32 %v6025_v29, %v12417_v39  ;;  %v6282_v6 = vpop.f32.mrb[246].mxu1  ;;  %v6027_v46 = vpop.f32.mrb[247].mxu0 }
 0x4e9   :  { %v6368_v25 = vmax.f32 %v6344_v58, 0.0  ;;  %v6345_v18 = vadd.f32 %v6282_v6, %v12417_v39  ;;  %v6284_v34 = vpop.f32.mrb[247].mxu1 }
 0x4ea   :  { %v6112_v21 = vmax.f32 %v6088_v22, 0.0  ;;  %7498 = vmatmul.mubr.bf16.vlgmr.msra.gmra.mrb[96].mxu0 %v15105_v41 }
 0x4eb   :  { %v6392_v8 = vmax.f32 %v6111_v14, %v6368_v25  ;;  %v6369_v44 = vmax.f32 %v6345_v18, 0.0  ;;  %7595 = vmatmul.mubr.bf16.vlgmr.msra.gmra.mrb[96].mxu1 %v15111_v43  ;;  %10715 = vmatpush3.bf16.msra.mxu0 %v13075_v38 }
 0x4ec   :  { %7851 = vmatpush1.bf16.msra.mxu1 %v16978_v9  ;;  %10716 = vmatprep.subr.bf16.mxu0 %v13425_v36 }
 0x4ed   :  { %v6393_v55 = vmax.f32 %v6112_v21, %v6369_v44  ;;  %v6030_v62 = vpop.f32.mrb[248].mxu0  ;;  %7852 = vmatprep.subr.bf16.mxu1 %v16941_v54  ;;  %7505 = vmatprep.mubr.bf16.mxu0 %v15118_v42 }
 0x4ee   :  { %v6089_v34 = vadd.f32 %v6030_v62, %v12417_v39  ;;  %v6287_v46 = vpop.f32.mrb[248].mxu1  ;;  %v6032_v3 = vpop.f32.mrb[249].mxu0  ;;  %10505 = vmatprep.mubr.msk.bf16.mxu1 %vm7174_vm1, %v15124_v51 }
 0x4ef   :  { %v6411_v25 = vmax.f32 %v6392_v8, %v6393_v55  ;;  %v6346_v38 = vadd.f32 %v6287_v46, %v12417_v39  ;;  %v6289_v18 = vpop.f32.mrb[249].mxu1  ;;  %10717 = vmatpush3.bf16.msra.mxu0 %v13118_v53  ;;  %v6033_v2 = vpop.f32.mrb[250].mxu0 }
 0x4f0   :  { %v6113_v20 = vmax.f32 %v6089_v34, 0.0  ;;  %7853 = vmatpush1.bf16.msra.mxu1 %v16979_v11  ;;  %v6090_v58 = vadd.f32 %v6033_v2, %v12417_v39  ;;  %v6290_v10 = vpop.f32.mrb[250].mxu1  ;;  %10718 = vmatprep.subr.bf16.mxu0 %v16969_v52  ;;  %v6035_v29 = vpop.f32.mrb[251].mxu0 }
 0x4f1   :  { %v6370_v14 = vmax.f32 %v6346_v38, 0.0  ;;  %v6347_v22 = vadd.f32 %v6290_v10, %v12417_v39  ;;  %v6292_v6 = vpop.f32.mrb[251].mxu1  ;;  %7854 = vmatprep.subr.bf16.mxu1 %v16941_v54  ;;  %v15402_v21 = vpack.c.bf16 %v6411_v25, %v6410_v35 }
 0x4f2   :  { %v6114_v8 = vmax.f32 %v6090_v58, 0.0  ;;  %7506 = vmatmul.mubr.bf16.gmra.mrb[100].mxu0 %v15138_v45 }
 0x4f3   :  { %17006 = vst [vmem:[#allocation45_spill] sm:$0xff] %v15402_v21  ;;  %v6394_v53 = vmax.f32 %v6113_v20, %v6370_v14  ;;  %v6371_v44 = vmax.f32 %v6347_v22, 0.0  ;;  %7603 = vmatmul.mubr.bf16.gmra.mrb[100].mxu1 %v15145_v27  ;;  %10719 = vmatpush3.bf16.msra.mxu0 %v13160_v23 }
 0x4f4   :  { %7855 = vmatpush1.bf16.msra.mxu1 %v16988_v59  ;;  %10720 = vmatprep.subr.bf16.mxu0 %v16972_v7 }
 0x4f5   :  { %v6395_v55 = vmax.f32 %v6114_v8, %v6371_v44  ;;  %v6038_v62 = vpop.f32.mrb[252].mxu0  ;;  %7856 = vmatprep.subr.bf16.mxu1 %v16941_v54  ;;  %7513 = vmatprep.mubr.bf16.mxu0 %v15155_v33 }
 0x4f6   :  { %v6091_v35 = vadd.f32 %v6038_v62, %v12417_v39  ;;  %v6295_v34 = vpop.f32.mrb[252].mxu1  ;;  %v6040_v46 = vpop.f32.mrb[253].mxu0  ;;  %10506 = vmatprep.mubr.msk.bf16.mxu1 %vm7174_vm1, %v15163_v5 }
 0x4f7   :  { %v6412_v3 = vmax.f32 %v6394_v53, %v6395_v55  ;;  %v6348_v23 = vadd.f32 %v6295_v34, %v12417_v39  ;;  %v6297_v25 = vpop.f32.mrb[253].mxu1  ;;  %10721 = vmatpush3.bf16.msra.mxu0 %v16970_v63  ;;  %v6041_v38 = vpop.f32.mrb[254].mxu0 }
 0x4f8   :  { %v6115_v18 = vmax.f32 %v6091_v35, 0.0  ;;  %7857 = vmatpush1.bf16.msra.mxu1 %v16992_v16  ;;  %v6092_v2 = vadd.f32 %v6041_v38, %v12417_v39  ;;  %v6298_v20 = vpop.f32.mrb[254].mxu1  ;;  %10722 = vmatprep.subr.bf16.mxu0 %v16973_v4  ;;  %v6043_v58 = vpop.f32.mrb[255].mxu0 }
 0x4f9   :  { %v6372_v10 = vmax.f32 %v6348_v23, 0.0  ;;  %v6349_v29 = vadd.f32 %v6298_v20, %v12417_v39  ;;  %v6300_v14 = vpop.f32.mrb[255].mxu1  ;;  %7858 = vmatprep.subr.bf16.mxu1 %v16941_v54 }
 0x4fa   :  { %v6116_v22 = vmax.f32 %v6092_v2, 0.0  ;;  %7514 = vmatmul.mubr.bf16.gmra.mrb[104].mxu0 %v15179_v50 }
 0x4fb   :  { %v6396_v63 = vmax.f32 %v6115_v18, %v6372_v10  ;;  %v6373_v6 = vmax.f32 %v6349_v29, 0.0  ;;  %7611 = vmatmul.mubr.bf16.gmra.mrb[104].mxu1 %v15187_v12  ;;  %10723 = vmatpush3.bf16.msra.mxu0 %v13250_v37 }
 0x4fc   :  { %7859 = vmatpush1.bf16.msra.mxu1 %v16995_v61  ;;  %10724 = vmatprep.subr.bf16.mxu0 %v16974_v31 }
 0x4fd   :  { %v6397_v8 = vmax.f32 %v6116_v22, %v6373_v6  ;;  %v6046_v53 = vpop.f32.mrb[0].mxu0  ;;  %7860 = vmatprep.subr.bf16.mxu1 %v16941_v54  ;;  %7521 = vmatprep.mubr.bf16.mxu0 %v15197_v26 }
 0x4fe   :  { %v6093_v44 = vadd.f32 %v6046_v53, %v12417_v39  ;;  %v6303_v55 = vpop.f32.mrb[0].mxu1  ;;  %v6048_v62 = vpop.f32.mrb[1].mxu0  ;;  %10507 = vmatprep.mubr.msk.bf16.mxu1 %vm7174_vm1, %v15203_v13 }
 0x4ff   :  { %v6413_v35 = vmax.f32 %v6396_v63, %v6397_v8  ;;  %v6350_v37 = vadd.f32 %v6303_v55, %v12417_v39  ;;  %v6305_v34 = vpop.f32.mrb[1].mxu1  ;;  %10725 = vmatpush3.bf16.msra.mxu0 %v13307_v49  ;;  %v6049_v46 = vpop.f32.mrb[2].mxu0 }
 0x500   :  { %v6117_v23 = vmax.f32 %v6093_v44, 0.0  ;;  %7861 = vmatpush1.bf16.msra.mxu1 %v16999_v57  ;;  %v6094_v25 = vadd.f32 %v6049_v46, %v12417_v39  ;;  %v6306_v38 = vpop.f32.mrb[2].mxu1  ;;  %10726 = vmatprep.subr.bf16.mxu0 %v16976_v48  ;;  %v6051_v18 = vpop.f32.mrb[3].mxu0 }
 0x501   :  { %v6374_v2 = vmax.f32 %v6350_v37, 0.0  ;;  %v6351_v20 = vadd.f32 %v6306_v38, %v12417_v39  ;;  %v6308_v58 = vpop.f32.mrb[3].mxu1  ;;  %7862 = vmatprep.subr.bf16.mxu1 %v16941_v54  ;;  %v15438_v10 = vpack.c.bf16 %v6413_v35, %v6412_v3 }
 0x502   :  { %v6118_v29 = vmax.f32 %v6094_v25, 0.0  ;;  %7522 = vmatmul.mubr.bf16.gmra.mrb[108].mxu0 %v15217_v24  ;;  %v17008_v58 = vld [vmem:[#allocation22_spill] sm:$0xff] }
 0x503   :  { %17007 = vst [vmem:[#allocation46_spill] sm:$0xff] %v15438_v10  ;;  %v6398_v49 = vmax.f32 %v6117_v23, %v6374_v2  ;;  %v6375_v14 = vmax.f32 %v6351_v20, 0.0  ;;  %7619 = vmatmul.mubr.bf16.gmra.mrb[108].mxu1 %v15224_v0  ;;  %10727 = vmatpush3.bf16.msra.mxu0 %v13358_v56 }
 0x504   :  { %7863 = vmatpush1.bf16.msra.mxu1 %v17001_v60  ;;  %10728 = vmatprep.subr.bf16.mxu0 %v16977_v32 }
 0x505   :  { %v6399_v22 = vmax.f32 %v6118_v29, %v6375_v14  ;;  %v6054_v63 = vpop.f32.mrb[4].mxu0  ;;  %7864 = vmatprep.subr.bf16.mxu1 %v16941_v54  ;;  %7529 = vmatprep.mubr.bf16.mxu0 %v15234_v15  ;;  %v17009_v29 = vld [vmem:[#allocation14_spill] sm:$0xff] }
 0x506   :  { %v6095_v3 = vadd.f32 %v6054_v63, %v12417_v39  ;;  %v6311_v6 = vpop.f32.mrb[4].mxu1  ;;  %v6056_v8 = vpop.f32.mrb[5].mxu0  ;;  %10508 = vmatprep.mubr.msk.bf16.mxu1 %vm7174_vm1, %v15242_v1 }
 0x507   :  { %v6414_v53 = vmax.f32 %v6398_v49, %v6399_v22  ;;  %v6352_v44 = vadd.f32 %v6311_v6, %v12417_v39  ;;  %v6313_v55 = vpop.f32.mrb[5].mxu1  ;;  %10729 = vmatpush3.bf16.msra.mxu0 %v13381_v17  ;;  %v6057_v62 = vpop.f32.mrb[6].mxu0 }
 0x508   :  { %v6119_v35 = vmax.f32 %v6095_v3, 0.0  ;;  %7865 = vmatpush1.bf16.msra.mxu1 %v17004_v19  ;;  %v6096_v37 = vadd.f32 %v6057_v62, %v12417_v39  ;;  %v6314_v34 = vpop.f32.mrb[6].mxu1  ;;  %10778 = vmatprep.subr.bf16.mxu0 %v16976_v48  ;;  %v6059_v46 = vpop.f32.mrb[7].mxu0 }
 0x509   :  { %v6376_v23 = vmax.f32 %v6352_v44, 0.0  ;;  %v6353_v25 = vadd.f32 %v6314_v34, %v12417_v39  ;;  %v6316_v38 = vpop.f32.mrb[7].mxu1  ;;  %7866 = vmatprep.subr.bf16.mxu1 %v16941_v54 }
 0x50a   :  { %v6120_v18 = vmax.f32 %v6096_v37, 0.0  ;;  %7530 = vmatmul.mubr.bf16.gmra.mrb[112].mxu0 %v15258_v30 }
 0x50b   :  { %v6400_v2 = vmax.f32 %v6119_v35, %v6376_v23  ;;  %v6377_v20 = vmax.f32 %v6353_v25, 0.0  ;;  %7627 = vmatmul.mubr.bf16.gmra.mrb[112].mxu1 %v15266_v28  ;;  %7537 = vmatprep.mubr.bf16.mxu0 %v15271_v47  ;;  %v17010_v35 = vld [vmem:[#allocation23_spill] sm:$0xff] }
 0x50c   :  { %7867 = vmatpush1.bf16.msra.mxu1 %v17008_v58  ;;  %10509 = vmatprep.mubr.msk.bf16.mxu1 %vm7174_vm1, %v17009_v29 }
 0x50d   :  { %v6401_v49 = vmax.f32 %v6120_v18, %v6377_v20  ;;  %v6062_v14 = vpop.f32.mrb[8].mxu0  ;;  %7868 = vmatprep.subr.bf16.mxu1 %v16941_v54  ;;  %v17012_v20 = vld [vmem:[#allocation15_spill] sm:$0xff] }
 0x50e   :  { %v6097_v22 = vadd.f32 %v6062_v14, %v12417_v39  ;;  %v6319_v63 = vpop.f32.mrb[8].mxu1  ;;  %v6064_v3 = vpop.f32.mrb[9].mxu0 }
 0x50f   :  { %v6415_v6 = vmax.f32 %v6400_v2, %v6401_v49  ;;  %v6354_v8 = vadd.f32 %v6319_v63, %v12417_v39  ;;  %v6321_v44 = vpop.f32.mrb[9].mxu1  ;;  %v6065_v55 = vpop.f32.mrb[10].mxu0  ;;  %v17014_v63 = vld [vmem:[#allocation40_spill] sm:$0xff] }
 0x510   :  { %v6121_v62 = vmax.f32 %v6097_v22, 0.0  ;;  %7869 = vmatpush1.bf16.msra.mxu1 %v17010_v35  ;;  %v6098_v37 = vadd.f32 %v6065_v55, %v12417_v39  ;;  %v6322_v34 = vpop.f32.mrb[10].mxu1  ;;  %v6067_v46 = vpop.f32.mrb[11].mxu0  ;;  %v17013_v22 = vld [vmem:[#allocation16_spill] sm:$0xff]  ;;  %v17016_v44 = vld [vmem:[#allocation17_spill] sm:$0xff] }
 0x511   :  { %v6378_v23 = vmax.f32 %v6354_v8, 0.0  ;;  %v6355_v25 = vadd.f32 %v6322_v34, %v12417_v39  ;;  %v6324_v38 = vpop.f32.mrb[11].mxu1  ;;  %7870 = vmatprep.subr.bf16.mxu1 %v16941_v54  ;;  %v15470_v18 = vpack.c.bf16 %v6415_v6, %v6414_v53  ;;  %v17015_v3 = vld [vmem:[#allocation24_spill] sm:$0xff] }
 0x512   :  { %v6122_v2 = vmax.f32 %v6098_v37, 0.0  ;;  %7538 = vmatmul.mubr.bf16.gmra.mrb[116].mxu0 %v17012_v20  ;;  %v17017_v38 = vld [vmem:[#allocation25_spill] sm:$0xff] }
 0x513   :  { %17011 = vst [vmem:[#allocation22_spill] sm:$0xff] %v15470_v18  ;;  %v6402_v49 = vmax.f32 %v6121_v62, %v6378_v23  ;;  %v6379_v14 = vmax.f32 %v6355_v25, 0.0  ;;  %7635 = vmatmul.mubr.bf16.gmra.mrb[116].mxu1 %v17013_v22  ;;  %7545 = vmatprep.mubr.bf16.mxu0 %v17014_v63 }
 0x514   :  { %7871 = vmatpush1.bf16.msra.mxu1 %v17015_v3  ;;  %10510 = vmatprep.mubr.msk.bf16.mxu1 %vm7174_vm1, %v17016_v44 }
 0x515   :  { %v6403_v8 = vmax.f32 %v6122_v2, %v6379_v14  ;;  %v6070_v55 = vpop.f32.mrb[12].mxu0  ;;  %7872 = vmatprep.subr.bf16.mxu1 %v16941_v54 }
 0x516   :  { %v6099_v53 = vadd.f32 %v6070_v55, %v12417_v39  ;;  %v6327_v6 = vpop.f32.mrb[12].mxu1  ;;  %v6072_v37 = vpop.f32.mrb[13].mxu0 }
 0x517   :  { %v6416_v34 = vmax.f32 %v6402_v49, %v6403_v8  ;;  %v6356_v62 = vadd.f32 %v6327_v6, %v12417_v39  ;;  %v6329_v46 = vpop.f32.mrb[13].mxu1  ;;  %v6073_v23 = vpop.f32.mrb[14].mxu0  ;;  %v17018_v37 = vld [vmem:[#allocation18_spill] sm:$0xff] }
 0x518   :  { %v6123_v25 = vmax.f32 %v6099_v53, 0.0  ;;  %7873 = vmatpush1.bf16.msra.mxu1 %v17017_v38  ;;  %v6100_v18 = vadd.f32 %v6073_v23, %v12417_v39  ;;  %v6330_v10 = vpop.f32.mrb[14].mxu1  ;;  %v6075_v21 = vpop.f32.mrb[15].mxu0  ;;  %v17019_v6 = vld [vmem:[#allocation42_spill] sm:$0xff]  ;;  %v17020_v53 = vld [vmem:[#allocation43_spill] sm:$0xff] }
 0x519   :  { %v6380_v2 = vmax.f32 %v6356_v62, 0.0  ;;  %v6357_v14 = vadd.f32 %v6330_v10, %v12417_v39  ;;  %v6332_v48 = vpop.f32.mrb[15].mxu1  ;;  %7874 = vmatprep.subr.bf16.mxu1 %v16941_v54  ;;  %v17021_v46 = vld [vmem:[#allocation26_spill] sm:$0xff]  ;;  %v17022_v23 = vld [vmem:[#allocation19_spill] sm:$0xff] }
 0x51a   :  { %v6124_v55 = vmax.f32 %v6100_v18, 0.0  ;;  %7546 = vmatmul.mubr.bf16.gmra.mrb[120].mxu0 %v17018_v37 }
 0x51b   :  { %v6404_v49 = vmax.f32 %v6123_v25, %v6380_v2  ;;  %v6381_v8 = vmax.f32 %v6357_v14, 0.0  ;;  %7643 = vmatmul.mubr.bf16.gmra.mrb[120].mxu1 %v17019_v6  ;;  %7553 = vmatprep.mubr.bf16.mxu0 %v17020_v53  ;;  %v17023_v53 = vld [vmem:[#allocation27_spill] sm:$0xff] }
 0x51c   :  { %7875 = vmatpush1.bf16.msra.mxu1 %v17021_v46  ;;  %10511 = vmatprep.mubr.msk.bf16.mxu1 %vm7174_vm1, %v17022_v23 }
 0x51d   :  { %v6405_v21 = vmax.f32 %v6124_v55, %v6381_v8  ;;  %v6544_v62 = vpop.f32.mrb[16].mxu0  ;;  %7876 = vmatprep.subr.bf16.mxu1 %v16941_v54 }
 0x51e   :  { %v6639_v48 = vadd.f32 %v6544_v62, %v12417_v39  ;;  %v6801_v10 = vpop.f32.mrb[16].mxu1  ;;  %v6546_v18 = vpop.f32.mrb[17].mxu0 }
 0x51f   :  { %v6417_v37 = vmax.f32 %v6404_v49, %v6405_v21  ;;  %v6896_v25 = vadd.f32 %v6801_v10, %v12417_v39  ;;  %v6803_v2 = vpop.f32.mrb[17].mxu1  ;;  %v6547_v14 = vpop.f32.mrb[18].mxu0  ;;  %v17026_v18 = vld [vmem:[#allocation5_spill] sm:$0xff] }
 0x520   :  { %v6663_v6 = vmax.f32 %v6639_v48, 0.0  ;;  %7877 = vmatpush1.bf16.msra.mxu1 %v17023_v53  ;;  %v6640_v44 = vadd.f32 %v6547_v14, %v12417_v39  ;;  %v6804_v63 = vpop.f32.mrb[18].mxu1  ;;  %v6549_v23 = vpop.f32.mrb[19].mxu0  ;;  %v17025_v48 = vld [vmem:[#allocation44_spill] sm:$0xff]  ;;  %v17027_v2 = vld [vmem:[#allocation9_spill] sm:$0xff] }
 0x521   :  { %v6920_v55 = vmax.f32 %v6896_v25, 0.0  ;;  %v6897_v8 = vadd.f32 %v6804_v63, %v12417_v39  ;;  %v6806_v22 = vpop.f32.mrb[19].mxu1  ;;  %8106 = vmatprep.subr.bf16.mxu1 %v16941_v54  ;;  %v15498_v62 = vpack.c.bf16 %v6417_v37, %v6416_v34 }
 0x522   :  { %v6664_v49 = vmax.f32 %v6640_v44, 0.0  ;;  %7554 = vmatmul.mubr.bf16.gmra.mrb[124].mxu0 %v15362_v40 }
 0x523   :  { %17024 = vst [vmem:[#allocation14_spill] sm:$0xff] %v15498_v62  ;;  %v6944_v21 = vmax.f32 %v6663_v6, %v6920_v55  ;;  %v6921_v10 = vmax.f32 %v6897_v8, 0.0  ;;  %7651 = vmatmul.mubr.bf16.gmra.mrb[124].mxu1 %v17025_v48  ;;  %7785 = vmatprep.mubr.bf16.mxu0 %v17026_v18 }
 0x524   :  { %10512 = vmatprep.mubr.msk.bf16.mxu1 %vm7174_vm1, %v17027_v2 }
 0x525   :  { %v6945_v23 = vmax.f32 %v6664_v49, %v6921_v10  ;;  %v6552_v25 = vpop.f32.mrb[20].mxu0 }
 0x526   :  { %v6641_v22 = vadd.f32 %v6552_v25, %v12417_v39  ;;  %v6809_v63 = vpop.f32.mrb[20].mxu1  ;;  %v6554_v14 = vpop.f32.mrb[21].mxu0 }
 0x527   :  { %v6968_v34 = vmax.f32 %v6944_v21, %v6945_v23  ;;  %v6898_v44 = vadd.f32 %v6809_v63, %v12417_v39  ;;  %v6811_v37 = vpop.f32.mrb[21].mxu1  ;;  %v6555_v62 = vpop.f32.mrb[22].mxu0 }
 0x528   :  { %v6665_v6 = vmax.f32 %v6641_v22, 0.0  ;;  %v6642_v55 = vadd.f32 %v6555_v62, %v12417_v39  ;;  %v6812_v8 = vpop.f32.mrb[22].mxu1  ;;  %v6557_v48 = vpop.f32.mrb[23].mxu0 }
 0x529   :  { %v6922_v18 = vmax.f32 %v6898_v44, 0.0  ;;  %v6899_v40 = vadd.f32 %v6812_v8, %v12417_v39  ;;  %v6814_v2 = vpop.f32.mrb[23].mxu1 }
 0x52a   :  { %v6666_v49 = vmax.f32 %v6642_v55, 0.0  ;;  %7786 = vmatmul.mubr.bf16.vlgmr.msra.gmra.mrb[128].mxu0 %v15105_v41  ;;  %v17029_v2 = vld [vmem:[#allocation7_spill] sm:$0xff] }
 0x52b   :  { %v6946_v10 = vmax.f32 %v6665_v6, %v6922_v18  ;;  %v6923_v25 = vmax.f32 %v6899_v40, 0.0  ;;  %7883 = vmatmul.mubr.bf16.vlgmr.msra.gmra.mrb[128].mxu1 %v15111_v43  ;;  %10779 = vmatpush3.bf16.msra.mxu0 %v13358_v56 }
 0x52c   :  { %8107 = vmatpush1.bf16.msra.mxu1 %v17001_v60  ;;  %10780 = vmatprep.subr.bf16.mxu0 %v16977_v32 }
 0x52d   :  { %v6947_v62 = vmax.f32 %v6666_v49, %v6923_v25  ;;  %v6560_v21 = vpop.f32.mrb[24].mxu0  ;;  %8108 = vmatprep.subr.bf16.mxu1 %v16941_v54  ;;  %7793 = vmatprep.mubr.bf16.mxu0 %v15118_v42 }
 0x52e   :  { %v6643_v48 = vadd.f32 %v6560_v21, %v12417_v39  ;;  %v6817_v23 = vpop.f32.mrb[24].mxu1  ;;  %v6562_v41 = vpop.f32.mrb[25].mxu0  ;;  %10513 = vmatprep.mubr.msk.bf16.mxu1 %vm7174_vm1, %v15124_v51 }
 0x52f   :  { %v6969_v43 = vmax.f32 %v6946_v10, %v6947_v62  ;;  %v6900_v56 = vadd.f32 %v6817_v23, %v12417_v39  ;;  %v6819_v40 = vpop.f32.mrb[25].mxu1  ;;  %10781 = vmatpush3.bf16.msra.mxu0 %v13381_v17  ;;  %v6563_v22 = vpop.f32.mrb[26].mxu0 }
 0x530   :  { %v6667_v63 = vmax.f32 %v6643_v48, 0.0  ;;  %8109 = vmatpush1.bf16.msra.mxu1 %v17004_v19  ;;  %v6644_v14 = vadd.f32 %v6563_v22, %v12417_v39  ;;  %v6820_v42 = vpop.f32.mrb[26].mxu1  ;;  %10782 = vmatprep.subr.bf16.mxu0 %v16978_v9  ;;  %v6565_v44 = vpop.f32.mrb[27].mxu0 }
 0x531   :  { %v6924_v37 = vmax.f32 %v6900_v56, 0.0  ;;  %v6901_v6 = vadd.f32 %v6820_v42, %v12417_v39  ;;  %v6822_v51 = vpop.f32.mrb[27].mxu1  ;;  %8110 = vmatprep.subr.bf16.mxu1 %v16941_v54  ;;  %v15526_v55 = vpack.c.bf16 %v6969_v43, %v6968_v34 }
 0x532   :  { %v6668_v8 = vmax.f32 %v6644_v14, 0.0  ;;  %7794 = vmatmul.mubr.bf16.gmra.mrb[132].mxu0 %v15138_v45 }
 0x533   :  { %17028 = vst [vmem:[#allocation23_spill] sm:$0xff] %v15526_v55  ;;  %v6948_v17 = vmax.f32 %v6667_v63, %v6924_v37  ;;  %v6925_v18 = vmax.f32 %v6901_v6, 0.0  ;;  %7891 = vmatmul.mubr.bf16.gmra.mrb[132].mxu1 %v15145_v27  ;;  %10783 = vmatpush3.bf16.msra.mxu0 %v17029_v2 }
 0x534   :  { %8111 = vmatpush1.bf16.msra.mxu1 %v17008_v58  ;;  %10784 = vmatprep.subr.bf16.mxu0 %v16979_v11 }
 0x535   :  { %v6949_v49 = vmax.f32 %v6668_v8, %v6925_v18  ;;  %v6568_v10 = vpop.f32.mrb[28].mxu0  ;;  %8112 = vmatprep.subr.bf16.mxu1 %v16941_v54  ;;  %7801 = vmatprep.mubr.bf16.mxu0 %v15155_v33 }
 0x536   :  { %v6645_v34 = vadd.f32 %v6568_v10, %v12417_v39  ;;  %v6825_v25 = vpop.f32.mrb[28].mxu1  ;;  %v6570_v45 = vpop.f32.mrb[29].mxu0  ;;  %10514 = vmatprep.mubr.msk.bf16.mxu1 %vm7174_vm1, %v15163_v5 }
 0x537   :  { %v6970_v27 = vmax.f32 %v6948_v17, %v6949_v49  ;;  %v6902_v62 = vadd.f32 %v6825_v25, %v12417_v39  ;;  %v6827_v21 = vpop.f32.mrb[29].mxu1  ;;  %10785 = vmatpush3.bf16.msra.mxu0 %v13425_v36  ;;  %v6571_v48 = vpop.f32.mrb[30].mxu0 }
 0x538   :  { %v6669_v23 = vmax.f32 %v6645_v34, 0.0  ;;  %8113 = vmatpush1.bf16.msra.mxu1 %v17010_v35  ;;  %v6646_v41 = vadd.f32 %v6571_v48, %v12417_v39  ;;  %v6828_v33 = vpop.f32.mrb[30].mxu1  ;;  %10786 = vmatprep.subr.bf16.mxu0 %v16988_v59  ;;  %v6573_v43 = vpop.f32.mrb[31].mxu0 }
 0x539   :  { %v6926_v56 = vmax.f32 %v6902_v62, 0.0  ;;  %v6903_v40 = vadd.f32 %v6828_v33, %v12417_v39  ;;  %v6830_v5 = vpop.f32.mrb[31].mxu1  ;;  %8114 = vmatprep.subr.bf16.mxu1 %v16941_v54 }
 0x53a   :  { %v6670_v22 = vmax.f32 %v6646_v41, 0.0  ;;  %7802 = vmatmul.mubr.bf16.gmra.mrb[136].mxu0 %v15179_v50 }
 0x53b   :  { %v6950_v36 = vmax.f32 %v6669_v23, %v6926_v56  ;;  %v6927_v63 = vmax.f32 %v6903_v40, 0.0  ;;  %7899 = vmatmul.mubr.bf16.gmra.mrb[136].mxu1 %v15187_v12  ;;  %10787 = vmatpush3.bf16.msra.mxu0 %v16969_v52 }
 0x53c   :  { %8115 = vmatpush1.bf16.msra.mxu1 %v17015_v3  ;;  %10788 = vmatprep.subr.bf16.mxu0 %v16992_v16 }
 0x53d   :  { %v6951_v14 = vmax.f32 %v6670_v22, %v6927_v63  ;;  %v6576_v42 = vpop.f32.mrb[32].mxu0  ;;  %8116 = vmatprep.subr.bf16.mxu1 %v16941_v54  ;;  %7809 = vmatprep.mubr.bf16.mxu0 %v15197_v26 }
 0x53e   :  { %v6647_v44 = vadd.f32 %v6576_v42, %v12417_v39  ;;  %v6833_v37 = vpop.f32.mrb[32].mxu1  ;;  %v6578_v50 = vpop.f32.mrb[33].mxu0  ;;  %10515 = vmatprep.mubr.msk.bf16.mxu1 %vm7174_vm1, %v15203_v13 }
 0x53f   :  { %v6971_v12 = vmax.f32 %v6950_v36, %v6951_v14  ;;  %v6904_v52 = vadd.f32 %v6833_v37, %v12417_v39  ;;  %v6835_v6 = vpop.f32.mrb[33].mxu1  ;;  %10789 = vmatpush3.bf16.msra.mxu0 %v16972_v7  ;;  %v6579_v51 = vpop.f32.mrb[34].mxu0  ;;  %v17031_v14 = vld [vmem:[#allocation28_spill] sm:$0xff] }
 0x540   :  { %v6671_v8 = vmax.f32 %v6647_v44, 0.0  ;;  %8117 = vmatpush1.bf16.msra.mxu1 %v17017_v38  ;;  %v6648_v17 = vadd.f32 %v6579_v51, %v12417_v39  ;;  %v6836_v26 = vpop.f32.mrb[34].mxu1  ;;  %10790 = vmatprep.subr.bf16.mxu0 %v16995_v61  ;;  %v6581_v18 = vpop.f32.mrb[35].mxu0 }
 0x541   :  { %v6928_v2 = vmax.f32 %v6904_v52, 0.0  ;;  %v6905_v49 = vadd.f32 %v6836_v26, %v12417_v39  ;;  %v6838_v13 = vpop.f32.mrb[35].mxu1  ;;  %8118 = vmatprep.subr.bf16.mxu1 %v16941_v54  ;;  %v15562_v10 = vpack.c.bf16 %v6971_v12, %v6970_v27 }
 0x542   :  { %v6672_v34 = vmax.f32 %v6648_v17, 0.0  ;;  %7810 = vmatmul.mubr.bf16.gmra.mrb[140].mxu0 %v15217_v24 }
 0x543   :  { %17030 = vst [vmem:[#allocation15_spill] sm:$0xff] %v15562_v10  ;;  %v6952_v7 = vmax.f32 %v6671_v8, %v6928_v2  ;;  %v6929_v25 = vmax.f32 %v6905_v49, 0.0  ;;  %7907 = vmatmul.mubr.bf16.gmra.mrb[140].mxu1 %v15224_v0  ;;  %10791 = vmatpush3.bf16.msra.mxu0 %v16973_v4 }
 0x544   :  { %8119 = vmatpush1.bf16.msra.mxu1 %v17021_v46  ;;  %10792 = vmatprep.subr.bf16.mxu0 %v16999_v57 }
 0x545   :  { %v6953_v45 = vmax.f32 %v6672_v34, %v6929_v25  ;;  %v6584_v62 = vpop.f32.mrb[36].mxu0  ;;  %8120 = vmatprep.subr.bf16.mxu1 %v16941_v54  ;;  %7817 = vmatprep.mubr.bf16.mxu0 %v15234_v15  ;;  %v17034_v25 = vld [vmem:[#allocation16_spill] sm:$0xff] }
 0x546   :  { %v6649_v27 = vadd.f32 %v6584_v62, %v12417_v39  ;;  %v6841_v21 = vpop.f32.mrb[36].mxu1  ;;  %v6586_v24 = vpop.f32.mrb[37].mxu0  ;;  %10516 = vmatprep.mubr.msk.bf16.mxu1 %vm7174_vm1, %v15242_v1  ;;  %v17036_v62 = vld [vmem:[#allocation30_spill] sm:$0xff] }
 0x547   :  { %v6972_v0 = vmax.f32 %v6952_v7, %v6953_v45  ;;  %v6906_v48 = vadd.f32 %v6841_v21, %v12417_v39  ;;  %v6843_v23 = vpop.f32.mrb[37].mxu1  ;;  %10793 = vmatpush3.bf16.msra.mxu0 %v16974_v31  ;;  %v6587_v41 = vpop.f32.mrb[38].mxu0  ;;  %v17035_v45 = vld [vmem:[#allocation40_spill] sm:$0xff] }
 0x548   :  { %v6673_v33 = vmax.f32 %v6649_v27, 0.0  ;;  %8121 = vmatpush1.bf16.msra.mxu1 %v17023_v53  ;;  %v6650_v43 = vadd.f32 %v6587_v41, %v12417_v39  ;;  %v6844_v15 = vpop.f32.mrb[38].mxu1  ;;  %10842 = vmatprep.subr.bf16.mxu0 %v16995_v61  ;;  %v6589_v56 = vpop.f32.mrb[39].mxu0  ;;  %v17037_v27 = vld [vmem:[#allocation17_spill] sm:$0xff] }
 0x549   :  { %v6930_v40 = vmax.f32 %v6906_v48, 0.0  ;;  %v6907_v5 = vadd.f32 %v6844_v15, %v12417_v39  ;;  %v6846_v1 = vpop.f32.mrb[39].mxu1  ;;  %8122 = vmatprep.subr.bf16.mxu1 %v16941_v54  ;;  %v17038_v56 = vld [vmem:[#allocation31_spill] sm:$0xff] }
 0x54a   :  { %v6674_v22 = vmax.f32 %v6650_v43, 0.0  ;;  %7818 = vmatmul.mubr.bf16.gmra.mrb[144].mxu0 %v15258_v30 }
 0x54b   :  { %v6954_v36 = vmax.f32 %v6673_v33, %v6930_v40  ;;  %v6931_v63 = vmax.f32 %v6907_v5, 0.0  ;;  %7915 = vmatmul.mubr.bf16.gmra.mrb[144].mxu1 %v15266_v28  ;;  %7825 = vmatprep.mubr.bf16.mxu0 %v15271_v47  ;;  %v17032_v47 = vld [vmem:[#allocation29_spill] sm:$0xff] }
 0x54c   :  { %8123 = vmatpush1.bf16.msra.mxu1 %v17031_v14  ;;  %10517 = vmatprep.mubr.msk.bf16.mxu1 %vm7174_vm1, %v17009_v29 }
 0x54d   :  { %v6955_v42 = vmax.f32 %v6674_v22, %v6931_v63  ;;  %v6592_v44 = vpop.f32.mrb[40].mxu0  ;;  %8124 = vmatprep.subr.bf16.mxu1 %v16941_v54 }
 0x54e   :  { %v6651_v37 = vadd.f32 %v6592_v44, %v12417_v39  ;;  %v6849_v50 = vpop.f32.mrb[40].mxu1  ;;  %v6594_v12 = vpop.f32.mrb[41].mxu0  ;;  %v17039_v44 = vld [vmem:[#allocation18_spill] sm:$0xff] }
 0x54f   :  { %v6973_v30 = vmax.f32 %v6954_v36, %v6955_v42  ;;  %v6908_v52 = vadd.f32 %v6849_v50, %v12417_v39  ;;  %v6851_v6 = vpop.f32.mrb[41].mxu1  ;;  %v6595_v28 = vpop.f32.mrb[42].mxu0  ;;  %v17040_v12 = vld [vmem:[#allocation42_spill] sm:$0xff] }
 0x550   :  { %v6675_v51 = vmax.f32 %v6651_v37, 0.0  ;;  %8125 = vmatpush1.bf16.msra.mxu1 %v17032_v47  ;;  %v6652_v8 = vadd.f32 %v6595_v28, %v12417_v39  ;;  %v6852_v17 = vpop.f32.mrb[42].mxu1  ;;  %v6597_v29 = vpop.f32.mrb[43].mxu0  ;;  %v17043_v6 = vld [vmem:[#allocation19_spill] sm:$0xff] }
 0x551   :  { %v6932_v26 = vmax.f32 %v6908_v52, 0.0  ;;  %v6909_v18 = vadd.f32 %v6852_v17, %v12417_v39  ;;  %v6854_v2 = vpop.f32.mrb[43].mxu1  ;;  %8126 = vmatprep.subr.bf16.mxu1 %v16941_v54  ;;  %v15594_v49 = vpack.c.bf16 %v6973_v30, %v6972_v0  ;;  %v17041_v30 = vld [vmem:[#allocation43_spill] sm:$0xff]  ;;  %v17042_v52 = vld [vmem:[#allocation32_spill] sm:$0xff] }
 0x552   :  { %v6676_v13 = vmax.f32 %v6652_v8, 0.0  ;;  %7826 = vmatmul.mubr.bf16.gmra.mrb[148].mxu0 %v17012_v20 }
 0x553   :  { %17033 = vst [vmem:[#allocation26_spill] sm:$0xff] %v15594_v49  ;;  %v6956_v34 = vmax.f32 %v6675_v51, %v6932_v26  ;;  %v6933_v7 = vmax.f32 %v6909_v18, 0.0  ;;  %7923 = vmatmul.mubr.bf16.gmra.mrb[148].mxu1 %v17034_v25  ;;  %7833 = vmatprep.mubr.bf16.mxu0 %v17035_v45 }
 0x554   :  { %8127 = vmatpush1.bf16.msra.mxu1 %v17036_v62  ;;  %10518 = vmatprep.mubr.msk.bf16.mxu1 %vm7174_vm1, %v17037_v27 }
 0x555   :  { %v6957_v21 = vmax.f32 %v6676_v13, %v6933_v7  ;;  %v6600_v24 = vpop.f32.mrb[44].mxu0  ;;  %8128 = vmatprep.subr.bf16.mxu1 %v16941_v54  ;;  %v17044_v7 = vld [vmem:[#allocation33_spill] sm:$0xff] }
 0x556   :  { %v6653_v0 = vadd.f32 %v6600_v24, %v12417_v39  ;;  %v6857_v48 = vpop.f32.mrb[44].mxu1  ;;  %v6602_v23 = vpop.f32.mrb[45].mxu0 }
 0x557   :  { %v6974_v20 = vmax.f32 %v6956_v34, %v6957_v21  ;;  %v6910_v41 = vadd.f32 %v6857_v48, %v12417_v39  ;;  %v6859_v33 = vpop.f32.mrb[45].mxu1  ;;  %v6603_v43 = vpop.f32.mrb[46].mxu0 }
 0x558   :  { %v6677_v15 = vmax.f32 %v6653_v0, 0.0  ;;  %8129 = vmatpush1.bf16.msra.mxu1 %v17038_v56  ;;  %v6654_v40 = vadd.f32 %v6603_v43, %v12417_v39  ;;  %v6860_v5 = vpop.f32.mrb[46].mxu1  ;;  %v6605_v1 = vpop.f32.mrb[47].mxu0 }
 0x559   :  { %v6934_v22 = vmax.f32 %v6910_v41, 0.0  ;;  %v6911_v36 = vadd.f32 %v6860_v5, %v12417_v39  ;;  %v6862_v63 = vpop.f32.mrb[47].mxu1  ;;  %8130 = vmatprep.subr.bf16.mxu1 %v16941_v54  ;;  %v17046_v41 = vld [vmem:[#allocation20_spill] sm:$0xff]  ;;  %v15635_v5 = vld [vmem:[%s16818_s3 + $0xc] ss:$16 sps:$4 sm:$0xff]  }
 0x55a   :  { %v6678_v42 = vmax.f32 %v6654_v40, 0.0  ;;  %7834 = vmatmul.mubr.bf16.gmra.mrb[152].mxu0 %v17039_v44  ;;  %v15629_v40 = vld [vmem:[%s16818_s3 + $0x4] ss:$16 sps:$4 sm:$0xff]  }
 0x55b   :  { %v6958_v37 = vmax.f32 %v6677_v15, %v6934_v22  ;;  %v6935_v50 = vmax.f32 %v6911_v36, 0.0  ;;  %7931 = vmatmul.mubr.bf16.gmra.mrb[152].mxu1 %v17040_v12  ;;  %7841 = vmatprep.mubr.bf16.mxu0 %v17041_v30  ;;  %v17047_v15 = vld [vmem:[#allocation44_spill] sm:$0xff] }
 0x55c   :  { %8131 = vmatpush1.bf16.msra.mxu1 %v17042_v52  ;;  %10519 = vmatprep.mubr.msk.bf16.mxu1 %vm7174_vm1, %v17043_v6 }
 0x55d   :  { %v6959_v28 = vmax.f32 %v6678_v42, %v6935_v50  ;;  %v6608_v51 = vpop.f32.mrb[48].mxu0  ;;  %8132 = vmatprep.subr.bf16.mxu1 %v16941_v54 }
 0x55e   :  { %v6655_v8 = vadd.f32 %v6608_v51, %v12417_v39  ;;  %v6865_v17 = vpop.f32.mrb[48].mxu1  ;;  %v6610_v29 = vpop.f32.mrb[49].mxu0 }
 0x55f   :  { %v6975_v26 = vmax.f32 %v6958_v37, %v6959_v28  ;;  %v6912_v18 = vadd.f32 %v6865_v17, %v12417_v39  ;;  %v6867_v2 = vpop.f32.mrb[49].mxu1  ;;  %v6611_v13 = vpop.f32.mrb[50].mxu0 }
 0x560   :  { %v6679_v34 = vmax.f32 %v6655_v8, 0.0  ;;  %8133 = vmatpush1.bf16.msra.mxu1 %v17044_v7  ;;  %v6656_v25 = vadd.f32 %v6611_v13, %v12417_v39  ;;  %v6868_v45 = vpop.f32.mrb[50].mxu1  ;;  %v6613_v27 = vpop.f32.mrb[51].mxu0  ;;  %v15652_v13 = vld [vmem:[%s16818_s3 + $0x8] ss:$16 sps:$4 sm:$0xff]  }
 0x561   :  { %v6936_v21 = vmax.f32 %v6912_v18, 0.0  ;;  %v6913_v24 = vadd.f32 %v6868_v45, %v12417_v39  ;;  %v6870_v0 = vpop.f32.mrb[51].mxu1  ;;  %8394 = vmatprep.subr.bf16.mxu1 %v16941_v54  ;;  %v15622_v48 = vpack.c.bf16 %v6975_v26, %v6974_v20  ;;  %v15646_v26 = vld [vmem:[%s16818_s3] ss:$16 sps:$4 sm:$0xff]   ;;  %v15662_v45 = vld [vmem:[%s16818_s3 + $0x24] ss:$16 sps:$4 sm:$0xff]  }
 0x562   :  { %v6680_v23 = vmax.f32 %v6656_v25, 0.0  ;;  %7842 = vmatmul.mubr.bf16.gmra.mrb[156].mxu0 %v17046_v41 }
 0x563   :  { %17045 = vst [vmem:[#allocation27_spill] sm:$0xff] %v15622_v48  ;;  %v6960_v33 = vmax.f32 %v6679_v34, %v6936_v21  ;;  %v6937_v43 = vmax.f32 %v6913_v24, 0.0  ;;  %7939 = vmatmul.mubr.bf16.gmra.mrb[156].mxu1 %v17047_v15  ;;  %8041 = vmatprep.mubr.bf16.mxu0 %v15629_v40  ;;  %v17066_v48 = vld [vmem:[#allocation37_spill] sm:$0xff] }
 0x564   :  { %10520 = vmatprep.mubr.msk.bf16.mxu1 %vm7174_vm1, %v15635_v5 }
 0x565   :  { %v6961_v20 = vmax.f32 %v6680_v23, %v6937_v43  ;;  %v6616_v1 = vpop.f32.mrb[52].mxu0 }
 0x566   :  { %v6657_v22 = vadd.f32 %v6616_v1, %v12417_v39  ;;  %v6873_v36 = vpop.f32.mrb[52].mxu1  ;;  %v6618_v63 = vpop.f32.mrb[53].mxu0 }
 0x567   :  { %v6976_v42 = vmax.f32 %v6960_v33, %v6961_v20  ;;  %v6914_v44 = vadd.f32 %v6873_v36, %v12417_v39  ;;  %v6875_v37 = vpop.f32.mrb[53].mxu1  ;;  %v6619_v50 = vpop.f32.mrb[54].mxu0 }
 0x568   :  { %v6681_v12 = vmax.f32 %v6657_v22, 0.0  ;;  %v6658_v30 = vadd.f32 %v6619_v50, %v12417_v39  ;;  %v6876_v6 = vpop.f32.mrb[54].mxu1  ;;  %v6621_v28 = vpop.f32.mrb[55].mxu0 }
 0x569   :  { %v6938_v51 = vmax.f32 %v6914_v44, 0.0  ;;  %v6915_v8 = vadd.f32 %v6876_v6, %v12417_v39  ;;  %v6878_v17 = vpop.f32.mrb[55].mxu1 }
 0x56a   :  { %v6682_v29 = vmax.f32 %v6658_v30, 0.0  ;;  %8042 = vmatmul.mubr.bf16.vlgmr.msra.gmra.mrb[160].mxu0 %v15646_v26  ;;  %v15693_v30 = vld [vmem:[%s16818_s3 + $0x28] ss:$16 sps:$4 sm:$0xff]  }
 0x56b   :  { %v6962_v18 = vmax.f32 %v6681_v12, %v6938_v51  ;;  %v6939_v2 = vmax.f32 %v6915_v8, 0.0  ;;  %8139 = vmatmul.mubr.bf16.vlgmr.msra.gmra.mrb[160].mxu1 %v15652_v13  ;;  %10843 = vmatpush3.bf16.msra.mxu0 %v16973_v4  ;;  %v15669_v4 = vld [vmem:[%s16818_s3 + $0x2c] ss:$16 sps:$4 sm:$0xff]   ;;  %v15703_v51 = vld [vmem:[%s16818_s3 + $0x44] ss:$16 sps:$4 sm:$0xff]  }
 0x56c   :  { %8395 = vmatpush1.bf16.msra.mxu1 %v17021_v46  ;;  %10844 = vmatprep.subr.bf16.mxu0 %v16999_v57 }
 0x56d   :  { %v6963_v34 = vmax.f32 %v6682_v29, %v6939_v2  ;;  %v6624_v25 = vpop.f32.mrb[56].mxu0  ;;  %8396 = vmatprep.subr.bf16.mxu1 %v16941_v54  ;;  %8049 = vmatprep.mubr.bf16.mxu0 %v15662_v45 }
 0x56e   :  { %v6659_v27 = vadd.f32 %v6624_v25, %v12417_v39  ;;  %v6881_v21 = vpop.f32.mrb[56].mxu1  ;;  %v6626_v24 = vpop.f32.mrb[57].mxu0  ;;  %10521 = vmatprep.mubr.msk.bf16.mxu1 %vm7174_vm1, %v15669_v4 }
 0x56f   :  { %v6977_v0 = vmax.f32 %v6962_v18, %v6963_v34  ;;  %v6916_v23 = vadd.f32 %v6881_v21, %v12417_v39  ;;  %v6883_v41 = vpop.f32.mrb[57].mxu1  ;;  %10845 = vmatpush3.bf16.msra.mxu0 %v16974_v31  ;;  %v6627_v33 = vpop.f32.mrb[58].mxu0  ;;  %v15685_v31 = vld [vmem:[%s16818_s3 + $0x20] ss:$16 sps:$4 sm:$0xff]   ;;  %v15710_v18 = vld [vmem:[%s16818_s3 + $0x4c] ss:$16 sps:$4 sm:$0xff]  }
 0x570   :  { %v6683_v43 = vmax.f32 %v6659_v27, 0.0  ;;  %8397 = vmatpush1.bf16.msra.mxu1 %v17023_v53  ;;  %v6660_v15 = vadd.f32 %v6627_v33, %v12417_v39  ;;  %v6884_v20 = vpop.f32.mrb[58].mxu1  ;;  %10846 = vmatprep.subr.bf16.mxu0 %v17001_v60  ;;  %v6629_v1 = vpop.f32.mrb[59].mxu0 }
 0x571   :  { %v6940_v22 = vmax.f32 %v6916_v23, 0.0  ;;  %v6917_v36 = vadd.f32 %v6884_v20, %v12417_v39  ;;  %v6886_v63 = vpop.f32.mrb[59].mxu1  ;;  %8398 = vmatprep.subr.bf16.mxu1 %v16941_v54  ;;  %v15680_v44 = vpack.c.bf16 %v6977_v0, %v6976_v42  ;;  %v17049_v42 = vld [vmem:[#allocation12_spill] sm:$0xff] }
 0x572   :  { %v6684_v37 = vmax.f32 %v6660_v15, 0.0  ;;  %8050 = vmatmul.mubr.bf16.gmra.mrb[164].mxu0 %v15685_v31  ;;  %v15741_v63 = vld [vmem:[%s16818_s3 + $0x64] ss:$16 sps:$4 sm:$0xff]  }
 0x573   :  { %17048 = vst [vmem:[#allocation5_spill] sm:$0xff] %v15680_v44  ;;  %v15688_v50 = vmax.f32 %v6683_v43, %v6940_v22  ;;  %v6941_v12 = vmax.f32 %v6917_v36, 0.0  ;;  %8147 = vmatmul.mubr.bf16.gmra.mrb[164].mxu1 %v15693_v30  ;;  %10847 = vmatpush3.bf16.msra.mxu0 %v17049_v42  ;;  %v15731_v22 = vld [vmem:[%s16818_s3 + $0x48] ss:$16 sps:$4 sm:$0xff]  }
 0x574   :  { %8399 = vmatpush1.bf16.msra.mxu1 %v17031_v14  ;;  %10848 = vmatprep.subr.bf16.mxu0 %v17004_v19 }
 0x575   :  { %v6965_v6 = vmax.f32 %v6684_v37, %v6941_v12  ;;  %v6632_v28 = vpop.f32.mrb[60].mxu0  ;;  %8400 = vmatprep.subr.bf16.mxu1 %v16941_v54  ;;  %8057 = vmatprep.mubr.bf16.mxu0 %v15703_v51 }
 0x576   :  { %v6661_v8 = vadd.f32 %v6632_v28, %v12417_v39  ;;  %v6889_v17 = vpop.f32.mrb[60].mxu1  ;;  %v6634_v29 = vpop.f32.mrb[61].mxu0  ;;  %10522 = vmatprep.mubr.msk.bf16.mxu1 %vm7174_vm1, %v15710_v18 }
 0x577   :  { %v6978_v2 = vmax.f32 %v15688_v50, %v6965_v6  ;;  %v6918_v34 = vadd.f32 %v6889_v17, %v12417_v39  ;;  %v6891_v25 = vpop.f32.mrb[61].mxu1  ;;  %10849 = vmatpush3.bf16.msra.mxu0 %v16977_v32  ;;  %v6635_v27 = vpop.f32.mrb[62].mxu0  ;;  %v15725_v32 = vld [vmem:[%s16818_s3 + $0x40] ss:$16 sps:$4 sm:$0xff]  }
 0x578   :  { %v6685_v21 = vmax.f32 %v6661_v8, 0.0  ;;  %8401 = vmatpush1.bf16.msra.mxu1 %v17032_v47  ;;  %v6662_v24 = vadd.f32 %v6635_v27, %v12417_v39  ;;  %v6892_v0 = vpop.f32.mrb[62].mxu1  ;;  %10850 = vmatprep.subr.bf16.mxu0 %v17008_v58  ;;  %v6637_v23 = vpop.f32.mrb[63].mxu0 }
 0x579   :  { %v6942_v41 = vmax.f32 %v6918_v34, 0.0  ;;  %v6919_v33 = vadd.f32 %v6892_v0, %v12417_v39  ;;  %v6894_v43 = vpop.f32.mrb[63].mxu1  ;;  %8402 = vmatprep.subr.bf16.mxu1 %v16941_v54  ;;  %v15780_v0 = vld [vmem:[%s16818_s3 + $0x84] ss:$16 sps:$4 sm:$0xff]  }
 0x57a   :  { %v6686_v15 = vmax.f32 %v6662_v24, 0.0  ;;  %8058 = vmatmul.mubr.bf16.gmra.mrb[168].mxu0 %v15725_v32  ;;  %v15770_v24 = vld [vmem:[%s16818_s3 + $0x68] ss:$16 sps:$4 sm:$0xff]   ;;  %17053 = vst [vmem:[#allocation40_spill] sm:$0xff] %v15780_v0 }
 0x57b   :  { %v6966_v20 = vmax.f32 %v6685_v21, %v6942_v41  ;;  %v6943_v1 = vmax.f32 %v6919_v33, 0.0  ;;  %8155 = vmatmul.mubr.bf16.gmra.mrb[168].mxu1 %v15731_v22  ;;  %10851 = vmatpush3.bf16.msra.mxu0 %v16978_v9  ;;  %v15747_v9 = vld [vmem:[%s16818_s3 + $0x6c] ss:$16 sps:$4 sm:$0xff]   ;;  %v15762_v21 = vld [vmem:[%s16818_s3 + $0x60] ss:$16 sps:$4 sm:$0xff]   ;;  %17052 = vst [vmem:[#allocation16_spill] sm:$0xff] %v15770_v24 }
 0x57c   :  { %8403 = vmatpush1.bf16.msra.mxu1 %v17036_v62  ;;  %10852 = vmatprep.subr.bf16.mxu0 %v17010_v35  ;;  %17051 = vst [vmem:[#allocation7_spill] sm:$0xff] %v15762_v21  ;;  %v15786_v33 = vld [vmem:[%s16818_s3 + $0x8c] ss:$16 sps:$4 sm:$0xff]  }
 0x57d   :  { %v6967_v39 = vmax.f32 %v6686_v15, %v6943_v1  ;;  %v10602_v36 = vpop.f32.mrb[64].mxu0  ;;  %8404 = vmatprep.subr.bf16.mxu1 %v16941_v54  ;;  %8065 = vmatprep.mubr.bf16.mxu0 %v15741_v63  ;;  %17054 = vst [vmem:[#allocation17_spill] sm:$0xff] %v15786_v33 }
 0x57e   :  { %v7330_v37 = vpop.f32.mrb[64].mxu1  ;;  %v10603_v50 = vpop.f32.mrb[65].mxu0  ;;  %10523 = vmatprep.mubr.msk.bf16.mxu1 %vm7174_vm1, %v15747_v9 }
 0x57f   :  { %v6979_v12 = vmax.f32 %v6966_v20, %v6967_v39  ;;  %v10604_v42 = vadd.f32 %v10603_v50, %v10602_v36  ;;  %v7332_v6 = vpop.f32.mrb[65].mxu1  ;;  %10853 = vmatpush3.bf16.msra.mxu0 %v16979_v11  ;;  %v10605_v28 = vpop.f32.mrb[66].mxu0 }
 0x580   :  { %8405 = vmatpush1.bf16.msra.mxu1 %v17038_v56  ;;  %v7333_v8 = vpop.f32.mrb[66].mxu1  ;;  %10854 = vmatprep.subr.bf16.mxu0 %v17015_v3  ;;  %v10606_v17 = vpop.f32.mrb[67].mxu0  ;;  %v15807_v6 = vld [vmem:[%s16818_s3 + $0x88] ss:$16 sps:$4 sm:$0xff]  }
 0x581   :  { %v15754_v29 = vadd.f32 %v10604_v42, %v7330_v37  ;;  %v10607_v34 = vadd.f32 %v10606_v17, %v10605_v28  ;;  %v7335_v25 = vpop.f32.mrb[67].mxu1  ;;  %8406 = vmatprep.subr.bf16.mxu1 %v16941_v54  ;;  %v15757_v27 = vpack.c.bf16 %v6979_v12, %v6978_v2  ;;  %v15799_v12 = vld [vmem:[%s16818_s3 + $0x80] ss:$16 sps:$4 sm:$0xff]   ;;  %17056 = vst [vmem:[#allocation18_spill] sm:$0xff] %v15807_v6  ;;  %v15813_v28 = vld [vmem:[%s16818_s3 + $0xa4] ss:$16 sps:$4 sm:$0xff]  }
 0x582   :  { %8066 = vmatmul.mubr.bf16.gmra.mrb[172].mxu0 %v15762_v21  ;;  %17055 = vst [vmem:[#allocation31_spill] sm:$0xff] %v15799_v12  ;;  %17057 = vst [vmem:[#allocation42_spill] sm:$0xff] %v15813_v28  ;;  %v15820_v17 = vld [vmem:[%s16818_s3 + $0xac] ss:$16 sps:$4 sm:$0xff]  }
 0x583   :  { %17050 = vst [vmem:[#allocation9_spill] sm:$0xff] %v15757_v27  ;;  %v15765_v11 = vadd.f32 %v10607_v34, %v7333_v8  ;;  %8163 = vmatmul.mubr.bf16.gmra.mrb[172].mxu1 %v15770_v24  ;;  %10855 = vmatpush3.bf16.msra.mxu0 %v16988_v59  ;;  %v17058_v8 = vld [vmem:[#allocation34_spill] sm:$0xff]  ;;  %17059 = vst [vmem:[#allocation43_spill] sm:$0xff] %v15820_v17 }
 0x584   :  { %8407 = vmatpush1.bf16.msra.mxu1 %v17042_v52  ;;  %10856 = vmatprep.subr.bf16.mxu0 %v17017_v38  ;;  %v15832_v27 = vld [vmem:[%s16818_s3 + $0xa0] ss:$16 sps:$4 sm:$0xff]  }
 0x585   :  { %v10608_v2 = vpop.f32.mrb[68].mxu0  ;;  %8408 = vmatprep.subr.bf16.mxu1 %v16941_v54  ;;  %8073 = vmatprep.mubr.bf16.mxu0 %v15780_v0  ;;  %17061 = vst [vmem:[#allocation32_spill] sm:$0xff] %v15832_v27 }
 0x586   :  { %v7338_v23 = vpop.f32.mrb[68].mxu1  ;;  %v10609_v41 = vpop.f32.mrb[69].mxu0  ;;  %10524 = vmatprep.mubr.msk.bf16.mxu1 %vm7174_vm1, %v15786_v33 }
 0x587   :  { %v10610_v43 = vadd.f32 %v10609_v41, %v10608_v2  ;;  %v7340_v15 = vpop.f32.mrb[69].mxu1  ;;  %10857 = vmatpush3.bf16.msra.mxu0 %v16992_v16  ;;  %v10611_v20 = vpop.f32.mrb[70].mxu0 }
 0x588   :  { %8409 = vmatpush1.bf16.msra.mxu1 %v17044_v7  ;;  %v7341_v1 = vpop.f32.mrb[70].mxu1  ;;  %10906 = vmatprep.subr.bf16.mxu0 %v17015_v3  ;;  %v10612_v39 = vpop.f32.mrb[71].mxu0  ;;  %v17060_v15 = vld [vmem:[#allocation35_spill] sm:$0xff] }
 0x589   :  { %v15793_v36 = vadd.f32 %v10610_v43, %v7338_v23  ;;  %v10613_v37 = vadd.f32 %v10612_v39, %v10611_v20  ;;  %v7343_v50 = vpop.f32.mrb[71].mxu1  ;;  %8410 = vmatprep.subr.bf16.mxu1 %v16941_v54 }
 0x58a   :  { %8074 = vmatmul.mubr.bf16.gmra.mrb[176].mxu0 %v15799_v12 }
 0x58b   :  { %v15802_v42 = vadd.f32 %v10613_v37, %v7341_v1  ;;  %8171 = vmatmul.mubr.bf16.gmra.mrb[176].mxu1 %v15807_v6  ;;  %8081 = vmatprep.mubr.bf16.mxu0 %v15813_v28 }
 0x58c   :  { %8411 = vmatpush1.bf16.msra.mxu1 %v17058_v8  ;;  %10525 = vmatprep.mubr.msk.bf16.mxu1 %vm7174_vm1, %v15820_v17 }
 0x58d   :  { %v10614_v34 = vpop.f32.mrb[72].mxu0  ;;  %8412 = vmatprep.subr.bf16.mxu1 %v16941_v54 }
 0x58e   :  { %v7346_v25 = vpop.f32.mrb[72].mxu1  ;;  %v10615_v2 = vpop.f32.mrb[73].mxu0 }
 0x58f   :  { %v10616_v23 = vadd.f32 %v10615_v2, %v10614_v34  ;;  %v7348_v41 = vpop.f32.mrb[73].mxu1  ;;  %v10617_v43 = vpop.f32.mrb[74].mxu0  ;;  %v15840_v2 = vld [vmem:[%s16818_s3 + $0xa8] ss:$16 sps:$4 sm:$0xff]  }
 0x590   :  { %8413 = vmatpush1.bf16.msra.mxu1 %v17060_v15  ;;  %v7349_v20 = vpop.f32.mrb[74].mxu1  ;;  %v10618_v1 = vpop.f32.mrb[75].mxu0  ;;  %17062 = vst [vmem:[#allocation19_spill] sm:$0xff] %v15840_v2  ;;  %v15853_v41 = vld [vmem:[%s16818_s3 + $0xcc] ss:$16 sps:$4 sm:$0xff]  }
 0x591   :  { %v15826_v39 = vadd.f32 %v10616_v23, %v7346_v25  ;;  %v10619_v37 = vadd.f32 %v10618_v1, %v10617_v43  ;;  %v7351_v50 = vpop.f32.mrb[75].mxu1  ;;  %8414 = vmatprep.subr.bf16.mxu1 %v16941_v54  ;;  %v15846_v25 = vld [vmem:[%s16818_s3 + $0xc4] ss:$16 sps:$4 sm:$0xff]   ;;  %17065 = vst [vmem:[#allocation20_spill] sm:$0xff] %v15853_v41 }
 0x592   :  { %8082 = vmatmul.mubr.bf16.gmra.mrb[180].mxu0 %v15832_v27  ;;  %17063 = vst [vmem:[#allocation33_spill] sm:$0xff] %v15846_v25  ;;  %v17064_v23 = vld [vmem:[#allocation36_spill] sm:$0xff] }
 0x593   :  { %v15835_v34 = vadd.f32 %v10619_v37, %v7349_v20  ;;  %8179 = vmatmul.mubr.bf16.gmra.mrb[180].mxu1 %v15840_v2  ;;  %8089 = vmatprep.mubr.bf16.mxu0 %v15846_v25 }
 0x594   :  { %8415 = vmatpush1.bf16.msra.mxu1 %v17064_v23  ;;  %10526 = vmatprep.mubr.msk.bf16.mxu1 %vm7174_vm1, %v15853_v41  ;;  %v15865_v41 = vld [vmem:[%s16818_s3 + $0xc0] ss:$16 sps:$4 sm:$0xff]  }
 0x595   :  { %v10620_v43 = vpop.f32.mrb[76].mxu0  ;;  %8416 = vmatprep.subr.bf16.mxu1 %v16941_v54  ;;  %17068 = vst [vmem:[#allocation12_spill] sm:$0xff] %v15865_v41 }
 0x596   :  { %v7354_v20 = vpop.f32.mrb[76].mxu1  ;;  %v10621_v1 = vpop.f32.mrb[77].mxu0 }
 0x597   :  { %v10622_v37 = vadd.f32 %v10621_v1, %v10620_v43  ;;  %v7356_v50 = vpop.f32.mrb[77].mxu1  ;;  %v10623_v44 = vpop.f32.mrb[78].mxu0  ;;  %v15873_v1 = vld [vmem:[%s16818_s3 + $0xc8] ss:$16 sps:$4 sm:$0xff]  }
 0x598   :  { %8417 = vmatpush1.bf16.msra.mxu1 %v17066_v48  ;;  %v7357_v49 = vpop.f32.mrb[78].mxu1  ;;  %v10624_v10 = vpop.f32.mrb[79].mxu0  ;;  %17070 = vst [vmem:[#allocation35_spill] sm:$0xff] %v15873_v1 }
 0x599   :  { %v15859_v55 = vadd.f32 %v10622_v37, %v7354_v20  ;;  %v10625_v3 = vadd.f32 %v10624_v10, %v10623_v44  ;;  %v7359_v25 = vpop.f32.mrb[79].mxu1  ;;  %8418 = vmatprep.subr.bf16.mxu1 %v16941_v54  ;;  %v15879_v10 = vld [vmem:[%s16818_s3 + $0xe4] ss:$16 sps:$4 sm:$0xff]  }
 0x59a   :  { %8090 = vmatmul.mubr.bf16.gmra.mrb[184].mxu0 %v15865_v41  ;;  %17071 = vst [vmem:[#allocation36_spill] sm:$0xff] %v15879_v10  ;;  %v17072_v44 = vld [vmem:[#allocation38_spill] sm:$0xff] }
 0x59b   :  { %17067 = vst [vmem:[#allocation44_spill] sm:$0xff] %v15859_v55  ;;  %v15868_v43 = vadd.f32 %v10625_v3, %v7357_v49  ;;  %8187 = vmatmul.mubr.bf16.gmra.mrb[184].mxu1 %v15873_v1  ;;  %8097 = vmatprep.mubr.bf16.mxu0 %v15879_v10  ;;  %v15886_v3 = vld [vmem:[%s16818_s3 + $0xec] ss:$16 sps:$4 sm:$0xff]  }
 0x59c   :  { %8419 = vmatpush1.bf16.msra.mxu1 %v17072_v44  ;;  %17073 = vst [vmem:[#allocation38_spill] sm:$0xff] %v15886_v3  ;;  %10527 = vmatprep.mubr.msk.bf16.mxu1 %vm7174_vm1, %v15886_v3  ;;  %v15898_v3 = vld [vmem:[%s16818_s3 + $0xe0] ss:$16 sps:$4 sm:$0xff]  }
 0x59d   :  { %17069 = vst [vmem:[#allocation34_spill] sm:$0xff] %v15868_v43  ;;  %v10626_v49 = vpop.f32.mrb[80].mxu0  ;;  %8420 = vmatprep.subr.bf16.mxu1 %v16941_v54  ;;  %v17074_v43 = vld [vmem:[#allocation39_spill] sm:$0xff]  ;;  %17076 = vst [vmem:[#allocation47_spill] sm:$0xff] %v15898_v3 }
 0x59e   :  { %v7362_v25 = vpop.f32.mrb[80].mxu1  ;;  %v10627_v20 = vpop.f32.mrb[81].mxu0 }
 0x59f   :  { %v10628_v37 = vadd.f32 %v10627_v20, %v10626_v49  ;;  %v7364_v50 = vpop.f32.mrb[81].mxu1  ;;  %v10629_v1 = vpop.f32.mrb[82].mxu0  ;;  %v15906_v20 = vld [vmem:[%s16818_s3 + $0xe8] ss:$16 sps:$4 sm:$0xff]  }
 0x5a0   :  { %8421 = vmatpush1.bf16.msra.mxu1 %v17074_v43  ;;  %v7365_v10 = vpop.f32.mrb[82].mxu1  ;;  %v10630_v41 = vpop.f32.mrb[83].mxu0  ;;  %17078 = vst [vmem:[#allocation49_spill] sm:$0xff] %v15906_v20 }
 0x5a1   :  { %v15892_v55 = vadd.f32 %v10628_v37, %v7362_v25  ;;  %v10631_v2 = vadd.f32 %v10630_v41, %v10629_v1  ;;  %v7367_v27 = vpop.f32.mrb[83].mxu1  ;;  %8650 = vmatprep.subr.bf16.mxu1 %v16941_v54 }
 0x5a2   :  { %8098 = vmatmul.mubr.bf16.gmra.mrb[188].mxu0 %v15898_v3 }
 0x5a3   :  { %17075 = vst [vmem:[#allocation39_spill] sm:$0xff] %v15892_v55  ;;  %v15901_v49 = vadd.f32 %v10631_v2, %v7365_v10  ;;  %8195 = vmatmul.mubr.bf16.gmra.mrb[188].mxu1 %v15906_v20  ;;  %8329 = vmatprep.mubr.bf16.mxu0 %v15629_v40 }
 0x5a4   :  { %10528 = vmatprep.mubr.msk.bf16.mxu1 %vm7174_vm1, %v15635_v5 }
 0x5a5   :  { %17077 = vst [vmem:[#allocation48_spill] sm:$0xff] %v15901_v49  ;;  %v10632_v27 = vpop.f32.mrb[84].mxu0 }
 0x5a6   :  { %v7370_v41 = vpop.f32.mrb[84].mxu1  ;;  %v10633_v1 = vpop.f32.mrb[85].mxu0 }
 0x5a7   :  { %v10634_v25 = vadd.f32 %v10633_v1, %v10632_v27  ;;  %v7372_v37 = vpop.f32.mrb[85].mxu1  ;;  %v10635_v50 = vpop.f32.mrb[86].mxu0 }
 0x5a8   :  { %v7373_v2 = vpop.f32.mrb[86].mxu1  ;;  %v10636_v10 = vpop.f32.mrb[87].mxu0 }
 0x5a9   :  { %v15912_v3 = vadd.f32 %v10634_v25, %v7370_v41  ;;  %v10637_v49 = vadd.f32 %v10636_v10, %v10635_v50  ;;  %v7375_v55 = vpop.f32.mrb[87].mxu1 }
 0x5aa   :  { %8330 = vmatmul.mubr.bf16.vlgmr.msra.gmra.mrb[192].mxu0 %v15646_v26 }
 0x5ab   :  { %v15915_v20 = vadd.f32 %v10637_v49, %v7373_v2  ;;  %8427 = vmatmul.mubr.bf16.vlgmr.msra.gmra.mrb[192].mxu1 %v15652_v13  ;;  %10907 = vmatpush3.bf16.msra.mxu0 %v16988_v59 }
 0x5ac   :  { %8651 = vmatpush1.bf16.msra.mxu1 %v17042_v52  ;;  %10908 = vmatprep.subr.bf16.mxu0 %v17017_v38 }
 0x5ad   :  { %v10638_v27 = vpop.f32.mrb[88].mxu0  ;;  %8652 = vmatprep.subr.bf16.mxu1 %v16941_v54  ;;  %8337 = vmatprep.mubr.bf16.mxu0 %v15662_v45 }
 0x5ae   :  { %v7378_v41 = vpop.f32.mrb[88].mxu1  ;;  %v10639_v1 = vpop.f32.mrb[89].mxu0  ;;  %10529 = vmatprep.mubr.msk.bf16.mxu1 %vm7174_vm1, %v15669_v4 }
 0x5af   :  { %v10640_v55 = vadd.f32 %v10639_v1, %v10638_v27  ;;  %v7380_v49 = vpop.f32.mrb[89].mxu1  ;;  %10909 = vmatpush3.bf16.msra.mxu0 %v16992_v16  ;;  %v10641_v25 = vpop.f32.mrb[90].mxu0 }
 0x5b0   :  { %8653 = vmatpush1.bf16.msra.mxu1 %v17044_v7  ;;  %v7381_v59 = vpop.f32.mrb[90].mxu1  ;;  %10910 = vmatprep.subr.bf16.mxu0 %v17021_v46  ;;  %v10642_v37 = vpop.f32.mrb[91].mxu0 }
 0x5b1   :  { %v15928_v50 = vadd.f32 %v10640_v55, %v7378_v41  ;;  %v10643_v2 = vadd.f32 %v10642_v37, %v10641_v25  ;;  %v7383_v10 = vpop.f32.mrb[91].mxu1  ;;  %8654 = vmatprep.subr.bf16.mxu1 %v16941_v54 }
 0x5b2   :  { %8338 = vmatmul.mubr.bf16.gmra.mrb[196].mxu0 %v15685_v31 }
 0x5b3   :  { %v15932_v38 = vadd.f32 %v10643_v2, %v7381_v59  ;;  %8435 = vmatmul.mubr.bf16.gmra.mrb[196].mxu1 %v15693_v30  ;;  %10911 = vmatpush3.bf16.msra.mxu0 %v16995_v61 }
 0x5b4   :  { %8655 = vmatpush1.bf16.msra.mxu1 %v17058_v8  ;;  %10912 = vmatprep.subr.bf16.mxu0 %v17023_v53 }
 0x5b5   :  { %v10644_v16 = vpop.f32.mrb[92].mxu0  ;;  %8656 = vmatprep.subr.bf16.mxu1 %v16941_v54  ;;  %8345 = vmatprep.mubr.bf16.mxu0 %v15703_v51 }
 0x5b6   :  { %v7386_v27 = vpop.f32.mrb[92].mxu1  ;;  %v10645_v41 = vpop.f32.mrb[93].mxu0  ;;  %10530 = vmatprep.mubr.msk.bf16.mxu1 %vm7174_vm1, %v15710_v18 }
 0x5b7   :  { %v10646_v1 = vadd.f32 %v10645_v41, %v10644_v16  ;;  %v7388_v55 = vpop.f32.mrb[93].mxu1  ;;  %10913 = vmatpush3.bf16.msra.mxu0 %v16999_v57  ;;  %v10647_v49 = vpop.f32.mrb[94].mxu0 }
 0x5b8   :  { %8657 = vmatpush1.bf16.msra.mxu1 %v17060_v15  ;;  %v7389_v61 = vpop.f32.mrb[94].mxu1  ;;  %10914 = vmatprep.subr.bf16.mxu0 %v17031_v14  ;;  %v10648_v25 = vpop.f32.mrb[95].mxu0 }
 0x5b9   :  { %v15945_v59 = vadd.f32 %v10646_v1, %v7386_v27  ;;  %v10649_v37 = vadd.f32 %v10648_v25, %v10647_v49  ;;  %v7391_v2 = vpop.f32.mrb[95].mxu1  ;;  %8658 = vmatprep.subr.bf16.mxu1 %v16941_v54  ;;  %v15953_v57 = vpop.permute.xlu0 %7395 }
 0x5ba   :  { %8346 = vmatmul.mubr.bf16.gmra.mrb[200].mxu0 %v15725_v32  ;;  %v15957_v16 = vpop.permute.xlu1 %7400 }
 0x5bb   :  { %v15949_v10 = vadd.f32 %v10649_v37, %v7389_v61  ;;  %8443 = vmatmul.mubr.bf16.gmra.mrb[200].mxu1 %v15731_v22  ;;  %10915 = vmatpush3.bf16.msra.mxu0 %v17001_v60  ;;  %v7403_v37 = vadd.f32 %v15953_v57, %v15754_v29 }
 0x5bc   :  { %8659 = vmatpush1.bf16.msra.mxu1 %v17064_v23  ;;  %10916 = vmatprep.subr.bf16.mxu0 %v17032_v47 }
 0x5bd   :  { %v10666_v27 = vpop.f32.mrb[96].mxu0  ;;  %8660 = vmatprep.subr.bf16.mxu1 %v16941_v54  ;;  %8353 = vmatprep.mubr.bf16.mxu0 %v15741_v63  ;;  %v7419_v29 = vmax.f32 %v7403_v37, 0.0 }
 0x5be   :  { %v7596_v41 = vpop.f32.mrb[96].mxu1  ;;  %v10667_v1 = vpop.f32.mrb[97].mxu0  ;;  %10531 = vmatprep.mubr.msk.bf16.mxu1 %vm7174_vm1, %v15747_v9 }
 0x5bf   :  { %v10668_v55 = vadd.f32 %v10667_v1, %v10666_v27  ;;  %v7598_v60 = vpop.f32.mrb[97].mxu1  ;;  %10917 = vmatpush3.bf16.msra.mxu0 %v17004_v19  ;;  %v10669_v49 = vpop.f32.mrb[98].mxu0  ;;  %v7404_v19 = vadd.f32 %v15957_v16, %v15765_v11 }
 0x5c0   :  { %8661 = vmatpush1.bf16.msra.mxu1 %v17066_v48  ;;  %v7599_v61 = vpop.f32.mrb[98].mxu1  ;;  %10918 = vmatprep.subr.bf16.mxu0 %v17036_v62  ;;  %v10670_v25 = vpop.f32.mrb[99].mxu0 }
 0x5c1   :  { %v7597_v2 = vadd.f32 %v10668_v55, %v7596_v41  ;;  %v10671_v47 = vadd.f32 %v10670_v25, %v10669_v49  ;;  %v7601_v14 = vpop.f32.mrb[99].mxu1  ;;  %8662 = vmatprep.subr.bf16.mxu1 %v16941_v54  ;;  %v7420_v49 = vmax.f32 %v7404_v19, 0.0  ;;  %v7406_v19 = vadd.f32 %v15957_v16, %v15802_v42 }
 0x5c2   :  { %8354 = vmatmul.mubr.bf16.gmra.mrb[204].mxu0 %v15762_v21 }
 0x5c3   :  { %v7659_v27 = vadd.f32 %v7597_v2, %v15953_v57  ;;  %v7600_v1 = vadd.f32 %v10671_v47, %v7599_v61  ;;  %8451 = vmatmul.mubr.bf16.gmra.mrb[204].mxu1 %v15770_v24  ;;  %10919 = vmatpush3.bf16.msra.mxu0 %v17008_v58 }
 0x5c4   :  { %8663 = vmatpush1.bf16.msra.mxu1 %v17072_v44  ;;  %10920 = vmatprep.subr.bf16.mxu0 %v17038_v56 }
 0x5c5   :  { %v7675_v14 = vmax.f32 %v7659_v27, 0.0  ;;  %v7660_v41 = vadd.f32 %v7600_v1, %v15957_v16  ;;  %v10672_v55 = vpop.f32.mrb[100].mxu0  ;;  %8664 = vmatprep.subr.bf16.mxu1 %v16941_v54  ;;  %8361 = vmatprep.mubr.bf16.mxu0 %v15780_v0  ;;  %v7405_v0 = vadd.f32 %v15953_v57, %v15793_v36 }
 0x5c6   :  { %v7604_v60 = vpop.f32.mrb[100].mxu1  ;;  %v10673_v11 = vpop.f32.mrb[101].mxu0  ;;  %10532 = vmatprep.mubr.msk.bf16.mxu1 %vm7174_vm1, %v15786_v33 }
 0x5c7   :  { %v15982_v47 = vmax.f32 %v7419_v29, %v7675_v14  ;;  %v7676_v61 = vmax.f32 %v7660_v41, 0.0  ;;  %v10674_v25 = vadd.f32 %v10673_v11, %v10672_v55  ;;  %v7606_v2 = vpop.f32.mrb[101].mxu1  ;;  %10921 = vmatpush3.bf16.msra.mxu0 %v17010_v35  ;;  %v10675_v37 = vpop.f32.mrb[102].mxu0  ;;  %v17079_v11 = vld [vmem:[#allocation4_spill] sm:$0xff]  ;;  %v7421_v36 = vmax.f32 %v7405_v0, 0.0 }
 0x5c8   :  { %8665 = vmatpush1.bf16.msra.mxu1 %v17074_v43  ;;  %v7607_v27 = vpop.f32.mrb[102].mxu1  ;;  %10970 = vmatprep.subr.bf16.mxu0 %v17036_v62  ;;  %v10676_v1 = vpop.f32.mrb[103].mxu0  ;;  %v17080_v62 = vld [vmem:[#allocation8_spill] sm:$0xff] }
 0x5c9   :  { %v7692_v48 = vmax.f32 %v7420_v49, %v7676_v61  ;;  %v7605_v33 = vadd.f32 %v10674_v25, %v7604_v60  ;;  %v10677_v29 = vadd.f32 %v10676_v1, %v10675_v37  ;;  %v7609_v14 = vpop.f32.mrb[103].mxu1  ;;  %8666 = vmatprep.subr.bf16.mxu1 %v16941_v54 }
 0x5ca   :  { %8362 = vmatmul.mubr.bf16.gmra.mrb[208].mxu0 %v15799_v12  ;;  %v7407_v14 = vadd.f32 %v15953_v57, %v15826_v39 }
 0x5cb   :  { %v7661_v41 = vadd.f32 %v7605_v33, %v15953_v57  ;;  %v7608_v55 = vadd.f32 %v10677_v29, %v7607_v27  ;;  %8459 = vmatmul.mubr.bf16.gmra.mrb[208].mxu1 %v15807_v6  ;;  %8369 = vmatprep.mubr.bf16.mxu0 %v15813_v28  ;;  %v7422_v33 = vmax.f32 %v7406_v19, 0.0  ;;  %v7408_v19 = vadd.f32 %v15957_v16, %v15835_v34 }
 0x5cc   :  { %8667 = vmatpush1.bf16.msra.mxu1 %v17079_v11  ;;  %10533 = vmatprep.mubr.msk.bf16.mxu1 %vm7174_vm1, %v15820_v17 }
 0x5cd   :  { %v7677_v60 = vmax.f32 %v7661_v41, 0.0  ;;  %v7662_v49 = vadd.f32 %v7608_v55, %v15957_v16  ;;  %v10678_v61 = vpop.f32.mrb[104].mxu0  ;;  %8668 = vmatprep.subr.bf16.mxu1 %v16941_v54 }
 0x5ce   :  { %v7612_v42 = vpop.f32.mrb[104].mxu1  ;;  %v10679_v25 = vpop.f32.mrb[105].mxu0 }
 0x5cf   :  { %v7693_v2 = vmax.f32 %v7421_v36, %v7677_v60  ;;  %v7678_v37 = vmax.f32 %v7662_v49, 0.0  ;;  %v10680_v27 = vadd.f32 %v10679_v25, %v10678_v61  ;;  %v7614_v1 = vpop.f32.mrb[105].mxu1  ;;  %v10681_v29 = vpop.f32.mrb[106].mxu0  ;;  %v17081_v36 = vld [vmem:[#allocation32_spill] sm:$0xff]  ;;  %v17082_v61 = vld [vmem:[#allocation19_spill] sm:$0xff]  ;;  %v17083_v25 = vld [vmem:[#allocation33_spill] sm:$0xff] }
 0x5d0   :  { %8669 = vmatpush1.bf16.msra.mxu1 %v17080_v62  ;;  %v7615_v0 = vpop.f32.mrb[106].mxu1  ;;  %v10682_v41 = vpop.f32.mrb[107].mxu0 }
 0x5d1   :  { %v7707_v55 = vmax.f32 %v15982_v47, %v7693_v2  ;;  %v7694_v17 = vmax.f32 %v7422_v33, %v7678_v37  ;;  %v7613_v28 = vadd.f32 %v10680_v27, %v7612_v42  ;;  %v10683_v6 = vadd.f32 %v10682_v41, %v10681_v29  ;;  %v7617_v12 = vpop.f32.mrb[107].mxu1  ;;  %8670 = vmatprep.subr.bf16.mxu1 %v16941_v54  ;;  %v17084_v47 = vld [vmem:[#allocation6_spill] sm:$0xff]  ;;  %v17085_v42 = vld [vmem:[#allocation20_spill] sm:$0xff] }
 0x5d2   :  { %8370 = vmatmul.mubr.bf16.gmra.mrb[212].mxu0 %v17081_v36  ;;  %v7423_v12 = vmax.f32 %v7407_v14, 0.0  ;;  %v17087_v41 = vld [vmem:[#allocation10_spill] sm:$0xff] }
 0x5d3   :  { %v7708_v60 = vmax.f32 %v7692_v48, %v7694_v17  ;;  %v7663_v39 = vadd.f32 %v7613_v28, %v15953_v57  ;;  %v7616_v49 = vadd.f32 %v10683_v6, %v7615_v0  ;;  %8467 = vmatmul.mubr.bf16.gmra.mrb[212].mxu1 %v17082_v61  ;;  %8377 = vmatprep.mubr.bf16.mxu0 %v17083_v25  ;;  %v7424_v17 = vmax.f32 %v7408_v19, 0.0  ;;  %v17090_v19 = vld [vmem:[#allocation34_spill] sm:$0xff] }
 0x5d4   :  { %8671 = vmatpush1.bf16.msra.mxu1 %v17084_v47  ;;  %10534 = vmatprep.mubr.msk.bf16.mxu1 %vm7174_vm1, %v17085_v42 }
 0x5d5   :  { %v7679_v33 = vmax.f32 %v7663_v39, 0.0  ;;  %v7664_v2 = vadd.f32 %v7616_v49, %v15957_v16  ;;  %v10684_v34 = vpop.f32.mrb[108].mxu0  ;;  %8672 = vmatprep.subr.bf16.mxu1 %v16941_v54  ;;  %v16017_v48 = vpack.c.bf16 %v7708_v60, %v7707_v55  ;;  %v17088_v39 = vld [vmem:[#allocation44_spill] sm:$0xff] }
 0x5d6   :  { %v7620_v28 = vpop.f32.mrb[108].mxu1  ;;  %v10685_v6 = vpop.f32.mrb[109].mxu0  ;;  %v7409_v49 = vadd.f32 %v15953_v57, %v17088_v39  ;;  %v17089_v60 = vld [vmem:[#allocation12_spill] sm:$0xff] }
 0x5d7   :  { %17086 = vst [vmem:[#allocation4_spill] sm:$0xff] %v16017_v48  ;;  %v7695_v37 = vmax.f32 %v7423_v12, %v7679_v33  ;;  %v7680_v27 = vmax.f32 %v7664_v2, 0.0  ;;  %v10686_v1 = vadd.f32 %v10685_v6, %v10684_v34  ;;  %v7622_v29 = vpop.f32.mrb[109].mxu1  ;;  %v10687_v0 = vpop.f32.mrb[110].mxu0  ;;  %v7410_v12 = vadd.f32 %v15957_v16, %v17090_v19  ;;  %v17091_v34 = vld [vmem:[#allocation35_spill] sm:$0xff]  ;;  %v17092_v6 = vld [vmem:[#allocation36_spill] sm:$0xff] }
 0x5d8   :  { %8673 = vmatpush1.bf16.msra.mxu1 %v17087_v41  ;;  %v7623_v42 = vpop.f32.mrb[110].mxu1  ;;  %v10688_v14 = vpop.f32.mrb[111].mxu0  ;;  %v17093_v29 = vld [vmem:[#allocation11_spill] sm:$0xff] }
 0x5d9   :  { %v7696_v25 = vmax.f32 %v7424_v17, %v7680_v27  ;;  %v7621_v61 = vadd.f32 %v10686_v1, %v7620_v28  ;;  %v10689_v36 = vadd.f32 %v10688_v14, %v10687_v0  ;;  %v7625_v55 = vpop.f32.mrb[111].mxu1  ;;  %8674 = vmatprep.subr.bf16.mxu1 %v16941_v54  ;;  %v17094_v17 = vld [vmem:[#allocation38_spill] sm:$0xff]  ;;  %v7425_v28 = vmax.f32 %v7409_v49, 0.0 }
 0x5da   :  { %8378 = vmatmul.mubr.bf16.gmra.mrb[216].mxu0 %v17089_v60  ;;  %v17096_v60 = vld [vmem:[#allocation13_spill] sm:$0xff] }
 0x5db   :  { %v7665_v33 = vadd.f32 %v7621_v61, %v15953_v57  ;;  %v7624_v2 = vadd.f32 %v10689_v36, %v7623_v42  ;;  %8475 = vmatmul.mubr.bf16.gmra.mrb[216].mxu1 %v17091_v34  ;;  %8385 = vmatprep.mubr.bf16.mxu0 %v17092_v6  ;;  %v7426_v61 = vmax.f32 %v7410_v12, 0.0  ;;  %v17095_v6 = vld [vmem:[#allocation39_spill] sm:$0xff]  ;;  %v17097_v12 = vld [vmem:[#allocation48_spill] sm:$0xff] }
 0x5dc   :  { %8675 = vmatpush1.bf16.msra.mxu1 %v17093_v29  ;;  %10535 = vmatprep.mubr.msk.bf16.mxu1 %vm7174_vm1, %v17094_v17  ;;  %v7411_v34 = vadd.f32 %v15953_v57, %v17095_v6 }
 0x5dd   :  { %v7681_v27 = vmax.f32 %v7665_v33, 0.0  ;;  %v7666_v1 = vadd.f32 %v7624_v2, %v15957_v16  ;;  %v10690_v0 = vpop.f32.mrb[112].mxu0  ;;  %8676 = vmatprep.subr.bf16.mxu1 %v16941_v54 }
 0x5de   :  { %v7628_v14 = vpop.f32.mrb[112].mxu1  ;;  %v10691_v39 = vpop.f32.mrb[113].mxu0 }
 0x5df   :  { %v7697_v36 = vmax.f32 %v7425_v28, %v7681_v27  ;;  %v7682_v42 = vmax.f32 %v7666_v1, 0.0  ;;  %v10692_v55 = vadd.f32 %v10691_v39, %v10690_v0  ;;  %v7630_v19 = vpop.f32.mrb[113].mxu1  ;;  %v10693_v48 = vpop.f32.mrb[114].mxu0  ;;  %v7412_v28 = vadd.f32 %v15957_v16, %v17097_v12  ;;  %v17098_v27 = vld [vmem:[#allocation47_spill] sm:$0xff]  ;;  %v17099_v39 = vld [vmem:[#allocation49_spill] sm:$0xff] }
 0x5e0   :  { %8677 = vmatpush1.bf16.msra.mxu1 %v17096_v60  ;;  %v7631_v49 = vpop.f32.mrb[114].mxu1  ;;  %v10694_v33 = vpop.f32.mrb[115].mxu0 }
 0x5e1   :  { %v7709_v17 = vmax.f32 %v7695_v37, %v7697_v36  ;;  %v7698_v2 = vmax.f32 %v7426_v61, %v7682_v42  ;;  %v7629_v29 = vadd.f32 %v10692_v55, %v7628_v14  ;;  %v10695_v24 = vadd.f32 %v10694_v33, %v10693_v48  ;;  %v7633_v21 = vpop.f32.mrb[115].mxu1  ;;  %8938 = vmatprep.subr.bf16.mxu1 %v16941_v54 }
 0x5e2   :  { %8386 = vmatmul.mubr.bf16.gmra.mrb[220].mxu0 %v17098_v27  ;;  %v7427_v48 = vmax.f32 %v7411_v34, 0.0 }
 0x5e3   :  { %v7710_v1 = vmax.f32 %v7696_v25, %v7698_v2  ;;  %v7667_v0 = vadd.f32 %v7629_v29, %v15953_v57  ;;  %v7632_v6 = vadd.f32 %v10695_v24, %v7631_v49  ;;  %8483 = vmatmul.mubr.bf16.gmra.mrb[220].mxu1 %v17099_v39  ;;  %8585 = vmatprep.mubr.bf16.mxu0 %v15629_v40  ;;  %v7428_v25 = vmax.f32 %v7412_v28, 0.0 }
 0x5e4   :  { %10536 = vmatprep.mubr.msk.bf16.mxu1 %vm7174_vm1, %v15635_v5  ;;  %v7413_v5 = vadd.f32 %v15953_v57, %v15912_v3 }
 0x5e5   :  { %v7683_v21 = vmax.f32 %v7667_v0, 0.0  ;;  %v7668_v37 = vadd.f32 %v7632_v6, %v15957_v16  ;;  %v10696_v14 = vpop.f32.mrb[116].mxu0  ;;  %v16047_v61 = vpack.c.bf16 %v7710_v1, %v7709_v17  ;;  %v7414_v17 = vadd.f32 %v15957_v16, %v15915_v20 }
 0x5e6   :  { %v7636_v36 = vpop.f32.mrb[116].mxu1  ;;  %v10697_v42 = vpop.f32.mrb[117].mxu0  ;;  %v7429_v3 = vmax.f32 %v7413_v5, 0.0 }
 0x5e7   :  { %17100 = vst [vmem:[#allocation8_spill] sm:$0xff] %v16047_v61  ;;  %v16049_v55 = vmax.f32 %v7427_v48, %v7683_v21  ;;  %v7684_v24 = vmax.f32 %v7668_v37, 0.0  ;;  %v10698_v29 = vadd.f32 %v10697_v42, %v10696_v14  ;;  %v7638_v19 = vpop.f32.mrb[117].mxu1  ;;  %v10699_v49 = vpop.f32.mrb[118].mxu0 }
 0x5e8   :  { %v7639_v40 = vpop.f32.mrb[118].mxu1  ;;  %v10700_v33 = vpop.f32.mrb[119].mxu0 }
 0x5e9   :  { %v7700_v34 = vmax.f32 %v7428_v25, %v7684_v24  ;;  %v7637_v2 = vadd.f32 %v10698_v29, %v7636_v36  ;;  %v10701_v12 = vadd.f32 %v10700_v33, %v10699_v49  ;;  %v7641_v0 = vpop.f32.mrb[119].mxu1  ;;  %v7415_v25 = vadd.f32 %v15953_v57, %v15928_v50 }
 0x5ea   :  { %8586 = vmatmul.mubr.bf16.vlgmr.msra.gmra.mrb[224].mxu0 %v15646_v26 }
 0x5eb   :  { %v7669_v28 = vadd.f32 %v7637_v2, %v15953_v57  ;;  %v7640_v1 = vadd.f32 %v10701_v12, %v7639_v40  ;;  %8683 = vmatmul.mubr.bf16.vlgmr.msra.gmra.mrb[224].mxu1 %v15652_v13  ;;  %10971 = vmatpush3.bf16.msra.mxu0 %v17008_v58  ;;  %v7430_v13 = vmax.f32 %v7414_v17, 0.0  ;;  %v17101_v2 = vld [vmem:[#allocation24_spill] sm:$0xff] }
 0x5ec   :  { %8939 = vmatpush1.bf16.msra.mxu1 %v17072_v44  ;;  %10972 = vmatprep.subr.bf16.mxu0 %v17038_v56 }
 0x5ed   :  { %v7685_v6 = vmax.f32 %v7669_v28, 0.0  ;;  %v7670_v48 = vadd.f32 %v7640_v1, %v15957_v16  ;;  %v10702_v21 = vpop.f32.mrb[120].mxu0  ;;  %8940 = vmatprep.subr.bf16.mxu1 %v16941_v54  ;;  %8593 = vmatprep.mubr.bf16.mxu0 %v15662_v45 }
 0x5ee   :  { %v7644_v26 = vpop.f32.mrb[120].mxu1  ;;  %v10703_v20 = vpop.f32.mrb[121].mxu0  ;;  %10537 = vmatprep.mubr.msk.bf16.mxu1 %vm7174_vm1, %v15669_v4 }
 0x5ef   :  { %v7701_v58 = vmax.f32 %v7429_v3, %v7685_v6  ;;  %v7686_v37 = vmax.f32 %v7670_v48, 0.0  ;;  %v10704_v14 = vadd.f32 %v10703_v20, %v10702_v21  ;;  %v7646_v36 = vpop.f32.mrb[121].mxu1  ;;  %10973 = vmatpush3.bf16.msra.mxu0 %v17010_v35  ;;  %v10705_v42 = vpop.f32.mrb[122].mxu0  ;;  %v7416_v35 = vadd.f32 %v15957_v16, %v15932_v38  ;;  %v17103_v48 = vld [vmem:[#allocation25_spill] sm:$0xff] }
 0x5f0   :  { %8941 = vmatpush1.bf16.msra.mxu1 %v17074_v43  ;;  %v7647_v24 = vpop.f32.mrb[122].mxu1  ;;  %10974 = vmatprep.subr.bf16.mxu0 %v17042_v52  ;;  %v10706_v45 = vpop.f32.mrb[123].mxu0  ;;  %v7417_v20 = vadd.f32 %v15953_v57, %v15945_v59 }
 0x5f1   :  { %v7711_v29 = vmax.f32 %v16049_v55, %v7701_v58  ;;  %v7702_v4 = vmax.f32 %v7430_v13, %v7686_v37  ;;  %v7645_v19 = vadd.f32 %v10704_v14, %v7644_v26  ;;  %v10707_v49 = vadd.f32 %v10706_v45, %v10705_v42  ;;  %v7649_v40 = vpop.f32.mrb[123].mxu1  ;;  %8942 = vmatprep.subr.bf16.mxu1 %v16941_v54 }
 0x5f2   :  { %8594 = vmatmul.mubr.bf16.gmra.mrb[228].mxu0 %v15685_v31  ;;  %v7431_v55 = vmax.f32 %v7415_v25, 0.0  ;;  %v7418_v14 = vadd.f32 %v15957_v16, %v15949_v10  ;;  %v7433_v59 = vmax.f32 %v7417_v20, 0.0 }
 0x5f3   :  { %v7712_v50 = vmax.f32 %v7700_v34, %v7702_v4  ;;  %v7671_v33 = vadd.f32 %v7645_v19, %v15953_v57  ;;  %v7648_v5 = vadd.f32 %v10707_v49, %v7647_v24  ;;  %8691 = vmatmul.mubr.bf16.gmra.mrb[228].mxu1 %v15693_v30  ;;  %10975 = vmatpush3.bf16.msra.mxu0 %v17101_v2  ;;  %v7432_v30 = vmax.f32 %v7416_v35, 0.0  ;;  %v17104_v2 = vld [vmem:[#allocation7_spill] sm:$0xff] }
 0x5f4   :  { %8943 = vmatpush1.bf16.msra.mxu1 %v17079_v11  ;;  %10976 = vmatprep.subr.bf16.mxu0 %v17044_v7 }
 0x5f5   :  { %v7687_v12 = vmax.f32 %v7671_v33, 0.0  ;;  %v7672_v0 = vadd.f32 %v7648_v5, %v15957_v16  ;;  %v10708_v17 = vpop.f32.mrb[124].mxu0  ;;  %8944 = vmatprep.subr.bf16.mxu1 %v16941_v54  ;;  %8601 = vmatprep.mubr.bf16.mxu0 %v15703_v51  ;;  %v16084_v38 = vpack.c.bf16 %v7712_v50, %v7711_v29 }
 0x5f6   :  { %v7652_v31 = vpop.f32.mrb[124].mxu1  ;;  %v10709_v34 = vpop.f32.mrb[125].mxu0  ;;  %10538 = vmatprep.mubr.msk.bf16.mxu1 %vm7174_vm1, %v15710_v18 }
 0x5f7   :  { %17102 = vst [vmem:[#allocation6_spill] sm:$0xff] %v16084_v38  ;;  %v7703_v28 = vmax.f32 %v7431_v55, %v7687_v12  ;;  %v7688_v1 = vmax.f32 %v7672_v0, 0.0  ;;  %v10710_v3 = vadd.f32 %v10709_v34, %v10708_v17  ;;  %v7654_v6 = vpop.f32.mrb[125].mxu1  ;;  %10977 = vmatpush3.bf16.msra.mxu0 %v17103_v48  ;;  %v10711_v21 = vpop.f32.mrb[126].mxu0  ;;  %v17106_v0 = vld [vmem:[#allocation28_spill] sm:$0xff]  ;;  %v17107_v17 = vld [vmem:[#allocation11_spill] sm:$0xff] }
 0x5f8   :  { %8945 = vmatpush1.bf16.msra.mxu1 %v17080_v62  ;;  %v7655_v26 = vpop.f32.mrb[126].mxu1  ;;  %10978 = vmatprep.subr.bf16.mxu0 %v17058_v8  ;;  %v10712_v51 = vpop.f32.mrb[127].mxu0  ;;  %v17111_v6 = vld [vmem:[#allocation17_spill] sm:$0xff] }
 0x5f9   :  { %v7704_v13 = vmax.f32 %v7432_v30, %v7688_v1  ;;  %v7653_v58 = vadd.f32 %v10710_v3, %v7652_v31  ;;  %v10713_v18 = vadd.f32 %v10712_v51, %v10711_v21  ;;  %v7657_v37 = vpop.f32.mrb[127].mxu1  ;;  %8946 = vmatprep.subr.bf16.mxu1 %v16941_v54  ;;  %v17108_v31 = vld [vmem:[#allocation37_spill] sm:$0xff]  ;;  %v17109_v30 = vld [vmem:[#allocation40_spill] sm:$0xff] }
 0x5fa   :  { %8602 = vmatmul.mubr.bf16.gmra.mrb[232].mxu0 %v15725_v32 }
 0x5fb   :  { %v7673_v36 = vadd.f32 %v7653_v58, %v15953_v57  ;;  %v7656_v42 = vadd.f32 %v10713_v18, %v7655_v26  ;;  %8699 = vmatmul.mubr.bf16.gmra.mrb[232].mxu1 %v15731_v22  ;;  %10979 = vmatpush3.bf16.msra.mxu0 %v17021_v46  ;;  %v7434_v22 = vmax.f32 %v7418_v14, 0.0  ;;  %v17112_v26 = vld [vmem:[#allocation29_spill] sm:$0xff]  ;;  %v17113_v14 = vld [vmem:[#allocation31_spill] sm:$0xff] }
 0x5fc   :  { %8947 = vmatpush1.bf16.msra.mxu1 %v17084_v47  ;;  %10980 = vmatprep.subr.bf16.mxu0 %v17060_v15 }
 0x5fd   :  { %v7689_v25 = vmax.f32 %v7673_v36, 0.0  ;;  %v7674_v24 = vadd.f32 %v7656_v42, %v15957_v16  ;;  %v10730_v45 = vpop.f32.mrb[128].mxu0  ;;  %8948 = vmatprep.subr.bf16.mxu1 %v16941_v54  ;;  %8609 = vmatprep.mubr.bf16.mxu0 %v15741_v63  ;;  %v17114_v42 = vld [vmem:[#allocation18_spill] sm:$0xff] }
 0x5fe   :  { %v7884_v32 = vpop.f32.mrb[128].mxu1  ;;  %v10731_v10 = vpop.f32.mrb[129].mxu0  ;;  %10539 = vmatprep.mubr.msk.bf16.mxu1 %vm7174_vm1, %v15747_v9 }
 0x5ff   :  { %v7705_v46 = vmax.f32 %v7433_v59, %v7689_v25  ;;  %v7690_v29 = vmax.f32 %v7674_v24, 0.0  ;;  %v10732_v4 = vadd.f32 %v10731_v10, %v10730_v45  ;;  %v7886_v19 = vpop.f32.mrb[129].mxu1  ;;  %10981 = vmatpush3.bf16.msra.mxu0 %v17023_v53  ;;  %v10733_v49 = vpop.f32.mrb[130].mxu0  ;;  %v17105_v53 = vld [vmem:[#allocation16_spill] sm:$0xff]  ;;  %v17115_v59 = vld [vmem:[#allocation42_spill] sm:$0xff]  ;;  %v17116_v25 = vld [vmem:[#allocation41_spill] sm:$0xff] }
 0x600   :  { %8949 = vmatpush1.bf16.msra.mxu1 %v17087_v41  ;;  %v7887_v40 = vpop.f32.mrb[130].mxu1  ;;  %10982 = vmatprep.subr.bf16.mxu0 %v17064_v23  ;;  %v10734_v35 = vpop.f32.mrb[131].mxu0  ;;  %v17117_v24 = vld [vmem:[#allocation43_spill] sm:$0xff] }
 0x601   :  { %v7713_v63 = vmax.f32 %v7703_v28, %v7705_v46  ;;  %v7706_v50 = vmax.f32 %v7434_v22, %v7690_v29  ;;  %v16110_v33 = vadd.f32 %v10732_v4, %v7884_v32  ;;  %v10735_v5 = vadd.f32 %v10734_v35, %v10733_v49  ;;  %v7889_v9 = vpop.f32.mrb[131].mxu1  ;;  %8950 = vmatprep.subr.bf16.mxu1 %v16941_v54  ;;  %v17118_v29 = vld [vmem:[#allocation21_spill] sm:$0xff] }
 0x602   :  { %8610 = vmatmul.mubr.bf16.gmra.mrb[236].mxu0 %v17104_v2  ;;  %v17121_v9 = vld [vmem:[#allocation33_spill] sm:$0xff] }
 0x603   :  { %v7714_v55 = vmax.f32 %v7704_v13, %v7706_v50  ;;  %v16114_v12 = vadd.f32 %v10735_v5, %v7887_v40  ;;  %8707 = vmatmul.mubr.bf16.gmra.mrb[236].mxu1 %v17105_v53  ;;  %10983 = vmatpush3.bf16.msra.mxu0 %v17106_v0  ;;  %v17120_v5 = vld [vmem:[#allocation19_spill] sm:$0xff]  ;;  %v17122_v2 = vld [vmem:[#allocation45_spill] sm:$0xff] }
 0x604   :  { %8951 = vmatpush1.bf16.msra.mxu1 %v17107_v17  ;;  %10984 = vmatprep.subr.bf16.mxu0 %v17108_v31 }
 0x605   :  { %v10736_v34 = vpop.f32.mrb[132].mxu0  ;;  %8952 = vmatprep.subr.bf16.mxu1 %v16941_v54  ;;  %8617 = vmatprep.mubr.bf16.mxu0 %v17109_v30  ;;  %v16122_v28 = vpack.c.bf16 %v7714_v55, %v7713_v63  ;;  %v17119_v63 = vld [vmem:[#allocation32_spill] sm:$0xff] }
 0x606   :  { %v7892_v1 = vpop.f32.mrb[132].mxu1  ;;  %v10737_v3 = vpop.f32.mrb[133].mxu0  ;;  %10540 = vmatprep.mubr.msk.bf16.mxu1 %vm7174_vm1, %v17111_v6  ;;  %v17123_v55 = vld [vmem:[#allocation20_spill] sm:$0xff] }
 0x607   :  { %17110 = vst [vmem:[#allocation10_spill] sm:$0xff] %v16122_v28  ;;  %v10738_v48 = vadd.f32 %v10737_v3, %v10736_v34  ;;  %v7894_v21 = vpop.f32.mrb[133].mxu1  ;;  %10985 = vmatpush3.bf16.msra.mxu0 %v17112_v26  ;;  %v10739_v51 = vpop.f32.mrb[134].mxu0 }
 0x608   :  { %8953 = vmatpush1.bf16.msra.mxu1 %v17096_v60  ;;  %v7895_v20 = vpop.f32.mrb[134].mxu1  ;;  %11034 = vmatprep.subr.bf16.mxu0 %v17064_v23  ;;  %v10740_v13 = vpop.f32.mrb[135].mxu0 }
 0x609   :  { %v16129_v58 = vadd.f32 %v10738_v48, %v7892_v1  ;;  %v10741_v18 = vadd.f32 %v10740_v13, %v10739_v51  ;;  %v7897_v37 = vpop.f32.mrb[135].mxu1  ;;  %8954 = vmatprep.subr.bf16.mxu1 %v16941_v54  ;;  %v17124_v48 = vld [vmem:[#allocation46_spill] sm:$0xff] }
 0x60a   :  { %8618 = vmatmul.mubr.bf16.gmra.mrb[240].mxu0 %v17113_v14  ;;  %v17125_v37 = vld [vmem:[#allocation12_spill] sm:$0xff] }
 0x60b   :  { %v16133_v36 = vadd.f32 %v10741_v18, %v7895_v20  ;;  %8715 = vmatmul.mubr.bf16.gmra.mrb[240].mxu1 %v17114_v42  ;;  %8625 = vmatprep.mubr.bf16.mxu0 %v17115_v59  ;;  %v17126_v42 = vld [vmem:[#allocation35_spill] sm:$0xff]  ;;  %v17127_v59 = vld [vmem:[#allocation36_spill] sm:$0xff] }
 0x60c   :  { %8955 = vmatpush1.bf16.msra.mxu1 %v17116_v25  ;;  %10541 = vmatprep.mubr.msk.bf16.mxu1 %vm7174_vm1, %v17117_v24  ;;  %v17128_v24 = vld [vmem:[#allocation22_spill] sm:$0xff] }
 0x60d   :  { %v10742_v23 = vpop.f32.mrb[136].mxu0  ;;  %8956 = vmatprep.subr.bf16.mxu1 %v16941_v54 }
 0x60e   :  { %v7900_v45 = vpop.f32.mrb[136].mxu1  ;;  %v10743_v32 = vpop.f32.mrb[137].mxu0 }
 0x60f   :  { %v10744_v10 = vadd.f32 %v10743_v32, %v10742_v23  ;;  %v7902_v22 = vpop.f32.mrb[137].mxu1  ;;  %v10745_v46 = vpop.f32.mrb[138].mxu0  ;;  %v17129_v23 = vld [vmem:[#allocation38_spill] sm:$0xff]  ;;  %v9386_v32 = vld [vmem:[%s16815_s6] sm:$0xff] }
 0x610   :  { %8957 = vmatpush1.bf16.msra.mxu1 %v17118_v29  ;;  %v7903_v4 = vpop.f32.mrb[138].mxu1  ;;  %v10746_v19 = vpop.f32.mrb[139].mxu0  ;;  %9403 = vperm.xlu1 %11220, %v9386_v32   ;;  %v16205_v32 = vld [vmem:[%s16818_s3] ss:$16 sps:$4 sm:$0xff]  }
 0x611   :  { %v16142_v49 = vadd.f32 %v10744_v10, %v7900_v45  ;;  %v10747_v40 = vadd.f32 %v10746_v19, %v10745_v46  ;;  %v7905_v35 = vpop.f32.mrb[139].mxu1  ;;  %8958 = vmatprep.subr.bf16.mxu1 %v16941_v54 }
 0x612   :  { %8626 = vmatmul.mubr.bf16.gmra.mrb[244].mxu0 %v17119_v63  ;;  %v17130_v35 = vld [vmem:[#allocation14_spill] sm:$0xff] }
 0x613   :  { %v16146_v50 = vadd.f32 %v10747_v40, %v7903_v4  ;;  %8723 = vmatmul.mubr.bf16.gmra.mrb[244].mxu1 %v17120_v5  ;;  %8633 = vmatprep.mubr.bf16.mxu0 %v17121_v9  ;;  %v9388_v40 = vld [vmem:[%s16815_s6 + $0x10] sm:$0xff] }
 0x614   :  { %8959 = vmatpush1.bf16.msra.mxu1 %v17122_v2  ;;  %10542 = vmatprep.mubr.msk.bf16.mxu1 %vm7174_vm1, %v17123_v55 }
 0x615   :  { %v10748_v53 = vpop.f32.mrb[140].mxu0  ;;  %8960 = vmatprep.subr.bf16.mxu1 %v16941_v54  ;;  %9413 = vperm.xlu1 %11220, %v9388_v40  }
 0x616   :  { %v7908_v34 = vpop.f32.mrb[140].mxu1  ;;  %v10749_v30 = vpop.f32.mrb[141].mxu0 }
 0x617   :  { %v10750_v1 = vadd.f32 %v10749_v30, %v10748_v53  ;;  %v7910_v3 = vpop.f32.mrb[141].mxu1  ;;  %v10751_v6 = vpop.f32.mrb[142].mxu0  ;;  %v16184_v30 = vld [vmem:[%s16818_s3 + $0x4] ss:$16 sps:$4 sm:$0xff]  }
 0x618   :  { %8961 = vmatpush1.bf16.msra.mxu1 %v17124_v48  ;;  %v7911_v21 = vpop.f32.mrb[142].mxu1  ;;  %v10752_v51 = vpop.f32.mrb[143].mxu0 }
 0x619   :  { %v16155_v20 = vadd.f32 %v10750_v1, %v7908_v34  ;;  %v10753_v13 = vadd.f32 %v10752_v51, %v10751_v6  ;;  %v7913_v18 = vpop.f32.mrb[143].mxu1  ;;  %8962 = vmatprep.subr.bf16.mxu1 %v16941_v54  ;;  %v16190_v1 = vld [vmem:[%s16818_s3 + $0xc] ss:$16 sps:$4 sm:$0xff]  }
 0x61a   :  { %8634 = vmatmul.mubr.bf16.gmra.mrb[248].mxu0 %v17125_v37  ;;  %v9392_v18 = vld [vmem:[%s16815_s6 + $0x30] sm:$0xff] }
 0x61b   :  { %v16159_v14 = vadd.f32 %v10753_v13, %v7911_v21  ;;  %8731 = vmatmul.mubr.bf16.gmra.mrb[248].mxu1 %v17126_v42  ;;  %8641 = vmatprep.mubr.bf16.mxu0 %v17127_v59 }
 0x61c   :  { %8963 = vmatpush1.bf16.msra.mxu1 %v17128_v24  ;;  %10543 = vmatprep.mubr.msk.bf16.mxu1 %vm7174_vm1, %v17129_v23 }
 0x61d   :  { %v10754_v45 = vpop.f32.mrb[144].mxu0  ;;  %8964 = vmatprep.subr.bf16.mxu1 %v16941_v54 }
 0x61e   :  { %v7916_v10 = vpop.f32.mrb[144].mxu1  ;;  %v10755_v22 = vpop.f32.mrb[145].mxu0 }
 0x61f   :  { %v10756_v46 = vadd.f32 %v10755_v22, %v10754_v45  ;;  %v7918_v4 = vpop.f32.mrb[145].mxu1  ;;  %v10757_v19 = vpop.f32.mrb[146].mxu0  ;;  %v16213_v22 = vld [vmem:[%s16818_s3 + $0x8] ss:$16 sps:$4 sm:$0xff]  }
 0x620   :  { %8965 = vmatpush1.bf16.msra.mxu1 %v17130_v35  ;;  %v7919_v63 = vpop.f32.mrb[146].mxu1  ;;  %v10758_v5 = vpop.f32.mrb[147].mxu0  ;;  %v16223_v4 = vld [vmem:[%s16818_s3 + $0x24] ss:$16 sps:$4 sm:$0xff]  }
 0x621   :  { %v16174_v9 = vadd.f32 %v10756_v46, %v7916_v10  ;;  %v10759_v55 = vadd.f32 %v10758_v5, %v10757_v19  ;;  %v7921_v53 = vpop.f32.mrb[147].mxu1  ;;  %9194 = vmatprep.subr.bf16.mxu1 %v16941_v54  ;;  %v9394_v19 = vld [vmem:[%s16815_s6 + $0x40] sm:$0xff] }
 0x622   :  { %8642 = vmatmul.mubr.bf16.gmra.mrb[252].mxu0 %v17098_v27 }
 0x623   :  { %v16178_v34 = vadd.f32 %v10759_v55, %v7919_v63  ;;  %8739 = vmatmul.mubr.bf16.gmra.mrb[252].mxu1 %v17099_v39  ;;  %8873 = vmatprep.mubr.bf16.mxu0 %v16184_v30  ;;  %v9390_v39 = vld [vmem:[%s16815_s6 + $0x20] sm:$0xff]  ;;  %v9396_v55 = vld [vmem:[%s16815_s6 + $0x50] sm:$0xff] }
 0x624   :  { %10544 = vmatprep.mubr.msk.bf16.mxu1 %vm7174_vm1, %v16190_v1  ;;  %9423 = vperm.xlu1 %11220, %v9390_v39  }
 0x625   :  { %v10760_v27 = vpop.f32.mrb[148].mxu0 }
 0x626   :  { %v7924_v3 = vpop.f32.mrb[148].mxu1  ;;  %v10761_v6 = vpop.f32.mrb[149].mxu0 }
 0x627   :  { %v10762_v21 = vadd.f32 %v10761_v6, %v10760_v27  ;;  %v7926_v51 = vpop.f32.mrb[149].mxu1  ;;  %v10763_v13 = vpop.f32.mrb[150].mxu0 }
 0x628   :  { %v7927_v37 = vpop.f32.mrb[150].mxu1  ;;  %v10764_v42 = vpop.f32.mrb[151].mxu0  ;;  %9433 = vperm.xlu1 %11220, %v9392_v18   ;;  %v9398_v18 = vld [vmem:[%s16815_s6 + $0x60] sm:$0xff] }
 0x629   :  { %v16200_v59 = vadd.f32 %v10762_v21, %v7924_v3  ;;  %v10765_v23 = vadd.f32 %v10764_v42, %v10763_v13  ;;  %v7929_v45 = vpop.f32.mrb[151].mxu1  ;;  %v16266_v13 = vld [vmem:[%s16818_s3 + $0x44] ss:$16 sps:$4 sm:$0xff]  }
 0x62a   :  { %8874 = vmatmul.mubr.bf16.vlgmr.msra.gmra.mrb[0].mxu0 %v16205_v32 }
 0x62b   :  { %v16208_v10 = vadd.f32 %v10765_v23, %v7927_v37  ;;  %8971 = vmatmul.mubr.bf16.vlgmr.msra.gmra.mrb[0].mxu1 %v16213_v22  ;;  %11035 = vmatpush3.bf16.msra.mxu0 %v17106_v0 }
 0x62c   :  { %9195 = vmatpush1.bf16.msra.mxu1 %v17107_v17  ;;  %11036 = vmatprep.subr.bf16.mxu0 %v17108_v31  ;;  %v16232_v17 = vld [vmem:[%s16818_s3 + $0x2c] ss:$16 sps:$4 sm:$0xff]  }
 0x62d   :  { %v10766_v46 = vpop.f32.mrb[152].mxu0  ;;  %9196 = vmatprep.subr.bf16.mxu1 %v16941_v54  ;;  %8881 = vmatprep.mubr.bf16.mxu0 %v16223_v4 }
 0x62e   :  { %v7932_v40 = vpop.f32.mrb[152].mxu1  ;;  %v10767_v0 = vpop.f32.mrb[153].mxu0  ;;  %10545 = vmatprep.mubr.msk.bf16.mxu1 %vm7174_vm1, %v16232_v17  ;;  %9443 = vperm.xlu1 %11220, %v9394_v19  }
 0x62f   :  { %v10768_v31 = vadd.f32 %v10767_v0, %v10766_v46  ;;  %v7934_v63 = vpop.f32.mrb[153].mxu1  ;;  %11037 = vmatpush3.bf16.msra.mxu0 %v17112_v26  ;;  %v10769_v5 = vpop.f32.mrb[154].mxu0  ;;  %v16248_v26 = vld [vmem:[%s16818_s3 + $0x20] ss:$16 sps:$4 sm:$0xff]  }
 0x630   :  { %9197 = vmatpush1.bf16.msra.mxu1 %v17096_v60  ;;  %v7935_v53 = vpop.f32.mrb[154].mxu1  ;;  %11038 = vmatprep.subr.bf16.mxu0 %v17072_v44  ;;  %v10770_v27 = vpop.f32.mrb[155].mxu0  ;;  %v16256_v44 = vld [vmem:[%s16818_s3 + $0x28] ss:$16 sps:$4 sm:$0xff]   ;;  %v17131_v60 = vld [vmem:[#allocation30_spill] sm:$0xff] }
 0x631   :  { %v16242_v39 = vadd.f32 %v10768_v31, %v7932_v40  ;;  %v10771_v3 = vadd.f32 %v10770_v27, %v10769_v5  ;;  %v7937_v6 = vpop.f32.mrb[155].mxu1  ;;  %9198 = vmatprep.subr.bf16.mxu1 %v16941_v54  ;;  %v9400_v46 = vld [vmem:[%s16815_s6 + $0x70] sm:$0xff] }
 0x632   :  { %8882 = vmatmul.mubr.bf16.gmra.mrb[4].mxu0 %v16248_v26  ;;  %9453 = vperm.xlu1 %11220, %v9396_v55   ;;  %v16309_v55 = vld [vmem:[%s16818_s3 + $0x64] ss:$16 sps:$4 sm:$0xff]  }
 0x633   :  { %v16251_v21 = vadd.f32 %v10771_v3, %v7935_v53  ;;  %8979 = vmatmul.mubr.bf16.gmra.mrb[4].mxu1 %v16256_v44  ;;  %11039 = vmatpush3.bf16.msra.mxu0 %v17131_v60  ;;  %v9681_v53 = vld [vmem:[%s16816_s8 + $0x8] sm:$0xff]  ;;  %v9683_v60 = vld [vmem:[%s16816_s8 + $0x18] sm:$0xff] }
 0x634   :  { %9199 = vmatpush1.bf16.msra.mxu1 %v17116_v25  ;;  %11040 = vmatprep.subr.bf16.mxu0 %v17074_v43  ;;  %v16275_v43 = vld [vmem:[%s16818_s3 + $0x4c] ss:$16 sps:$4 sm:$0xff]  }
 0x635   :  { %v10772_v51 = vpop.f32.mrb[156].mxu0  ;;  %9200 = vmatprep.subr.bf16.mxu1 %v16941_v54  ;;  %8889 = vmatprep.mubr.bf16.mxu0 %v16266_v13 }
 0x636   :  { %v7940_v37 = vpop.f32.mrb[156].mxu1  ;;  %v10773_v42 = vpop.f32.mrb[157].mxu0  ;;  %10546 = vmatprep.mubr.msk.bf16.mxu1 %vm7174_vm1, %v16275_v43  ;;  %9463 = vperm.xlu1 %11220, %v9398_v18  }
 0x637   :  { %v10774_v25 = vadd.f32 %v10773_v42, %v10772_v51  ;;  %v7942_v23 = vpop.f32.mrb[157].mxu1  ;;  %11041 = vmatpush3.bf16.msra.mxu0 %v17038_v56  ;;  %v10775_v45 = vpop.f32.mrb[158].mxu0  ;;  %v16291_v56 = vld [vmem:[%s16818_s3 + $0x40] ss:$16 sps:$4 sm:$0xff]  }
 0x638   :  { %9201 = vmatpush1.bf16.msra.mxu1 %v17118_v29  ;;  %v7943_v19 = vpop.f32.mrb[158].mxu1  ;;  %11042 = vmatprep.subr.bf16.mxu0 %v17079_v11  ;;  %v10776_v40 = vpop.f32.mrb[159].mxu0  ;;  %v16299_v11 = vld [vmem:[%s16818_s3 + $0x48] ss:$16 sps:$4 sm:$0xff]  }
 0x639   :  { %v16285_v0 = vadd.f32 %v10774_v25, %v7940_v37  ;;  %v10777_v31 = vadd.f32 %v10776_v40, %v10775_v45  ;;  %v7945_v63 = vpop.f32.mrb[159].mxu1  ;;  %9202 = vmatprep.subr.bf16.mxu1 %v16941_v54  ;;  %v7947_v37 = vadd.f32 %v16110_v33, %v15953_v57  ;;  %v16343_v33 = vld [vmem:[%s16818_s3 + $0x68] ss:$16 sps:$4 sm:$0xff]  }
 0x63a   :  { %8890 = vmatmul.mubr.bf16.gmra.mrb[8].mxu0 %v16291_v56  ;;  %9473 = vperm.xlu1 %11220, %v9400_v46  }
 0x63b   :  { %v16294_v5 = vadd.f32 %v10777_v31, %v7943_v19  ;;  %8987 = vmatmul.mubr.bf16.gmra.mrb[8].mxu1 %v16299_v11  ;;  %11043 = vmatpush3.bf16.msra.mxu0 %v17042_v52  ;;  %v7963_v46 = vmax.f32 %v7947_v37, 0.0  ;;  %v16354_v31 = vld [vmem:[%s16818_s3 + $0x84] ss:$16 sps:$4 sm:$0xff]  }
 0x63c   :  { %9203 = vmatpush1.bf16.msra.mxu1 %v17122_v2  ;;  %11044 = vmatprep.subr.bf16.mxu0 %v17080_v62  ;;  %v16318_v62 = vld [vmem:[%s16818_s3 + $0x6c] ss:$16 sps:$4 sm:$0xff]  }
 0x63d   :  { %v10794_v29 = vpop.f32.mrb[160].mxu0  ;;  %9204 = vmatprep.subr.bf16.mxu1 %v16941_v54  ;;  %8897 = vmatprep.mubr.bf16.mxu0 %v16309_v55 }
 0x63e   :  { %v8140_v27 = vpop.f32.mrb[160].mxu1  ;;  %v10795_v52 = vpop.f32.mrb[161].mxu0  ;;  %10547 = vmatprep.mubr.msk.bf16.mxu1 %vm7174_vm1, %v16318_v62  ;;  %9695 = vperm.xlu1 %11220, %v9681_v53  }
 0x63f   :  { %v10796_v2 = vadd.f32 %v10795_v52, %v10794_v29  ;;  %v8142_v3 = vpop.f32.mrb[161].mxu1  ;;  %11045 = vmatpush3.bf16.msra.mxu0 %v17044_v7  ;;  %v10797_v6 = vpop.f32.mrb[162].mxu0  ;;  %v16334_v7 = vld [vmem:[%s16818_s3 + $0x60] ss:$16 sps:$4 sm:$0xff]  }
 0x640   :  { %9205 = vmatpush1.bf16.msra.mxu1 %v17124_v48  ;;  %v8143_v51 = vpop.f32.mrb[162].mxu1  ;;  %11046 = vmatprep.subr.bf16.mxu0 %v17084_v47  ;;  %v10798_v18 = vpop.f32.mrb[163].mxu0  ;;  %v7948_v47 = vadd.f32 %v16114_v12, %v15957_v16  ;;  %v9685_v3 = vld [vmem:[%s16816_s8 + $0x28] sm:$0xff] }
 0x641   :  { %v8141_v42 = vadd.f32 %v10796_v2, %v8140_v27  ;;  %v10799_v25 = vadd.f32 %v10798_v18, %v10797_v6  ;;  %v8145_v23 = vpop.f32.mrb[163].mxu1  ;;  %9206 = vmatprep.subr.bf16.mxu1 %v16941_v54 }
 0x642   :  { %8898 = vmatmul.mubr.bf16.gmra.mrb[12].mxu0 %v16334_v7  ;;  %9705 = vperm.xlu1 %11220, %v9683_v60  }
 0x643   :  { %v8203_v48 = vadd.f32 %v8141_v42, %v15953_v57  ;;  %v8144_v45 = vadd.f32 %v10799_v25, %v8143_v51  ;;  %8995 = vmatmul.mubr.bf16.gmra.mrb[12].mxu1 %v16343_v33  ;;  %11047 = vmatpush3.bf16.msra.mxu0 %v17058_v8  ;;  %v7949_v51 = vadd.f32 %v16129_v58, %v15953_v57 }
 0x644   :  { %9207 = vmatpush1.bf16.msra.mxu1 %v17128_v24  ;;  %11048 = vmatprep.subr.bf16.mxu0 %v17087_v41  ;;  %v16360_v41 = vld [vmem:[%s16818_s3 + $0x8c] ss:$16 sps:$4 sm:$0xff]   ;;  %v7964_v24 = vmax.f32 %v7948_v47, 0.0  ;;  %v7950_v58 = vadd.f32 %v16133_v36, %v15957_v16 }
 0x645   :  { %v8219_v19 = vmax.f32 %v8203_v48, 0.0  ;;  %v8204_v12 = vadd.f32 %v8144_v45, %v15957_v16  ;;  %v10800_v40 = vpop.f32.mrb[164].mxu0  ;;  %9208 = vmatprep.subr.bf16.mxu1 %v16941_v54  ;;  %8905 = vmatprep.mubr.bf16.mxu0 %v16354_v31  ;;  %v16391_v48 = vld [vmem:[%s16818_s3 + $0x88] ss:$16 sps:$4 sm:$0xff]   ;;  %v16397_v45 = vld [vmem:[%s16818_s3 + $0xa4] ss:$16 sps:$4 sm:$0xff]  }
 0x646   :  { %v8148_v63 = vpop.f32.mrb[164].mxu1  ;;  %v10801_v8 = vpop.f32.mrb[165].mxu0  ;;  %10548 = vmatprep.mubr.msk.bf16.mxu1 %vm7174_vm1, %v16360_v41  ;;  %9715 = vperm.xlu1 %11220, %v9685_v3   ;;  %v16404_v36 = vld [vmem:[%s16818_s3 + $0xac] ss:$16 sps:$4 sm:$0xff]  }
 0x647   :  { %v16364_v29 = vmax.f32 %v7963_v46, %v8219_v19  ;;  %v8220_v53 = vmax.f32 %v8204_v12, 0.0  ;;  %v10802_v27 = vadd.f32 %v10801_v8, %v10800_v40  ;;  %v8150_v52 = vpop.f32.mrb[165].mxu1  ;;  %11049 = vmatpush3.bf16.msra.mxu0 %v17060_v15  ;;  %v10803_v2 = vpop.f32.mrb[166].mxu0  ;;  %v16379_v15 = vld [vmem:[%s16818_s3 + $0x80] ss:$16 sps:$4 sm:$0xff]   ;;  %v17132_v46 = vld [vmem:[#allocation23_spill] sm:$0xff] }
 0x648   :  { %9209 = vmatpush1.bf16.msra.mxu1 %v17130_v35  ;;  %v8151_v6 = vpop.f32.mrb[166].mxu1  ;;  %v10804_v60 = vpop.f32.mrb[167].mxu0  ;;  %v9687_v35 = vld [vmem:[%s16816_s8 + $0x38] sm:$0xff]  ;;  %v7965_v19 = vmax.f32 %v7949_v51, 0.0  ;;  %v7951_v51 = vadd.f32 %v16142_v49, %v15953_v57 }
 0x649   :  { %v16373_v18 = vmax.f32 %v7964_v24, %v8220_v53  ;;  %v8149_v37 = vadd.f32 %v10802_v27, %v8148_v63  ;;  %v10805_v42 = vadd.f32 %v10804_v60, %v10803_v2  ;;  %v8153_v25 = vpop.f32.mrb[167].mxu1  ;;  %9210 = vmatprep.subr.bf16.mxu1 %v16941_v54  ;;  %v7966_v53 = vmax.f32 %v7950_v58, 0.0  ;;  %v9845_v60 = vld [vmem:[%s16817_s10 + $0x8] sm:$0x3] }
 0x64a   :  { %8906 = vmatmul.mubr.bf16.gmra.mrb[16].mxu0 %v16379_v15  ;;  %9725 = vperm.xlu1 %11220, %v9687_v35  }
 0x64b   :  { %v8205_v23 = vadd.f32 %v8149_v37, %v15953_v57  ;;  %v8152_v47 = vadd.f32 %v10805_v42, %v8151_v6  ;;  %9003 = vmatmul.mubr.bf16.gmra.mrb[16].mxu1 %v16391_v48  ;;  %8913 = vmatprep.mubr.bf16.mxu0 %v16397_v45  ;;  %v17133_v37 = vld [vmem:[#allocation15_spill] sm:$0xff] }
 0x64c   :  { %9211 = vmatpush1.bf16.msra.mxu1 %v17132_v46  ;;  %10549 = vmatprep.mubr.msk.bf16.mxu1 %vm7174_vm1, %v16404_v36 }
 0x64d   :  { %v8221_v12 = vmax.f32 %v8205_v23, 0.0  ;;  %v8206_v40 = vadd.f32 %v8152_v47, %v15957_v16  ;;  %v10806_v63 = vpop.f32.mrb[168].mxu0  ;;  %9212 = vmatprep.subr.bf16.mxu1 %v16941_v54 }
 0x64e   :  { %v8156_v8 = vpop.f32.mrb[168].mxu1  ;;  %v10807_v24 = vpop.f32.mrb[169].mxu0  ;;  %9853 = vperm.xlu1 %11220, %v9845_v60  }
 0x64f   :  { %v8237_v27 = vmax.f32 %v7965_v19, %v8221_v12  ;;  %v8222_v52 = vmax.f32 %v8206_v40, 0.0  ;;  %v10808_v2 = vadd.f32 %v10807_v24, %v10806_v63  ;;  %v8158_v3 = vpop.f32.mrb[169].mxu1  ;;  %v10809_v6 = vpop.f32.mrb[170].mxu0  ;;  %v7952_v19 = vadd.f32 %v16146_v50, %v15957_v16  ;;  %v16423_v12 = vld [vmem:[%s16818_s3 + $0xa0] ss:$16 sps:$4 sm:$0xff]  }
 0x650   :  { %9213 = vmatpush1.bf16.msra.mxu1 %v17133_v37  ;;  %v8159_v42 = vpop.f32.mrb[170].mxu1  ;;  %v10810_v25 = vpop.f32.mrb[171].mxu0  ;;  %v16431_v63 = vld [vmem:[%s16818_s3 + $0xa8] ss:$16 sps:$4 sm:$0xff]   ;;  %v16437_v50 = vld [vmem:[%s16818_s3 + $0xc4] ss:$16 sps:$4 sm:$0xff]  }
 0x651   :  { %v8251_v35 = vmax.f32 %v16364_v29, %v8237_v27  ;;  %v8238_v23 = vmax.f32 %v7966_v53, %v8222_v52  ;;  %v8157_v58 = vadd.f32 %v10808_v2, %v8156_v8  ;;  %v10811_v47 = vadd.f32 %v10810_v25, %v10809_v6  ;;  %v8161_v46 = vpop.f32.mrb[171].mxu1  ;;  %9214 = vmatprep.subr.bf16.mxu1 %v16941_v54  ;;  %v17134_v8 = vld [vmem:[#allocation26_spill] sm:$0xff] }
 0x652   :  { %8914 = vmatmul.mubr.bf16.gmra.mrb[20].mxu0 %v16423_v12  ;;  %v7967_v24 = vmax.f32 %v7951_v51, 0.0  ;;  %v7968_v60 = vmax.f32 %v7952_v19, 0.0  ;;  %v16461_v19 = vld [vmem:[%s16818_s3 + $0xc0] ss:$16 sps:$4 sm:$0xff]  }
 0x653   :  { %v8252_v49 = vmax.f32 %v16373_v18, %v8238_v23  ;;  %v8207_v29 = vadd.f32 %v8157_v58, %v15953_v57  ;;  %v8160_v40 = vadd.f32 %v10811_v47, %v8159_v42  ;;  %9011 = vmatmul.mubr.bf16.gmra.mrb[20].mxu1 %v16431_v63  ;;  %8921 = vmatprep.mubr.bf16.mxu0 %v16437_v50  ;;  %v16444_v18 = vld [vmem:[%s16818_s3 + $0xcc] ss:$16 sps:$4 sm:$0xff]  }
 0x654   :  { %9215 = vmatpush1.bf16.msra.mxu1 %v17134_v8  ;;  %10550 = vmatprep.mubr.msk.bf16.mxu1 %vm7174_vm1, %v16444_v18  ;;  %v17136_v47 = vld [vmem:[#allocation27_spill] sm:$0xff] }
 0x655   :  { %v8223_v53 = vmax.f32 %v8207_v29, 0.0  ;;  %v8208_v27 = vadd.f32 %v8160_v40, %v15957_v16  ;;  %v10812_v52 = vpop.f32.mrb[172].mxu0  ;;  %9216 = vmatprep.subr.bf16.mxu1 %v16941_v54  ;;  %v16450_v2 = vpack.c.bf16 %v8252_v49, %v8251_v35  ;;  %v7953_v29 = vadd.f32 %v16155_v20, %v15953_v57  ;;  %v16470_v20 = vld [vmem:[%s16818_s3 + $0xc8] ss:$16 sps:$4 sm:$0xff]  }
 0x656   :  { %v8164_v3 = vpop.f32.mrb[172].mxu1  ;;  %v10813_v6 = vpop.f32.mrb[173].mxu0 }
 0x657   :  { %17135 = vst [vmem:[#allocation44_spill] sm:$0xff] %v16450_v2  ;;  %v16452_v37 = vmax.f32 %v7967_v24, %v8223_v53  ;;  %v8224_v42 = vmax.f32 %v8208_v27, 0.0  ;;  %v10814_v25 = vadd.f32 %v10813_v6, %v10812_v52  ;;  %v8166_v23 = vpop.f32.mrb[173].mxu1  ;;  %v10815_v58 = vpop.f32.mrb[174].mxu0  ;;  %v7954_v24 = vadd.f32 %v16159_v14, %v15957_v16  ;;  %v16476_v52 = vld [vmem:[%s16818_s3 + $0xe4] ss:$16 sps:$4 sm:$0xff]  }
 0x658   :  { %9217 = vmatpush1.bf16.msra.mxu1 %v17136_v47  ;;  %v8167_v51 = vpop.f32.mrb[174].mxu1  ;;  %v10816_v46 = vpop.f32.mrb[175].mxu0  ;;  %v16483_v14 = vld [vmem:[%s16818_s3 + $0xec] ss:$16 sps:$4 sm:$0xff]   ;;  %v7969_v6 = vmax.f32 %v7953_v29, 0.0 }
 0x659   :  { %v8240_v40 = vmax.f32 %v7968_v60, %v8224_v42  ;;  %v8165_v8 = vadd.f32 %v10814_v25, %v8164_v3  ;;  %v10817_v35 = vadd.f32 %v10816_v46, %v10815_v58  ;;  %v8169_v49 = vpop.f32.mrb[175].mxu1  ;;  %9218 = vmatprep.subr.bf16.mxu1 %v16941_v54  ;;  %v17137_v3 = vld [vmem:[#allocation5_spill] sm:$0xff]  ;;  %v7970_v47 = vmax.f32 %v7954_v24, 0.0 }
 0x65a   :  { %8922 = vmatmul.mubr.bf16.gmra.mrb[24].mxu0 %v16461_v19  ;;  %v17138_v2 = vld [vmem:[#allocation9_spill] sm:$0xff]  ;;  %v7956_v24 = vadd.f32 %v16178_v34, %v15957_v16 }
 0x65b   :  { %v8209_v53 = vadd.f32 %v8165_v8, %v15953_v57  ;;  %v8168_v27 = vadd.f32 %v10817_v35, %v8167_v51  ;;  %9019 = vmatmul.mubr.bf16.gmra.mrb[24].mxu1 %v16470_v20  ;;  %8929 = vmatprep.mubr.bf16.mxu0 %v16476_v52 }
 0x65c   :  { %9219 = vmatpush1.bf16.msra.mxu1 %v17137_v3  ;;  %10551 = vmatprep.mubr.msk.bf16.mxu1 %vm7174_vm1, %v16483_v14  ;;  %v7955_v3 = vadd.f32 %v16174_v9, %v15953_v57 }
 0x65d   :  { %v8225_v60 = vmax.f32 %v8209_v53, 0.0  ;;  %v8210_v42 = vadd.f32 %v8168_v27, %v15957_v16  ;;  %v10818_v25 = vpop.f32.mrb[176].mxu0  ;;  %9220 = vmatprep.subr.bf16.mxu1 %v16941_v54 }
 0x65e   :  { %v8172_v23 = vpop.f32.mrb[176].mxu1  ;;  %v10819_v58 = vpop.f32.mrb[177].mxu0 }
 0x65f   :  { %v8241_v51 = vmax.f32 %v7969_v6, %v8225_v60  ;;  %v8226_v46 = vmax.f32 %v8210_v42, 0.0  ;;  %v10820_v8 = vadd.f32 %v10819_v58, %v10818_v25  ;;  %v8174_v35 = vpop.f32.mrb[177].mxu1  ;;  %v10821_v49 = vpop.f32.mrb[178].mxu0  ;;  %v16498_v6 = vld [vmem:[%s16818_s3 + $0xe0] ss:$16 sps:$4 sm:$0xff]  }
 0x660   :  { %9221 = vmatpush1.bf16.msra.mxu1 %v17138_v2  ;;  %v8175_v29 = vpop.f32.mrb[178].mxu1  ;;  %v10822_v53 = vpop.f32.mrb[179].mxu0 }
 0x661   :  { %v8253_v27 = vmax.f32 %v16452_v37, %v8241_v51  ;;  %v8242_v28 = vmax.f32 %v7970_v47, %v8226_v46  ;;  %v8173_v38 = vadd.f32 %v10820_v8, %v8172_v23  ;;  %v10823_v54 = vadd.f32 %v10822_v53, %v10821_v49  ;;  %v8177_v61 = vpop.f32.mrb[179].mxu1  ;;  %v16505_v37 = vld [vmem:[%s16818_s3 + $0xe8] ss:$16 sps:$4 sm:$0xff]  }
 0x662   :  { %8930 = vmatmul.mubr.bf16.gmra.mrb[28].mxu0 %v16498_v6  ;;  %v7971_v61 = vmax.f32 %v7955_v3, 0.0  ;;  %v7972_v23 = vmax.f32 %v7956_v24, 0.0 }
 0x663   :  { %v8254_v9 = vmax.f32 %v8240_v40, %v8242_v28  ;;  %v8211_v2 = vadd.f32 %v8173_v38, %v15953_v57  ;;  %v8176_v60 = vadd.f32 %v10823_v54, %v8175_v29  ;;  %9027 = vmatmul.mubr.bf16.gmra.mrb[28].mxu1 %v16505_v37  ;;  %9129 = vmatprep.mubr.bf16.mxu0 %v16184_v30 }
 0x664   :  { %10552 = vmatprep.mubr.msk.bf16.mxu1 %vm7174_vm1, %v16190_v1  ;;  %v7957_v1 = vadd.f32 %v16200_v59, %v15953_v57 }
 0x665   :  { %v8227_v34 = vmax.f32 %v8211_v2, 0.0  ;;  %v8212_v42 = vadd.f32 %v8176_v60, %v15957_v16  ;;  %v10824_v28 = vpop.f32.mrb[180].mxu0  ;;  %v16512_v40 = vpack.c.bf16 %v8254_v9, %v8253_v27  ;;  %v7958_v27 = vadd.f32 %v16208_v10, %v15957_v16 }
 0x666   :  { %v8180_v38 = vpop.f32.mrb[180].mxu1  ;;  %v10825_v25 = vpop.f32.mrb[181].mxu0  ;;  %v7973_v59 = vmax.f32 %v7957_v1, 0.0 }
 0x667   :  { %v8243_v58 = vmax.f32 %v7971_v61, %v8227_v34  ;;  %v8228_v47 = vmax.f32 %v8212_v42, 0.0  ;;  %v10826_v51 = vadd.f32 %v10825_v25, %v10824_v28  ;;  %v8182_v46 = vpop.f32.mrb[181].mxu1  ;;  %v10827_v8 = vpop.f32.mrb[182].mxu0  ;;  %v7974_v34 = vmax.f32 %v7958_v27, 0.0 }
 0x668   :  { %v8183_v35 = vpop.f32.mrb[182].mxu1  ;;  %v10828_v30 = vpop.f32.mrb[183].mxu0 }
 0x669   :  { %v8244_v49 = vmax.f32 %v7972_v23, %v8228_v47  ;;  %v8181_v3 = vadd.f32 %v10826_v51, %v8180_v38  ;;  %v10829_v29 = vadd.f32 %v10828_v30, %v10827_v8  ;;  %v8185_v53 = vpop.f32.mrb[183].mxu1 }
 0x66a   :  { %9130 = vmatmul.mubr.bf16.vlgmr.msra.gmra.mrb[32].mxu0 %v16205_v32 }
 0x66b   :  { %v8213_v54 = vadd.f32 %v8181_v3, %v15953_v57  ;;  %v8184_v24 = vadd.f32 %v10829_v29, %v8183_v35  ;;  %9227 = vmatmul.mubr.bf16.vlgmr.msra.gmra.mrb[32].mxu1 %v16213_v22  ;;  %9137 = vmatprep.mubr.bf16.mxu0 %v16223_v4  ;;  %v7959_v22 = vadd.f32 %v16242_v39, %v15953_v57 }
 0x66c   :  { %10553 = vmatprep.mubr.msk.bf16.mxu1 %vm7174_vm1, %v16232_v17  ;;  %v7960_v35 = vadd.f32 %v16251_v21, %v15957_v16 }
 0x66d   :  { %v8229_v9 = vmax.f32 %v8213_v54, 0.0  ;;  %v8214_v2 = vadd.f32 %v8184_v24, %v15957_v16  ;;  %v10830_v60 = vpop.f32.mrb[184].mxu0  ;;  %v7975_v39 = vmax.f32 %v7959_v22, 0.0 }
 0x66e   :  { %v8188_v61 = vpop.f32.mrb[184].mxu1  ;;  %v10831_v32 = vpop.f32.mrb[185].mxu0 }
 0x66f   :  { %v8245_v42 = vmax.f32 %v7973_v59, %v8229_v9  ;;  %v8230_v10 = vmax.f32 %v8214_v2, 0.0  ;;  %v10832_v28 = vadd.f32 %v10831_v32, %v10830_v60  ;;  %v8190_v38 = vpop.f32.mrb[185].mxu1  ;;  %v10833_v25 = vpop.f32.mrb[186].mxu0 }
 0x670   :  { %v8191_v4 = vpop.f32.mrb[186].mxu1  ;;  %v10834_v23 = vpop.f32.mrb[187].mxu0 }
 0x671   :  { %v8255_v47 = vmax.f32 %v8243_v58, %v8245_v42  ;;  %v8246_v17 = vmax.f32 %v7974_v34, %v8230_v10  ;;  %v8189_v51 = vadd.f32 %v10832_v28, %v8188_v61  ;;  %v10835_v46 = vadd.f32 %v10834_v23, %v10833_v25  ;;  %v8193_v8 = vpop.f32.mrb[187].mxu1 }
 0x672   :  { %9138 = vmatmul.mubr.bf16.gmra.mrb[36].mxu0 %v16248_v26  ;;  %v7962_v42 = vadd.f32 %v16294_v5, %v15957_v16 }
 0x673   :  { %v8256_v30 = vmax.f32 %v8244_v49, %v8246_v17  ;;  %v8215_v1 = vadd.f32 %v8189_v51, %v15953_v57  ;;  %v8192_v3 = vadd.f32 %v10835_v46, %v8191_v4  ;;  %9235 = vmatmul.mubr.bf16.gmra.mrb[36].mxu1 %v16256_v44  ;;  %9145 = vmatprep.mubr.bf16.mxu0 %v16266_v13  ;;  %v7976_v49 = vmax.f32 %v7960_v35, 0.0 }
 0x674   :  { %10554 = vmatprep.mubr.msk.bf16.mxu1 %vm7174_vm1, %v16275_v43  ;;  %v7961_v43 = vadd.f32 %v16285_v0, %v15953_v57  ;;  %v7978_v23 = vmax.f32 %v7962_v42, 0.0 }
 0x675   :  { %v8231_v58 = vmax.f32 %v8215_v1, 0.0  ;;  %v8216_v29 = vadd.f32 %v8192_v3, %v15957_v16  ;;  %v10836_v53 = vpop.f32.mrb[188].mxu0  ;;  %v16536_v27 = vpack.c.bf16 %v8256_v30, %v8255_v47 }
 0x676   :  { %v8196_v21 = vpop.f32.mrb[188].mxu1  ;;  %v10837_v26 = vpop.f32.mrb[189].mxu0  ;;  %v7977_v0 = vmax.f32 %v7961_v43, 0.0 }
 0x677   :  { %v8247_v54 = vmax.f32 %v7975_v39, %v8231_v58  ;;  %v8232_v24 = vmax.f32 %v8216_v29, 0.0  ;;  %v10838_v59 = vadd.f32 %v10837_v26, %v10836_v53  ;;  %v8198_v9 = vpop.f32.mrb[189].mxu1  ;;  %v10839_v44 = vpop.f32.mrb[190].mxu0 }
 0x678   :  { %v8199_v2 = vpop.f32.mrb[190].mxu1  ;;  %v10840_v13 = vpop.f32.mrb[191].mxu0 }
 0x679   :  { %v8248_v60 = vmax.f32 %v7976_v49, %v8232_v24  ;;  %v8197_v61 = vadd.f32 %v10838_v59, %v8196_v21  ;;  %v10841_v32 = vadd.f32 %v10840_v13, %v10839_v44  ;;  %v8201_v34 = vpop.f32.mrb[191].mxu1 }
 0x67a   :  { %9146 = vmatmul.mubr.bf16.gmra.mrb[40].mxu0 %v16291_v56 }
 0x67b   :  { %v8217_v10 = vadd.f32 %v8197_v61, %v15953_v57  ;;  %v8200_v28 = vadd.f32 %v10841_v32, %v8199_v2  ;;  %9243 = vmatmul.mubr.bf16.gmra.mrb[40].mxu1 %v16299_v11  ;;  %9153 = vmatprep.mubr.bf16.mxu0 %v16309_v55 }
 0x67c   :  { %10555 = vmatprep.mubr.msk.bf16.mxu1 %vm7174_vm1, %v16318_v62 }
 0x67d   :  { %v8233_v38 = vmax.f32 %v8217_v10, 0.0  ;;  %v8218_v25 = vadd.f32 %v8200_v28, %v15957_v16  ;;  %v10858_v22 = vpop.f32.mrb[192].mxu0 }
 0x67e   :  { %v8428_v4 = vpop.f32.mrb[192].mxu1  ;;  %v10859_v56 = vpop.f32.mrb[193].mxu0 }
 0x67f   :  { %v8249_v47 = vmax.f32 %v7977_v0, %v8233_v38  ;;  %v8234_v5 = vmax.f32 %v8218_v25, 0.0  ;;  %v10860_v17 = vadd.f32 %v10859_v56, %v10858_v22  ;;  %v8430_v51 = vpop.f32.mrb[193].mxu1  ;;  %v10861_v46 = vpop.f32.mrb[194].mxu0 }
 0x680   :  { %v8431_v8 = vpop.f32.mrb[194].mxu1  ;;  %v10862_v11 = vpop.f32.mrb[195].mxu0 }
 0x681   :  { %v8257_v35 = vmax.f32 %v8247_v54, %v8249_v47  ;;  %v8250_v55 = vmax.f32 %v7978_v23, %v8234_v5  ;;  %v16549_v30 = vadd.f32 %v10860_v17, %v8428_v4  ;;  %v10863_v62 = vadd.f32 %v10862_v11, %v10861_v46  ;;  %v8433_v1 = vpop.f32.mrb[195].mxu1 }
 0x682   :  { %9154 = vmatmul.mubr.bf16.gmra.mrb[44].mxu0 %v16334_v7 }
 0x683   :  { %v8258_v3 = vmax.f32 %v8248_v60, %v8250_v55  ;;  %v16552_v39 = vadd.f32 %v10863_v62, %v8431_v8  ;;  %9251 = vmatmul.mubr.bf16.gmra.mrb[44].mxu1 %v16343_v33  ;;  %9161 = vmatprep.mubr.bf16.mxu0 %v16354_v31 }
 0x684   :  { %10556 = vmatprep.mubr.msk.bf16.mxu1 %vm7174_vm1, %v16360_v41 }
 0x685   :  { %v10864_v58 = vpop.f32.mrb[196].mxu0  ;;  %v16558_v29 = vpack.c.bf16 %v8258_v3, %v8257_v35 }
 0x686   :  { %v8436_v53 = vpop.f32.mrb[196].mxu1  ;;  %v10865_v21 = vpop.f32.mrb[197].mxu0 }
 0x687   :  { %v10866_v26 = vadd.f32 %v10865_v21, %v10864_v58  ;;  %v8438_v49 = vpop.f32.mrb[197].mxu1  ;;  %v10867_v54 = vpop.f32.mrb[198].mxu0 }
 0x688   :  { %v8439_v24 = vpop.f32.mrb[198].mxu1  ;;  %v10868_v7 = vpop.f32.mrb[199].mxu0 }
 0x689   :  { %v16560_v59 = vadd.f32 %v10866_v26, %v8436_v53  ;;  %v10869_v9 = vadd.f32 %v10868_v7, %v10867_v54  ;;  %v8441_v44 = vpop.f32.mrb[199].mxu1 }
 0x68a   :  { %9162 = vmatmul.mubr.bf16.gmra.mrb[48].mxu0 %v16379_v15 }
 0x68b   :  { %v16563_v33 = vadd.f32 %v10869_v9, %v8439_v24  ;;  %9259 = vmatmul.mubr.bf16.gmra.mrb[48].mxu1 %v16391_v48  ;;  %9169 = vmatprep.mubr.bf16.mxu0 %v16397_v45 }
 0x68c   :  { %10557 = vmatprep.mubr.msk.bf16.mxu1 %vm7174_vm1, %v16404_v36 }
 0x68d   :  { %v10870_v31 = vpop.f32.mrb[200].mxu0 }
 0x68e   :  { %v8444_v41 = vpop.f32.mrb[200].mxu1  ;;  %v10871_v2 = vpop.f32.mrb[201].mxu0 }
 0x68f   :  { %v10872_v13 = vadd.f32 %v10871_v2, %v10870_v31  ;;  %v8446_v43 = vpop.f32.mrb[201].mxu1  ;;  %v10873_v60 = vpop.f32.mrb[202].mxu0 }
 0x690   :  { %v8447_v61 = vpop.f32.mrb[202].mxu1  ;;  %v10874_v32 = vpop.f32.mrb[203].mxu0 }
 0x691   :  { %v16569_v34 = vadd.f32 %v10872_v13, %v8444_v41  ;;  %v10875_v15 = vadd.f32 %v10874_v32, %v10873_v60  ;;  %v8449_v42 = vpop.f32.mrb[203].mxu1 }
 0x692   :  { %9170 = vmatmul.mubr.bf16.gmra.mrb[52].mxu0 %v16423_v12 }
 0x693   :  { %v16572_v48 = vadd.f32 %v10875_v15, %v8447_v61  ;;  %9267 = vmatmul.mubr.bf16.gmra.mrb[52].mxu1 %v16431_v63  ;;  %9177 = vmatprep.mubr.bf16.mxu0 %v16437_v50 }
 0x694   :  { %10558 = vmatprep.mubr.msk.bf16.mxu1 %vm7174_vm1, %v16444_v18 }
 0x695   :  { %v10876_v45 = vpop.f32.mrb[204].mxu0 }
 0x696   :  { %v8452_v36 = vpop.f32.mrb[204].mxu1  ;;  %v10877_v10 = vpop.f32.mrb[205].mxu0 }
 0x697   :  { %v10878_v28 = vadd.f32 %v10877_v10, %v10876_v45  ;;  %v8454_v0 = vpop.f32.mrb[205].mxu1  ;;  %v10879_v38 = vpop.f32.mrb[206].mxu0 }
 0x698   :  { %v8455_v25 = vpop.f32.mrb[206].mxu1  ;;  %v10880_v22 = vpop.f32.mrb[207].mxu0 }
 0x699   :  { %v16578_v4 = vadd.f32 %v10878_v28, %v8452_v36  ;;  %v10881_v12 = vadd.f32 %v10880_v22, %v10879_v38  ;;  %v8457_v56 = vpop.f32.mrb[207].mxu1 }
 0x69a   :  { %9178 = vmatmul.mubr.bf16.gmra.mrb[56].mxu0 %v16461_v19 }
 0x69b   :  { %v16581_v63 = vadd.f32 %v10881_v12, %v8455_v25  ;;  %9275 = vmatmul.mubr.bf16.gmra.mrb[56].mxu1 %v16470_v20  ;;  %9185 = vmatprep.mubr.bf16.mxu0 %v16476_v52 }
 0x69c   :  { %10559 = vmatprep.mubr.msk.bf16.mxu1 %vm7174_vm1, %v16483_v14 }
 0x69d   :  { %v10882_v50 = vpop.f32.mrb[208].mxu0 }
 0x69e   :  { %v8460_v18 = vpop.f32.mrb[208].mxu1  ;;  %v10883_v23 = vpop.f32.mrb[209].mxu0 }
 0x69f   :  { %v10884_v47 = vadd.f32 %v10883_v23, %v10882_v50  ;;  %v8462_v5 = vpop.f32.mrb[209].mxu1  ;;  %v10885_v17 = vpop.f32.mrb[210].mxu0 }
 0x6a0   :  { %v8463_v51 = vpop.f32.mrb[210].mxu1  ;;  %v10886_v46 = vpop.f32.mrb[211].mxu0 }
 0x6a1   :  { %v16587_v8 = vadd.f32 %v10884_v47, %v8460_v18  ;;  %v10887_v19 = vadd.f32 %v10886_v46, %v10885_v17  ;;  %v8465_v11 = vpop.f32.mrb[211].mxu1  ;;  %v8491_v17 = vadd.f32 %v16549_v30, %v15953_v57 }
 0x6a2   :  { %9186 = vmatmul.mubr.bf16.gmra.mrb[60].mxu0 %v16498_v6  ;;  %v8492_v11 = vadd.f32 %v16552_v39, %v15957_v16  ;;  %v8493_v39 = vadd.f32 %v16560_v59, %v15953_v57 }
 0x6a3   :  { %v16590_v20 = vadd.f32 %v10887_v19, %v8463_v51  ;;  %9283 = vmatmul.mubr.bf16.gmra.mrb[60].mxu1 %v16505_v37 }
 0x6a5   :  { %v10888_v52 = vpop.f32.mrb[212].mxu0 }
 0x6a6   :  { %v8468_v14 = vpop.f32.mrb[212].mxu1  ;;  %v10889_v35 = vpop.f32.mrb[213].mxu0 }
 0x6a7   :  { %v10890_v55 = vadd.f32 %v10889_v35, %v10888_v52  ;;  %v8470_v62 = vpop.f32.mrb[213].mxu1  ;;  %v10891_v1 = vpop.f32.mrb[214].mxu0  ;;  %v8507_v35 = vmax.f32 %v8491_v17, 0.0 }
 0x6a8   :  { %v8471_v3 = vpop.f32.mrb[214].mxu1  ;;  %v10892_v58 = vpop.f32.mrb[215].mxu0 }
 0x6a9   :  { %v16593_v53 = vadd.f32 %v10890_v55, %v8468_v14  ;;  %v10893_v21 = vadd.f32 %v10892_v58, %v10891_v1  ;;  %v8473_v26 = vpop.f32.mrb[215].mxu1 }
 0x6ab   :  { %v16595_v49 = vadd.f32 %v10893_v21, %v8471_v3  ;;  %v8508_v21 = vmax.f32 %v8492_v11, 0.0 }
 0x6ad   :  { %v10894_v54 = vpop.f32.mrb[216].mxu0 }
 0x6ae   :  { %v8476_v6 = vpop.f32.mrb[216].mxu1  ;;  %v10895_v24 = vpop.f32.mrb[217].mxu0 }
 0x6af   :  { %v10896_v7 = vadd.f32 %v10895_v24, %v10894_v54  ;;  %v8478_v9 = vpop.f32.mrb[217].mxu1  ;;  %v10897_v37 = vpop.f32.mrb[218].mxu0 }
 0x6b0   :  { %v8479_v44 = vpop.f32.mrb[218].mxu1  ;;  %v10898_v31 = vpop.f32.mrb[219].mxu0 }
 0x6b1   :  { %v16597_v41 = vadd.f32 %v10896_v7, %v8476_v6  ;;  %v10899_v2 = vadd.f32 %v10898_v31, %v10897_v37  ;;  %v8481_v13 = vpop.f32.mrb[219].mxu1 }
 0x6b2   :  { %v8494_v13 = vadd.f32 %v16563_v33, %v15957_v16 }
 0x6b3   :  { %v16599_v43 = vadd.f32 %v10899_v2, %v8479_v44 }
 0x6b5   :  { %v10900_v60 = vpop.f32.mrb[220].mxu0 }
 0x6b6   :  { %v8484_v61 = vpop.f32.mrb[220].mxu1  ;;  %v10901_v32 = vpop.f32.mrb[221].mxu0 }
 0x6b7   :  { %v10902_v15 = vadd.f32 %v10901_v32, %v10900_v60  ;;  %v8486_v42 = vpop.f32.mrb[221].mxu1  ;;  %v10903_v45 = vpop.f32.mrb[222].mxu0  ;;  %v8509_v32 = vmax.f32 %v8493_v39, 0.0 }
 0x6b8   :  { %v8487_v36 = vpop.f32.mrb[222].mxu1  ;;  %v10904_v10 = vpop.f32.mrb[223].mxu0 }
 0x6b9   :  { %v16601_v28 = vadd.f32 %v10902_v15, %v8484_v61  ;;  %v10905_v0 = vadd.f32 %v10904_v10, %v10903_v45  ;;  %v8489_v38 = vpop.f32.mrb[223].mxu1 }
 0x6bb   :  { %v16603_v25 = vadd.f32 %v10905_v0, %v8487_v36  ;;  %v8510_v0 = vmax.f32 %v8494_v13, 0.0 }
 0x6bd   :  { %v10922_v22 = vpop.f32.mrb[224].mxu0 }
 0x6be   :  { %v8684_v12 = vpop.f32.mrb[224].mxu1  ;;  %v10923_v56 = vpop.f32.mrb[225].mxu0 }
 0x6bf   :  { %v10924_v50 = vadd.f32 %v10923_v56, %v10922_v22  ;;  %v8686_v18 = vpop.f32.mrb[225].mxu1  ;;  %v10925_v23 = vpop.f32.mrb[226].mxu0 }
 0x6c0   :  { %v8687_v47 = vpop.f32.mrb[226].mxu1  ;;  %v10926_v5 = vpop.f32.mrb[227].mxu0 }
 0x6c1   :  { %v8685_v51 = vadd.f32 %v10924_v50, %v8684_v12  ;;  %v10927_v46 = vadd.f32 %v10926_v5, %v10925_v23  ;;  %v8689_v19 = vpop.f32.mrb[227].mxu1  ;;  %v8495_v50 = vadd.f32 %v16569_v34, %v15953_v57 }
 0x6c3   :  { %v8747_v52 = vadd.f32 %v8685_v51, %v15953_v57  ;;  %v8688_v14 = vadd.f32 %v10927_v46, %v8687_v47  ;;  %v8496_v46 = vadd.f32 %v16572_v48, %v15957_v16 }
 0x6c5   :  { %v8763_v55 = vmax.f32 %v8747_v52, 0.0  ;;  %v8748_v62 = vadd.f32 %v8688_v14, %v15957_v16  ;;  %v10928_v1 = vpop.f32.mrb[228].mxu0  ;;  %v8511_v14 = vmax.f32 %v8495_v50, 0.0 }
 0x6c6   :  { %v8692_v3 = vpop.f32.mrb[228].mxu1  ;;  %v10929_v58 = vpop.f32.mrb[229].mxu0 }
 0x6c7   :  { %v8779_v26 = vmax.f32 %v8507_v35, %v8763_v55  ;;  %v8764_v54 = vmax.f32 %v8748_v62, 0.0  ;;  %v10930_v30 = vadd.f32 %v10929_v58, %v10928_v1  ;;  %v8694_v6 = vpop.f32.mrb[229].mxu1  ;;  %v10931_v24 = vpop.f32.mrb[230].mxu0  ;;  %v8512_v58 = vmax.f32 %v8496_v46, 0.0 }
 0x6c8   :  { %v8695_v7 = vpop.f32.mrb[230].mxu1  ;;  %v10932_v9 = vpop.f32.mrb[231].mxu0 }
 0x6c9   :  { %v8780_v37 = vmax.f32 %v8508_v21, %v8764_v54  ;;  %v8693_v44 = vadd.f32 %v10930_v30, %v8692_v3  ;;  %v10933_v31 = vadd.f32 %v10932_v9, %v10931_v24  ;;  %v8697_v2 = vpop.f32.mrb[231].mxu1  ;;  %v8497_v9 = vadd.f32 %v16578_v4, %v15953_v57 }
 0x6ca   :  { %v8498_v2 = vadd.f32 %v16581_v63, %v15957_v16 }
 0x6cb   :  { %v8749_v60 = vadd.f32 %v8693_v44, %v15953_v57  ;;  %v8696_v61 = vadd.f32 %v10933_v31, %v8695_v7  ;;  %v17139_v7 = vld [vmem:[#allocation4_spill] sm:$0xff] }
 0x6cd   :  { %v8765_v15 = vmax.f32 %v8749_v60, 0.0  ;;  %v8750_v42 = vadd.f32 %v8696_v61, %v15957_v16  ;;  %v10934_v45 = vpop.f32.mrb[232].mxu0  ;;  %v8513_v61 = vmax.f32 %v8497_v9, 0.0  ;;  %v8502_v9 = vadd.f32 %v16595_v49, %v15957_v16 }
 0x6ce   :  { %v8700_v36 = vpop.f32.mrb[232].mxu1  ;;  %v10935_v10 = vpop.f32.mrb[233].mxu0 }
 0x6cf   :  { %v8781_v38 = vmax.f32 %v8509_v32, %v8765_v15  ;;  %v8766_v59 = vmax.f32 %v8750_v42, 0.0  ;;  %v10936_v22 = vadd.f32 %v10935_v10, %v10934_v45  ;;  %v8702_v12 = vpop.f32.mrb[233].mxu1  ;;  %v10937_v56 = vpop.f32.mrb[234].mxu0  ;;  %v8514_v10 = vmax.f32 %v8498_v2, 0.0 }
 0x6d0   :  { %v8703_v33 = vpop.f32.mrb[234].mxu1  ;;  %v10938_v18 = vpop.f32.mrb[235].mxu0  ;;  %v8499_v12 = vadd.f32 %v16587_v8, %v15953_v57 }
 0x6d1   :  { %v8782_v23 = vmax.f32 %v8510_v0, %v8766_v59  ;;  %v8701_v47 = vadd.f32 %v10936_v22, %v8700_v36  ;;  %v10939_v5 = vadd.f32 %v10938_v18, %v10937_v56  ;;  %v8705_v17 = vpop.f32.mrb[235].mxu1  ;;  %v8795_v51 = vmax.f32 %v8779_v26, %v8781_v38 }
 0x6d3   :  { %v8751_v19 = vadd.f32 %v8701_v47, %v15953_v57  ;;  %v8704_v11 = vadd.f32 %v10939_v5, %v8703_v33  ;;  %v8796_v52 = vmax.f32 %v8780_v37, %v8782_v23  ;;  %v8500_v5 = vadd.f32 %v16590_v20, %v15957_v16 }
 0x6d5   :  { %v8767_v35 = vmax.f32 %v8751_v19, 0.0  ;;  %v8752_v55 = vadd.f32 %v8704_v11, %v15957_v16  ;;  %v10940_v62 = vpop.f32.mrb[236].mxu0  ;;  %v8803_v34 = vpack.c.bf16 %v8796_v52, %v8795_v51  ;;  %v8515_v19 = vmax.f32 %v8499_v12, 0.0 }
 0x6d6   :  { %v8708_v1 = vpop.f32.mrb[236].mxu1  ;;  %v10941_v3 = vpop.f32.mrb[237].mxu0 }
 0x6d7   :  { %v8783_v21 = vmax.f32 %v8511_v14, %v8767_v35  ;;  %v8768_v54 = vmax.f32 %v8752_v55, 0.0  ;;  %v10942_v30 = vadd.f32 %v10941_v3, %v10940_v62  ;;  %v8710_v26 = vpop.f32.mrb[237].mxu1  ;;  %v10943_v6 = vpop.f32.mrb[238].mxu0  ;;  %11098 = vmatprep.subr.bf16.mxu0 %v8803_v34  ;;  %v8516_v62 = vmax.f32 %v8500_v5, 0.0 }
 0x6d8   :  { %v8711_v48 = vpop.f32.mrb[238].mxu1  ;;  %v10944_v24 = vpop.f32.mrb[239].mxu0  ;;  %11099 = vmatpush3.bf16.msra.mxu0 %v17139_v7  ;;  %v8501_v26 = vadd.f32 %v16593_v53, %v15953_v57 }
 0x6d9   :  { %v8784_v39 = vmax.f32 %v8512_v58, %v8768_v54  ;;  %v8709_v37 = vadd.f32 %v10942_v30, %v8708_v1  ;;  %v10945_v44 = vadd.f32 %v10944_v24, %v10943_v6  ;;  %v8713_v31 = vpop.f32.mrb[239].mxu1  ;;  %v17140_v30 = vld [vmem:[#allocation8_spill] sm:$0xff] }
 0x6db   :  { %v8753_v13 = vadd.f32 %v8709_v37, %v15953_v57  ;;  %v8712_v60 = vadd.f32 %v10945_v44, %v8711_v48  ;;  %v8517_v44 = vmax.f32 %v8501_v26, 0.0 }
 0x6dd   :  { %v8769_v32 = vmax.f32 %v8753_v13, 0.0  ;;  %v8754_v15 = vadd.f32 %v8712_v60, %v15957_v16  ;;  %v10946_v42 = vpop.f32.mrb[240].mxu0 }
 0x6de   :  { %v8716_v45 = vpop.f32.mrb[240].mxu1  ;;  %v10947_v36 = vpop.f32.mrb[241].mxu0 }
 0x6df   :  { %v8785_v0 = vmax.f32 %v8513_v61, %v8769_v32  ;;  %v8770_v4 = vmax.f32 %v8754_v15, 0.0  ;;  %v10948_v38 = vadd.f32 %v10947_v36, %v10946_v42  ;;  %v8718_v59 = vpop.f32.mrb[241].mxu1  ;;  %v10949_v22 = vpop.f32.mrb[242].mxu0  ;;  %v8518_v32 = vmax.f32 %v8502_v9, 0.0 }
 0x6e0   :  { %v8719_v63 = vpop.f32.mrb[242].mxu1  ;;  %v10950_v56 = vpop.f32.mrb[243].mxu0 }
 0x6e1   :  { %v8786_v50 = vmax.f32 %v8514_v10, %v8770_v4  ;;  %v8717_v33 = vadd.f32 %v10948_v38, %v8716_v45  ;;  %v10951_v18 = vadd.f32 %v10950_v56, %v10949_v22  ;;  %v8721_v23 = vpop.f32.mrb[243].mxu1  ;;  %v8797_v47 = vmax.f32 %v8783_v21, %v8785_v0 }
 0x6e2   :  { %v8503_v10 = vadd.f32 %v16597_v41, %v15953_v57 }
 0x6e3   :  { %v8755_v17 = vadd.f32 %v8717_v33, %v15953_v57  ;;  %v8720_v51 = vadd.f32 %v10951_v18, %v8719_v63  ;;  %v8798_v46 = vmax.f32 %v8784_v39, %v8786_v50  ;;  %v8504_v63 = vadd.f32 %v16599_v43, %v15957_v16 }
 0x6e4   :  { %v8519_v18 = vmax.f32 %v8503_v10, 0.0 }
 0x6e5   :  { %v8771_v11 = vmax.f32 %v8755_v17, 0.0  ;;  %v8756_v52 = vadd.f32 %v8720_v51, %v15957_v16  ;;  %v10952_v14 = vpop.f32.mrb[244].mxu0  ;;  %v8804_v8 = vpack.c.bf16 %v8798_v46, %v8797_v47  ;;  %v8520_v46 = vmax.f32 %v8504_v63, 0.0 }
 0x6e6   :  { %v8724_v35 = vpop.f32.mrb[244].mxu1  ;;  %v10953_v55 = vpop.f32.mrb[245].mxu0 }
 0x6e7   :  { %v8787_v34 = vmax.f32 %v8515_v19, %v8771_v11  ;;  %v8772_v1 = vmax.f32 %v8756_v52, 0.0  ;;  %v10954_v3 = vadd.f32 %v10953_v55, %v10952_v14  ;;  %v8726_v58 = vpop.f32.mrb[245].mxu1  ;;  %v10955_v21 = vpop.f32.mrb[246].mxu0  ;;  %11100 = vmatprep.subr.bf16.mxu0 %v8804_v8  ;;  %v17141_v55 = vld [vmem:[#allocation6_spill] sm:$0xff] }
 0x6e8   :  { %v8727_v20 = vpop.f32.mrb[246].mxu1  ;;  %v10956_v54 = vpop.f32.mrb[247].mxu0  ;;  %11101 = vmatpush3.bf16.msra.mxu0 %v17140_v30 }
 0x6e9   :  { %v8788_v6 = vmax.f32 %v8516_v62, %v8772_v1  ;;  %v8725_v48 = vadd.f32 %v10954_v3, %v8724_v35  ;;  %v10957_v24 = vadd.f32 %v10956_v54, %v10955_v21  ;;  %v8729_v7 = vpop.f32.mrb[247].mxu1  ;;  %v8505_v62 = vadd.f32 %v16601_v28, %v15953_v57 }
 0x6ea   :  { %v8506_v21 = vadd.f32 %v16603_v25, %v15957_v16 }
 0x6eb   :  { %v8757_v39 = vadd.f32 %v8725_v48, %v15953_v57  ;;  %v8728_v37 = vadd.f32 %v10957_v24, %v8727_v20  ;;  %v8521_v30 = vmax.f32 %v8505_v62, 0.0 }
 0x6ec   :  { %v8522_v9 = vmax.f32 %v8506_v21, 0.0 }
 0x6ed   :  { %v8773_v31 = vmax.f32 %v8757_v39, 0.0  ;;  %v8758_v2 = vadd.f32 %v8728_v37, %v15957_v16  ;;  %v10958_v13 = vpop.f32.mrb[248].mxu0 }
 0x6ee   :  { %v8732_v60 = vpop.f32.mrb[248].mxu1  ;;  %v10959_v61 = vpop.f32.mrb[249].mxu0 }
 0x6ef   :  { %v8789_v15 = vmax.f32 %v8517_v44, %v8773_v31  ;;  %v8774_v53 = vmax.f32 %v8758_v2, 0.0  ;;  %v10960_v42 = vadd.f32 %v10959_v61, %v10958_v13  ;;  %v8734_v45 = vpop.f32.mrb[249].mxu1  ;;  %v10961_v36 = vpop.f32.mrb[250].mxu0 }
 0x6f0   :  { %v8735_v49 = vpop.f32.mrb[250].mxu1  ;;  %v10962_v0 = vpop.f32.mrb[251].mxu0 }
 0x6f1   :  { %v8790_v4 = vmax.f32 %v8518_v32, %v8774_v53  ;;  %v8733_v38 = vadd.f32 %v10960_v42, %v8732_v60  ;;  %v10963_v59 = vadd.f32 %v10962_v0, %v10961_v36  ;;  %v8737_v22 = vpop.f32.mrb[251].mxu1  ;;  %v8799_v12 = vmax.f32 %v8787_v34, %v8789_v15 }
 0x6f3   :  { %v8759_v56 = vadd.f32 %v8733_v38, %v15953_v57  ;;  %v8736_v50 = vadd.f32 %v10963_v59, %v8735_v49  ;;  %v8800_v33 = vmax.f32 %v8788_v6, %v8790_v4 }
 0x6f5   :  { %v8775_v23 = vmax.f32 %v8759_v56, 0.0  ;;  %v8760_v47 = vadd.f32 %v8736_v50, %v15957_v16  ;;  %v10964_v5 = vpop.f32.mrb[252].mxu0  ;;  %v8805_v41 = vpack.c.bf16 %v8800_v33, %v8799_v12  ;;  %v17142_v12 = vld [vmem:[#allocation10_spill] sm:$0xff]  ;;  %v11547_v33 = vld [vmem:[%s16819_s5 + $0x4] ss:$8 sps:$4 sm:$0xff]  }
 0x6f6   :  { %v8740_v17 = vpop.f32.mrb[252].mxu1  ;;  %v10965_v51 = vpop.f32.mrb[253].mxu0  ;;  %9585 = vmatprep.mubr.bf16.mxu0 %v11547_v33 }
 0x6f7   :  { %v8791_v19 = vmax.f32 %v8519_v18, %v8775_v23  ;;  %v8776_v11 = vmax.f32 %v8760_v47, 0.0  ;;  %v10966_v52 = vadd.f32 %v10965_v51, %v10964_v5  ;;  %v8742_v14 = vpop.f32.mrb[253].mxu1  ;;  %v10967_v8 = vpop.f32.mrb[254].mxu0  ;;  %11102 = vmatprep.subr.bf16.mxu0 %v8805_v41 }
 0x6f8   :  { %v8743_v43 = vpop.f32.mrb[254].mxu1  ;;  %v10968_v35 = vpop.f32.mrb[255].mxu0  ;;  %11103 = vmatpush3.bf16.msra.mxu0 %v17141_v55 }
 0x6f9   :  { %v8792_v34 = vmax.f32 %v8520_v46, %v8776_v11  ;;  %v8741_v1 = vadd.f32 %v10966_v52, %v8740_v17  ;;  %v10969_v3 = vadd.f32 %v10968_v35, %v10967_v8  ;;  %v8745_v58 = vpop.f32.mrb[255].mxu1 }
 0x6fb   :  { %v8761_v20 = vadd.f32 %v8741_v1, %v15953_v57  ;;  %v8744_v54 = vadd.f32 %v10969_v3, %v8743_v43 }
 0x6fd   :  { %v8777_v26 = vmax.f32 %v8761_v20, 0.0  ;;  %v8762_v6 = vadd.f32 %v8744_v54, %v15957_v16  ;;  %v10986_v48 = vpop.f32.mrb[0].mxu0 }
 0x6fe   :  { %v8972_v24 = vpop.f32.mrb[0].mxu1  ;;  %v10987_v7 = vpop.f32.mrb[1].mxu0 }
 0x6ff   :  { %v8793_v39 = vmax.f32 %v8521_v30, %v8777_v26  ;;  %v8778_v28 = vmax.f32 %v8762_v6, 0.0  ;;  %v10988_v37 = vadd.f32 %v10987_v7, %v10986_v48  ;;  %v8974_v44 = vpop.f32.mrb[1].mxu1  ;;  %v10989_v31 = vpop.f32.mrb[2].mxu0 }
 0x700   :  { %v8975_v2 = vpop.f32.mrb[2].mxu1  ;;  %v10990_v13 = vpop.f32.mrb[3].mxu0 }
 0x701   :  { %v8794_v60 = vmax.f32 %v8522_v9, %v8778_v28  ;;  %v16656_v25 = vadd.f32 %v10988_v37, %v8972_v24  ;;  %v10991_v61 = vadd.f32 %v10990_v13, %v10989_v31  ;;  %v8977_v32 = vpop.f32.mrb[3].mxu1  ;;  %v8801_v15 = vmax.f32 %v8791_v19, %v8793_v39 }
 0x703   :  { %v16658_v53 = vadd.f32 %v10991_v61, %v8975_v2  ;;  %v8802_v42 = vmax.f32 %v8792_v34, %v8794_v60 }
 0x705   :  { %v10992_v45 = vpop.f32.mrb[4].mxu0  ;;  %v8806_v36 = vpack.c.bf16 %v8802_v42, %v8801_v15 }
 0x706   :  { %v8980_v10 = vpop.f32.mrb[4].mxu1  ;;  %v10993_v49 = vpop.f32.mrb[5].mxu0 }
 0x707   :  { %v10994_v0 = vadd.f32 %v10993_v49, %v10992_v45  ;;  %v8982_v4 = vpop.f32.mrb[5].mxu1  ;;  %v10995_v38 = vpop.f32.mrb[6].mxu0  ;;  %11104 = vmatprep.subr.bf16.mxu0 %v8806_v36 }
 0x708   :  { %v8983_v59 = vpop.f32.mrb[6].mxu1  ;;  %v10996_v22 = vpop.f32.mrb[7].mxu0  ;;  %11105 = vmatpush3.bf16.msra.mxu0 %v17142_v12 }
 0x709   :  { %v16661_v63 = vadd.f32 %v10994_v0, %v8980_v10  ;;  %v10997_v56 = vadd.f32 %v10996_v22, %v10995_v38  ;;  %v8985_v50 = vpop.f32.mrb[7].mxu1 }
 0x70b   :  { %v16666_v18 = vadd.f32 %v10997_v56, %v8983_v59 }
 0x70d   :  { %v10998_v23 = vpop.f32.mrb[8].mxu0 }
 0x70e   :  { %v8988_v47 = vpop.f32.mrb[8].mxu1  ;;  %v10999_v5 = vpop.f32.mrb[9].mxu0 }
 0x70f   :  { %v11000_v41 = vadd.f32 %v10999_v5, %v10998_v23  ;;  %v8990_v17 = vpop.f32.mrb[9].mxu1  ;;  %v11001_v51 = vpop.f32.mrb[10].mxu0 }
 0x710   :  { %v8991_v46 = vpop.f32.mrb[10].mxu1  ;;  %v11002_v19 = vpop.f32.mrb[11].mxu0 }
 0x711   :  { %v16668_v11 = vadd.f32 %v11000_v41, %v8988_v47  ;;  %v11003_v52 = vadd.f32 %v11002_v19, %v11001_v51  ;;  %v8993_v14 = vpop.f32.mrb[11].mxu1 }
 0x713   :  { %v16670_v8 = vadd.f32 %v11003_v52, %v8991_v46 }
 0x715   :  { %v11004_v43 = vpop.f32.mrb[12].mxu0 }
 0x716   :  { %v8996_v35 = vpop.f32.mrb[12].mxu1  ;;  %v11005_v55 = vpop.f32.mrb[13].mxu0 }
 0x717   :  { %v11006_v62 = vadd.f32 %v11005_v55, %v11004_v43  ;;  %v8998_v34 = vpop.f32.mrb[13].mxu1  ;;  %v11007_v1 = vpop.f32.mrb[14].mxu0 }
 0x718   :  { %v8999_v3 = vpop.f32.mrb[14].mxu1  ;;  %v11008_v58 = vpop.f32.mrb[15].mxu0 }
 0x719   :  { %v16672_v21 = vadd.f32 %v11006_v62, %v8996_v35  ;;  %v11009_v20 = vadd.f32 %v11008_v58, %v11007_v1  ;;  %v9001_v54 = vpop.f32.mrb[15].mxu1 }
 0x71b   :  { %v16674_v30 = vadd.f32 %v11009_v20, %v8999_v3 }
 0x71d   :  { %v11010_v26 = vpop.f32.mrb[16].mxu0 }
 0x71e   :  { %v9004_v6 = vpop.f32.mrb[16].mxu1  ;;  %v11011_v48 = vpop.f32.mrb[17].mxu0 }
 0x71f   :  { %v11012_v24 = vadd.f32 %v11011_v48, %v11010_v26  ;;  %v9006_v7 = vpop.f32.mrb[17].mxu1  ;;  %v11013_v9 = vpop.f32.mrb[18].mxu0 }
 0x720   :  { %v9007_v39 = vpop.f32.mrb[18].mxu1  ;;  %v11014_v28 = vpop.f32.mrb[19].mxu0 }
 0x721   :  { %v16676_v37 = vadd.f32 %v11012_v24, %v9004_v6  ;;  %v11015_v44 = vadd.f32 %v11014_v28, %v11013_v9  ;;  %v9009_v31 = vpop.f32.mrb[19].mxu1  ;;  %v9035_v9 = vadd.f32 %v16656_v25, %v15953_v57 }
 0x722   :  { %v9036_v31 = vadd.f32 %v16658_v53, %v15957_v16  ;;  %v9037_v53 = vadd.f32 %v16661_v63, %v15953_v57 }
 0x723   :  { %v16678_v2 = vadd.f32 %v11015_v44, %v9007_v39 }
 0x725   :  { %v11016_v13 = vpop.f32.mrb[20].mxu0 }
 0x726   :  { %v9012_v60 = vpop.f32.mrb[20].mxu1  ;;  %v11017_v61 = vpop.f32.mrb[21].mxu0 }
 0x727   :  { %v11018_v32 = vadd.f32 %v11017_v61, %v11016_v13  ;;  %v9014_v15 = vpop.f32.mrb[21].mxu1  ;;  %v11019_v42 = vpop.f32.mrb[22].mxu0  ;;  %v9051_v61 = vmax.f32 %v9035_v9, 0.0 }
 0x728   :  { %v9015_v45 = vpop.f32.mrb[22].mxu1  ;;  %v11020_v36 = vpop.f32.mrb[23].mxu0 }
 0x729   :  { %v16680_v10 = vadd.f32 %v11018_v32, %v9012_v60  ;;  %v11021_v49 = vadd.f32 %v11020_v36, %v11019_v42  ;;  %v9017_v0 = vpop.f32.mrb[23].mxu1 }
 0x72b   :  { %v16682_v4 = vadd.f32 %v11021_v49, %v9015_v45  ;;  %v9052_v49 = vmax.f32 %v9036_v31, 0.0 }
 0x72d   :  { %v11022_v38 = vpop.f32.mrb[24].mxu0 }
 0x72e   :  { %v9020_v59 = vpop.f32.mrb[24].mxu1  ;;  %v11023_v22 = vpop.f32.mrb[25].mxu0 }
 0x72f   :  { %v11024_v12 = vadd.f32 %v11023_v22, %v11022_v38  ;;  %v9022_v56 = vpop.f32.mrb[25].mxu1  ;;  %v11025_v50 = vpop.f32.mrb[26].mxu0 }
 0x730   :  { %v9023_v33 = vpop.f32.mrb[26].mxu1  ;;  %v11026_v23 = vpop.f32.mrb[27].mxu0 }
 0x731   :  { %v16684_v47 = vadd.f32 %v11024_v12, %v9020_v59  ;;  %v11027_v5 = vadd.f32 %v11026_v23, %v11025_v50  ;;  %v9025_v41 = vpop.f32.mrb[27].mxu1 }
 0x732   :  { %v9038_v41 = vadd.f32 %v16666_v18, %v15957_v16 }
 0x733   :  { %v16686_v17 = vadd.f32 %v11027_v5, %v9023_v33 }
 0x735   :  { %v11028_v51 = vpop.f32.mrb[28].mxu0 }
 0x736   :  { %v9028_v46 = vpop.f32.mrb[28].mxu1  ;;  %v11029_v19 = vpop.f32.mrb[29].mxu0 }
 0x737   :  { %v11030_v52 = vadd.f32 %v11029_v19, %v11028_v51  ;;  %v9030_v14 = vpop.f32.mrb[29].mxu1  ;;  %v11031_v43 = vpop.f32.mrb[30].mxu0  ;;  %v9053_v19 = vmax.f32 %v9037_v53, 0.0 }
 0x738   :  { %v9031_v35 = vpop.f32.mrb[30].mxu1  ;;  %v11032_v55 = vpop.f32.mrb[31].mxu0 }
 0x739   :  { %v16688_v62 = vadd.f32 %v11030_v52, %v9028_v46  ;;  %v11033_v34 = vadd.f32 %v11032_v55, %v11031_v43  ;;  %v9033_v1 = vpop.f32.mrb[31].mxu1 }
 0x73b   :  { %v16690_v3 = vadd.f32 %v11033_v34, %v9031_v35  ;;  %v9054_v34 = vmax.f32 %v9038_v41, 0.0 }
 0x73d   :  { %v11050_v58 = vpop.f32.mrb[32].mxu0 }
 0x73e   :  { %v9228_v20 = vpop.f32.mrb[32].mxu1  ;;  %v11051_v54 = vpop.f32.mrb[33].mxu0 }
 0x73f   :  { %v11052_v26 = vadd.f32 %v11051_v54, %v11050_v58  ;;  %v9230_v6 = vpop.f32.mrb[33].mxu1  ;;  %v11053_v48 = vpop.f32.mrb[34].mxu0 }
 0x740   :  { %v9231_v24 = vpop.f32.mrb[34].mxu1  ;;  %v11054_v7 = vpop.f32.mrb[35].mxu0 }
 0x741   :  { %v9229_v39 = vadd.f32 %v11052_v26, %v9228_v20  ;;  %v11055_v28 = vadd.f32 %v11054_v7, %v11053_v48  ;;  %v9233_v44 = vpop.f32.mrb[35].mxu1  ;;  %v9039_v26 = vadd.f32 %v16668_v11, %v15953_v57 }
 0x743   :  { %v9291_v13 = vadd.f32 %v9229_v39, %v15953_v57  ;;  %v9232_v60 = vadd.f32 %v11055_v28, %v9231_v24  ;;  %v9040_v28 = vadd.f32 %v16670_v8, %v15957_v16 }
 0x745   :  { %v9307_v32 = vmax.f32 %v9291_v13, 0.0  ;;  %v9292_v15 = vadd.f32 %v9232_v60, %v15957_v16  ;;  %v11056_v42 = vpop.f32.mrb[36].mxu0  ;;  %v9055_v60 = vmax.f32 %v9039_v26, 0.0 }
 0x746   :  { %v9236_v45 = vpop.f32.mrb[36].mxu1  ;;  %v11057_v36 = vpop.f32.mrb[37].mxu0 }
 0x747   :  { %v9323_v0 = vmax.f32 %v9051_v61, %v9307_v32  ;;  %v9308_v38 = vmax.f32 %v9292_v15, 0.0  ;;  %v11058_v25 = vadd.f32 %v11057_v36, %v11056_v42  ;;  %v9238_v59 = vpop.f32.mrb[37].mxu1  ;;  %v11059_v22 = vpop.f32.mrb[38].mxu0  ;;  %v9056_v36 = vmax.f32 %v9040_v28, 0.0 }
 0x748   :  { %v9239_v12 = vpop.f32.mrb[38].mxu1  ;;  %v11060_v56 = vpop.f32.mrb[39].mxu0 }
 0x749   :  { %v9324_v50 = vmax.f32 %v9052_v49, %v9308_v38  ;;  %v9237_v33 = vadd.f32 %v11058_v25, %v9236_v45  ;;  %v11061_v23 = vadd.f32 %v11060_v56, %v11059_v22  ;;  %v9241_v5 = vpop.f32.mrb[39].mxu1  ;;  %v9041_v56 = vadd.f32 %v16672_v21, %v15953_v57 }
 0x74a   :  { %v9042_v5 = vadd.f32 %v16674_v30, %v15957_v16 }
 0x74b   :  { %v9293_v51 = vadd.f32 %v9237_v33, %v15953_v57  ;;  %v9240_v46 = vadd.f32 %v11061_v23, %v9239_v12  ;;  %v17143_v12 = vld [vmem:[#allocation44_spill] sm:$0xff] }
 0x74d   :  { %v9309_v52 = vmax.f32 %v9293_v51, 0.0  ;;  %v9294_v14 = vadd.f32 %v9240_v46, %v15957_v16  ;;  %v11062_v43 = vpop.f32.mrb[40].mxu0  ;;  %v9057_v46 = vmax.f32 %v9041_v56, 0.0 }
 0x74e   :  { %v9244_v35 = vpop.f32.mrb[40].mxu1  ;;  %v11063_v55 = vpop.f32.mrb[41].mxu0 }
 0x74f   :  { %v9325_v1 = vmax.f32 %v9053_v19, %v9309_v52  ;;  %v9310_v63 = vmax.f32 %v9294_v14, 0.0  ;;  %v11064_v58 = vadd.f32 %v11063_v55, %v11062_v43  ;;  %v9246_v20 = vpop.f32.mrb[41].mxu1  ;;  %v11065_v54 = vpop.f32.mrb[42].mxu0  ;;  %v9058_v55 = vmax.f32 %v9042_v5, 0.0 }
 0x750   :  { %v9247_v18 = vpop.f32.mrb[42].mxu1  ;;  %v11066_v6 = vpop.f32.mrb[43].mxu0  ;;  %v9043_v20 = vadd.f32 %v16676_v37, %v15953_v57 }
 0x751   :  { %v9326_v48 = vmax.f32 %v9054_v34, %v9310_v63  ;;  %v9245_v24 = vadd.f32 %v11064_v58, %v9244_v35  ;;  %v11067_v7 = vadd.f32 %v11066_v6, %v11065_v54  ;;  %v9249_v9 = vpop.f32.mrb[43].mxu1  ;;  %v9339_v39 = vmax.f32 %v9323_v0, %v9325_v1 }
 0x753   :  { %v9295_v44 = vadd.f32 %v9245_v24, %v15953_v57  ;;  %v9248_v31 = vadd.f32 %v11067_v7, %v9247_v18  ;;  %v9340_v13 = vmax.f32 %v9324_v50, %v9326_v48  ;;  %v9044_v7 = vadd.f32 %v16678_v2, %v15957_v16 }
 0x755   :  { %v9311_v61 = vmax.f32 %v9295_v44, 0.0  ;;  %v9296_v32 = vadd.f32 %v9248_v31, %v15957_v16  ;;  %v11068_v15 = vpop.f32.mrb[44].mxu0  ;;  %v9347_v11 = vpack.c.bf16 %v9340_v13, %v9339_v39  ;;  %v9059_v44 = vmax.f32 %v9043_v20, 0.0 }
 0x756   :  { %v9252_v42 = vpop.f32.mrb[44].mxu1  ;;  %v11069_v45 = vpop.f32.mrb[45].mxu0 }
 0x757   :  { %v9327_v49 = vmax.f32 %v9055_v60, %v9311_v61  ;;  %v9312_v38 = vmax.f32 %v9296_v32, 0.0  ;;  %v11070_v25 = vadd.f32 %v11069_v45, %v11068_v15  ;;  %v9254_v0 = vpop.f32.mrb[45].mxu1  ;;  %v11071_v59 = vpop.f32.mrb[46].mxu0  ;;  %11106 = vmatprep.subr.bf16.mxu0 %v9347_v11  ;;  %v9060_v15 = vmax.f32 %v9044_v7, 0.0 }
 0x758   :  { %v9255_v8 = vpop.f32.mrb[46].mxu1  ;;  %v11072_v22 = vpop.f32.mrb[47].mxu0  ;;  %11107 = vmatpush3.bf16.msra.mxu0 %v17143_v12  ;;  %v9046_v12 = vadd.f32 %v16682_v4, %v15957_v16 }
 0x759   :  { %v9328_v53 = vmax.f32 %v9056_v36, %v9312_v38  ;;  %v9253_v50 = vadd.f32 %v11070_v25, %v9252_v42  ;;  %v11073_v33 = vadd.f32 %v11072_v22, %v11071_v59  ;;  %v9257_v23 = vpop.f32.mrb[47].mxu1  ;;  %v9045_v25 = vadd.f32 %v16680_v10, %v15953_v57 }
 0x75b   :  { %v9297_v41 = vadd.f32 %v9253_v50, %v15953_v57  ;;  %v9256_v51 = vadd.f32 %v11073_v33, %v9255_v8  ;;  %v9061_v50 = vmax.f32 %v9045_v25, 0.0 }
 0x75d   :  { %v9313_v19 = vmax.f32 %v9297_v41, 0.0  ;;  %v9298_v52 = vadd.f32 %v9256_v51, %v15957_v16  ;;  %v11074_v14 = vpop.f32.mrb[48].mxu0  ;;  %v9062_v51 = vmax.f32 %v9046_v12, 0.0  ;;  %v11545_v12 = vld [vmem:[%s16819_s5] ss:$8 sps:$4 sm:$0xff]  }
 0x75e   :  { %v9260_v43 = vpop.f32.mrb[48].mxu1  ;;  %v11075_v35 = vpop.f32.mrb[49].mxu0 }
 0x75f   :  { %v9329_v34 = vmax.f32 %v9057_v46, %v9313_v19  ;;  %v9314_v21 = vmax.f32 %v9298_v52, 0.0  ;;  %v11076_v1 = vadd.f32 %v11075_v35, %v11074_v14  ;;  %v9262_v63 = vpop.f32.mrb[49].mxu1  ;;  %v11077_v58 = vpop.f32.mrb[50].mxu0 }
 0x760   :  { %v9263_v30 = vpop.f32.mrb[50].mxu1  ;;  %v11078_v54 = vpop.f32.mrb[51].mxu0 }
 0x761   :  { %v9330_v26 = vmax.f32 %v9058_v55, %v9314_v21  ;;  %v9261_v18 = vadd.f32 %v11076_v1, %v9260_v43  ;;  %v11079_v6 = vadd.f32 %v11078_v54, %v11077_v58  ;;  %v9265_v48 = vpop.f32.mrb[51].mxu1  ;;  %v9341_v24 = vmax.f32 %v9327_v49, %v9329_v34 }
 0x762   :  { %v9047_v43 = vadd.f32 %v16684_v47, %v15953_v57  ;;  %v9048_v58 = vadd.f32 %v16686_v17, %v15957_v16 }
 0x763   :  { %v9299_v9 = vadd.f32 %v9261_v18, %v15953_v57  ;;  %v9264_v39 = vadd.f32 %v11079_v6, %v9263_v30  ;;  %v9342_v28 = vmax.f32 %v9328_v53, %v9330_v26 }
 0x764   :  { %v9063_v26 = vmax.f32 %v9047_v43, 0.0 }
 0x765   :  { %v9315_v31 = vmax.f32 %v9299_v9, 0.0  ;;  %v9300_v13 = vadd.f32 %v9264_v39, %v15957_v16  ;;  %v11080_v60 = vpop.f32.mrb[52].mxu0  ;;  %v9348_v37 = vpack.c.bf16 %v9342_v28, %v9341_v24  ;;  %v9064_v9 = vmax.f32 %v9048_v58, 0.0 }
 0x766   :  { %v9268_v61 = vpop.f32.mrb[52].mxu1  ;;  %v11081_v32 = vpop.f32.mrb[53].mxu0 }
 0x767   :  { %v9331_v11 = vmax.f32 %v9059_v44, %v9315_v31  ;;  %v9316_v42 = vmax.f32 %v9300_v13, 0.0  ;;  %v11082_v45 = vadd.f32 %v11081_v32, %v11080_v60  ;;  %v9270_v36 = vpop.f32.mrb[53].mxu1  ;;  %v11083_v49 = vpop.f32.mrb[54].mxu0  ;;  %11108 = vmatprep.subr.bf16.mxu0 %v9348_v37  ;;  %v9049_v37 = vadd.f32 %v16688_v62, %v15953_v57 }
 0x768   :  { %v9271_v2 = vpop.f32.mrb[54].mxu1  ;;  %v11084_v38 = vpop.f32.mrb[55].mxu0  ;;  %11109 = vmatpush3.bf16.msra.mxu0 %v16512_v40 }
 0x769   :  { %v9332_v0 = vmax.f32 %v9060_v15, %v9316_v42  ;;  %v9269_v59 = vadd.f32 %v11082_v45, %v9268_v61  ;;  %v11085_v8 = vadd.f32 %v11084_v38, %v11083_v49  ;;  %v9273_v22 = vpop.f32.mrb[55].mxu1  ;;  %v9050_v42 = vadd.f32 %v16690_v3, %v15957_v16  ;;  %v11553_v3 = vld [vmem:[%s16819_s5 + $0x24] ss:$8 sps:$4 sm:$0xff]  }
 0x76a   :  { %v9065_v49 = vmax.f32 %v9049_v37, 0.0 }
 0x76b   :  { %v9301_v56 = vadd.f32 %v9269_v59, %v15953_v57  ;;  %v9272_v53 = vadd.f32 %v11085_v8, %v9271_v2  ;;  %v9066_v25 = vmax.f32 %v9050_v42, 0.0 }
 0x76d   :  { %v9317_v33 = vmax.f32 %v9301_v56, 0.0  ;;  %v9302_v23 = vadd.f32 %v9272_v53, %v15957_v16  ;;  %v11086_v5 = vpop.f32.mrb[56].mxu0  ;;  %v11556_v56 = vld [vmem:[%s16819_s5 + $0x34] ss:$8 sps:$4 sm:$0xff]   ;;  %v11554_v53 = vld [vmem:[%s16819_s5 + $0x30] ss:$8 sps:$4 sm:$0xff]  }
 0x76e   :  { %v9276_v41 = vpop.f32.mrb[56].mxu1  ;;  %v11087_v40 = vpop.f32.mrb[57].mxu0 }
 0x76f   :  { %v9333_v46 = vmax.f32 %v9061_v50, %v9317_v33  ;;  %v9318_v10 = vmax.f32 %v9302_v23, 0.0  ;;  %v11088_v19 = vadd.f32 %v11087_v40, %v11086_v5  ;;  %v9278_v52 = vpop.f32.mrb[57].mxu1  ;;  %v11089_v14 = vpop.f32.mrb[58].mxu0  ;;  %v11559_v50 = vld [vmem:[%s16819_s5 + $0x44] ss:$8 sps:$4 sm:$0xff]   ;;  %v9385_v40 = vld [vmem:[%s16819_s5 + $0x70] sm:$0xff] }
 0x770   :  { %v9279_v4 = vpop.f32.mrb[58].mxu1  ;;  %v11090_v35 = vpop.f32.mrb[59].mxu0  ;;  %v11557_v33 = vld [vmem:[%s16819_s5 + $0x40] ss:$8 sps:$4 sm:$0xff]   ;;  %v11562_v23 = vld [vmem:[%s16819_s5 + $0x54] ss:$8 sps:$4 sm:$0xff]  }
 0x771   :  { %v9334_v55 = vmax.f32 %v9062_v51, %v9318_v10  ;;  %v9277_v34 = vadd.f32 %v11088_v19, %v9276_v41  ;;  %v11091_v21 = vadd.f32 %v11090_v35, %v11089_v14  ;;  %v9281_v1 = vpop.f32.mrb[59].mxu1  ;;  %v9343_v63 = vmax.f32 %v9331_v11, %v9333_v46  ;;  %v11560_v5 = vld [vmem:[%s16819_s5 + $0x50] ss:$8 sps:$4 sm:$0xff]   ;;  %v11565_v41 = vld [vmem:[%s16819_s5 + $0x64] ss:$8 sps:$4 sm:$0xff]   ;;  %v9404_v35 = vpop.permute.xlu1 %9403 }
 0x772   :  { %v11563_v51 = vld [vmem:[%s16819_s5 + $0x60] ss:$8 sps:$4 sm:$0xff]   ;;  %v10575_v46 = vcombine.high %v9385_v40, %v9385_v40  ;;  %v10574_v10 = vcombine.low %v9385_v40, %v9385_v40  ;;  %v9409_v1 = vpop.permute.xlu0 %9408 }
 0x773   :  { %v9303_v20 = vadd.f32 %v9277_v34, %v15953_v57  ;;  %v9280_v30 = vadd.f32 %v11091_v21, %v9279_v4  ;;  %v9344_v54 = vmax.f32 %v9332_v0, %v9334_v55  ;;  %v11568_v19 = vld [vmem:[%s16820_s7] sm:$0xff]  }
 0x774   :  { %11195 = vmatprep.mubr.msk.bf16.mxu1 %vm9748_vm2, %v11568_v19 }
 0x775   :  { %v9319_v18 = vmax.f32 %v9303_v20, 0.0  ;;  %v9304_v6 = vadd.f32 %v9280_v30, %v15957_v16  ;;  %v11092_v48 = vpop.f32.mrb[60].mxu0  ;;  %v9349_v47 = vpack.c.bf16 %v9344_v54, %v9343_v63 }
 0x776   :  { %v9284_v24 = vpop.f32.mrb[60].mxu1  ;;  %v11093_v7 = vpop.f32.mrb[61].mxu0 }
 0x777   :  { %v9335_v39 = vmax.f32 %v9063_v26, %v9319_v18  ;;  %v9320_v28 = vmax.f32 %v9304_v6, 0.0  ;;  %v11094_v44 = vadd.f32 %v11093_v7, %v11092_v48  ;;  %v9286_v31 = vpop.f32.mrb[61].mxu1  ;;  %v11095_v13 = vpop.f32.mrb[62].mxu0  ;;  %11110 = vmatprep.subr.bf16.mxu0 %v9349_v47 }
 0x778   :  { %v9287_v17 = vpop.f32.mrb[62].mxu1  ;;  %v11096_v60 = vpop.f32.mrb[63].mxu0  ;;  %11111 = vmatpush3.bf16.msra.mxu0 %v16536_v27 }
 0x779   :  { %v9336_v61 = vmax.f32 %v9064_v9, %v9320_v28  ;;  %v9285_v32 = vadd.f32 %v11094_v44, %v9284_v24  ;;  %v11097_v15 = vadd.f32 %v11096_v60, %v11095_v13  ;;  %v9289_v11 = vpop.f32.mrb[63].mxu1  ;;  %v9414_v48 = vpop.permute.xlu1 %9413 }
 0x77a   :  { %v9419_v9 = vpop.permute.xlu0 %9418 }
 0x77b   :  { %v9305_v45 = vadd.f32 %v9285_v32, %v15953_v57  ;;  %v9288_v36 = vadd.f32 %v11097_v15, %v9287_v17  ;;  %v11550_v57 = vld [vmem:[%s16819_s5 + $0x14] ss:$8 sps:$4 sm:$0xff]  }
 0x77d   :  { %v9321_v2 = vmax.f32 %v9305_v45, 0.0  ;;  %v9306_v38 = vadd.f32 %v9288_v36, %v15957_v16  ;;  %v11548_v16 = vld [vmem:[%s16819_s5 + $0x10] ss:$8 sps:$4 sm:$0xff]  }
 0x77e   :  { %v9429_v42 = vpop.permute.xlu0 %9428 }
 0x77f   :  { %v9337_v0 = vmax.f32 %v9065_v49, %v9321_v2  ;;  %v9322_v27 = vmax.f32 %v9306_v38, 0.0 }
 0x781   :  { %v9338_v59 = vmax.f32 %v9066_v25, %v9322_v27  ;;  %v9345_v8 = vmax.f32 %v9335_v39, %v9337_v0 }
 0x783   :  { %v9346_v62 = vmax.f32 %v9336_v61, %v9338_v59  ;;  %v9424_v61 = vpop.permute.xlu1 %9423 }
 0x785   :  { %v9350_v22 = vpack.c.bf16 %v9346_v62, %v9345_v8 }
 0x787   :  { %11112 = vmatprep.subr.bf16.mxu0 %v9350_v22  ;;  %v9434_v59 = vpop.permute.xlu1 %9433 }
 0x788   :  { %11113 = vmatpush3.bf16.msra.mxu0 %v16558_v29  ;;  %v11551_v29 = vld [vmem:[%s16819_s5 + $0x20] ss:$8 sps:$4 sm:$0xff]  }
 0x78b   :  { %9586 = vmatmul.mubr.bf16.vlgmr.msra.gmra.mrb[64].mxu0 %v11545_v12  ;;  %v9439_v12 = vpop.permute.xlu0 %9438 }
 0x78c   :  { %9593 = vmatprep.mubr.bf16.mxu0 %v11550_v57 }
 0x793   :  { %9594 = vmatmul.mubr.bf16.gmra.mrb[68].mxu0 %v11548_v16 }
 0x794   :  { %9601 = vmatprep.mubr.bf16.mxu0 %v11553_v3 }
 0x79b   :  { %9602 = vmatmul.mubr.bf16.gmra.mrb[72].mxu0 %v11551_v29 }
 0x79c   :  { %9609 = vmatprep.mubr.bf16.mxu0 %v11556_v56 }
 0x7a3   :  { %9610 = vmatmul.mubr.bf16.gmra.mrb[76].mxu0 %v11554_v53 }
 0x7a4   :  { %9617 = vmatprep.mubr.bf16.mxu0 %v11559_v50 }
 0x7ab   :  { %9618 = vmatmul.mubr.bf16.gmra.mrb[80].mxu0 %v11557_v33 }
 0x7ac   :  { %9625 = vmatprep.mubr.bf16.mxu0 %v11562_v23  ;;  %v9444_v23 = vpop.permute.xlu1 %9443 }
 0x7b3   :  { %9626 = vmatmul.mubr.bf16.gmra.mrb[84].mxu0 %v11560_v5 }
 0x7b4   :  { %9633 = vmatprep.mubr.bf16.mxu0 %v11565_v41 }
 0x7bb   :  { %9634 = vmatmul.mubr.bf16.gmra.mrb[88].mxu0 %v11563_v51  ;;  %v9449_v51 = vpop.permute.xlu0 %9448 }
 0x7bc   :  { %9641 = vmatprep.mubr.bf16.mxu0 %v10575_v46 }
 0x7c3   :  { %9642 = vmatmul.mubr.bf16.gmra.mrb[92].mxu0 %v10574_v10 }
 0x85e   :  { %v11114_v52 = vpop.f32.mrb[64].mxu0 }
 0x85f   :  { %v11115_v14 = vpop.f32.mrb[65].mxu0 }
 0x860   :  { %v11116_v43 = vadd.f32 %v11115_v14, %v11114_v52  ;;  %v11117_v4 = vpop.f32.mrb[66].mxu0 }
 0x861   :  { %v11118_v55 = vpop.f32.mrb[67].mxu0 }
 0x862   :  { %v9588_v34 = vadd.f32 %v11116_v43, %v9404_v35  ;;  %v11119_v21 = vadd.f32 %v11118_v55, %v11117_v4  ;;  %v9454_v55 = vpop.permute.xlu1 %9453 }
 0x864   :  { %v9591_v63 = vadd.f32 %v11119_v21, %v9409_v1  ;;  %v9649_v58 = vmax.f32 %v9588_v34, 0.0 }
 0x866   :  { %v9650_v20 = vmax.f32 %v9591_v63, 0.0  ;;  %v11120_v30 = vpop.f32.mrb[68].mxu0  ;;  %v9459_v63 = vpop.permute.xlu0 %9458 }
 0x867   :  { %v11121_v54 = vpop.f32.mrb[69].mxu0 }
 0x868   :  { %v11122_v26 = vadd.f32 %v11121_v54, %v11120_v30  ;;  %v11123_v18 = vpop.f32.mrb[70].mxu0  ;;  %v9672_v6 = vpack.c.bf16 %v9650_v20, %v9649_v58 }
 0x869   :  { %v11124_v47 = vpop.f32.mrb[71].mxu0 }
 0x86a   :  { %v9596_v24 = vadd.f32 %v11122_v26, %v9414_v48  ;;  %v11125_v7 = vadd.f32 %v11124_v47, %v11123_v18  ;;  %11179 = vmatprep.subr.bf16.mxu1 %v9672_v6  ;;  %v9464_v47 = vpop.permute.xlu1 %9463 }
 0x86b   :  { %11180 = vmatpush3.bf16.msra.mxu1 %v9672_v6 }
 0x86c   :  { %v9599_v39 = vadd.f32 %v11125_v7, %v9419_v9  ;;  %v9651_v28 = vmax.f32 %v9596_v24, 0.0 }
 0x86e   :  { %v9652_v44 = vmax.f32 %v9599_v39, 0.0  ;;  %v11126_v31 = vpop.f32.mrb[72].mxu0  ;;  %v9469_v39 = vpop.permute.xlu0 %9468 }
 0x86f   :  { %v11127_v13 = vpop.f32.mrb[73].mxu0 }
 0x870   :  { %v11128_v17 = vadd.f32 %v11127_v13, %v11126_v31  ;;  %v11129_v60 = vpop.f32.mrb[74].mxu0  ;;  %v9673_v37 = vpack.c.bf16 %v9652_v44, %v9651_v28 }
 0x871   :  { %v11130_v32 = vpop.f32.mrb[75].mxu0 }
 0x872   :  { %v9604_v15 = vadd.f32 %v11128_v17, %v9424_v61  ;;  %v11131_v11 = vadd.f32 %v11130_v32, %v11129_v60  ;;  %11181 = vmatprep.subr.bf16.mxu1 %v9673_v37  ;;  %v9474_v32 = vpop.permute.xlu1 %9473 }
 0x873   :  { %11182 = vmatpush3.bf16.msra.mxu1 %v9673_v37 }
 0x874   :  { %v9607_v45 = vadd.f32 %v11131_v11, %v9429_v42  ;;  %v9653_v36 = vmax.f32 %v9604_v15, 0.0 }
 0x876   :  { %v9654_v49 = vmax.f32 %v9607_v45, 0.0  ;;  %v11132_v2 = vpop.f32.mrb[76].mxu0 }
 0x877   :  { %v11133_v38 = vpop.f32.mrb[77].mxu0 }
 0x878   :  { %v11134_v25 = vadd.f32 %v11133_v38, %v11132_v2  ;;  %v11135_v0 = vpop.f32.mrb[78].mxu0  ;;  %v9674_v27 = vpack.c.bf16 %v9654_v49, %v9653_v36  ;;  %v11569_v49 = vld [vmem:[%s16820_s7 + $0x8] sm:$0xff]   ;;  %v11570_v2 = vld [vmem:[%s16820_s7 + $0x10] sm:$0xff]   ;;  %v11571_v38 = vld [vmem:[%s16820_s7 + $0x18] sm:$0xff]  }
 0x879   :  { %v11136_v8 = vpop.f32.mrb[79].mxu0 }
 0x87a   :  { %v9612_v62 = vadd.f32 %v11134_v25, %v9434_v59  ;;  %v11137_v22 = vadd.f32 %v11136_v8, %v11135_v0  ;;  %11183 = vmatprep.subr.bf16.mxu1 %v9674_v27  ;;  %v11758_v25 = vmov 0.0   ;;  %v9691_v0 = vpop.permute.xlu0 %9690 }
 0x87b   :  { %11184 = vmatpush3.bf16.msra.mxu1 %v9674_v27  ;;  %v9696_v27 = vpop.permute.xlu1 %9695 }
 0x87c   :  { %v9615_v57 = vadd.f32 %v11137_v22, %v9439_v12  ;;  %v9655_v16 = vmax.f32 %v9612_v62, 0.0 }
 0x87e   :  { %v9656_v3 = vmax.f32 %v9615_v57, 0.0  ;;  %v11138_v29 = vpop.f32.mrb[80].mxu0  ;;  %v9701_v59 = vpop.permute.xlu0 %9700 }
 0x87f   :  { %v11139_v56 = vpop.f32.mrb[81].mxu0  ;;  %v9706_v8 = vpop.permute.xlu1 %9705 }
 0x880   :  { %v11140_v53 = vadd.f32 %v11139_v56, %v11138_v29  ;;  %v11141_v50 = vpop.f32.mrb[82].mxu0  ;;  %v9675_v33 = vpack.c.bf16 %v9656_v3, %v9655_v16 }
 0x881   :  { %v11142_v5 = vpop.f32.mrb[83].mxu0 }
 0x882   :  { %v9620_v41 = vadd.f32 %v11140_v53, %v9444_v23  ;;  %v11143_v40 = vadd.f32 %v11142_v5, %v11141_v50  ;;  %11185 = vmatprep.subr.bf16.mxu1 %v9675_v33  ;;  %v9711_v57 = vpop.permute.xlu0 %9710 }
 0x883   :  { %11186 = vmatpush3.bf16.msra.mxu1 %v9675_v33  ;;  %v9716_v53 = vpop.permute.xlu1 %9715 }
 0x884   :  { %v9623_v46 = vadd.f32 %v11143_v40, %v9449_v51  ;;  %v9657_v10 = vmax.f32 %v9620_v41, 0.0 }
 0x886   :  { %v9658_v19 = vmax.f32 %v9623_v46, 0.0  ;;  %v11144_v52 = vpop.f32.mrb[84].mxu0  ;;  %v9721_v51 = vpop.permute.xlu0 %9720 }
 0x887   :  { %v11145_v14 = vpop.f32.mrb[85].mxu0 }
 0x888   :  { %v11146_v43 = vadd.f32 %v11145_v14, %v11144_v52  ;;  %v11147_v4 = vpop.f32.mrb[86].mxu0  ;;  %v9676_v35 = vpack.c.bf16 %v9658_v19, %v9657_v10  ;;  %v9726_v14 = vpop.permute.xlu1 %9725 }
 0x889   :  { %v11148_v34 = vpop.f32.mrb[87].mxu0 }
 0x88a   :  { %v9628_v21 = vadd.f32 %v11146_v43, %v9454_v55  ;;  %v11149_v1 = vadd.f32 %v11148_v34, %v11147_v4  ;;  %11187 = vmatprep.subr.bf16.mxu1 %v9676_v35 }
 0x88b   :  { %11188 = vmatpush3.bf16.msra.mxu1 %v9676_v35 }
 0x88c   :  { %v9631_v58 = vadd.f32 %v11149_v1, %v9459_v63  ;;  %v9659_v20 = vmax.f32 %v9628_v21, 0.0 }
 0x88e   :  { %v9660_v30 = vmax.f32 %v9631_v58, 0.0  ;;  %v11150_v54 = vpop.f32.mrb[88].mxu0 }
 0x88f   :  { %v11151_v26 = vpop.f32.mrb[89].mxu0 }
 0x890   :  { %v11152_v18 = vadd.f32 %v11151_v26, %v11150_v54  ;;  %v11153_v6 = vpop.f32.mrb[90].mxu0  ;;  %v9677_v48 = vpack.c.bf16 %v9660_v30, %v9659_v20  ;;  %v11572_v54 = vld [vmem:[%s16821_s9] sm:$0x1f]   ;;  %v9849_v26 = vpop.permute.xlu0 %9848 }
 0x891   :  { %v11154_v24 = vpop.f32.mrb[91].mxu0 }
 0x892   :  { %v9636_v7 = vadd.f32 %v11152_v18, %v9464_v47  ;;  %v11155_v9 = vadd.f32 %v11154_v24, %v11153_v6  ;;  %11189 = vmatprep.subr.bf16.mxu1 %v9677_v48  ;;  %v9854_v47 = vpop.permute.xlu1 %9853 }
 0x893   :  { %11190 = vmatpush3.bf16.msra.mxu1 %v9677_v48 }
 0x894   :  { %v9639_v28 = vadd.f32 %v11155_v9, %v9469_v39  ;;  %v9661_v44 = vmax.f32 %v9636_v7, 0.0 }
 0x896   :  { %v9662_v31 = vmax.f32 %v9639_v28, 0.0  ;;  %v11156_v13 = vpop.f32.mrb[92].mxu0 }
 0x897   :  { %v11157_v17 = vpop.f32.mrb[93].mxu0 }
 0x898   :  { %v11158_v60 = vadd.f32 %v11157_v17, %v11156_v13  ;;  %v11159_v37 = vpop.f32.mrb[94].mxu0  ;;  %v9678_v61 = vpack.c.bf16 %v9662_v31, %v9661_v44 }
 0x899   :  { %v11160_v15 = vpop.f32.mrb[95].mxu0 }
 0x89a   :  { %v9644_v11 = vadd.f32 %v11158_v60, %v9474_v32  ;;  %11191 = vmatprep.subr.bf16.mxu1 %v9678_v61 }
 0x89b   :  { %11192 = vmatpush3.bf16.msra.mxu1 %v9678_v61 }
 0x89c   :  { %v9663_v42 = vmax.f32 %v9644_v11, 0.0 }
 0x89e   :  { %v9679_v45 = vpack.c.bf16 %v9663_v42, %v9663_v42 }
 0x8a0   :  { %11215 = vmatprep.subr.msk.bf16.mxu1 %vm9761_vm3, %v9679_v45  ;;  %v9763_v36 = vsel %vm9761_vm3, %v9679_v45, 0 }
 0x8a1   :  { %11194 = vmatpush3.bf16.msra.mxu1 %v9763_v36 }
 0x8a2   :  { %11203 = vmatprep.subr.bf16.mxu1 %v11758_v25 }
 0x8a4   :  { %11196 = vmatmul.mubr.msk.bf16.vlgmr.msra.gmra.mrb[64].mxu1 %vm9748_vm2, %v11569_v49 }
 0x8a5   :  { %11199 = vmatprep.mubr.msk.bf16.mxu1 %vm9748_vm2, %v11570_v2 }
 0x8ac   :  { %11200 = vmatmul.mubr.msk.bf16.gmra.mrb[68].mxu1 %vm9748_vm2, %v11571_v38 }
 0x8ad   :  { %11211 = vmatprep.mubr.msk.bf16.mxu1 %vm11759_vm4, %v11758_v25 }
 0x977   :  { %v11197_v62 = vpop.f32.mrb[64].mxu1 }
 0x978   :  { %v9808_v22 = vadd.f32 %v11197_v62, %v9701_v59  ;;  %v9799_v12 = vpop.f32.mrb[65].mxu1 }
 0x979   :  { %v9800_v16 = vadd.f32 %v9799_v12, %v9691_v0  ;;  %v11198_v3 = vpop.f32.mrb[66].mxu1 }
 0x97a   :  { %v9811_v29 = vadd.f32 %v11198_v3, %v9706_v8  ;;  %v9802_v56 = vpop.f32.mrb[67].mxu1  ;;  %v9832_v33 = vmax.f32 %v9808_v22, 0.0 }
 0x97b   :  { %v9803_v50 = vadd.f32 %v9802_v56, %v9696_v27  ;;  %v9830_v5 = vmax.f32 %v9800_v16, 0.0 }
 0x97c   :  { %v9833_v23 = vmax.f32 %v9811_v29, 0.0 }
 0x97d   :  { %v9831_v41 = vmax.f32 %v9803_v50, 0.0 }
 0x97e   :  { %v9841_v40 = vpack.c.bf16 %v9833_v23, %v9832_v33 }
 0x97f   :  { %v9840_v46 = vpack.c.bf16 %v9831_v41, %v9830_v5  ;;  %v11201_v10 = vpop.f32.mrb[68].mxu1 }
 0x980   :  { %v9824_v19 = vadd.f32 %v11201_v10, %v9721_v51  ;;  %v9815_v52 = vpop.f32.mrb[69].mxu1 }
 0x981   :  { %v9816_v43 = vadd.f32 %v9815_v52, %v9711_v57  ;;  %v11202_v4 = vpop.f32.mrb[70].mxu1  ;;  %11204 = vmatpush3.bf16.msra.mxu1 %v9840_v46 }
 0x982   :  { %v9827_v35 = vadd.f32 %v11202_v4, %v9726_v14  ;;  %v9818_v55 = vpop.f32.mrb[71].mxu1  ;;  %11205 = vmatprep.subr.bf16.mxu1 %v11758_v25  ;;  %v9836_v21 = vmax.f32 %v9824_v19, 0.0 }
 0x983   :  { %v9819_v34 = vadd.f32 %v9818_v55, %v9716_v53  ;;  %v9834_v63 = vmax.f32 %v9816_v43, 0.0 }
 0x984   :  { %v9837_v1 = vmax.f32 %v9827_v35, 0.0 }
 0x985   :  { %v9835_v58 = vmax.f32 %v9819_v34, 0.0  ;;  %11206 = vmatpush3.bf16.msra.mxu1 %v9841_v40 }
 0x986   :  { %v9843_v20 = vpack.c.bf16 %v9837_v1, %v9836_v21  ;;  %11207 = vmatprep.subr.bf16.mxu1 %v11758_v25 }
 0x987   :  { %v9842_v30 = vpack.c.bf16 %v9835_v58, %v9834_v63 }
 0x989   :  { %11208 = vmatpush3.bf16.msra.mxu1 %v9842_v30 }
 0x98a   :  { %11209 = vmatprep.subr.bf16.mxu1 %v11758_v25 }
 0x98d   :  { %11210 = vmatpush3.bf16.msra.mxu1 %v9843_v20 }
 0x990   :  { %11212 = vmatmul.mubr.msk.bf16.vlgmr.msra.gmra.mrb[72].mxu1 %vm9861_vm5, %v11572_v54 }
 0xa63   :  { %v9899_v18 = vpop.f32.mrb[72].mxu1 }
 0xa64   :  { %v9900_v6 = vadd.f32 %v9899_v18, %v9849_v26  ;;  %v11213_v48 = vpop.f32.mrb[73].mxu1 }
 0xa65   :  { %v9902_v24 = vpop.f32.mrb[74].mxu1 }
 0xa66   :  { %9906 = vst [vmem:[%s16822_s11] sm:$0xff] %v9900_v6  ;;  %v9903_v7 = vadd.f32 %v9902_v24, %v9854_v47  ;;  %v11214_v9 = vpop.f32.mrb[75].mxu1 }
 0xa68   :  { %9907 = vst [vmem:[%s16822_s11 + $0x8] sm:$0x3] %v9903_v7 }

</bundles_post_ra>
